<compile_context>
chip_gen: v5e
topology: v5e:2x2
jax: 0.10.0
libtpu: 0.0.40
codegen_flags: <defaults>
</compile_context>

<pallas_src>
import functools

import jax
import jax.numpy as jnp
from jax.experimental import pallas as pl
from jax.experimental.pallas import tpu as pltpu


# ----------------------------------------------------------------------------
# small helpers
# ----------------------------------------------------------------------------
def _pad_dim(a, axis, mult):
    size = a.shape[axis]
    rem = (-size) % mult
    if rem == 0:
        return a
    pads = [(0, 0)] * a.ndim
    pads[axis] = (0, rem)
    return jnp.pad(a, pads)


def _pick_hw_tile(hw, bytes_per_pos, mult=8, target=2 * 1024 * 1024):
    """Largest tile dividing hw that is a multiple of `mult` and fits `target`.

    Falls back to the full extent (full-dim blocks are always legal)."""
    if hw * bytes_per_pos <= target:
        return hw
    best = hw
    t = mult
    while t < hw:
        if hw % t == 0 and t * bytes_per_pos <= target:
            best = t
        t += mult
    return best


def _pick_pool_rows(H, W, C, target=2 * 1024 * 1024):
    """Output-row tile for the fused sa-apply + 2x2 max-pool kernel."""
    Hh, Wh = H // 2, W // 2
    cand = [r for r in range(1, Hh + 1)
            if Hh % r == 0 and ((r * Wh) % 8 == 0 or r == Hh)]
    under = [r for r in cand if r * W * 2 * C * 2 <= target]
    return max(under) if under else min(cand)


# ----------------------------------------------------------------------------
# Fused (bf16 matmul + per-column scale/bias + optional ReLU) kernel
# ----------------------------------------------------------------------------
def _mm_kernel(x_ref, w_ref, s_ref, b_ref, o_ref, acc_ref, *, relu):
    @pl.when(pl.program_id(2) == 0)
    def _():
        acc_ref[...] = jnp.zeros_like(acc_ref)

    acc_ref[...] += jnp.dot(x_ref[...], w_ref[...],
                            preferred_element_type=jnp.float32)

    @pl.when(pl.program_id(2) == pl.num_programs(2) - 1)
    def _():
        y = acc_ref[...] * s_ref[...] + b_ref[...]
        if relu:
            y = jnp.maximum(y, 0.0)
        o_ref[...] = y.astype(o_ref.dtype)


def fused_matmul(x, w, scale, bias, relu, out_dtype=jnp.bfloat16):
    """relu_opt((x @ w) * scale + bias).  bf16 MXU operands, f32 accumulator."""
    M, K = x.shape
    Kw, Nout = w.shape
    assert K == Kw
    xp = _pad_dim(_pad_dim(x.astype(jnp.bfloat16), 0, 8), 1, 128)
    wp = _pad_dim(_pad_dim(w.astype(jnp.bfloat16), 0, 128), 1, 128)
    sp = _pad_dim(scale.reshape(1, Nout).astype(jnp.float32), 1, 128)
    bp = _pad_dim(bias.reshape(1, Nout).astype(jnp.float32), 1, 128)
    Mp, Kp = xp.shape
    Np = wp.shape[1]

    tm = 256 if Mp % 256 == 0 else Mp
    tk = 512 if Kp % 512 == 0 else Kp
    tn = 512 if Np % 512 == 0 else Np

    kernel = functools.partial(_mm_kernel, relu=relu)
    out = pl.pallas_call(
        kernel,
        out_shape=jax.ShapeDtypeStruct((Mp, Np), out_dtype),
        grid_spec=pltpu.PrefetchScalarGridSpec(
            num_scalar_prefetch=0,
            grid=(Mp // tm, Np // tn, Kp // tk),
            in_specs=[pl.BlockSpec((tm, tk), lambda i, j, k: (i, k)),
                      pl.BlockSpec((tk, tn), lambda i, j, k: (k, j)),
                      pl.BlockSpec((1, tn), lambda i, j, k: (0, j)),
                      pl.BlockSpec((1, tn), lambda i, j, k: (0, j))],
            out_specs=pl.BlockSpec((tm, tn), lambda i, j, k: (i, j)),
            scratch_shapes=[pltpu.VMEM((tm, tn), jnp.float32)]),
        compiler_params=pltpu.CompilerParams(
            dimension_semantics=("parallel", "parallel", "arbitrary")),
    )(xp, wp, sp, bp)
    return out[:M, :Nout]


# ----------------------------------------------------------------------------
# 3x3 conv (pad 1) + folded BN + ReLU, as 9 shifted matmuls (no im2col in HBM)
# ----------------------------------------------------------------------------
def _conv3x3_kernel(x_ref, w_ref, s_ref, b_ref, o_ref, *, S, Wp, relu):
    # x_ref: (1, Hp*Wp, Cin) bf16 padded image, flattened with row width Wp.
    # Output position p = h*Wp + w (columns w >= W are garbage, dropped later);
    # tap (dy, dx) reads the contiguous window starting at dy*Wp + dx.
    acc = None
    for t in range(9):
        dy, dx = divmod(t, 3)
        xs = x_ref[0, pl.ds(dy * Wp + dx, S), :]
        part = jnp.dot(xs, w_ref[t], preferred_element_type=jnp.float32)
        acc = part if acc is None else acc + part
    y = acc * s_ref[...] + b_ref[...]
    if relu:
        y = jnp.maximum(y, 0.0)
    o_ref[0] = y.astype(o_ref.dtype)


def conv_bn_relu(x, p):
    """x: (N, H, W, Cin) bf16 -> (N, H, W, Cout) bf16."""
    N, H, W, Cin = x.shape
    w9 = p['w9']                              # (9, Cin_p, Cout) bf16, pre-laid-out
    cin_p = w9.shape[1]
    cpad = cin_p - Cin
    Cout = w9.shape[2]
    Hp, Wp = H + 3, W + 2                     # 1 top / 2 bottom rows keep tap reads in bounds
    S = H * Wp
    xp = jnp.pad(x, ((0, 0), (1, 2), (1, 1), (0, cpad))).reshape(N, Hp * Wp, cin_p)

    y = pl.pallas_call(
        functools.partial(_conv3x3_kernel, S=S, Wp=Wp, relu=True),
        out_shape=jax.ShapeDtypeStruct((N, S, Cout), jnp.bfloat16),
        grid=(N,),
        in_specs=[pl.BlockSpec((1, Hp * Wp, cin_p), lambda b: (b, 0, 0)),
                  pl.BlockSpec((9, cin_p, Cout), lambda b: (0, 0, 0)),
                  pl.BlockSpec((1, Cout), lambda b: (0, 0)),
                  pl.BlockSpec((1, Cout), lambda b: (0, 0))],
        out_specs=pl.BlockSpec((1, S, Cout), lambda b: (b, 0, 0)),
        compiler_params=pltpu.CompilerParams(dimension_semantics=("parallel",)),
    )(xp, w9, p['scale'], p['bias'])
    return y.reshape(N, H, Wp, Cout)[:, :, :W, :]


# ----------------------------------------------------------------------------
# CBAM kernels
# ----------------------------------------------------------------------------
def _channel_pool_kernel(x_ref, avg_ref, max_ref, sum_sc, max_sc, *, inv_hw):
    t = pl.program_id(1)
    x = x_ref[0].astype(jnp.float32)                     # (thw, C)

    @pl.when(t == 0)
    def _():
        sum_sc[...] = jnp.zeros_like(sum_sc)
        max_sc[...] = jnp.full(max_sc.shape, -jnp.inf, max_sc.dtype)

    sum_sc[...] = sum_sc[...] + jnp.sum(x, axis=0, keepdims=True)
    max_sc[...] = jnp.maximum(max_sc[...], jnp.max(x, axis=0, keepdims=True))

    @pl.when(t == pl.num_programs(1) - 1)
    def _():
        avg_ref[0] = sum_sc[...] * inv_hw
        max_ref[0] = max_sc[...]


def channel_pool(xf):
    """Spatial avg / max pooling per channel.  xf: (N, HW, C) bf16."""
    N, HW, C = xf.shape
    thw = _pick_hw_tile(HW, 2 * C, mult=8)
    nt = HW // thw
    return pl.pallas_call(
        functools.partial(_channel_pool_kernel, inv_hw=1.0 / HW),
        out_shape=(jax.ShapeDtypeStruct((N, 1, C), jnp.float32),
                   jax.ShapeDtypeStruct((N, 1, C), jnp.float32)),
        grid=(N, nt),
        in_specs=[pl.BlockSpec((1, thw, C), lambda b, t: (b, t, 0))],
        out_specs=(pl.BlockSpec((1, 1, C), lambda b, t: (b, 0, 0)),
                   pl.BlockSpec((1, 1, C), lambda b, t: (b, 0, 0))),
        scratch_shapes=[pltpu.VMEM((1, C), jnp.float32),
                        pltpu.VMEM((1, C), jnp.float32)],
        compiler_params=pltpu.CompilerParams(
            dimension_semantics=("parallel", "arbitrary")),
    )(xf)


def _ca_apply_kernel(x_ref, ca_ref, x1_ref, pool_ref):
    ca = jax.nn.sigmoid(ca_ref[0])                       # (1, C) f32, fused sigmoid
    x1 = x_ref[0].astype(jnp.float32) * ca               # (thw, C)
    x1_ref[0] = x1.astype(x1_ref.dtype)
    mean_c = jnp.mean(x1, axis=1, keepdims=True)         # (thw, 1)
    max_c = jnp.max(x1, axis=1, keepdims=True)           # (thw, 1)
    pool_ref[0] = jnp.concatenate([mean_c, max_c], axis=1)


def ca_apply(xf, ca_logit):
    """Apply sigmoid(channel attention) and emit channel-wise mean/max maps."""
    N, HW, C = xf.shape
    thw = _pick_hw_tile(HW, 4 * C + 8, mult=8)
    nt = HW // thw
    return pl.pallas_call(
        _ca_apply_kernel,
        out_shape=(jax.ShapeDtypeStruct((N, HW, C), jnp.bfloat16),
                   jax.ShapeDtypeStruct((N, HW, 2), jnp.float32)),
        grid=(N, nt),
        in_specs=[pl.BlockSpec((1, thw, C), lambda b, t: (b, t, 0)),
                  pl.BlockSpec((1, 1, C), lambda b, t: (b, 0, 0))],
        out_specs=(pl.BlockSpec((1, thw, C), lambda b, t: (b, t, 0)),
                   pl.BlockSpec((1, thw, 2), lambda b, t: (b, t, 0))),
        compiler_params=pltpu.CompilerParams(
            dimension_semantics=("parallel", "parallel")),
    )(xf, ca_logit)


def _spatial_attn_kernel(p_ref, w_ref, o_ref, *, S7, Wp7):
    # 7x7 conv over the 2-channel pooled map, as 49 shifted VPU MACs.
    acc = None
    for t in range(49):
        dy, dx = divmod(t, 7)
        v = p_ref[0, pl.ds(dy * Wp7 + dx, S7), :]        # (S7, 2) f32
        term = v * w_ref[t:t + 1, :]                      # (1, 2) broadcast
        acc = term if acc is None else acc + term
    logit = jnp.sum(acc, axis=1, keepdims=True)          # (S7, 1)
    o_ref[0] = jax.nn.sigmoid(logit)                      # fused sigmoid


def spatial_attn(pooled, w_sa, *, H, W):
    """pooled: (N, HW, 2) f32 -> sigmoid(7x7 conv) spatial map (N, HW, 1) f32."""
    N, HW, _ = pooled.shape
    Hp7, Wp7 = H + 7, W + 6                # extra bottom row keeps tap reads in bounds
    S7 = H * Wp7
    pm = jnp.pad(pooled.reshape(N, H, W, 2),
                 ((0, 0), (3, 4), (3, 3), (0, 0))).reshape(N, Hp7 * Wp7, 2)
    sa = pl.pallas_call(
        functools.partial(_spatial_attn_kernel, S7=S7, Wp7=Wp7),
        out_shape=jax.ShapeDtypeStruct((N, S7, 1), jnp.float32),
        grid=(N,),
        in_specs=[pl.BlockSpec((1, Hp7 * Wp7, 2), lambda b: (b, 0, 0)),
                  pl.BlockSpec((49, 2), lambda b: (0, 0))],
        out_specs=pl.BlockSpec((1, S7, 1), lambda b: (b, 0, 0)),
        compiler_params=pltpu.CompilerParams(dimension_semantics=("parallel",)),
    )(pm, w_sa)
    return sa.reshape(N, H, Wp7)[:, :, :W].reshape(N, H * W, 1)


def _sa_pool_kernel(x_ref, s_ref, o_ref, *, Wh, C, rh):
    # x_ref: (1, rh*W, 2C) bf16 — x1 reshaped so even/odd columns sit side by
    # side on the lane axis; s_ref: (1, rh*W, 2) f32 spatial-attention map.
    for r in range(rh):
        r0 = pl.ds(2 * r * Wh, Wh)           # even image row of this output row
        r1 = pl.ds((2 * r + 1) * Wh, Wh)     # odd image row
        x00 = x_ref[0, r0, :C].astype(jnp.float32) * s_ref[0, r0, 0:1]
        x01 = x_ref[0, r0, C:].astype(jnp.float32) * s_ref[0, r0, 1:2]
        x10 = x_ref[0, r1, :C].astype(jnp.float32) * s_ref[0, r1, 0:1]
        x11 = x_ref[0, r1, C:].astype(jnp.float32) * s_ref[0, r1, 1:2]
        m = jnp.maximum(jnp.maximum(x00, x01), jnp.maximum(x10, x11))
        o_ref[0, pl.ds(r * Wh, Wh), :] = m.astype(o_ref.dtype)


def sa_apply_maxpool(x1, sa, *, H, W):
    """(x1 * sa) followed by 2x2/2 max pool, fused.  Returns (N, H/2*W/2, C)."""
    N, HW, C = x1.shape
    Hh, Wh = H // 2, W // 2
    xr = x1.reshape(N, HW // 2, 2 * C)       # free reshape: even/odd cols -> lanes
    sr = sa.reshape(N, HW // 2, 2)
    rh = _pick_pool_rows(H, W, C)
    n_rt = Hh // rh
    return pl.pallas_call(
        functools.partial(_sa_pool_kernel, Wh=Wh, C=C, rh=rh),
        out_shape=jax.ShapeDtypeStruct((N, Hh * Wh, C), jnp.bfloat16),
        grid=(N, n_rt),
        in_specs=[pl.BlockSpec((1, rh * W, 2 * C), lambda b, i: (b, i, 0)),
                  pl.BlockSpec((1, rh * W, 2), lambda b, i: (b, i, 0))],
        out_specs=pl.BlockSpec((1, rh * Wh, C), lambda b, i: (b, i, 0)),
        compiler_params=pltpu.CompilerParams(
            dimension_semantics=("parallel", "parallel")),
    )(xr, sr)


def cbam_maxpool(x, p):
    """CBAM (channel + 7x7 spatial attention) followed by the stage 2x2 max pool."""
    N, H, W, C = x.shape
    HW = H * W
    xf = x.reshape(N, HW, C)

    # channel attention: shared MLP on spatial avg/max pools
    avg, mx = channel_pool(xf)                                     # (N, 1, C) f32
    z = jnp.concatenate([avg[:, 0, :], mx[:, 0, :]], axis=0)       # (2N, C)
    h = fused_matmul(z, p['fc1'], p['ones_h'], p['zeros_h'], relu=True)
    z2 = fused_matmul(h, p['fc2'], p['ones_c'], p['zeros_c'], relu=False,
                      out_dtype=jnp.float32)
    ca_logit = (z2[:N] + z2[N:]).reshape(N, 1, C)

    # sigmoid + apply + channel-wise mean/max maps (fused)
    x1, pooled = ca_apply(xf, ca_logit)

    # spatial attention (7x7 conv on the VPU, sigmoid fused)
    sa = spatial_attn(pooled, p['w_sa'], H=H, W=W)                  # (N, HW, 1)

    # apply spatial attention + 2x2 max pool (fused)
    y = sa_apply_maxpool(x1, sa, H=H, W=W)
    return y.reshape(N, H // 2, W // 2, C)


# ----------------------------------------------------------------------------
# Plain-JAX glue
# ----------------------------------------------------------------------------
def adaptive_avg_pool(x, out_hw=7):
    """PyTorch AdaptiveAvgPool2d semantics.  x: (N, H, W, C)."""
    N, H, W, C = x.shape
    if (H, W) == (out_hw, out_hw):
        return x
    rows = []
    for i in range(out_hw):
        h0, h1 = (i * H) // out_hw, -(-((i + 1) * H) // out_hw)
        cols = []
        for j in range(out_hw):
            w0, w1 = (j * W) // out_hw, -(-((j + 1) * W) // out_hw)
            cols.append(jnp.mean(x[:, h0:h1, w0:w1, :], axis=(1, 2)))
        rows.append(jnp.stack(cols, axis=1))
    return jnp.stack(rows, axis=1)


# ----------------------------------------------------------------------------
# Parameters (deterministic synthetic init) + one-time inference preparation
# ----------------------------------------------------------------------------
def _he(key, shape, fan_in):
    return jax.random.normal(key, shape, dtype=jnp.float32) * jnp.sqrt(2.0 / fan_in)


def _conv_bn_params(kit, cin, cout):
    return dict(
        w=_he(next(kit), (cout, cin, 3, 3), cin * 9),
        b=0.01 * jax.random.normal(next(kit), (cout,), dtype=jnp.float32),
        gamma=1.0 + 0.1 * jax.random.normal(next(kit), (cout,), dtype=jnp.float32),
        beta=0.1 * jax.random.normal(next(kit), (cout,), dtype=jnp.float32),
        mean=0.1 * jax.random.normal(next(kit), (cout,), dtype=jnp.float32),
        var=jax.random.uniform(next(kit), (cout,), minval=0.5, maxval=1.5,
                               dtype=jnp.float32),
    )


def _cbam_params(kit, c, r=2):
    return dict(
        fc1=_he(next(kit), (c // r, c), c),
        fc2=_he(next(kit), (c, c // r), c // r),
        conv_sa=_he(next(kit), (1, 2, 7, 7), 2 * 49),
    )


def make_params(key, in_channels, num_classes):
    kit = iter(jax.random.split(key, 256))
    stage_cfgs = [
        [(in_channels, 64), (64, 64)],
        [(64, 128), (128, 128)],
        [(128, 256)] + [(256, 256)] * 3,
        [(256, 512)] + [(512, 512)] * 3,
        [(512, 512)] * 4,
    ]
    stages = []
    for cfg in stage_cfgs:
        convs = [_conv_bn_params(kit, cin, cout) for cin, cout in cfg]
        stages.append(dict(convs=convs, cbam=_cbam_params(kit, cfg[-1][1], r=2)))
    return dict(
        stages=stages,
        fc1_w=_he(next(kit), (4096, 7 * 7 * 512), 7 * 7 * 512),
        fc1_b=0.01 * jax.random.normal(next(kit), (4096,), dtype=jnp.float32),
        fc2_w=_he(next(kit), (4096, 4096), 4096),
        fc2_b=0.01 * jax.random.normal(next(kit), (4096,), dtype=jnp.float32),
        fc3_w=_he(next(kit), (num_classes, 4096), 4096),
        fc3_b=0.01 * jax.random.normal(next(kit), (num_classes,), dtype=jnp.float32),
    )


def prepare_params(params, r=2):
    """One-time prep: fold BN, lay out + bf16-cast weights (hoisted out of forward)."""
    stages = []
    for stage in params['stages']:
        convs = []
        for cp in stage['convs']:
            cout, cin = cp['w'].shape[0], cp['w'].shape[1]
            w9 = jnp.transpose(cp['w'], (2, 3, 1, 0)).reshape(9, cin, cout)
            w9 = _pad_dim(w9, 1, 16)                      # pad Cin for the MXU
            s = cp['gamma'] / jnp.sqrt(cp['var'] + 1e-5)
            bias = (cp['b'] - cp['mean']) * s + cp['beta']
            convs.append(dict(w9=w9.astype(jnp.bfloat16),
                              scale=s.reshape(1, cout).astype(jnp.float32),
                              bias=bias.reshape(1, cout).astype(jnp.float32)))
        cb = stage['cbam']
        C = cb['fc2'].shape[0]
        cbam_p = dict(
            fc1=cb['fc1'].T.astype(jnp.bfloat16),         # (C, C//r)
            fc2=cb['fc2'].T.astype(jnp.bfloat16),         # (C//r, C)
            w_sa=jnp.transpose(cb['conv_sa'][0], (1, 2, 0))
                 .reshape(49, 2).astype(jnp.float32),
            ones_h=jnp.ones((C // r,), jnp.float32),
            zeros_h=jnp.zeros((C // r,), jnp.float32),
            ones_c=jnp.ones((C,), jnp.float32),
            zeros_c=jnp.zeros((C,), jnp.float32),
        )
        stages.append(dict(convs=convs, cbam=cbam_p))

    nc = params['fc3_w'].shape[0]
    return dict(
        stages=stages,
        fc1_w=params['fc1_w'].T.astype(jnp.bfloat16),
        fc1_b=params['fc1_b'].astype(jnp.float32),
        fc2_w=params['fc2_w'].T.astype(jnp.bfloat16),
        fc2_b=params['fc2_b'].astype(jnp.float32),
        fc3_w=params['fc3_w'].T.astype(jnp.bfloat16),
        fc3_b=params['fc3_b'].astype(jnp.float32),
        ones_4096=jnp.ones((4096,), jnp.float32),
        ones_nc=jnp.ones((nc,), jnp.float32),
    )


# ----------------------------------------------------------------------------
# Full forward pass
# ----------------------------------------------------------------------------
def vgg19_forward(prepped, x_nchw):
    x = jnp.transpose(x_nchw, (0, 2, 3, 1)).astype(jnp.bfloat16)    # NCHW -> NHWC

    for stage in prepped['stages']:
        for cp in stage['convs']:
            x = conv_bn_relu(x, cp)
        x = cbam_maxpool(x, stage['cbam'])

    x = adaptive_avg_pool(x, 7)                                     # (N, 7, 7, 512)
    N = x.shape[0]
    x = jnp.transpose(x, (0, 3, 1, 2)).reshape(N, -1)               # NCHW flatten order

    # Linear -> Dropout(identity, eval) -> ReLU
    x = fused_matmul(x, prepped['fc1_w'], prepped['ones_4096'], prepped['fc1_b'],
                     relu=True)
    x = fused_matmul(x, prepped['fc2_w'], prepped['ones_4096'], prepped['fc2_b'],
                     relu=True)
    x = fused_matmul(x, prepped['fc3_w'], prepped['ones_nc'], prepped['fc3_b'],
                     relu=False, out_dtype=jnp.float32)
    return x


if __name__ == "__main__":
    key = jax.random.PRNGKey(0)
    k_params, k_input = jax.random.split(key)

    in_channels, num_classes = 3, 10
    params = make_params(k_params, in_channels, num_classes)
    prepped = prepare_params(params)

    # Small input consistent with the module: 5 max-pools need spatial >= 32.
    x = jax.random.normal(k_input, (2, in_channels, 32, 32), dtype=jnp.float32)

    out = vgg19_forward(prepped, x)
    out = jax.block_until_ready(out)
    assert out.shape == (2, num_classes), out.shape
    assert bool(jnp.all(jnp.isfinite(out)))
    print("KERNEL_OK")
</pallas_src>

<mosaic_0001>
module attributes {stable_mosaic.version = 11 : i64} {
  func.func @_conv3x3_kernel(%arg0: i32, %arg1: memref<1x1190x16xbf16, #tpu.memory_space<vmem>>, %arg2: memref<9x16x64xbf16, #tpu.memory_space<vmem>>, %arg3: memref<1x64xf32, #tpu.memory_space<vmem>>, %arg4: memref<1x64xf32, #tpu.memory_space<vmem>>, %arg5: memref<1x1088x64xbf16, #tpu.memory_space<vmem>>) attributes {dimension_semantics = [#tpu.dimension_semantics<parallel>], iteration_bounds = array<i64: 2>, scalar_prefetch = 0 : i64, scratch_operands = 0 : i64, tpu.core_type = #tpu.core_type<tc>, window_params = [{transform_indices = @transform_0, window_bounds = array<i64: 1, 1190, 16>}, {pipeline_mode = #tpu.pipeline_mode<synchronous>, transform_indices = @transform_1, window_bounds = array<i64: 9, 16, 64>}, {pipeline_mode = #tpu.pipeline_mode<synchronous>, transform_indices = @transform_2, window_bounds = array<i64: 1, 64>}, {pipeline_mode = #tpu.pipeline_mode<synchronous>, transform_indices = @transform_3, window_bounds = array<i64: 1, 64>}, {transform_indices = @transform_4, window_bounds = array<i64: 1, 1088, 64>}]} {
    %c0 = arith.constant 0 : index
    %c0_0 = arith.constant 0 : index
    %c0_1 = arith.constant 0 : index
    %0 = vector.load %arg1[%c0, %c0_0, %c0_1] : memref<1x1190x16xbf16, #tpu.memory_space<vmem>>, vector<1x1088x16xbf16>
    %1 = vector.shape_cast %0 : vector<1x1088x16xbf16> to vector<1088x16xbf16>
    %c0_2 = arith.constant 0 : index
    %c0_3 = arith.constant 0 : index
    %c0_4 = arith.constant 0 : index
    %2 = vector.load %arg2[%c0_2, %c0_3, %c0_4] : memref<9x16x64xbf16, #tpu.memory_space<vmem>>, vector<1x16x64xbf16>
    %3 = vector.shape_cast %2 : vector<1x16x64xbf16> to vector<16x64xbf16>
    %cst = arith.constant dense<0.000000e+00> : vector<1088x64xf32>
    %4 = tpu.matmul %1, %3, %cst {dimension_numbers = #tpu.dot_dimension_numbers<[1], [0], [0], [1], [0, 0, 1, 1], [], []>} : vector<1088x16xbf16>, vector<16x64xbf16>, vector<1088x64xf32> -> vector<1088x64xf32>
    %c0_5 = arith.constant 0 : index
    %c1 = arith.constant 1 : index
    %c0_6 = arith.constant 0 : index
    %5 = vector.load %arg1[%c0_5, %c1, %c0_6] : memref<1x1190x16xbf16, #tpu.memory_space<vmem>>, vector<1x1088x16xbf16>
    %6 = vector.shape_cast %5 : vector<1x1088x16xbf16> to vector<1088x16xbf16>
    %c1_7 = arith.constant 1 : index
    %c0_8 = arith.constant 0 : index
    %c0_9 = arith.constant 0 : index
    %7 = vector.load %arg2[%c1_7, %c0_8, %c0_9] : memref<9x16x64xbf16, #tpu.memory_space<vmem>>, vector<1x16x64xbf16>
    %8 = vector.shape_cast %7 : vector<1x16x64xbf16> to vector<16x64xbf16>
    %cst_10 = arith.constant dense<0.000000e+00> : vector<1088x64xf32>
    %9 = tpu.matmul %6, %8, %cst_10 {dimension_numbers = #tpu.dot_dimension_numbers<[1], [0], [0], [1], [0, 0, 1, 1], [], []>} : vector<1088x16xbf16>, vector<16x64xbf16>, vector<1088x64xf32> -> vector<1088x64xf32>
    %10 = arith.addf %4, %9 : vector<1088x64xf32>
    %c0_11 = arith.constant 0 : index
    %c2 = arith.constant 2 : index
    %c0_12 = arith.constant 0 : index
    %11 = vector.load %arg1[%c0_11, %c2, %c0_12] : memref<1x1190x16xbf16, #tpu.memory_space<vmem>>, vector<1x1088x16xbf16>
    %12 = vector.shape_cast %11 : vector<1x1088x16xbf16> to vector<1088x16xbf16>
    %c2_13 = arith.constant 2 : index
    %c0_14 = arith.constant 0 : index
    %c0_15 = arith.constant 0 : index
    %13 = vector.load %arg2[%c2_13, %c0_14, %c0_15] : memref<9x16x64xbf16, #tpu.memory_space<vmem>>, vector<1x16x64xbf16>
    %14 = vector.shape_cast %13 : vector<1x16x64xbf16> to vector<16x64xbf16>
    %cst_16 = arith.constant dense<0.000000e+00> : vector<1088x64xf32>
    %15 = tpu.matmul %12, %14, %cst_16 {dimension_numbers = #tpu.dot_dimension_numbers<[1], [0], [0], [1], [0, 0, 1, 1], [], []>} : vector<1088x16xbf16>, vector<16x64xbf16>, vector<1088x64xf32> -> vector<1088x64xf32>
    %16 = arith.addf %10, %15 : vector<1088x64xf32>
    %c0_17 = arith.constant 0 : index
    %c34 = arith.constant 34 : index
    %c0_18 = arith.constant 0 : index
    %17 = vector.load %arg1[%c0_17, %c34, %c0_18] : memref<1x1190x16xbf16, #tpu.memory_space<vmem>>, vector<1x1088x16xbf16>
    %18 = vector.shape_cast %17 : vector<1x1088x16xbf16> to vector<1088x16xbf16>
    %c3 = arith.constant 3 : index
    %c0_19 = arith.constant 0 : index
    %c0_20 = arith.constant 0 : index
    %19 = vector.load %arg2[%c3, %c0_19, %c0_20] : memref<9x16x64xbf16, #tpu.memory_space<vmem>>, vector<1x16x64xbf16>
    %20 = vector.shape_cast %19 : vector<1x16x64xbf16> to vector<16x64xbf16>
    %cst_21 = arith.constant dense<0.000000e+00> : vector<1088x64xf32>
    %21 = tpu.matmul %18, %20, %cst_21 {dimension_numbers = #tpu.dot_dimension_numbers<[1], [0], [0], [1], [0, 0, 1, 1], [], []>} : vector<1088x16xbf16>, vector<16x64xbf16>, vector<1088x64xf32> -> vector<1088x64xf32>
    %22 = arith.addf %16, %21 : vector<1088x64xf32>
    %c0_22 = arith.constant 0 : index
    %c35 = arith.constant 35 : index
    %c0_23 = arith.constant 0 : index
    %23 = vector.load %arg1[%c0_22, %c35, %c0_23] : memref<1x1190x16xbf16, #tpu.memory_space<vmem>>, vector<1x1088x16xbf16>
    %24 = vector.shape_cast %23 : vector<1x1088x16xbf16> to vector<1088x16xbf16>
    %c4 = arith.constant 4 : index
    %c0_24 = arith.constant 0 : index
    %c0_25 = arith.constant 0 : index
    %25 = vector.load %arg2[%c4, %c0_24, %c0_25] : memref<9x16x64xbf16, #tpu.memory_space<vmem>>, vector<1x16x64xbf16>
    %26 = vector.shape_cast %25 : vector<1x16x64xbf16> to vector<16x64xbf16>
    %cst_26 = arith.constant dense<0.000000e+00> : vector<1088x64xf32>
    %27 = tpu.matmul %24, %26, %cst_26 {dimension_numbers = #tpu.dot_dimension_numbers<[1], [0], [0], [1], [0, 0, 1, 1], [], []>} : vector<1088x16xbf16>, vector<16x64xbf16>, vector<1088x64xf32> -> vector<1088x64xf32>
    %28 = arith.addf %22, %27 : vector<1088x64xf32>
    %c0_27 = arith.constant 0 : index
    %c36 = arith.constant 36 : index
    %c0_28 = arith.constant 0 : index
    %29 = vector.load %arg1[%c0_27, %c36, %c0_28] : memref<1x1190x16xbf16, #tpu.memory_space<vmem>>, vector<1x1088x16xbf16>
    %30 = vector.shape_cast %29 : vector<1x1088x16xbf16> to vector<1088x16xbf16>
    %c5 = arith.constant 5 : index
    %c0_29 = arith.constant 0 : index
    %c0_30 = arith.constant 0 : index
    %31 = vector.load %arg2[%c5, %c0_29, %c0_30] : memref<9x16x64xbf16, #tpu.memory_space<vmem>>, vector<1x16x64xbf16>
    %32 = vector.shape_cast %31 : vector<1x16x64xbf16> to vector<16x64xbf16>
    %cst_31 = arith.constant dense<0.000000e+00> : vector<1088x64xf32>
    %33 = tpu.matmul %30, %32, %cst_31 {dimension_numbers = #tpu.dot_dimension_numbers<[1], [0], [0], [1], [0, 0, 1, 1], [], []>} : vector<1088x16xbf16>, vector<16x64xbf16>, vector<1088x64xf32> -> vector<1088x64xf32>
    %34 = arith.addf %28, %33 : vector<1088x64xf32>
    %c0_32 = arith.constant 0 : index
    %c68 = arith.constant 68 : index
    %c0_33 = arith.constant 0 : index
    %35 = vector.load %arg1[%c0_32, %c68, %c0_33] : memref<1x1190x16xbf16, #tpu.memory_space<vmem>>, vector<1x1088x16xbf16>
    %36 = vector.shape_cast %35 : vector<1x1088x16xbf16> to vector<1088x16xbf16>
    %c6 = arith.constant 6 : index
    %c0_34 = arith.constant 0 : index
    %c0_35 = arith.constant 0 : index
    %37 = vector.load %arg2[%c6, %c0_34, %c0_35] : memref<9x16x64xbf16, #tpu.memory_space<vmem>>, vector<1x16x64xbf16>
    %38 = vector.shape_cast %37 : vector<1x16x64xbf16> to vector<16x64xbf16>
    %cst_36 = arith.constant dense<0.000000e+00> : vector<1088x64xf32>
    %39 = tpu.matmul %36, %38, %cst_36 {dimension_numbers = #tpu.dot_dimension_numbers<[1], [0], [0], [1], [0, 0, 1, 1], [], []>} : vector<1088x16xbf16>, vector<16x64xbf16>, vector<1088x64xf32> -> vector<1088x64xf32>
    %40 = arith.addf %34, %39 : vector<1088x64xf32>
    %c0_37 = arith.constant 0 : index
    %c69 = arith.constant 69 : index
    %c0_38 = arith.constant 0 : index
    %41 = vector.load %arg1[%c0_37, %c69, %c0_38] : memref<1x1190x16xbf16, #tpu.memory_space<vmem>>, vector<1x1088x16xbf16>
    %42 = vector.shape_cast %41 : vector<1x1088x16xbf16> to vector<1088x16xbf16>
    %c7 = arith.constant 7 : index
    %c0_39 = arith.constant 0 : index
    %c0_40 = arith.constant 0 : index
    %43 = vector.load %arg2[%c7, %c0_39, %c0_40] : memref<9x16x64xbf16, #tpu.memory_space<vmem>>, vector<1x16x64xbf16>
    %44 = vector.shape_cast %43 : vector<1x16x64xbf16> to vector<16x64xbf16>
    %cst_41 = arith.constant dense<0.000000e+00> : vector<1088x64xf32>
    %45 = tpu.matmul %42, %44, %cst_41 {dimension_numbers = #tpu.dot_dimension_numbers<[1], [0], [0], [1], [0, 0, 1, 1], [], []>} : vector<1088x16xbf16>, vector<16x64xbf16>, vector<1088x64xf32> -> vector<1088x64xf32>
    %46 = arith.addf %40, %45 : vector<1088x64xf32>
    %c0_42 = arith.constant 0 : index
    %c70 = arith.constant 70 : index
    %c0_43 = arith.constant 0 : index
    %47 = vector.load %arg1[%c0_42, %c70, %c0_43] : memref<1x1190x16xbf16, #tpu.memory_space<vmem>>, vector<1x1088x16xbf16>
    %48 = vector.shape_cast %47 : vector<1x1088x16xbf16> to vector<1088x16xbf16>
    %c8 = arith.constant 8 : index
    %c0_44 = arith.constant 0 : index
    %c0_45 = arith.constant 0 : index
    %49 = vector.load %arg2[%c8, %c0_44, %c0_45] : memref<9x16x64xbf16, #tpu.memory_space<vmem>>, vector<1x16x64xbf16>
    %50 = vector.shape_cast %49 : vector<1x16x64xbf16> to vector<16x64xbf16>
    %cst_46 = arith.constant dense<0.000000e+00> : vector<1088x64xf32>
    %51 = tpu.matmul %48, %50, %cst_46 {dimension_numbers = #tpu.dot_dimension_numbers<[1], [0], [0], [1], [0, 0, 1, 1], [], []>} : vector<1088x16xbf16>, vector<16x64xbf16>, vector<1088x64xf32> -> vector<1088x64xf32>
    %52 = arith.addf %46, %51 : vector<1088x64xf32>
    %c0_47 = arith.constant 0 : index
    %c0_48 = arith.constant 0 : index
    %53 = vector.load %arg3[%c0_47, %c0_48] : memref<1x64xf32, #tpu.memory_space<vmem>>, vector<1x64xf32>
    %54 = vector.broadcast %53 : vector<1x64xf32> to vector<1088x64xf32>
    %55 = arith.mulf %52, %54 : vector<1088x64xf32>
    %c0_49 = arith.constant 0 : index
    %c0_50 = arith.constant 0 : index
    %56 = vector.load %arg4[%c0_49, %c0_50] : memref<1x64xf32, #tpu.memory_space<vmem>>, vector<1x64xf32>
    %57 = vector.broadcast %56 : vector<1x64xf32> to vector<1088x64xf32>
    %58 = arith.addf %55, %57 : vector<1088x64xf32>
    %cst_51 = arith.constant 0.000000e+00 : f32
    %59 = vector.broadcast %cst_51 : f32 to vector<1088x64xf32>
    %60 = arith.maximumf %58, %59 : vector<1088x64xf32>
    %61 = arith.truncf %60 : vector<1088x64xf32> to vector<1088x64xbf16>
    %c0_52 = arith.constant 0 : index
    %c0_53 = arith.constant 0 : index
    %c0_54 = arith.constant 0 : index
    %62 = vector.load %arg5[%c0_52, %c0_53, %c0_54] : memref<1x1088x64xbf16, #tpu.memory_space<vmem>>, vector<1x1088x64xbf16>
    %63 = vector.shape_cast %62 : vector<1x1088x64xbf16> to vector<1088x64xbf16>
    %64 = vector.shape_cast %61 : vector<1088x64xbf16> to vector<1x1088x64xbf16>
    tpu.vector_store %arg5[%c0_52, %c0_53, %c0_54], %64 {strides = array<i32>} : memref<1x1088x64xbf16, #tpu.memory_space<vmem>>, vector<1x1088x64xbf16>,
    return
  }
  func.func @transform_0(%arg0: i32) -> (i32, i32, i32) {
    %c0_i32 = arith.constant 0 : i32
    %c0_i32_0 = arith.constant 0 : i32
    %c0_i32_1 = arith.constant 0 : i32
    return %arg0, %c0_i32, %c0_i32_0 : i32, i32, i32
  }
  func.func @transform_1(%arg0: i32) -> (i32, i32, i32) {
    %c0_i32 = arith.constant 0 : i32
    %c0_i32_0 = arith.constant 0 : i32
    %c0_i32_1 = arith.constant 0 : i32
    %c0_i32_2 = arith.constant 0 : i32
    return %c0_i32, %c0_i32_0, %c0_i32_1 : i32, i32, i32
  }
  func.func @transform_2(%arg0: i32) -> (i32, i32) {
    %c0_i32 = arith.constant 0 : i32
    %c0_i32_0 = arith.constant 0 : i32
    %c0_i32_1 = arith.constant 0 : i32
    return %c0_i32, %c0_i32_0 : i32, i32
  }
  func.func @transform_3(%arg0: i32) -> (i32, i32) {
    %c0_i32 = arith.constant 0 : i32
    %c0_i32_0 = arith.constant 0 : i32
    %c0_i32_1 = arith.constant 0 : i32
    return %c0_i32, %c0_i32_0 : i32, i32
  }
  func.func @transform_4(%arg0: i32) -> (i32, i32, i32) {
    %c0_i32 = arith.constant 0 : i32
    %c0_i32_0 = arith.constant 0 : i32
    %c0_i32_1 = arith.constant 0 : i32
    return %arg0, %c0_i32, %c0_i32_0 : i32, i32, i32
  }
}

</mosaic_0001>

<bundles_post_ra>
// kernel: tpu_custom_call.1
= control target key start
LH: loop header
LB: loop body
LE: loop exit
PB: predicated region body
PF: predicated region fallthrough
CT: control target
= control target key end

     0   :  { %s12711_s15 = smov 0   ;;  %s16154_s0 = inlined_call_operand.vmem [shape: bf16[2,1190,16], index: 0, kind: input, shape index: {}]   ;;  %s16155_s1 = inlined_call_operand.vmem [shape: bf16[9,16,64], index: 1, kind: input, shape index: {}]   ;;  %s16156_s2 = inlined_call_operand.vmem [shape: f32[1,64], index: 2, kind: input, shape index: {}]   ;;  %s16157_s3 = inlined_call_operand.vmem [shape: f32[1,64], index: 3, kind: input, shape index: {}]   ;;  %s16158_s4 = inlined_call_operand.vmem [shape: bf16[2,1088,64], index: 4, kind: output, shape index: {}]  }
   0x1 LB: > { %s10824_s16 = sadd.s32 4294967295, %s12684_s15   ;;  %p10828_p0 = scmp.ge.s32.totalorder %s12684_s15, 1  ;;  %s12684_s15 = sphi %s12711_s15, %s14_s15  }
   0x2   : > { %p162_p1 = scmp.lt.s32.totalorder %s12684_s15, 3 }
   0x4   : > { %p163_p2 = pnand %p10828_p0, %p162_p1 }
   0x6   : > { %166 = sbr.rel (%p163_p2) target bundleno = 2613 (0xa35), region = 36 }
   0xb   : > { %v12369_v0 = vld [vmem:[%s16155_s1 + $0x8] sm:$0xff]  ;;  %p188_p3 = scmp.lt.s32.totalorder %s10824_s16, 1  ;;  %v12370_v1 = vld [vmem:[%s16155_s1 + $0x10] sm:$0xff]  ;;  %v12438_v2 = vld [vmem:[%s16155_s1 + $0x18] sm:$0xff]  ;;  %vm684_vm0 = vsmask.f32 7424 }
   0xc   : > { %v12368_v3 = vld [vmem:[%s16155_s1] sm:$0xff]  ;;  %12518 = vmatpush.bf16.msra.mxu1 %v12369_v0  ;;  %12519 = vmatpush.bf16.msra.mxu2 %v12369_v0  ;;  %vm1239_vm1 = vcmask 130048   ;;  %vm2291_vm2 = vcmask 1046528   ;;  %vm4446_vm3 = vsmask.f32 6400  ;;  %vm5769_vm4 = vcmask 1045504  }
   0xd   : > { %v12439_v4 = vld [vmem:[%s16155_s1 + $0x20] sm:$0xff]  ;;  %s16575_s16 = smov (!%p188_p3, %s10824_s16), 1  ;;  %12520 = vmatpush.bf16.msra.mxu3 %v12369_v0  ;;  %1451 = vmatpush.bf16.msra.mxu0 %v12369_v0  ;;  %vm7924_vm5 = vsmask.f32 5376  ;;  %vm9247_vm6 = vcmask 1044480   ;;  %vm10632_vm7 = vcmask 519168  }
   0xe   : > { %s12521_s27 = smul.u32 596, %s16575_s16 }
   0xf   : > { %s12522_s19 = smul.u32 544, %s16575_s16 }
  0x10   : > { %2646 = vmatpush.bf16.msrb.mxu2 %v12370_v1  ;;  %1942 = vmatpush.bf16.msrb.mxu1 %v12368_v3  ;;  %s12740_s30 = scalar_lea.vmem %s16154_s0, %s12521_s27 }
  0x11   : > { %3961 = vmatpush.bf16.msrb.mxu3 %v12438_v2  ;;  %5284 = vmatpush.bf16.msrb.mxu0 %v12439_v4  ;;  %v12317_v5 = vld [vmem:[%s12740_s30 + $0x88] sm:$0xff]  ;;  %v12318_v6 = vld [vmem:[%s12740_s30 + $0x90] sm:$0xff]  ;;  %v12335_v8 = vld [vmem:[%s12740_s30 + $0x118] sm:$0xff]  ;;  %s14498_s21 = scalar_lea.vmem %s16158_s4, %s12522_s19 }
  0x12   : > { %v12334_v7 = vld [vmem:[%s12740_s30 + $0x110] sm:$0xff]  ;;  %v12351_v9 = vld [vmem:[%s12740_s30 + $0x198] sm:$0xff]  ;;  %v12352_v10 = vld [vmem:[%s12740_s30 + $0x1a0] sm:$0xff]  ;;  %v821_v11 = vshll.u32 %v12317_v5, 16  ;;  %v825_v12 = vshrl.u32 %v12317_v5, 16  ;;  %v829_v13 = vshll.u32 %v12318_v6, 16 }
  0x13   : > { %v957_v14 = vshll.u32 %v12334_v7, 16  ;;  %v12512_v15 = vld [vmem:[%s12740_s30] sm:$0xff]   ;;  %v12301_v16 = vld [vmem:[%s12740_s30 + $0x8] sm:$0xff]  ;;  %v961_v17 = vshrl.u32 %v12334_v7, 16  ;;  %v965_v18 = vshll.u32 %v12335_v8, 16  ;;  %v1093_v19 = vshll.u32 %v12351_v9, 16 }
  0x14   : > { %v1097_v20 = vshrl.u32 %v12351_v9, 16  ;;  %v12750_v21 = vrot.slane %v821_v11, 1  ;;  %v831_v22 = vrot.slane %v829_v13, 1  ;;  %v1101_v24 = vshll.u32 %v12352_v10, 16  ;;  %v12319_v40 = vld [vmem:[%s12740_s30 + $0x98] sm:$0xff]  ;;  %v12336_v41 = vld [vmem:[%s12740_s30 + $0x120] sm:$0xff] }
  0x15   : > { %v12752_v23 = vrot.slane %v957_v14, 1  ;;  %v967_v25 = vrot.slane %v965_v18, 1  ;;  %v12754_v26 = vrot.slane %v1093_v19, 1  ;;  %v686_v27 = vshrl.u32 %v12512_v15, 16  ;;  %v12353_v43 = vld [vmem:[%s12740_s30 + $0x1a8] sm:$0xff]  ;;  %v12302_v44 = vld [vmem:[%s12740_s30 + $0x10] sm:$0xff] }
  0x16   : > { %v688_v28 = vshll.u32 %v12512_v15, 16  ;;  %v827_v29 = vor.u32 %v825_v12, %v12750_v21  ;;  %v1103_v31 = vrot.slane %v1101_v24, 1  ;;  %v693_v32 = vshll.u32 %v12301_v16, 16  ;;  %v12320_v1 = vld [vmem:[%s12740_s30 + $0xa0] sm:$0xff]  ;;  %v12337_v2 = vld [vmem:[%s12740_s30 + $0x128] sm:$0xff]  ;;  %v12354_v3 = vld [vmem:[%s12740_s30 + $0x1b0] sm:$0xff] }
  0x17   : > { %v963_v30 = vor.u32 %v961_v17, %v12752_v23  ;;  %v1099_v33 = vor.u32 %v1097_v20, %v12754_v26  ;;  %v833_v45 = vshrl.u32 %v12318_v6, 16  ;;  %v837_v46 = vshll.u32 %v12319_v40, 16  ;;  %v12303_v4 = vld [vmem:[%s12740_s30 + $0x18] sm:$0xff] }
  0x18   : > { %v690_v34 = vrot.slane %v688_v28, 1  ;;  %v832_v35 = vsel %vm684_vm0, %v827_v29, %v831_v22  ;;  %v695_v37 = vrot.slane %v693_v32, 1  ;;  %v969_v47 = vshrl.u32 %v12335_v8, 16  ;;  %v12321_v28 = vld [vmem:[%s12740_s30 + $0xa8] sm:$0xff]  ;;  %v12338_v29 = vld [vmem:[%s12740_s30 + $0x130] sm:$0xff] }
  0x19   : > { %v968_v36 = vsel %vm684_vm0, %v963_v30, %v967_v25  ;;  %11122 = vmatmul.msk.bf16.vlgmr.msra.gmra.mxu1 %vm1239_vm1, %v832_v35  ;;  %v1104_v38 = vsel %vm684_vm0, %v1099_v33, %v1103_v31  ;;  %v973_v48 = vshll.u32 %v12336_v41, 16  ;;  %v1105_v49 = vshrl.u32 %v12352_v10, 16  ;;  %v12355_v30 = vld [vmem:[%s12740_s30 + $0x1b8] sm:$0xff] }
  0x1a   : > { %11139 = vmatmul.msk.bf16.vlgmr.msra.gmra.mxu2 %vm1239_vm1, %v968_v36  ;;  %v691_v39 = vor.u32 %v690_v34, %v686_v27  ;;  %11156 = vmatmul.msk.bf16.vlgmr.msra.gmra.mxu3 %vm1239_vm1, %v1104_v38  ;;  %v1109_v50 = vshll.u32 %v12353_v43, 16  ;;  %v697_v51 = vshrl.u32 %v12301_v16, 16  ;;  %v701_v52 = vshll.u32 %v12302_v44, 16 }
  0x1b   : > { %v835_v53 = vor.u32 %v833_v45, %v831_v22  ;;  %v839_v54 = vrot.slane %v837_v46, 1  ;;  %v971_v55 = vor.u32 %v969_v47, %v967_v25  ;;  %v975_v56 = vrot.slane %v973_v48, 1 }
  0x1c   : > { %v696_v42 = vsel %vm684_vm0, %v691_v39, %v695_v37  ;;  %v1107_v57 = vor.u32 %v1105_v49, %v1103_v31  ;;  %v1111_v58 = vrot.slane %v1109_v50, 1  ;;  %v699_v59 = vor.u32 %v697_v51, %v695_v37  ;;  %v12304_v31 = vld [vmem:[%s12740_s30 + $0x20] sm:$0xff] }
  0x1d   : > { %11105 = vmatmul.msk.bf16.vlgmr.msra.gmra.mxu0 %vm1239_vm1, %v696_v42  ;;  %v703_v60 = vrot.slane %v701_v52, 1  ;;  %v840_v61 = vsel %vm684_vm0, %v835_v53, %v839_v54  ;;  %v976_v62 = vsel %vm684_vm0, %v971_v55, %v975_v56  ;;  %v841_v5 = vshrl.u32 %v12319_v40, 16  ;;  %v12322_v52 = vld [vmem:[%s12740_s30 + $0xb0] sm:$0xff]  ;;  %v12339_v53 = vld [vmem:[%s12740_s30 + $0x138] sm:$0xff]  ;;  %v12305_v55 = vld [vmem:[%s12740_s30 + $0x28] sm:$0xff] }
  0x1e   : > { %v1112_v63 = vsel %vm684_vm0, %v1107_v57, %v1111_v58  ;;  %v845_v6 = vshll.u32 %v12320_v1, 16  ;;  %v977_v7 = vshrl.u32 %v12336_v41, 16  ;;  %v981_v8 = vshll.u32 %v12337_v2, 16 }
  0x1f   : > { %v704_v0 = vsel %vm684_vm0, %v699_v59, %v703_v60  ;;  %v1113_v9 = vshrl.u32 %v12353_v43, 16  ;;  %v1117_v10 = vshll.u32 %v12354_v3, 16  ;;  %v705_v11 = vshrl.u32 %v12302_v44, 16 }
  0x20   : > { %v709_v12 = vshll.u32 %v12303_v4, 16  ;;  %v843_v13 = vor.u32 %v841_v5, %v839_v54  ;;  %v847_v14 = vrot.slane %v845_v6, 1  ;;  %v979_v15 = vor.u32 %v977_v7, %v975_v56  ;;  %v12356_v54 = vld [vmem:[%s12740_s30 + $0x1c0] sm:$0xff] }
  0x21   : > { %v983_v16 = vrot.slane %v981_v8, 1  ;;  %v1115_v17 = vor.u32 %v1113_v9, %v1111_v58  ;;  %v1119_v18 = vrot.slane %v1117_v10, 1  ;;  %v707_v19 = vor.u32 %v705_v11, %v703_v60 }
  0x22   : > { %v711_v20 = vrot.slane %v709_v12, 1  ;;  %v848_v22 = vsel %vm684_vm0, %v843_v13, %v847_v14  ;;  %v849_v32 = vshrl.u32 %v12320_v1, 16  ;;  %v853_v33 = vshll.u32 %v12321_v28, 16  ;;  %v12323_v12 = vld [vmem:[%s12740_s30 + $0xb8] sm:$0xff]  ;;  %v12340_v13 = vld [vmem:[%s12740_s30 + $0x140] sm:$0xff] }
  0x23   : > { %v984_v24 = vsel %vm684_vm0, %v979_v15, %v983_v16  ;;  %v1120_v25 = vsel %vm684_vm0, %v1115_v17, %v1119_v18  ;;  %v985_v34 = vshrl.u32 %v12337_v2, 16  ;;  %v989_v35 = vshll.u32 %v12338_v29, 16  ;;  %v12306_v15 = vld [vmem:[%s12740_s30 + $0x30] sm:$0xff] }
  0x24   : > { %v712_v27 = vsel %vm684_vm0, %v707_v19, %v711_v20  ;;  %v1121_v36 = vshrl.u32 %v12354_v3, 16  ;;  %v1125_v37 = vshll.u32 %v12355_v30, 16  ;;  %v713_v38 = vshrl.u32 %v12303_v4, 16 }
  0x25   : > { %v717_v39 = vshll.u32 %v12304_v31, 16  ;;  %v851_v40 = vor.u32 %v849_v32, %v847_v14  ;;  %v855_v41 = vrot.slane %v853_v33, 1  ;;  %v987_v42 = vor.u32 %v985_v34, %v983_v16  ;;  %v12357_v14 = vld [vmem:[%s12740_s30 + $0x1c8] sm:$0xff] }
  0x26   : > { %v991_v43 = vrot.slane %v989_v35, 1  ;;  %v1123_v44 = vor.u32 %v1121_v36, %v1119_v18  ;;  %v1127_v45 = vrot.slane %v1125_v37, 1  ;;  %v715_v46 = vor.u32 %v713_v38, %v711_v20 }
  0x27   : > { %v719_v47 = vrot.slane %v717_v39, 1  ;;  %v856_v48 = vsel %vm684_vm0, %v851_v40, %v855_v41  ;;  %v857_v56 = vshrl.u32 %v12321_v28, 16  ;;  %v861_v57 = vshll.u32 %v12322_v52, 16  ;;  %v12324_v39 = vld [vmem:[%s12740_s30 + $0xc0] sm:$0xff]  ;;  %v12341_v40 = vld [vmem:[%s12740_s30 + $0x148] sm:$0xff] }
  0x28   : > { %v992_v49 = vsel %vm684_vm0, %v987_v42, %v991_v43  ;;  %v1128_v50 = vsel %vm684_vm0, %v1123_v44, %v1127_v45  ;;  %v993_v58 = vshrl.u32 %v12338_v29, 16  ;;  %v997_v59 = vshll.u32 %v12339_v53, 16  ;;  %v12307_v42 = vld [vmem:[%s12740_s30 + $0x38] sm:$0xff] }
  0x29   : > { %11123 = vmatmul.msk.bf16.gmra.mxu1 %vm1239_vm1, %v840_v61  ;;  %v720_v51 = vsel %vm684_vm0, %v715_v46, %v719_v47  ;;  %v1129_v60 = vshrl.u32 %v12355_v30, 16  ;;  %v1133_v61 = vshll.u32 %v12356_v54, 16  ;;  %v863_v1 = vrot.slane %v861_v57, 1 }
  0x2a   : > { %11140 = vmatmul.msk.bf16.gmra.mxu2 %vm1239_vm1, %v976_v62  ;;  %11157 = vmatmul.msk.bf16.gmra.mxu3 %vm1239_vm1, %v1112_v63  ;;  %v721_v62 = vshrl.u32 %v12304_v31, 16  ;;  %v725_v63 = vshll.u32 %v12305_v55, 16  ;;  %v995_v2 = vor.u32 %v993_v58, %v991_v43  ;;  %v999_v3 = vrot.slane %v997_v59, 1 }
  0x2b   : > { %v1131_v4 = vor.u32 %v1129_v60, %v1127_v45  ;;  %v1135_v5 = vrot.slane %v1133_v61, 1  ;;  %v865_v16 = vshrl.u32 %v12322_v52, 16  ;;  %v869_v17 = vshll.u32 %v12323_v12, 16 }
  0x2c   : > { %v723_v6 = vor.u32 %v721_v62, %v719_v47  ;;  %v727_v7 = vrot.slane %v725_v63, 1  ;;  %v1000_v9 = vsel %vm684_vm0, %v995_v2, %v999_v3  ;;  %v1001_v18 = vshrl.u32 %v12339_v53, 16  ;;  %v12325_v63 = vld [vmem:[%s12740_s30 + $0xc8] sm:$0xff]  ;;  %v12308_v2 = vld [vmem:[%s12740_s30 + $0x40] sm:$0xff] }
  0x2d   : > { %11106 = vmatmul.msk.bf16.gmra.mxu0 %vm1239_vm1, %v704_v0  ;;  %v859_v0 = vor.u32 %v857_v56, %v855_v41  ;;  %v1136_v10 = vsel %vm684_vm0, %v1131_v4, %v1135_v5  ;;  %v1005_v19 = vshll.u32 %v12340_v13, 16  ;;  %v1137_v20 = vshrl.u32 %v12356_v54, 16  ;;  %v12358_v41 = vld [vmem:[%s12740_s30 + $0x1d0] sm:$0xff] }
  0x2e   : > { %v728_v11 = vsel %vm684_vm0, %v723_v6, %v727_v7  ;;  %v871_v28 = vrot.slane %v869_v17, 1  ;;  %v1003_v29 = vor.u32 %v1001_v18, %v999_v3  ;;  %v873_v43 = vshrl.u32 %v12323_v12, 16 }
  0x2f   : > { %v864_v8 = vsel %vm684_vm0, %v859_v0, %v863_v1  ;;  %v1007_v30 = vrot.slane %v1005_v19, 1  ;;  %v1139_v31 = vor.u32 %v1137_v20, %v1135_v5  ;;  %v877_v44 = vshll.u32 %v12324_v39, 16  ;;  %v12342_v0 = vld [vmem:[%s12740_s30 + $0x150] sm:$0xff] }
  0x30   : > { %v1009_v45 = vshrl.u32 %v12340_v13, 16  ;;  %v1013_v46 = vshll.u32 %v12341_v40, 16  ;;  %v1145_v47 = vshrl.u32 %v12357_v14, 16  ;;  %v881_v3 = vshrl.u32 %v12324_v39, 16 }
  0x31   : > { %v1008_v36 = vsel %vm684_vm0, %v1003_v29, %v1007_v30  ;;  %v879_v52 = vrot.slane %v877_v44, 1  ;;  %v885_v4 = vshll.u32 %v12325_v63, 16  ;;  %v1017_v5 = vshrl.u32 %v12341_v40, 16  ;;  %v12309_v29 = vld [vmem:[%s12740_s30 + $0x48] sm:$0xff] }
  0x32   : > { %v1011_v53 = vor.u32 %v1009_v45, %v1007_v30  ;;  %v1015_v54 = vrot.slane %v1013_v46, 1  ;;  %v1021_v6 = vshll.u32 %v12342_v0, 16  ;;  %v889_v30 = vshrl.u32 %v12325_v63, 16 }
  0x33   : > { %v887_v12 = vrot.slane %v885_v4, 1 }
  0x34   : > { %v1016_v60 = vsel %vm684_vm0, %v1011_v53, %v1015_v54  ;;  %v1019_v13 = vor.u32 %v1017_v5, %v1015_v54  ;;  %v12344_v53 = vld [vmem:[%s12740_s30 + $0x160] sm:$0xff]  ;;  %v12361_v54 = vld [vmem:[%s12740_s30 + $0x1e8] sm:$0xff] }
  0x39   : > { %11124 = vmatmul.msk.bf16.gmra.mxu1 %vm1239_vm1, %v848_v22  ;;  %v1141_v22 = vshll.u32 %v12357_v14, 16  ;;  %v1023_v14 = vrot.slane %v1021_v6, 1 }
  0x3a   : > { %11141 = vmatmul.msk.bf16.gmra.mxu2 %vm1239_vm1, %v984_v24  ;;  %11158 = vmatmul.msk.bf16.gmra.mxu3 %vm1239_vm1, %v1120_v25  ;;  %v729_v24 = vshrl.u32 %v12305_v55, 16  ;;  %v733_v25 = vshll.u32 %v12306_v15, 16 }
  0x3b   : > { %v1143_v32 = vrot.slane %v1141_v22, 1  ;;  %v1024_v20 = vsel %vm684_vm0, %v1019_v13, %v1023_v14 }
  0x3c   : > { %v731_v33 = vor.u32 %v729_v24, %v727_v7  ;;  %v735_v34 = vrot.slane %v733_v25, 1  ;;  %v1153_v7 = vshrl.u32 %v12358_v41, 16  ;;  %v12326_v25 = vld [vmem:[%s12740_s30 + $0xd0] sm:$0xff] }
  0x3d   : > { %11107 = vmatmul.msk.bf16.gmra.mxu0 %vm1239_vm1, %v712_v27  ;;  %v867_v27 = vor.u32 %v865_v16, %v863_v1  ;;  %v1144_v37 = vsel %vm684_vm0, %v1139_v31, %v1143_v32  ;;  %v1147_v55 = vor.u32 %v1145_v47, %v1143_v32  ;;  %v12359_v1 = vld [vmem:[%s12740_s30 + $0x1d8] sm:$0xff]  ;;  %v893_v31 = vshll.u32 %v12326_v25, 16 }
  0x3e   : > { %v736_v38 = vsel %vm684_vm0, %v731_v33, %v735_v34  ;;  %v1025_v32 = vshrl.u32 %v12342_v0, 16  ;;  %v1173_v0 = vshll.u32 %v12361_v54, 16 }
  0x3f   : > { %v872_v35 = vsel %vm684_vm0, %v867_v27, %v871_v28  ;;  %v12343_v27 = vld [vmem:[%s12740_s30 + $0x158] sm:$0xff]  ;;  %v895_v39 = vrot.slane %v893_v31, 1 }
  0x40   : > { %v1029_v33 = vshll.u32 %v12343_v27, 16  ;;  %v1027_v40 = vor.u32 %v1025_v32, %v1023_v14  ;;  %v1041_v32 = vshrl.u32 %v12344_v53, 16 }
  0x49   : > { %11125 = vmatmul.msk.bf16.gmra.mxu1 %vm1239_vm1, %v856_v48  ;;  %v1149_v48 = vshll.u32 %v12358_v41, 16  ;;  %v1031_v41 = vrot.slane %v1029_v33, 1 }
  0x4a   : > { %11142 = vmatmul.msk.bf16.gmra.mxu2 %vm1239_vm1, %v992_v49  ;;  %11159 = vmatmul.msk.bf16.gmra.mxu3 %vm1239_vm1, %v1128_v50  ;;  %v737_v49 = vshrl.u32 %v12306_v15, 16  ;;  %v741_v50 = vshll.u32 %v12307_v42, 16 }
  0x4b   : > { %v1151_v56 = vrot.slane %v1149_v48, 1  ;;  %v1032_v48 = vsel %vm684_vm0, %v1027_v40, %v1031_v41 }
  0x4c   : > { %v739_v57 = vor.u32 %v737_v49, %v735_v34  ;;  %v743_v58 = vrot.slane %v741_v50, 1  ;;  %v1161_v34 = vshrl.u32 %v12359_v1, 16 }
  0x4d   : > { %11108 = vmatmul.msk.bf16.gmra.mxu0 %vm1239_vm1, %v720_v51  ;;  %v875_v51 = vor.u32 %v873_v43, %v871_v28  ;;  %v1152_v61 = vsel %vm684_vm0, %v1147_v55, %v1151_v56  ;;  %v1155_v15 = vor.u32 %v1153_v7, %v1151_v56  ;;  %v12360_v28 = vld [vmem:[%s12740_s30 + $0x1e0] sm:$0xff] }
  0x4e   : > { %v744_v62 = vsel %vm684_vm0, %v739_v57, %v743_v58  ;;  %v12310_v57 = vld [vmem:[%s12740_s30 + $0x50] sm:$0xff]  ;;  %v1169_v63 = vshrl.u32 %v12360_v28, 16 }
  0x4f   : > { %v880_v59 = vsel %vm684_vm0, %v875_v51, %v879_v52 }
  0x59   : > { %11126 = vmatmul.msk.bf16.gmra.mxu1 %vm1239_vm1, %v864_v8  ;;  %v1157_v8 = vshll.u32 %v12359_v1, 16 }
  0x5a   : > { %11143 = vmatmul.msk.bf16.gmra.mxu2 %vm1239_vm1, %v1000_v9  ;;  %11160 = vmatmul.msk.bf16.gmra.mxu3 %vm1239_vm1, %v1136_v10  ;;  %v745_v9 = vshrl.u32 %v12307_v42, 16  ;;  %v749_v10 = vshll.u32 %v12308_v2, 16 }
  0x5b   : > { %v1159_v16 = vrot.slane %v1157_v8, 1 }
  0x5c   : > { %v747_v17 = vor.u32 %v745_v9, %v743_v58  ;;  %v751_v18 = vrot.slane %v749_v10, 1  ;;  %v1175_v9 = vrot.slane %v1173_v0, 1 }
  0x5d   : > { %11109 = vmatmul.msk.bf16.gmra.mxu0 %vm1239_vm1, %v728_v11  ;;  %v883_v11 = vor.u32 %v881_v3, %v879_v52  ;;  %v1160_v22 = vsel %vm684_vm0, %v1155_v15, %v1159_v16  ;;  %v1163_v42 = vor.u32 %v1161_v34, %v1159_v16  ;;  %v12327_v52 = vld [vmem:[%s12740_s30 + $0xd8] sm:$0xff]  ;;  %v765_v3 = vshll.u32 %v12310_v57, 16 }
  0x5e   : > { %v752_v24 = vsel %vm684_vm0, %v747_v17, %v751_v18  ;;  %v1177_v34 = vshrl.u32 %v12361_v54, 16 }
  0x5f   : > { %v888_v19 = vsel %vm684_vm0, %v883_v11, %v887_v12  ;;  %v767_v13 = vrot.slane %v765_v3, 1 }
  0x69   : > { %11127 = vmatmul.msk.bf16.gmra.mxu1 %vm1239_vm1, %v872_v35  ;;  %v1165_v35 = vshll.u32 %v12360_v28, 16  ;;  %v12311_v28 = vld [vmem:[%s12740_s30 + $0x58] sm:$0xff] }
  0x6a   : > { %11144 = vmatmul.msk.bf16.gmra.mxu2 %vm1239_vm1, %v1008_v36  ;;  %11161 = vmatmul.msk.bf16.gmra.mxu3 %vm1239_vm1, %v1144_v37  ;;  %v753_v36 = vshrl.u32 %v12308_v2, 16  ;;  %v757_v37 = vshll.u32 %v12309_v29, 16  ;;  %v761_v2 = vshrl.u32 %v12309_v29, 16 }
  0x6b   : > { %v1167_v43 = vrot.slane %v1165_v35, 1 }
  0x6c   : > { %v755_v44 = vor.u32 %v753_v36, %v751_v18  ;;  %v759_v45 = vrot.slane %v757_v37, 1  ;;  %v769_v37 = vshrl.u32 %v12310_v57, 16 }
  0x6d   : > { %11110 = vmatmul.msk.bf16.gmra.mxu0 %vm1239_vm1, %v736_v38  ;;  %v891_v38 = vor.u32 %v889_v30, %v887_v12  ;;  %v1168_v49 = vsel %vm684_vm0, %v1163_v42, %v1167_v43  ;;  %v1171_v8 = vor.u32 %v1169_v63, %v1167_v43  ;;  %v905_v30 = vshrl.u32 %v12327_v52, 16 }
  0x6e   : > { %v760_v51 = vsel %vm684_vm0, %v755_v44, %v759_v45  ;;  %v763_v12 = vor.u32 %v761_v2, %v759_v45  ;;  %v1179_v43 = vor.u32 %v1177_v34, %v1175_v9  ;;  %v12931_v2 = vld [vmem:[%s12740_s30 + $0x60] sm:$0xff] }
  0x6f   : > { %v896_v47 = vsel %vm684_vm0, %v891_v38, %v895_v39  ;;  %v1176_v17 = vsel %vm684_vm0, %v1171_v8, %v1175_v9  ;;  %v773_v38 = vshll.u32 %v12311_v28, 16 }
  0x79   : > { %11128 = vmatmul.msk.bf16.gmra.mxu1 %vm1239_vm1, %v880_v59  ;;  %v897_v59 = vshrl.u32 %v12326_v25, 16 }
  0x7a   : > { %11145 = vmatmul.msk.bf16.gmra.mxu2 %vm1239_vm1, %v1016_v60  ;;  %11162 = vmatmul.msk.bf16.gmra.mxu3 %vm1239_vm1, %v1152_v61  ;;  %v901_v60 = vshll.u32 %v12327_v52, 16  ;;  %v1033_v61 = vshrl.u32 %v12343_v27, 16 }
  0x7b   : > { %v899_v4 = vor.u32 %v897_v59, %v895_v39 }
  0x7c   : > { %v903_v5 = vrot.slane %v901_v60, 1  ;;  %v1035_v6 = vor.u32 %v1033_v61, %v1031_v41  ;;  %v12329_v60 = vld [vmem:[%s12740_s30 + $0xe8] sm:$0xff]  ;;  %v12346_v61 = vld [vmem:[%s12740_s30 + $0x170] sm:$0xff] }
  0x7d   : > { %11111 = vmatmul.msk.bf16.gmra.mxu0 %vm1239_vm1, %v744_v62  ;;  %v1037_v62 = vshll.u32 %v12344_v53, 16 }
  0x7e   : > { %v904_v15 = vsel %vm684_vm0, %v899_v4, %v903_v5  ;;  %v907_v39 = vor.u32 %v905_v30, %v903_v5  ;;  %v917_v5 = vshll.u32 %v12329_v60, 16 }
  0x7f   : > { %v1039_v7 = vrot.slane %v1037_v62, 1  ;;  %v12363_v62 = vld [vmem:[%s12740_s30 + $0x1f8] sm:$0xff] }
  0x80   : > { %v1189_v9 = vshll.u32 %v12363_v62, 16 }
  0x81   : > { %v1040_v16 = vsel %vm684_vm0, %v1035_v6, %v1039_v7  ;;  %v1043_v41 = vor.u32 %v1041_v32, %v1039_v7  ;;  %v1053_v7 = vshll.u32 %v12346_v61, 16 }
  0x82   : > { %v1191_v32 = vrot.slane %v1189_v9, 1 }
  0x83   : > { %v1055_v30 = vrot.slane %v1053_v7, 1  ;;  %v785_v7 = vshrl.u32 %v12931_v2, 16 }
  0x89   : > { %11129 = vmatmul.msk.bf16.gmra.mxu1 %vm1239_vm1, %v888_v19  ;;  %v768_v19 = vsel %vm684_vm0, %v763_v12, %v767_v13 }
  0x8a   : > { %11146 = vmatmul.msk.bf16.gmra.mxu2 %vm1239_vm1, %v1024_v20  ;;  %11163 = vmatmul.msk.bf16.gmra.mxu3 %vm1239_vm1, %v1160_v22  ;;  %v12328_v20 = vld [vmem:[%s12740_s30 + $0xe0] sm:$0xff]  ;;  %v12345_v22 = vld [vmem:[%s12740_s30 + $0x168] sm:$0xff] }
  0x8b   : > { %v909_v31 = vshll.u32 %v12328_v20, 16  ;;  %v1045_v33 = vshll.u32 %v12345_v22, 16  ;;  %v913_v4 = vshrl.u32 %v12328_v20, 16  ;;  %v1049_v6 = vshrl.u32 %v12345_v22, 16 }
  0x8d   : > { %11112 = vmatmul.msk.bf16.gmra.mxu0 %vm1239_vm1, %v752_v24  ;;  %v12362_v24 = vld [vmem:[%s12740_s30 + $0x1f0] sm:$0xff]  ;;  %v911_v40 = vrot.slane %v909_v31, 1  ;;  %v1047_v42 = vrot.slane %v1045_v33, 1 }
  0x8e   : > { %v1181_v35 = vshll.u32 %v12362_v24, 16  ;;  %v1185_v8 = vshrl.u32 %v12362_v24, 16 }
  0x8f   : > { %v912_v52 = vsel %vm684_vm0, %v907_v39, %v911_v40  ;;  %v1048_v53 = vsel %vm684_vm0, %v1043_v41, %v1047_v42  ;;  %v12347_v41 = vld [vmem:[%s12740_s30 + $0x178] sm:$0xff] }
  0x90   : > { %v1183_v44 = vrot.slane %v1181_v35, 1 }
  0x92   : > { %v1184_v54 = vsel %vm684_vm0, %v1179_v43, %v1183_v44  ;;  %v1187_v31 = vor.u32 %v1185_v8, %v1183_v44 }
  0x96   : > { %v12855_v46 = vpop.f32.mrf.mxu1 }
  0x97   : > { %16163 = vst [vmem:[#allocation2_spill] sm:$0xff] %v12855_v46 }
  0x99   : > { %11130 = vmatmul.msk.bf16.gmra.mxu1 %vm1239_vm1, %v896_v47 }
  0x9a   : > { %v12860_v50 = vpop.f32.mrf.mxu0  ;;  %11147 = vmatmul.msk.bf16.gmra.mxu2 %vm1239_vm1, %v1032_v48  ;;  %11164 = vmatmul.msk.bf16.gmra.mxu3 %vm1239_vm1, %v1168_v49  ;;  %v771_v48 = vor.u32 %v769_v37, %v767_v13  ;;  %v775_v49 = vrot.slane %v773_v38, 1  ;;  %v777_v13 = vshrl.u32 %v12311_v28, 16  ;;  %v1192_v37 = vsel %vm684_vm0, %v1187_v31, %v1191_v32 }
  0x9c   : > { %v776_v59 = vsel %vm684_vm0, %v771_v48, %v775_v49  ;;  %v779_v24 = vor.u32 %v777_v13, %v775_v49  ;;  %v12962_v48 = vld [vmem:[%s12740_s30 + $0x68] sm:$0xff] }
  0x9d   : > { %11113 = vmatmul.msk.bf16.gmra.mxu0 %vm1239_vm1, %v760_v51  ;;  %v12870_v55 = vpop.f32.mrf.mxu2  ;;  %v12872_v56 = vpop.f32.mrf.mxu3  ;;  %v789_v8 = vshll.u32 %v12962_v48, 16 }
  0x9e   : > { %16164 = vst [vmem:[#allocation3_spill] sm:$0xff] %v12870_v55  ;;  %v12875_v58 = vpop.f32.mrf.mxu1 }
  0x9f   : > { %16165 = vst [vmem:[#allocation4_spill] sm:$0xff] %v12872_v56 }
  0xa0   : > { %16166 = vst [vmem:[#allocation5_spill] sm:$0xff] %v12875_v58 }
  0xa2   : > { %v12877_v1 = vpop.f32.mrf.mxu0 }
  0xa5   : > { %v12879_v10 = vpop.f32.mrf.mxu2  ;;  %v12881_v11 = vpop.f32.mrf.mxu3 }
  0xa6   : > { %16167 = vst [vmem:[#allocation6_spill] sm:$0xff] %v12879_v10  ;;  %v12883_v14 = vpop.f32.mrf.mxu1 }
  0xa7   : > { %16168 = vst [vmem:[#allocation7_spill] sm:$0xff] %v12881_v11 }
  0xa8   : > { %16169 = vst [vmem:[#allocation8_spill] sm:$0xff] %v12883_v14 }
  0xa9   : > { %11131 = vmatmul.msk.bf16.gmra.mxu1 %vm1239_vm1, %v904_v15  ;;  %v781_v15 = vshll.u32 %v12931_v2, 16 }
  0xaa   : > { %v12888_v18 = vpop.f32.mrf.mxu0  ;;  %11148 = vmatmul.msk.bf16.gmra.mxu2 %vm1239_vm1, %v1040_v16  ;;  %11165 = vmatmul.msk.bf16.gmra.mxu3 %vm1239_vm1, %v1176_v17  ;;  %v915_v16 = vor.u32 %v913_v4, %v911_v40  ;;  %v919_v17 = vrot.slane %v917_v5, 1  ;;  %v12330_v40 = vld [vmem:[%s12740_s30 + $0xf0] sm:$0xff]  ;;  %v1193_v4 = vshrl.u32 %v12363_v62, 16 }
  0xab   : > { %v783_v33 = vrot.slane %v781_v15, 1 }
  0xac   : > { %v920_v28 = vsel %vm684_vm0, %v915_v16, %v919_v17 }
  0xad   : > { %11114 = vmatmul.msk.bf16.gmra.mxu0 %vm1239_vm1, %v768_v19  ;;  %v12898_v25 = vpop.f32.mrf.mxu2  ;;  %v12900_v27 = vpop.f32.mrf.mxu3  ;;  %v1051_v19 = vor.u32 %v1049_v6, %v1047_v42  ;;  %v784_v39 = vsel %vm684_vm0, %v779_v24, %v783_v33  ;;  %v12364_v42 = vld [vmem:[%s12740_s30 + $0x200] sm:$0xff]  ;;  %v787_v62 = vor.u32 %v785_v7, %v783_v33  ;;  %v791_v24 = vrot.slane %v789_v8, 1  ;;  %v12331_v33 = vld [vmem:[%s12740_s30 + $0xf8] sm:$0xff] }
  0xae   : > { %16170 = vst [vmem:[#allocation9_spill] sm:$0xff] %v12898_v25  ;;  %v12903_v29 = vpop.f32.mrf.mxu1  ;;  %v1197_v5 = vshll.u32 %v12364_v42, 16  ;;  %v933_v7 = vshll.u32 %v12331_v33, 16  ;;  %v1065_v8 = vshrl.u32 %v12347_v41, 16 }
  0xaf   : > { %16171 = vst [vmem:[#allocation10_spill] sm:$0xff] %v12900_v27  ;;  %v1056_v35 = vsel %vm684_vm0, %v1051_v19, %v1055_v30  ;;  %v1195_v19 = vor.u32 %v1193_v4, %v1191_v32  ;;  %v792_v32 = vsel %vm684_vm0, %v787_v62, %v791_v24 }
  0xb0   : > { %16172 = vst [vmem:[#allocation11_spill] sm:$0xff] %v12903_v29  ;;  %v1199_v31 = vrot.slane %v1197_v5, 1  ;;  %v929_v5 = vshrl.u32 %v12330_v40, 16 }
  0xb2   : > { %v12905_v36 = vpop.f32.mrf.mxu0 }
  0xb5   : > { %v12907_v45 = vpop.f32.mrf.mxu2  ;;  %v12909_v47 = vpop.f32.mrf.mxu3 }
  0xb6   : > { %16173 = vst [vmem:[#allocation12_spill] sm:$0xff] %v12907_v45  ;;  %v12911_v51 = vpop.f32.mrf.mxu1 }
  0xb7   : > { %16174 = vst [vmem:[#allocation13_spill] sm:$0xff] %v12909_v47 }
  0xb8   : > { %16175 = vst [vmem:[#allocation14_spill] sm:$0xff] %v12911_v51 }
  0xb9   : > { %11132 = vmatmul.msk.bf16.gmra.mxu1 %vm1239_vm1, %v912_v52  ;;  %v921_v52 = vshrl.u32 %v12329_v60, 16 }
  0xba   : > { %v12916_v57 = vpop.f32.mrf.mxu0  ;;  %11149 = vmatmul.msk.bf16.gmra.mxu2 %vm1239_vm1, %v1048_v53  ;;  %11166 = vmatmul.msk.bf16.gmra.mxu3 %vm1239_vm1, %v1184_v54  ;;  %v925_v53 = vshll.u32 %v12330_v40, 16  ;;  %v1057_v54 = vshrl.u32 %v12346_v61, 16 }
  0xbb   : > { %v923_v9 = vor.u32 %v921_v52, %v919_v17  ;;  %v12365_v52 = vld [vmem:[%s12740_s30 + $0x208] sm:$0xff] }
  0xbc   : > { %v927_v13 = vrot.slane %v925_v53, 1  ;;  %v1059_v15 = vor.u32 %v1057_v54, %v1055_v30  ;;  %v1200_v30 = vsel %vm684_vm0, %v1195_v19, %v1199_v31  ;;  %v1205_v19 = vshll.u32 %v12365_v52, 16 }
  0xbd   : > { %11115 = vmatmul.msk.bf16.gmra.mxu0 %vm1239_vm1, %v776_v59  ;;  %v12926_v63 = vpop.f32.mrf.mxu2  ;;  %v12928_v0 = vpop.f32.mrf.mxu3  ;;  %v1061_v59 = vshll.u32 %v12347_v41, 16 }
  0xbe   : > { %16176 = vst [vmem:[#allocation15_spill] sm:$0xff] %v12926_v63  ;;  %v12933_v3 = vpop.f32.mrf.mxu1 }
  0xbf   : > { %16177 = vst [vmem:[#allocation16_spill] sm:$0xff] %v12928_v0  ;;  %v1063_v16 = vrot.slane %v1061_v59, 1  ;;  %v12994_v59 = vld [vmem:[%s12740_s30 + $0x70] sm:$0xff] }
  0xc0   : > { %16178 = vst [vmem:[#allocation17_spill] sm:$0xff] %v12933_v3 }
  0xc1   : > { %v1064_v17 = vsel %vm684_vm0, %v1059_v15, %v1063_v16  ;;  %v1201_v15 = vshrl.u32 %v12364_v42, 16 }
  0xc2   : > { %v12935_v12 = vpop.f32.mrf.mxu0 }
  0xc5   : > { %v12938_v20 = vpop.f32.mrf.mxu2  ;;  %v12940_v22 = vpop.f32.mrf.mxu3 }
  0xc6   : > { %16179 = vst [vmem:[#allocation18_spill] sm:$0xff] %v12938_v20  ;;  %v12942_v34 = vpop.f32.mrf.mxu1 }
  0xc7   : > { %16180 = vst [vmem:[#allocation19_spill] sm:$0xff] %v12940_v22  ;;  %v1207_v22 = vrot.slane %v1205_v19, 1 }
  0xc8   : > { %16181 = vst [vmem:[#allocation20_spill] sm:$0xff] %v12942_v34 }
  0xc9   : > { %11133 = vmatmul.msk.bf16.gmra.mxu1 %vm1239_vm1, %v920_v28 }
  0xca   : > { %v12947_v38 = vpop.f32.mrf.mxu0  ;;  %11150 = vmatmul.msk.bf16.gmra.mxu2 %vm1239_vm1, %v1056_v35  ;;  %11167 = vmatmul.msk.bf16.gmra.mxu3 %vm1239_vm1, %v1192_v37  ;;  %v928_v35 = vsel %vm684_vm0, %v923_v9, %v927_v13 }
  0xcd   : > { %11116 = vmatmul.msk.bf16.gmra.mxu0 %vm1239_vm1, %v784_v39  ;;  %v12957_v43 = vpop.f32.mrf.mxu2  ;;  %v12959_v44 = vpop.f32.mrf.mxu3  ;;  %v12348_v39 = vld [vmem:[%s12740_s30 + $0x180] sm:$0xff] }
  0xce   : > { %16182 = vst [vmem:[#allocation21_spill] sm:$0xff] %v12957_v43  ;;  %v12964_v49 = vpop.f32.mrf.mxu1  ;;  %v1069_v9 = vshll.u32 %v12348_v39, 16 }
  0xcf   : > { %16183 = vst [vmem:[#allocation22_spill] sm:$0xff] %v12959_v44  ;;  %v1203_v44 = vor.u32 %v1201_v15, %v1199_v31 }
  0xd0   : > { %16184 = vst [vmem:[#allocation23_spill] sm:$0xff] %v12964_v49 }
  0xd2   : > { %v12966_v6 = vpop.f32.mrf.mxu0 }
  0xd5   : > { %v12970_v60 = vpop.f32.mrf.mxu2  ;;  %v12972_v61 = vpop.f32.mrf.mxu3 }
  0xd6   : > { %16185 = vst [vmem:[#allocation24_spill] sm:$0xff] %v12970_v60  ;;  %v12974_v28 = vpop.f32.mrf.mxu1 }
  0xd7   : > { %16186 = vst [vmem:[#allocation25_spill] sm:$0xff] %v12972_v61  ;;  %v1067_v61 = vor.u32 %v1065_v8, %v1063_v16  ;;  %v1208_v16 = vsel %vm684_vm0, %v1203_v44, %v1207_v22  ;;  %v12366_v8 = vld [vmem:[%s12740_s30 + $0x210] sm:$0xff]  ;;  %v13026_v44 = vld [vmem:[%s12740_s30 + $0x78] sm:$0xff] }
  0xd8   : > { %16187 = vst [vmem:[#allocation26_spill] sm:$0xff] %v12974_v28 }
  0xd9   : > { %11134 = vmatmul.msk.bf16.gmra.mxu1 %vm1239_vm1, %v928_v35  ;;  %v793_v35 = vshrl.u32 %v12962_v48, 16 }
  0xda   : > { %v12979_v37 = vpop.f32.mrf.mxu0  ;;  %11151 = vmatmul.msk.bf16.gmra.mxu2 %vm1239_vm1, %v1064_v17  ;;  %11168 = vmatmul.msk.bf16.gmra.mxu3 %vm1239_vm1, %v1200_v30  ;;  %v797_v17 = vshll.u32 %v12994_v59, 16  ;;  %v931_v30 = vor.u32 %v929_v5, %v927_v13 }
  0xdb   : > { %v795_v42 = vor.u32 %v793_v35, %v791_v24  ;;  %v12332_v24 = vld [vmem:[%s12740_s30 + $0x100] sm:$0xff]  ;;  %v1073_v35 = vshrl.u32 %v12348_v39, 16 }
  0xdc   : > { %v799_v0 = vrot.slane %v797_v17, 1  ;;  %v941_v19 = vshll.u32 %v12332_v24, 16 }
  0xdd   : > { %11117 = vmatmul.msk.bf16.gmra.mxu0 %vm1239_vm1, %v792_v32  ;;  %v12989_v53 = vpop.f32.mrf.mxu2  ;;  %v12991_v54 = vpop.f32.mrf.mxu3  ;;  %v935_v32 = vrot.slane %v933_v7, 1  ;;  %v12349_v7 = vld [vmem:[%s12740_s30 + $0x188] sm:$0xff] }
  0xde   : > { %16188 = vst [vmem:[#allocation27_spill] sm:$0xff] %v12989_v53  ;;  %v12996_v4 = vpop.f32.mrf.mxu1  ;;  %v800_v31 = vsel %vm684_vm0, %v795_v42, %v799_v0  ;;  %v1077_v17 = vshll.u32 %v12349_v7, 16  ;;  %v1213_v42 = vshll.u32 %v12366_v8, 16  ;;  %v943_v11 = vrot.slane %v941_v19, 1  ;;  %v12350_v19 = vld [vmem:[%s12740_s30 + $0x190] sm:$0xff] }
  0xdf   : > { %16189 = vst [vmem:[#allocation28_spill] sm:$0xff] %v12991_v54  ;;  %v1071_v54 = vrot.slane %v1069_v9, 1  ;;  %v936_v27 = vsel %vm684_vm0, %v931_v30, %v935_v32  ;;  %v1209_v30 = vshrl.u32 %v12365_v52, 16 }
  0xe0   : > { %16190 = vst [vmem:[#allocation29_spill] sm:$0xff] %v12996_v4 }
  0xe1   : > { %v1072_v13 = vsel %vm684_vm0, %v1067_v61, %v1071_v54  ;;  %v1075_v56 = vor.u32 %v1073_v35, %v1071_v54  ;;  %v12367_v35 = vld [vmem:[%s12740_s30 + $0x218] sm:$0xff] }
  0xe2   : > { %v12998_v62 = vpop.f32.mrf.mxu0 }
  0xe5   : > { %v13002_v40 = vpop.f32.mrf.mxu2  ;;  %v13004_v41 = vpop.f32.mrf.mxu3 }
  0xe6   : > { %16191 = vst [vmem:[#allocation30_spill] sm:$0xff] %v13002_v40  ;;  %v13006_v47 = vpop.f32.mrf.mxu1  ;;  %v1215_v40 = vrot.slane %v1213_v42, 1  ;;  %v1081_v42 = vshrl.u32 %v12349_v7, 16 }
  0xe7   : > { %16192 = vst [vmem:[#allocation31_spill] sm:$0xff] %v13004_v41 }
  0xe8   : > { %16193 = vst [vmem:[#allocation32_spill] sm:$0xff] %v13006_v47 }
  0xe9   : > { %11135 = vmatmul.msk.bf16.gmra.mxu1 %vm1239_vm1, %v936_v27  ;;  %v937_v27 = vshrl.u32 %v12331_v33, 16 }
  0xea   : > { %v13011_v5 = vpop.f32.mrf.mxu0  ;;  %11152 = vmatmul.msk.bf16.gmra.mxu2 %vm1239_vm1, %v1072_v13  ;;  %11169 = vmatmul.msk.bf16.gmra.mxu3 %vm1239_vm1, %v1208_v16  ;;  %v801_v16 = vshrl.u32 %v12994_v59, 16 }
  0xeb   : > { %v939_v41 = vor.u32 %v937_v27, %v935_v32 }
  0xec   : > { %v803_v52 = vor.u32 %v801_v16, %v799_v0  ;;  %v12333_v0 = vld [vmem:[%s12740_s30 + $0x108] sm:$0xff]  ;;  %v1085_v16 = vshll.u32 %v12350_v19, 16 }
  0xed   : > { %11118 = vmatmul.msk.bf16.gmra.mxu0 %vm1239_vm1, %v800_v31  ;;  %v13021_v9 = vpop.f32.mrf.mxu2  ;;  %v13023_v61 = vpop.f32.mrf.mxu3  ;;  %v805_v31 = vshll.u32 %v13026_v44, 16  ;;  %v944_v43 = vsel %vm684_vm0, %v939_v41, %v943_v11 }
  0xee   : > { %16194 = vst [vmem:[#allocation33_spill] sm:$0xff] %v13021_v9  ;;  %v13028_v15 = vpop.f32.mrf.mxu1  ;;  %v1211_v9 = vor.u32 %v1209_v30, %v1207_v22  ;;  %v949_v30 = vshll.u32 %v12333_v0, 16 }
  0xef   : > { %16195 = vst [vmem:[#allocation34_spill] sm:$0xff] %v13023_v61  ;;  %v1079_v61 = vrot.slane %v1077_v17, 1  ;;  %v807_v53 = vrot.slane %v805_v31, 1  ;;  %v1217_v31 = vshrl.u32 %v12366_v8, 16 }
  0xf0   : > { %16196 = vst [vmem:[#allocation35_spill] sm:$0xff] %v13028_v15  ;;  %v1216_v54 = vsel %vm684_vm0, %v1211_v9, %v1215_v40  ;;  %v13058_v9 = vld [vmem:[%s12740_s30 + $0x80] sm:$0xff] }
  0xf1   : > { %v1080_v32 = vsel %vm684_vm0, %v1075_v56, %v1079_v61  ;;  %v808_v22 = vsel %vm684_vm0, %v803_v52, %v807_v53  ;;  %v1221_v52 = vshll.u32 %v12367_v35, 16  ;;  %v1219_v20 = vor.u32 %v1217_v31, %v1215_v40 }
  0xf2   : > { %v13030_v13 = vpop.f32.mrf.mxu0  ;;  %v1225_v31 = vshrl.u32 %v12367_v35, 16 }
  0xf3   : > { %v1223_v63 = vrot.slane %v1221_v52, 1 }
  0xf5   : > { %v13034_v33 = vpop.f32.mrf.mxu2  ;;  %v13036_v39 = vpop.f32.mrf.mxu3 }
  0xf6   : > { %16197 = vst [vmem:[#allocation36_spill] sm:$0xff] %v13034_v33  ;;  %v13038_v60 = vpop.f32.mrf.mxu1  ;;  %v1087_v33 = vrot.slane %v1085_v16, 1  ;;  %v1089_v16 = vshrl.u32 %v12350_v19, 16 }
  0xf7   : > { %16198 = vst [vmem:[#allocation37_spill] sm:$0xff] %v13036_v39 }
  0xf8   : > { %16199 = vst [vmem:[#allocation38_spill] sm:$0xff] %v13038_v60 }
  0xf9   : > { %11136 = vmatmul.msk.bf16.gmra.mxu1 %vm1239_vm1, %v944_v43  ;;  %v945_v43 = vshrl.u32 %v12332_v24, 16  ;;  %v337_v24 = vld [vmem:[%s12740_s30 + $0x220] sm:$0x1] }
  0xfa   : > { %v13043_v27 = vpop.f32.mrf.mxu0  ;;  %11153 = vmatmul.msk.bf16.gmra.mxu2 %vm1239_vm1, %v1080_v32  ;;  %11170 = vmatmul.msk.bf16.gmra.mxu3 %vm1239_vm1, %v1216_v54  ;;  %v809_v54 = vshrl.u32 %v13026_v44, 16 }
  0xfb   : > { %v947_v39 = vor.u32 %v945_v43, %v943_v11  ;;  %v1224_v11 = vsel %vm684_vm0, %v1219_v20, %v1223_v63  ;;  %v614_v43 = vunpack.c.l.b16 %v337_v24  ;;  %v12510_v24 = vld [vmem:[%s16155_s1 + $0x40] sm:$0xff] }
  0xfc   : > { %v811_v7 = vor.u32 %v809_v54, %v807_v53  ;;  %v12508_v53 = vld [vmem:[%s16155_s1 + $0x30] sm:$0xff]  ;;  %9602 = vmatpush.bf16.msra.mxu0 %v12510_v24 }
  0xfd   : > { %11119 = vmatmul.msk.bf16.gmra.mxu0 %vm1239_vm1, %v808_v22  ;;  %v13053_v41 = vpop.f32.mrf.mxu2  ;;  %v13055_v56 = vpop.f32.mrf.mxu3  ;;  %v813_v22 = vshll.u32 %v13058_v9, 16  ;;  %7439 = vmatpush.bf16.msra.mxu2 %v12508_v53 }
  0xfe   : > { %16200 = vst [vmem:[#allocation39_spill] sm:$0xff] %v13053_v41  ;;  %v13060_v17 = vpop.f32.mrf.mxu1  ;;  %v951_v41 = vrot.slane %v949_v30, 1 }
  0xff   : > { %16201 = vst [vmem:[#allocation40_spill] sm:$0xff] %v13055_v56  ;;  %v1083_v56 = vor.u32 %v1081_v42, %v1079_v61  ;;  %v815_v8 = vrot.slane %v813_v22, 1  ;;  %v953_v42 = vshrl.u32 %v12333_v0, 16  ;;  %v817_v22 = vshrl.u32 %v13058_v9, 16 }
 0x100   : > { %16202 = vst [vmem:[#allocation41_spill] sm:$0xff] %v13060_v17  ;;  %v952_v55 = vsel %vm684_vm0, %v947_v39, %v951_v41  ;;  %v13085_v39 = vpack.c.b16 %v614_v43, %v614_v43  ;;  %v3124_v43 = vld [vmem:[%s12740_s30 + $0x10] sm:$0xe]  ;;  %v1227_v0 = vor.u32 %v1225_v31, %v1223_v63 }
 0x101   : > { %v1088_v17 = vsel %vm684_vm0, %v1083_v56, %v1087_v33  ;;  %v816_v40 = vsel %vm684_vm0, %v811_v7, %v815_v8  ;;  %v955_v7 = vor.u32 %v953_v42, %v951_v41 }
 0x102   : > { %v13062_v32 = vpop.f32.mrf.mxu0  ;;  %16206 = vst [vmem:[#allocation45_spill] sm:$0xff] %v13085_v39  ;;  %v1229_v52 = vshll.u32 %v13085_v39, 16 }
 0x104   : > { %v1231_v19 = vrot.slane %v1229_v52, 1  ;;  %v12516_v52 = vld [vmem:[%s12740_s30] sm:$0xe] }
 0x105   : > { %v13066_v45 = vpop.f32.mrf.mxu2  ;;  %v13069_v25 = vpop.f32.mrf.mxu3 }
 0x106   : > { %16203 = vst [vmem:[#allocation42_spill] sm:$0xff] %v13066_v45  ;;  %v13071_v10 = vpop.f32.mrf.mxu1  ;;  %v1232_v41 = vsel %vm684_vm0, %v1227_v0, %v1231_v19 }
 0x107   : > { %16204 = vst [vmem:[#allocation43_spill] sm:$0xff] %v13069_v25 }
 0x108   : > { %16205 = vst [vmem:[#allocation44_spill] sm:$0xff] %v13071_v10 }
 0x109   : > { %11137 = vmatmul.msk.bf16.gmra.mxu1 %vm1239_vm1, %v952_v55  ;;  %v12509_v55 = vld [vmem:[%s16155_s1 + $0x38] sm:$0xff] }
 0x10a   : > { %v13076_v61 = vpop.f32.mrf.mxu0  ;;  %11154 = vmatmul.msk.bf16.gmra.mxu2 %vm1239_vm1, %v1088_v17  ;;  %11171 = vmatmul.msk.bf16.gmra.mxu3 %vm1239_vm1, %v1224_v11  ;;  %v12440_v17 = vld [vmem:[%s16155_s1 + $0x28] sm:$0xff]  ;;  %v1091_v11 = vor.u32 %v1089_v16, %v1087_v33  ;;  %v960_v33 = vsel %vm684_vm0, %v955_v7, %v12752_v23  ;;  %v12371_v16 = vld [vmem:[%s12740_s30 + $0x18] sm:$0xff]  ;;  %v12515_v23 = vld [vmem:[%s12740_s30] sm:$0xf0] }
 0x10b   : > { %8762 = vmatpush.bf16.msra.mxu3 %v12509_v55  ;;  %6124 = vmatpush.bf16.msra.mxu1 %v12440_v17  ;;  %v819_v55 = vor.u32 %v817_v22, %v815_v8  ;;  %v3401_v17 = vunpack.c.l.b16 %v3124_v43  ;;  %v4459_v43 = vshll.u32 %v12371_v16, 16  ;;  %v12517_v0 = vor.u32 %v12516_v52, %v12515_v23 }
 0x10c   : > { %v1096_v63 = vsel %vm684_vm0, %v1091_v11, %v12754_v26  ;;  %v4456_v11 = vshrl.u32 %v12371_v16, 16 }
 0x10d   : > { %11120 = vmatmul.msk.bf16.gmra.mxu0 %vm1239_vm1, %v816_v40  ;;  %v13088_v20 = vpop.f32.mrf.mxu2  ;;  %v13093_v56 = vpop.f32.mrf.mxu3  ;;  %v13109_v40 = vld [vmem:[%s12740_s30 + $0x14] sm:$0xf]  ;;  %v824_v8 = vsel %vm684_vm0, %v819_v55, %v12750_v21 }
 0x10e   : > { %16207 = vst [vmem:[#allocation46_spill] sm:$0xff] %v13088_v20  ;;  %v13098_v30 = vpop.f32.mrf.mxu1  ;;  %v16160_v39 = vunpack.c.l.b16 %v13109_v40 }
 0x10f   : > { %16208 = vst [vmem:[#allocation47_spill] sm:$0xff] %v13093_v56 }
 0x110   : > { %16209 = vst [vmem:[#allocation48_spill] sm:$0xff] %v13098_v30  ;;  %v3538_v31 = vpack.c.b16 %v16160_v39, %v3401_v17 }
 0x111   : > { %16210 = vst [vmem:[#allocation49_spill] sm:$0xff] %v13109_v40 }
 0x112   : > { %v13101_v54 = vpop.f32.mrf.mxu0  ;;  %v4448_v24 = vshrl.u32 %v3538_v31, 16  ;;  %v4451_v7 = vshll.u32 %v3538_v31, 16  ;;  %v3607_v40 = vrot.slane %v3538_v31, 1  ;;  %v12372_v31 = vld [vmem:[%s12740_s30 + $0x20] sm:$0xff] }
 0x114   : > { %v4450_v55 = vrot.slane %v4448_v24, 1  ;;  %v4453_v17 = vrot.slane %v4451_v7, 2 }
 0x115   : > { %v13111_v35 = vpop.f32.mrf.mxu2  ;;  %v13113_v53 = vpop.f32.mrf.mxu3 }
 0x116   : > { %16211 = vst [vmem:[#allocation50_spill] sm:$0xff] %v13111_v35  ;;  %v13116_v56 = vpop.f32.mrf.mxu1 }
 0x117   : > { %16212 = vst [vmem:[#allocation51_spill] sm:$0xff] %v13113_v53 }
 0x118   : > { %16213 = vst [vmem:[#allocation52_spill] sm:$0xff] %v13116_v56 }
 0x119   : > { %11138 = vmatmul.msk.bf16.gmra.mxu1 %vm1239_vm1, %v960_v33  ;;  %v4458_v33 = vrot.slane %v4456_v11, 1 }
 0x11a   : > { %v13123_v42 = vpop.f32.mrf.mxu0  ;;  %11155 = vmatmul.msk.bf16.gmra.mxu2 %vm1239_vm1, %v1096_v63  ;;  %11172 = vmatmul.msk.bf16.gmra.mxu3 %vm1239_vm1, %v1232_v41  ;;  %v4461_v63 = vrot.slane %v4459_v43, 2  ;;  %v2292_v41 = vrot.slane %v12517_v0, 1  ;;  %v12534_v43 = vld [vmem:[%s12740_s30] sm:$0xff]  }
 0x11c   : > { %v4462_v23 = vor.u32 %v4461_v63, %v4458_v33 }
 0x11d   : > { %11121 = vmatmul.msk.bf16.gmra.mxu0 %vm1239_vm1, %v824_v8  ;;  %v13136_v26 = vpop.f32.mrf.mxu2  ;;  %v13138_v22 = vpop.f32.mrf.mxu3  ;;  %v12533_v8 = vld [vmem:[%s12740_s30 + $0x8] sm:$0xff] }
 0x11e   : > { %16214 = vst [vmem:[#allocation53_spill] sm:$0xff] %v13136_v26  ;;  %v13140_v21 = vpop.f32.mrf.mxu1  ;;  %v2293_v39 = vrot.slane %v12533_v8, 1  ;;  %v4454_v26 = vor.u32 %v4453_v17, %v4450_v55  ;;  %v4468_v17 = vshll.u32 %v12372_v31, 16 }
 0x11f   : > { %16215 = vst [vmem:[#allocation54_spill] sm:$0xff] %v13138_v22  ;;  %v3608_v22 = vrot.slane %v12371_v16, 1 }
 0x120   : > { %16216 = vst [vmem:[#allocation55_spill] sm:$0xff] %v13140_v21  ;;  %v2294_v24 = vsel %vm2291_vm2, %v2292_v41, %v2293_v39  ;;  %v4463_v16 = vsel %vm4446_vm3, %v4454_v26, %v4462_v23 }
 0x121   : > { %v3609_v7 = vsel %vm2291_vm2, %v3607_v40, %v3608_v22  ;;  %v4465_v40 = vshrl.u32 %v12372_v31, 16 }
 0x122   : > { %v13142_v19 = vpop.f32.mrf.mxu0 }
 0x123   : > { %v4467_v41 = vrot.slane %v4465_v40, 1  ;;  %v12373_v40 = vld [vmem:[%s12740_s30 + $0x28] sm:$0xff] }
 0x124   : > { %v3612_v45 = vrot.slane %v12373_v40, 1 }
 0x125   : > { %v13145_v53 = vpop.f32.mrf.mxu2  ;;  %v13147_v25 = vpop.f32.mrf.mxu3 }
 0x126   : > { %16217 = vst [vmem:[#allocation56_spill] sm:$0xff] %v13145_v53  ;;  %v13149_v52 = vpop.f32.mrf.mxu1 }
 0x127   : > { %16218 = vst [vmem:[#allocation57_spill] sm:$0xff] %v13147_v25  ;;  %v3610_v25 = vrot.slane %v12372_v31, 1 }
 0x128   : > { %16219 = vst [vmem:[#allocation58_spill] sm:$0xff] %v13149_v52 }
 0x129   : > { %11177 = vmatmul.msk.bf16.vlgmr.msrb.gmra.mxu1 %vm1239_vm1, %v12534_v43  ;;  %v12535_v43 = vld [vmem:[%s12740_s30 + $0x10] sm:$0xff]  ;;  %v3611_v35 = vsel %vm2291_vm2, %v3608_v22, %v3610_v25  ;;  %v4477_v22 = vshll.u32 %v12373_v40, 16 }
 0x12a   : > { %v13153_v11 = vpop.f32.mrf.mxu0  ;;  %11251 = vmatmul.msk.bf16.vlgmr.msrb.gmra.mxu2 %vm1239_vm1, %v2294_v24  ;;  %11593 = vmatmul.msk.bf16.vlgmr.msrb.gmra.mxu3 %vm1239_vm1, %v3609_v7  ;;  %v4470_v24 = vrot.slane %v4468_v17, 2  ;;  %v2295_v26 = vrot.slane %v12535_v43, 1 }
 0x12d   : > { %11667 = vmatmul.msk.bf16.vlgmr.msrb.gmra.mxu0 %vm1239_vm1, %v4463_v16  ;;  %v13162_v0 = vpop.f32.mrf.mxu2  ;;  %v13164_v55 = vpop.f32.mrf.mxu3  ;;  %v4471_v16 = vor.u32 %v4470_v24, %v4467_v41 }
 0x12e   : > { %16220 = vst [vmem:[#allocation59_spill] sm:$0xff] %v13162_v0  ;;  %v13166_v33 = vpop.f32.mrf.mxu1 }
 0x12f   : > { %16221 = vst [vmem:[#allocation60_spill] sm:$0xff] %v13164_v55  ;;  %v2296_v55 = vsel %vm2291_vm2, %v2293_v39, %v2295_v26  ;;  %v4472_v31 = vsel %vm4446_vm3, %v4462_v23, %v4471_v16  ;;  %v4474_v39 = vshrl.u32 %v12373_v40, 16 }
 0x130   : > { %16222 = vst [vmem:[#allocation61_spill] sm:$0xff] %v13166_v33  ;;  %v3613_v33 = vsel %vm2291_vm2, %v3610_v25, %v3612_v45 }
 0x132   : > { %v13168_v63 = vpop.f32.mrf.mxu0 }
 0x135   : > { %v13171_v53 = vpop.f32.mrf.mxu2  ;;  %v13173_v7 = vpop.f32.mrf.mxu3 }
 0x136   : > { %16223 = vst [vmem:[#allocation62_spill] sm:$0xff] %v13171_v53  ;;  %v13175_v0 = vpop.f32.mrf.mxu1  ;;  %v12536_v53 = vld [vmem:[%s12740_s30 + $0x18] sm:$0xff] }
 0x137   : > { %16224 = vst [vmem:[#allocation63_spill] sm:$0xff] %v13173_v7  ;;  %v2297_v23 = vrot.slane %v12536_v53, 1 }
 0x138   : > { %16225 = vst [vmem:[#allocation64_spill] sm:$0xff] %v13175_v0 }
 0x139   : > { %11178 = vmatmul.msk.bf16.gmra.mxu1 %vm1239_vm1, %v12533_v8  ;;  %v4476_v8 = vrot.slane %v4474_v39, 1  ;;  %v12374_v39 = vld [vmem:[%s12740_s30 + $0x30] sm:$0xff] }
 0x13a   : > { %v13179_v20 = vpop.f32.mrf.mxu0  ;;  %11252 = vmatmul.msk.bf16.gmra.mxu2 %vm1239_vm1, %v2296_v55  ;;  %11594 = vmatmul.msk.bf16.gmra.mxu3 %vm1239_vm1, %v3611_v35  ;;  %v4479_v55 = vrot.slane %v4477_v22, 2  ;;  %v4486_v25 = vshll.u32 %v12374_v39, 16 }
 0x13d   : > { %11668 = vmatmul.msk.bf16.gmra.mxu0 %vm1239_vm1, %v4472_v31  ;;  %v13187_v17 = vpop.f32.mrf.mxu2  ;;  %v13189_v41 = vpop.f32.mrf.mxu3  ;;  %v4480_v31 = vor.u32 %v4479_v55, %v4476_v8 }
 0x13e   : > { %16226 = vst [vmem:[#allocation65_spill] sm:$0xff] %v13187_v17  ;;  %v13191_v24 = vpop.f32.mrf.mxu1 }
 0x13f   : > { %16227 = vst [vmem:[#allocation66_spill] sm:$0xff] %v13189_v41  ;;  %v2298_v41 = vsel %vm2291_vm2, %v2295_v26, %v2297_v23  ;;  %v4481_v40 = vsel %vm4446_vm3, %v4471_v16, %v4480_v31  ;;  %v4483_v26 = vshrl.u32 %v12374_v39, 16 }
 0x140   : > { %16228 = vst [vmem:[#allocation67_spill] sm:$0xff] %v13191_v24 }
 0x142   : > { %v13193_v7 = vpop.f32.mrf.mxu0 }
 0x145   : > { %v13196_v0 = vpop.f32.mrf.mxu2  ;;  %v13198_v35 = vpop.f32.mrf.mxu3 }
 0x146   : > { %16229 = vst [vmem:[#allocation68_spill] sm:$0xff] %v13196_v0  ;;  %v13200_v17 = vpop.f32.mrf.mxu1  ;;  %v12537_v0 = vld [vmem:[%s12740_s30 + $0x20] sm:$0xff] }
 0x147   : > { %16230 = vst [vmem:[#allocation69_spill] sm:$0xff] %v13198_v35  ;;  %v2299_v16 = vrot.slane %v12537_v0, 1 }
 0x148   : > { %16231 = vst [vmem:[#allocation70_spill] sm:$0xff] %v13200_v17  ;;  %v3614_v17 = vrot.slane %v12374_v39, 1 }
 0x149   : > { %11179 = vmatmul.msk.bf16.gmra.mxu1 %vm1239_vm1, %v12535_v43  ;;  %v4485_v43 = vrot.slane %v4483_v26, 1  ;;  %v12375_v26 = vld [vmem:[%s12740_s30 + $0x38] sm:$0xff] }
 0x14a   : > { %v13204_v24 = vpop.f32.mrf.mxu0  ;;  %11253 = vmatmul.msk.bf16.gmra.mxu2 %vm1239_vm1, %v2298_v41  ;;  %11595 = vmatmul.msk.bf16.gmra.mxu3 %vm1239_vm1, %v3613_v33  ;;  %v4488_v41 = vrot.slane %v4486_v25, 2  ;;  %v3615_v21 = vsel %vm2291_vm2, %v3612_v45, %v3614_v17  ;;  %v4495_v45 = vshll.u32 %v12375_v26, 16 }
 0x14d   : > { %11669 = vmatmul.msk.bf16.gmra.mxu0 %vm1239_vm1, %v4481_v40  ;;  %v13212_v22 = vpop.f32.mrf.mxu2  ;;  %v13214_v8 = vpop.f32.mrf.mxu3  ;;  %v4489_v40 = vor.u32 %v4488_v41, %v4485_v43 }
 0x14e   : > { %16232 = vst [vmem:[#allocation71_spill] sm:$0xff] %v13212_v22  ;;  %v13216_v55 = vpop.f32.mrf.mxu1 }
 0x14f   : > { %16233 = vst [vmem:[#allocation72_spill] sm:$0xff] %v13214_v8  ;;  %v2300_v8 = vsel %vm2291_vm2, %v2297_v23, %v2299_v16  ;;  %v4490_v39 = vsel %vm4446_vm3, %v4480_v31, %v4489_v40  ;;  %v4492_v23 = vshrl.u32 %v12375_v26, 16 }
 0x150   : > { %16234 = vst [vmem:[#allocation73_spill] sm:$0xff] %v13216_v55 }
 0x152   : > { %v13218_v35 = vpop.f32.mrf.mxu0 }
 0x155   : > { %v13221_v52 = vpop.f32.mrf.mxu2  ;;  %v13223_v33 = vpop.f32.mrf.mxu3 }
 0x156   : > { %16235 = vst [vmem:[#allocation74_spill] sm:$0xff] %v13221_v52  ;;  %v13225_v22 = vpop.f32.mrf.mxu1  ;;  %v12538_v52 = vld [vmem:[%s12740_s30 + $0x28] sm:$0xff] }
 0x157   : > { %16236 = vst [vmem:[#allocation75_spill] sm:$0xff] %v13223_v33  ;;  %v2301_v31 = vrot.slane %v12538_v52, 1 }
 0x158   : > { %16237 = vst [vmem:[#allocation76_spill] sm:$0xff] %v13225_v22  ;;  %v3616_v22 = vrot.slane %v12375_v26, 1 }
 0x159   : > { %11180 = vmatmul.msk.bf16.gmra.mxu1 %vm1239_vm1, %v12536_v53  ;;  %v4494_v53 = vrot.slane %v4492_v23, 1  ;;  %v12376_v23 = vld [vmem:[%s12740_s30 + $0x40] sm:$0xff] }
 0x15a   : > { %v13229_v55 = vpop.f32.mrf.mxu0  ;;  %11254 = vmatmul.msk.bf16.gmra.mxu2 %vm1239_vm1, %v2300_v8  ;;  %11596 = vmatmul.msk.bf16.gmra.mxu3 %vm1239_vm1, %v3615_v21  ;;  %v4497_v8 = vrot.slane %v4495_v45, 2  ;;  %v3617_v30 = vsel %vm2291_vm2, %v3614_v17, %v3616_v22  ;;  %v4504_v17 = vshll.u32 %v12376_v23, 16 }
 0x15d   : > { %11670 = vmatmul.msk.bf16.gmra.mxu0 %vm1239_vm1, %v4490_v39  ;;  %v13237_v25 = vpop.f32.mrf.mxu2  ;;  %v13239_v43 = vpop.f32.mrf.mxu3  ;;  %v4498_v39 = vor.u32 %v4497_v8, %v4494_v53 }
 0x15e   : > { %16238 = vst [vmem:[#allocation77_spill] sm:$0xff] %v13237_v25  ;;  %v13241_v41 = vpop.f32.mrf.mxu1 }
 0x15f   : > { %16239 = vst [vmem:[#allocation78_spill] sm:$0xff] %v13239_v43  ;;  %v2302_v43 = vsel %vm2291_vm2, %v2299_v16, %v2301_v31  ;;  %v4499_v26 = vsel %vm4446_vm3, %v4489_v40, %v4498_v39  ;;  %v4501_v16 = vshrl.u32 %v12376_v23, 16 }
 0x160   : > { %16240 = vst [vmem:[#allocation79_spill] sm:$0xff] %v13241_v41 }
 0x162   : > { %v13243_v33 = vpop.f32.mrf.mxu0 }
 0x165   : > { %v13246_v56 = vpop.f32.mrf.mxu2  ;;  %v13248_v21 = vpop.f32.mrf.mxu3 }
 0x166   : > { %16241 = vst [vmem:[#allocation80_spill] sm:$0xff] %v13246_v56  ;;  %v13250_v25 = vpop.f32.mrf.mxu1  ;;  %v12539_v56 = vld [vmem:[%s12740_s30 + $0x30] sm:$0xff] }
 0x167   : > { %16242 = vst [vmem:[#allocation81_spill] sm:$0xff] %v13248_v21  ;;  %v2303_v40 = vrot.slane %v12539_v56, 1 }
 0x168   : > { %16243 = vst [vmem:[#allocation82_spill] sm:$0xff] %v13250_v25  ;;  %v3618_v25 = vrot.slane %v12376_v23, 1 }
 0x169   : > { %11181 = vmatmul.msk.bf16.gmra.mxu1 %vm1239_vm1, %v12537_v0  ;;  %v4503_v0 = vrot.slane %v4501_v16, 1  ;;  %v12377_v16 = vld [vmem:[%s12740_s30 + $0x48] sm:$0xff] }
 0x16a   : > { %v13254_v41 = vpop.f32.mrf.mxu0  ;;  %11255 = vmatmul.msk.bf16.gmra.mxu2 %vm1239_vm1, %v2302_v43  ;;  %11597 = vmatmul.msk.bf16.gmra.mxu3 %vm1239_vm1, %v3617_v30  ;;  %v4506_v43 = vrot.slane %v4504_v17, 2  ;;  %v3619_v60 = vsel %vm2291_vm2, %v3616_v22, %v3618_v25  ;;  %v4513_v22 = vshll.u32 %v12377_v16, 16 }
 0x16d   : > { %11671 = vmatmul.msk.bf16.gmra.mxu0 %vm1239_vm1, %v4499_v26  ;;  %v13262_v45 = vpop.f32.mrf.mxu2  ;;  %v13264_v53 = vpop.f32.mrf.mxu3  ;;  %v4507_v26 = vor.u32 %v4506_v43, %v4503_v0 }
 0x16e   : > { %16244 = vst [vmem:[#allocation83_spill] sm:$0xff] %v13262_v45  ;;  %v13266_v8 = vpop.f32.mrf.mxu1 }
 0x16f   : > { %16245 = vst [vmem:[#allocation84_spill] sm:$0xff] %v13264_v53  ;;  %v2304_v53 = vsel %vm2291_vm2, %v2301_v31, %v2303_v40  ;;  %v4508_v23 = vsel %vm4446_vm3, %v4498_v39, %v4507_v26  ;;  %v4510_v31 = vshrl.u32 %v12377_v16, 16 }
 0x170   : > { %16246 = vst [vmem:[#allocation85_spill] sm:$0xff] %v13266_v8 }
 0x172   : > { %v13268_v21 = vpop.f32.mrf.mxu0 }
 0x175   : > { %v13271_v10 = vpop.f32.mrf.mxu2  ;;  %v13273_v30 = vpop.f32.mrf.mxu3 }
 0x176   : > { %16247 = vst [vmem:[#allocation86_spill] sm:$0xff] %v13271_v10  ;;  %v13275_v45 = vpop.f32.mrf.mxu1  ;;  %v12540_v10 = vld [vmem:[%s12740_s30 + $0x38] sm:$0xff] }
 0x177   : > { %16248 = vst [vmem:[#allocation87_spill] sm:$0xff] %v13273_v30  ;;  %v2305_v39 = vrot.slane %v12540_v10, 1 }
 0x178   : > { %16249 = vst [vmem:[#allocation88_spill] sm:$0xff] %v13275_v45  ;;  %v3620_v45 = vrot.slane %v12377_v16, 1 }
 0x179   : > { %11182 = vmatmul.msk.bf16.gmra.mxu1 %vm1239_vm1, %v12538_v52  ;;  %v4512_v52 = vrot.slane %v4510_v31, 1  ;;  %v12378_v31 = vld [vmem:[%s12740_s30 + $0x50] sm:$0xff] }
 0x17a   : > { %v13279_v8 = vpop.f32.mrf.mxu0  ;;  %11256 = vmatmul.msk.bf16.gmra.mxu2 %vm1239_vm1, %v2304_v53  ;;  %11598 = vmatmul.msk.bf16.gmra.mxu3 %vm1239_vm1, %v3619_v60  ;;  %v4515_v53 = vrot.slane %v4513_v22, 2  ;;  %v3621_v47 = vsel %vm2291_vm2, %v3618_v25, %v3620_v45  ;;  %v4522_v25 = vshll.u32 %v12378_v31, 16 }
 0x17d   : > { %11672 = vmatmul.msk.bf16.gmra.mxu0 %vm1239_vm1, %v4508_v23  ;;  %v13287_v17 = vpop.f32.mrf.mxu2  ;;  %v13289_v0 = vpop.f32.mrf.mxu3  ;;  %v4516_v23 = vor.u32 %v4515_v53, %v4512_v52 }
 0x17e   : > { %16250 = vst [vmem:[#allocation89_spill] sm:$0xff] %v13287_v17  ;;  %v13291_v43 = vpop.f32.mrf.mxu1 }
 0x17f   : > { %16251 = vst [vmem:[#allocation90_spill] sm:$0xff] %v13289_v0  ;;  %v2306_v0 = vsel %vm2291_vm2, %v2303_v40, %v2305_v39  ;;  %v4517_v16 = vsel %vm4446_vm3, %v4507_v26, %v4516_v23  ;;  %v4519_v40 = vshrl.u32 %v12378_v31, 16 }
 0x180   : > { %16252 = vst [vmem:[#allocation91_spill] sm:$0xff] %v13291_v43 }
 0x182   : > { %v13293_v30 = vpop.f32.mrf.mxu0 }
 0x185   : > { %v13296_v15 = vpop.f32.mrf.mxu2  ;;  %v13298_v60 = vpop.f32.mrf.mxu3 }
 0x186   : > { %16253 = vst [vmem:[#allocation92_spill] sm:$0xff] %v13296_v15  ;;  %v13300_v17 = vpop.f32.mrf.mxu1  ;;  %v12541_v15 = vld [vmem:[%s12740_s30 + $0x40] sm:$0xff] }
 0x187   : > { %16254 = vst [vmem:[#allocation93_spill] sm:$0xff] %v13298_v60  ;;  %v2307_v26 = vrot.slane %v12541_v15, 1 }
 0x188   : > { %16255 = vst [vmem:[#allocation94_spill] sm:$0xff] %v13300_v17  ;;  %v3622_v17 = vrot.slane %v12378_v31, 1 }
 0x189   : > { %11183 = vmatmul.msk.bf16.gmra.mxu1 %vm1239_vm1, %v12539_v56  ;;  %v4521_v56 = vrot.slane %v4519_v40, 1  ;;  %v12379_v40 = vld [vmem:[%s12740_s30 + $0x58] sm:$0xff] }
 0x18a   : > { %v13304_v43 = vpop.f32.mrf.mxu0  ;;  %11257 = vmatmul.msk.bf16.gmra.mxu2 %vm1239_vm1, %v2306_v0  ;;  %11599 = vmatmul.msk.bf16.gmra.mxu3 %vm1239_vm1, %v3621_v47  ;;  %v4524_v0 = vrot.slane %v4522_v25, 2  ;;  %v3623_v28 = vsel %vm2291_vm2, %v3620_v45, %v3622_v17  ;;  %v4531_v45 = vshll.u32 %v12379_v40, 16 }
 0x18d   : > { %11673 = vmatmul.msk.bf16.gmra.mxu0 %vm1239_vm1, %v4517_v16  ;;  %v13312_v22 = vpop.f32.mrf.mxu2  ;;  %v13314_v52 = vpop.f32.mrf.mxu3  ;;  %v4525_v16 = vor.u32 %v4524_v0, %v4521_v56 }
 0x18e   : > { %16256 = vst [vmem:[#allocation95_spill] sm:$0xff] %v13312_v22  ;;  %v13316_v53 = vpop.f32.mrf.mxu1 }
 0x18f   : > { %16257 = vst [vmem:[#allocation96_spill] sm:$0xff] %v13314_v52  ;;  %v2308_v52 = vsel %vm2291_vm2, %v2305_v39, %v2307_v26  ;;  %v4526_v31 = vsel %vm4446_vm3, %v4516_v23, %v4525_v16  ;;  %v4528_v39 = vshrl.u32 %v12379_v40, 16 }
 0x190   : > { %16258 = vst [vmem:[#allocation97_spill] sm:$0xff] %v13316_v53 }
 0x192   : > { %v13318_v60 = vpop.f32.mrf.mxu0 }
 0x195   : > { %v13321_v4 = vpop.f32.mrf.mxu2  ;;  %v13323_v47 = vpop.f32.mrf.mxu3 }
 0x196   : > { %16259 = vst [vmem:[#allocation98_spill] sm:$0xff] %v13321_v4  ;;  %v13325_v22 = vpop.f32.mrf.mxu1  ;;  %v12542_v4 = vld [vmem:[%s12740_s30 + $0x48] sm:$0xff] }
 0x197   : > { %16260 = vst [vmem:[#allocation99_spill] sm:$0xff] %v13323_v47  ;;  %v2309_v23 = vrot.slane %v12542_v4, 1 }
 0x198   : > { %16261 = vst [vmem:[#allocation100_spill] sm:$0xff] %v13325_v22  ;;  %v3624_v22 = vrot.slane %v12379_v40, 1 }
 0x199   : > { %11184 = vmatmul.msk.bf16.gmra.mxu1 %vm1239_vm1, %v12540_v10  ;;  %v4530_v10 = vrot.slane %v4528_v39, 1 }
 0x19a   : > { %v13329_v53 = vpop.f32.mrf.mxu0  ;;  %11258 = vmatmul.msk.bf16.gmra.mxu2 %vm1239_vm1, %v2308_v52  ;;  %11600 = vmatmul.msk.bf16.gmra.mxu3 %vm1239_vm1, %v3623_v28  ;;  %v4533_v52 = vrot.slane %v4531_v45, 2  ;;  %v3625_v34 = vsel %vm2291_vm2, %v3622_v17, %v3624_v22  ;;  %v12380_v45 = vld [vmem:[%s12740_s30 + $0x60] sm:$0xff] }
 0x19b   : > { %v4540_v17 = vshll.u32 %v12380_v45, 16 }
 0x19d   : > { %11674 = vmatmul.msk.bf16.gmra.mxu0 %vm1239_vm1, %v4526_v31  ;;  %v13337_v25 = vpop.f32.mrf.mxu2  ;;  %v13339_v56 = vpop.f32.mrf.mxu3  ;;  %v4534_v31 = vor.u32 %v4533_v52, %v4530_v10 }
 0x19e   : > { %16262 = vst [vmem:[#allocation101_spill] sm:$0xff] %v13337_v25  ;;  %v13341_v0 = vpop.f32.mrf.mxu1 }
 0x19f   : > { %16263 = vst [vmem:[#allocation102_spill] sm:$0xff] %v13339_v56  ;;  %v2310_v56 = vsel %vm2291_vm2, %v2307_v26, %v2309_v23  ;;  %v4535_v39 = vsel %vm4446_vm3, %v4525_v16, %v4534_v31  ;;  %v12543_v16 = vld [vmem:[%s12740_s30 + $0x50] sm:$0xff] }
 0x1a0   : > { %16264 = vst [vmem:[#allocation103_spill] sm:$0xff] %v13341_v0  ;;  %v2311_v14 = vrot.slane %v12543_v16, 1 }
 0x1a2   : > { %v13343_v47 = vpop.f32.mrf.mxu0  ;;  %v2312_v46 = vsel %vm2291_vm2, %v2309_v23, %v2311_v14 }
 0x1a3   : > { %16265 = vst [vmem:[#allocation104_spill] sm:$0xff] %v13343_v47 }
 0x1a5   : > { %v13346_v49 = vpop.f32.mrf.mxu2  ;;  %v13348_v28 = vpop.f32.mrf.mxu3 }
 0x1a6   : > { %16266 = vst [vmem:[#allocation105_spill] sm:$0xff] %v13346_v49  ;;  %v1944_v25 = vpop.f32.mrf.mxu1 }
 0x1a7   : > { %16267 = vst [vmem:[#allocation106_spill] sm:$0xff] %v13348_v28  ;;  %v1945_v40 = vadd.f32 %v1944_v25, %v12860_v50  ;;  %v4537_v28 = vshrl.u32 %v12380_v45, 16  ;;  %v3626_v50 = vrot.slane %v12380_v45, 1 }
 0x1a9   : > { %11185 = vmatmul.msk.bf16.gmra.mxu1 %vm1239_vm1, %v12541_v15  ;;  %v4539_v51 = vrot.slane %v4537_v28, 1 }
 0x1aa   : > { %v5286_v3 = vpop.f32.mrf.mxu0  ;;  %11259 = vmatmul.msk.bf16.gmra.mxu2 %vm1239_vm1, %v2310_v56  ;;  %11601 = vmatmul.msk.bf16.gmra.mxu3 %vm1239_vm1, %v3625_v34  ;;  %v4542_v56 = vrot.slane %v4540_v17, 2 }
 0x1ad   : > { %11675 = vmatmul.msk.bf16.gmra.mxu0 %vm1239_vm1, %v4535_v39  ;;  %v2648_v10 = vpop.f32.mrf.mxu2  ;;  %v3963_v26 = vpop.f32.mrf.mxu3 }
 0x1ae   : > { %v2988_v52 = vadd.f32 %v2648_v10, %v1945_v40  ;;  %v1946_v49 = vpop.f32.mrf.mxu1  ;;  %v4543_v40 = vor.u32 %v4542_v56, %v4539_v51 }
 0x1af   : > { %v1947_v34 = vadd.f32 %v1946_v49, %v12877_v1 }
 0x1b0   : > { %v4303_v0 = vadd.f32 %v3963_v26, %v2988_v52  ;;  %v3627_v52 = vsel %vm2291_vm2, %v3624_v22, %v3626_v50 }
 0x1b2   : > { %v5288_v15 = vpop.f32.mrf.mxu0  ;;  %v13359_v29 = vadd.f32 %v5286_v3, %v4303_v0  ;;  %v4544_v3 = vsel %vm4446_vm3, %v4534_v31, %v4543_v40  ;;  %v12381_v0 = vld [vmem:[%s12740_s30 + $0x68] sm:$0xff] }
 0x1b3   : > { %v4546_v23 = vshrl.u32 %v12381_v0, 16  ;;  %v4549_v45 = vshll.u32 %v12381_v0, 16 }
 0x1b5   : > { %v2650_v25 = vpop.f32.mrf.mxu2  ;;  %v3965_v58 = vpop.f32.mrf.mxu3  ;;  %v4548_v17 = vrot.slane %v4546_v23, 1  ;;  %v4551_v31 = vrot.slane %v4549_v45, 2  ;;  %v12382_v23 = vld [vmem:[%s12740_s30 + $0x70] sm:$0xff] }
 0x1b6   : > { %v2989_v39 = vadd.f32 %v2650_v25, %v1947_v34  ;;  %v1949_v10 = vpop.f32.mrf.mxu1 }
 0x1b7   : > { %v1950_v51 = vadd.f32 %v1949_v10, %v12888_v18  ;;  %v3628_v18 = vrot.slane %v12381_v0, 1 }
 0x1b8   : > { %v4304_v47 = vadd.f32 %v3965_v58, %v2989_v39 }
 0x1b9   : > { %11186 = vmatmul.msk.bf16.gmra.mxu1 %vm1239_vm1, %v12542_v4 }
 0x1ba   : > { %v5291_v28 = vpop.f32.mrf.mxu0  ;;  %11260 = vmatmul.msk.bf16.gmra.mxu2 %vm1239_vm1, %v2312_v46  ;;  %v13369_v1 = vadd.f32 %v5288_v15, %v4304_v47  ;;  %11602 = vmatmul.msk.bf16.gmra.mxu3 %vm1239_vm1, %v3627_v52  ;;  %v12544_v47 = vld [vmem:[%s12740_s30 + $0x58] sm:$0xff]  ;;  %v4552_v52 = vor.u32 %v4551_v31, %v4548_v17 }
 0x1bb   : > { %v2313_v15 = vrot.slane %v12544_v47, 1 }
 0x1bd   : > { %11676 = vmatmul.msk.bf16.gmra.mxu0 %vm1239_vm1, %v4544_v3  ;;  %v2653_v58 = vpop.f32.mrf.mxu2  ;;  %v3968_v22 = vpop.f32.mrf.mxu3 }
 0x1be   : > { %v2990_v49 = vadd.f32 %v2653_v58, %v1950_v51  ;;  %v1951_v4 = vpop.f32.mrf.mxu1  ;;  %v2314_v51 = vsel %vm2291_vm2, %v2311_v14, %v2313_v15 }
 0x1bf   : > { %v1952_v34 = vadd.f32 %v1951_v4, %v12905_v36 }
 0x1c0   : > { %v4305_v26 = vadd.f32 %v3968_v22, %v2990_v49  ;;  %v3629_v49 = vsel %vm2291_vm2, %v3626_v50, %v3628_v18  ;;  %v4555_v50 = vshrl.u32 %v12382_v23, 16 }
 0x1c2   : > { %v5293_v46 = vpop.f32.mrf.mxu0  ;;  %v13374_v56 = vadd.f32 %v5291_v28, %v4305_v26  ;;  %v4553_v28 = vsel %vm4446_vm3, %v4543_v40, %v4552_v52  ;;  %v4558_v26 = vshll.u32 %v12382_v23, 16 }
 0x1c5   : > { %v2655_v25 = vpop.f32.mrf.mxu2  ;;  %v3970_v10 = vpop.f32.mrf.mxu3 }
 0x1c6   : > { %v2991_v39 = vadd.f32 %v2655_v25, %v1952_v34  ;;  %v1954_v3 = vpop.f32.mrf.mxu1  ;;  %v4557_v34 = vrot.slane %v4555_v50, 1  ;;  %v4560_v25 = vrot.slane %v4558_v26, 2 }
 0x1c7   : > { %v1955_v0 = vadd.f32 %v1954_v3, %v12916_v57  ;;  %v3630_v57 = vrot.slane %v12382_v23, 1 }
 0x1c8   : > { %v4306_v58 = vadd.f32 %v3970_v10, %v2991_v39 }
 0x1c9   : > { %11187 = vmatmul.msk.bf16.gmra.mxu1 %vm1239_vm1, %v12543_v16 }
 0x1ca   : > { %v5296_v22 = vpop.f32.mrf.mxu0  ;;  %11261 = vmatmul.msk.bf16.gmra.mxu2 %vm1239_vm1, %v2314_v51  ;;  %v13384_v36 = vadd.f32 %v5293_v46, %v4306_v58  ;;  %11603 = vmatmul.msk.bf16.gmra.mxu3 %vm1239_vm1, %v3629_v49  ;;  %v2315_v46 = vrot.slane %v12931_v2, 1  ;;  %v4561_v58 = vor.u32 %v4560_v25, %v4557_v34 }
 0x1cc   : > { %v4562_v2 = vsel %vm4446_vm3, %v4552_v52, %v4561_v58 }
 0x1cd   : > { %11677 = vmatmul.msk.bf16.gmra.mxu0 %vm1239_vm1, %v4553_v28  ;;  %v2658_v14 = vpop.f32.mrf.mxu2  ;;  %v3973_v4 = vpop.f32.mrf.mxu3  ;;  %v2316_v28 = vsel %vm2291_vm2, %v2313_v15, %v2315_v46 }
 0x1ce   : > { %v2992_v45 = vadd.f32 %v2658_v14, %v1955_v0  ;;  %v1956_v17 = vpop.f32.mrf.mxu1  ;;  %v3631_v14 = vsel %vm2291_vm2, %v3628_v18, %v3630_v57 }
 0x1cf   : > { %v1957_v39 = vadd.f32 %v1956_v17, %v12935_v12 }
 0x1d0   : > { %v4307_v16 = vadd.f32 %v3973_v4, %v2992_v45 }
 0x1d2   : > { %v5298_v31 = vpop.f32.mrf.mxu0  ;;  %v13389_v40 = vadd.f32 %v5296_v22, %v4307_v16  ;;  %v12383_v22 = vld [vmem:[%s12740_s30 + $0x78] sm:$0xff] }
 0x1d3   : > { %v4564_v18 = vshrl.u32 %v12383_v22, 16  ;;  %v4567_v26 = vshll.u32 %v12383_v22, 16 }
 0x1d5   : > { %v2660_v10 = vpop.f32.mrf.mxu2  ;;  %v3975_v51 = vpop.f32.mrf.mxu3  ;;  %v4566_v34 = vrot.slane %v4564_v18, 1  ;;  %v4569_v52 = vrot.slane %v4567_v26, 2 }
 0x1d6   : > { %v2993_v3 = vadd.f32 %v2660_v10, %v1957_v39  ;;  %v1959_v49 = vpop.f32.mrf.mxu1  ;;  %v3632_v39 = vrot.slane %v12383_v22, 1 }
 0x1d7   : > { %v1960_v23 = vadd.f32 %v1959_v49, %v12947_v38  ;;  %v4570_v49 = vor.u32 %v4569_v52, %v4566_v34 }
 0x1d8   : > { %v4308_v0 = vadd.f32 %v3975_v51, %v2993_v3 }
 0x1d9   : > { %11188 = vmatmul.msk.bf16.gmra.mxu1 %vm1239_vm1, %v12544_v47 }
 0x1da   : > { %v5301_v45 = vpop.f32.mrf.mxu0  ;;  %11262 = vmatmul.msk.bf16.gmra.mxu2 %vm1239_vm1, %v2316_v28  ;;  %v13399_v12 = vadd.f32 %v5298_v31, %v4308_v0  ;;  %11604 = vmatmul.msk.bf16.gmra.mxu3 %vm1239_vm1, %v3631_v14  ;;  %v2317_v31 = vrot.slane %v12962_v48, 1  ;;  %v4571_v48 = vsel %vm4446_vm3, %v4561_v58, %v4570_v49 }
 0x1dc   : > { %v2318_v0 = vsel %vm2291_vm2, %v2315_v46, %v2317_v31 }
 0x1dd   : > { %11678 = vmatmul.msk.bf16.gmra.mxu0 %vm1239_vm1, %v4562_v2  ;;  %v2663_v15 = vpop.f32.mrf.mxu2  ;;  %v3978_v50 = vpop.f32.mrf.mxu3  ;;  %v3633_v2 = vsel %vm2291_vm2, %v3630_v57, %v3632_v39 }
 0x1de   : > { %v2994_v4 = vadd.f32 %v2663_v15, %v1960_v23  ;;  %v1961_v17 = vpop.f32.mrf.mxu1  ;;  %v12545_v15 = vld [vmem:[%s12740_s30 + $0x60] sm:$0xff] }
 0x1df   : > { %v1962_v38 = vadd.f32 %v1961_v17, %v12966_v6  ;;  %v12384_v6 = vld [vmem:[%s12740_s30 + $0x80] sm:$0xff] }
 0x1e0   : > { %v4309_v47 = vadd.f32 %v3978_v50, %v2994_v4  ;;  %v4573_v50 = vshrl.u32 %v12384_v6, 16  ;;  %v4576_v18 = vshll.u32 %v12384_v6, 16 }
 0x1e2   : > { %v5303_v16 = vpop.f32.mrf.mxu0  ;;  %v13404_v25 = vadd.f32 %v5301_v45, %v4309_v47  ;;  %v4575_v34 = vrot.slane %v4573_v50, 1  ;;  %v4578_v58 = vrot.slane %v4576_v18, 2 }
 0x1e5   : > { %v2665_v10 = vpop.f32.mrf.mxu2  ;;  %v3980_v51 = vpop.f32.mrf.mxu3 }
 0x1e6   : > { %v2995_v3 = vadd.f32 %v2665_v10, %v1962_v38  ;;  %v1964_v28 = vpop.f32.mrf.mxu1  ;;  %v3634_v38 = vrot.slane %v12384_v6, 1 }
 0x1e7   : > { %v1965_v22 = vadd.f32 %v1964_v28, %v12979_v37  ;;  %v4579_v28 = vor.u32 %v4578_v58, %v4575_v34 }
 0x1e8   : > { %v4310_v14 = vadd.f32 %v3980_v51, %v2995_v3 }
 0x1e9   : > { %11189 = vmatmul.msk.bf16.gmra.mxu1 %vm1239_vm1, %v12545_v15  ;;  %v3635_v15 = vsel %vm2291_vm2, %v3632_v39, %v3634_v38 }
 0x1ea   : > { %v5306_v23 = vpop.f32.mrf.mxu0  ;;  %11263 = vmatmul.msk.bf16.gmra.mxu2 %vm1239_vm1, %v2318_v0  ;;  %v13415_v45 = vadd.f32 %v5303_v16, %v4310_v14  ;;  %11605 = vmatmul.msk.bf16.gmra.mxu3 %vm1239_vm1, %v3633_v2  ;;  %v2319_v16 = vrot.slane %v12994_v59, 1  ;;  %v4580_v59 = vsel %vm4446_vm3, %v4570_v49, %v4579_v28 }
 0x1ec   : > { %v2320_v14 = vsel %vm2291_vm2, %v2317_v31, %v2319_v16 }
 0x1ed   : > { %11679 = vmatmul.msk.bf16.gmra.mxu0 %vm1239_vm1, %v4571_v48  ;;  %v2668_v46 = vpop.f32.mrf.mxu2  ;;  %v3983_v57 = vpop.f32.mrf.mxu3 }
 0x1ee   : > { %v2996_v4 = vadd.f32 %v2668_v46, %v1965_v22  ;;  %v1966_v26 = vpop.f32.mrf.mxu1  ;;  %v12546_v22 = vld [vmem:[%s12740_s30 + $0x68] sm:$0xff] }
 0x1ef   : > { %v1967_v37 = vadd.f32 %v1966_v26, %v12998_v62  ;;  %v12385_v62 = vld [vmem:[%s12740_s30 + $0x88] sm:$0xff] }
 0x1f0   : > { %v4311_v17 = vadd.f32 %v3983_v57, %v2996_v4  ;;  %v4582_v4 = vshrl.u32 %v12385_v62, 16  ;;  %v4585_v57 = vshll.u32 %v12385_v62, 16  ;;  %v3636_v58 = vrot.slane %v12385_v62, 1 }
 0x1f2   : > { %v5308_v47 = vpop.f32.mrf.mxu0  ;;  %v13420_v52 = vadd.f32 %v5306_v23, %v4311_v17  ;;  %v4584_v17 = vrot.slane %v4582_v4, 1  ;;  %v4587_v49 = vrot.slane %v4585_v57, 2 }
 0x1f5   : > { %v2670_v10 = vpop.f32.mrf.mxu2  ;;  %v3985_v51 = vpop.f32.mrf.mxu3 }
 0x1f6   : > { %v2997_v3 = vadd.f32 %v2670_v10, %v1967_v37  ;;  %v1969_v0 = vpop.f32.mrf.mxu1 }
 0x1f7   : > { %v1970_v6 = vadd.f32 %v1969_v0, %v13011_v5 }
 0x1f8   : > { %v4312_v2 = vadd.f32 %v3985_v51, %v2997_v3  ;;  %v4588_v51 = vor.u32 %v4587_v49, %v4584_v17 }
 0x1f9   : > { %11190 = vmatmul.msk.bf16.gmra.mxu1 %vm1239_vm1, %v12546_v22 }
 0x1fa   : > { %v5311_v48 = vpop.f32.mrf.mxu0  ;;  %11264 = vmatmul.msk.bf16.gmra.mxu2 %vm1239_vm1, %v2320_v14  ;;  %v13431_v23 = vadd.f32 %v5308_v47, %v4312_v2  ;;  %11606 = vmatmul.msk.bf16.gmra.mxu3 %vm1239_vm1, %v3635_v15  ;;  %v2321_v47 = vrot.slane %v13026_v44, 1  ;;  %v3637_v15 = vsel %vm2291_vm2, %v3634_v38, %v3636_v58  ;;  %v4589_v44 = vsel %vm4446_vm3, %v4579_v28, %v4588_v51 }
 0x1fc   : > { %v2322_v14 = vsel %vm2291_vm2, %v2319_v16, %v2321_v47 }
 0x1fd   : > { %11680 = vmatmul.msk.bf16.gmra.mxu0 %vm1239_vm1, %v4580_v59  ;;  %v2673_v31 = vpop.f32.mrf.mxu2  ;;  %v3988_v39 = vpop.f32.mrf.mxu3  ;;  %v12547_v59 = vld [vmem:[%s12740_s30 + $0x70] sm:$0xff] }
 0x1fe   : > { %v2998_v46 = vadd.f32 %v2673_v31, %v1970_v6  ;;  %v1971_v50 = vpop.f32.mrf.mxu1 }
 0x1ff   : > { %v1972_v5 = vadd.f32 %v1971_v50, %v13030_v13  ;;  %v12386_v13 = vld [vmem:[%s12740_s30 + $0x90] sm:$0xff] }
 0x200   : > { %v4313_v18 = vadd.f32 %v3988_v39, %v2998_v46  ;;  %v4591_v31 = vshrl.u32 %v12386_v13, 16  ;;  %v4594_v46 = vshll.u32 %v12386_v13, 16  ;;  %v3638_v17 = vrot.slane %v12386_v13, 1 }
 0x202   : > { %v5313_v26 = vpop.f32.mrf.mxu0  ;;  %v13436_v34 = vadd.f32 %v5311_v48, %v4313_v18  ;;  %v4593_v50 = vrot.slane %v4591_v31, 1  ;;  %v4596_v28 = vrot.slane %v4594_v46, 2 }
 0x205   : > { %v2675_v37 = vpop.f32.mrf.mxu2  ;;  %v3990_v3 = vpop.f32.mrf.mxu3 }
 0x206   : > { %v2999_v10 = vadd.f32 %v2675_v37, %v1972_v5  ;;  %v1974_v0 = vpop.f32.mrf.mxu1 }
 0x207   : > { %v1975_v62 = vadd.f32 %v1974_v0, %v13043_v27 }
 0x208   : > { %v4314_v2 = vadd.f32 %v3990_v3, %v2999_v10  ;;  %v4597_v10 = vor.u32 %v4596_v28, %v4593_v50 }
 0x209   : > { %11191 = vmatmul.msk.bf16.gmra.mxu1 %vm1239_vm1, %v12547_v59  ;;  %v12548_v59 = vld [vmem:[%s12740_s30 + $0x78] sm:$0xff] }
 0x20a   : > { %v5316_v22 = vpop.f32.mrf.mxu0  ;;  %11265 = vmatmul.msk.bf16.gmra.mxu2 %vm1239_vm1, %v2322_v14  ;;  %v13447_v48 = vadd.f32 %v5313_v26, %v4314_v2  ;;  %11607 = vmatmul.msk.bf16.gmra.mxu3 %vm1239_vm1, %v3637_v15  ;;  %v2323_v26 = vrot.slane %v13058_v9, 1  ;;  %v3639_v2 = vsel %vm2291_vm2, %v3636_v58, %v3638_v17  ;;  %v4598_v9 = vsel %vm4446_vm3, %v4588_v51, %v4597_v10 }
 0x20c   : > { %v2324_v0 = vsel %vm2291_vm2, %v2321_v47, %v2323_v26 }
 0x20d   : > { %11681 = vmatmul.msk.bf16.gmra.mxu0 %vm1239_vm1, %v4589_v44  ;;  %v2678_v16 = vpop.f32.mrf.mxu2  ;;  %v3993_v38 = vpop.f32.mrf.mxu3 }
 0x20e   : > { %v3000_v6 = vadd.f32 %v2678_v16, %v1975_v62  ;;  %v1976_v39 = vpop.f32.mrf.mxu1 }
 0x20f   : > { %v1977_v27 = vadd.f32 %v1976_v39, %v13062_v32  ;;  %v12387_v32 = vld [vmem:[%s12740_s30 + $0x98] sm:$0xff] }
 0x210   : > { %v4315_v4 = vadd.f32 %v3993_v38, %v3000_v6  ;;  %v4600_v62 = vshrl.u32 %v12387_v32, 16  ;;  %v4603_v16 = vshll.u32 %v12387_v32, 16  ;;  %v3640_v50 = vrot.slane %v12387_v32, 1 }
 0x212   : > { %v5318_v57 = vpop.f32.mrf.mxu0  ;;  %v13452_v18 = vadd.f32 %v5316_v22, %v4315_v4  ;;  %v4602_v46 = vrot.slane %v4600_v62, 1  ;;  %v4605_v51 = vrot.slane %v4603_v16, 2  ;;  %v12549_v4 = vld [vmem:[%s12740_s30 + $0x88] sm:$0xff] }
 0x215   : > { %v2680_v49 = vpop.f32.mrf.mxu2  ;;  %v3995_v37 = vpop.f32.mrf.mxu3 }
 0x216   : > { %v3001_v5 = vadd.f32 %v2680_v49, %v1977_v27  ;;  %v1979_v3 = vpop.f32.mrf.mxu1 }
 0x217   : > { %v1980_v44 = vadd.f32 %v1979_v3, %v13076_v61 }
 0x218   : > { %v4316_v14 = vadd.f32 %v3995_v37, %v3001_v5  ;;  %v4606_v5 = vor.u32 %v4605_v51, %v4602_v46 }
 0x219   : > { %11192 = vmatmul.msk.bf16.gmra.mxu1 %vm1239_vm1, %v12548_v59  ;;  %v12550_v59 = vld [vmem:[%s12740_s30 + $0x80] sm:$0xff] }
 0x21a   : > { %v5321_v15 = vpop.f32.mrf.mxu0  ;;  %11266 = vmatmul.msk.bf16.gmra.mxu2 %vm1239_vm1, %v2324_v0  ;;  %v13463_v22 = vadd.f32 %v5318_v57, %v4316_v14  ;;  %11608 = vmatmul.msk.bf16.gmra.mxu3 %vm1239_vm1, %v3639_v2  ;;  %v2325_v57 = vrot.slane %v12549_v4, 1  ;;  %v3641_v14 = vsel %vm2291_vm2, %v3638_v17, %v3640_v50 }
 0x21c   : > { %v2326_v3 = vsel %vm2291_vm2, %v2323_v26, %v2325_v57 }
 0x21d   : > { %11682 = vmatmul.msk.bf16.gmra.mxu0 %vm1239_vm1, %v4598_v9  ;;  %v2683_v47 = vpop.f32.mrf.mxu2  ;;  %v3998_v13 = vpop.f32.mrf.mxu3 }
 0x21e   : > { %v3002_v58 = vadd.f32 %v2683_v47, %v1980_v44  ;;  %v1981_v6 = vpop.f32.mrf.mxu1 }
 0x21f   : > { %v1982_v61 = vadd.f32 %v1981_v6, %v13101_v54  ;;  %v12388_v54 = vld [vmem:[%s12740_s30 + $0xa0] sm:$0xff] }
 0x220   : > { %v4317_v38 = vadd.f32 %v3998_v13, %v3002_v58  ;;  %v4609_v47 = vshrl.u32 %v12388_v54, 16  ;;  %v4612_v58 = vshll.u32 %v12388_v54, 16 }
 0x222   : > { %v5323_v31 = vpop.f32.mrf.mxu0  ;;  %v13468_v39 = vadd.f32 %v5321_v15, %v4317_v38  ;;  %v4607_v15 = vsel %vm4446_vm3, %v4597_v10, %v4606_v5  ;;  %v4611_v6 = vrot.slane %v4609_v47, 1  ;;  %v4614_v10 = vrot.slane %v4612_v58, 2 }
 0x225   : > { %v2685_v28 = vpop.f32.mrf.mxu2  ;;  %v4000_v49 = vpop.f32.mrf.mxu3 }
 0x226   : > { %v3003_v27 = vadd.f32 %v2685_v28, %v1982_v61  ;;  %v1984_v37 = vpop.f32.mrf.mxu1 }
 0x227   : > { %v1985_v32 = vadd.f32 %v1984_v37, %v13123_v42  ;;  %v3642_v42 = vrot.slane %v12388_v54, 1 }
 0x228   : > { %v4318_v0 = vadd.f32 %v4000_v49, %v3003_v27  ;;  %v4615_v49 = vor.u32 %v4614_v10, %v4611_v6 }
 0x229   : > { %11193 = vmatmul.msk.bf16.gmra.mxu1 %vm1239_vm1, %v12550_v59 }
 0x22a   : > { %v5326_v2 = vpop.f32.mrf.mxu0  ;;  %11267 = vmatmul.msk.bf16.gmra.mxu2 %vm1239_vm1, %v2326_v3  ;;  %v13479_v9 = vadd.f32 %v5323_v31, %v4318_v0  ;;  %11609 = vmatmul.msk.bf16.gmra.mxu3 %vm1239_vm1, %v3641_v14  ;;  %v12551_v31 = vld [vmem:[%s12740_s30 + $0x90] sm:$0xff]  ;;  %v3643_v14 = vsel %vm2291_vm2, %v3640_v50, %v3642_v42 }
 0x22b   : > { %v2327_v46 = vrot.slane %v12551_v31, 1 }
 0x22d   : > { %11683 = vmatmul.msk.bf16.gmra.mxu0 %vm1239_vm1, %v4607_v15  ;;  %v2688_v26 = vpop.f32.mrf.mxu2  ;;  %v4003_v44 = vpop.f32.mrf.mxu3  ;;  %v2328_v3 = vsel %vm2291_vm2, %v2325_v57, %v2327_v46  ;;  %v12389_v15 = vld [vmem:[%s12740_s30 + $0xa8] sm:$0xff] }
 0x22e   : > { %v3004_v17 = vadd.f32 %v2688_v26, %v1985_v32  ;;  %v1986_v13 = vpop.f32.mrf.mxu1  ;;  %v4618_v26 = vshrl.u32 %v12389_v15, 16 }
 0x22f   : > { %v1987_v51 = vadd.f32 %v1986_v13, %v13142_v19 }
 0x230   : > { %v4319_v62 = vadd.f32 %v4003_v44, %v3004_v17  ;;  %v4621_v17 = vshll.u32 %v12389_v15, 16  ;;  %v4620_v58 = vrot.slane %v4618_v26, 1 }
 0x232   : > { %v5328_v16 = vpop.f32.mrf.mxu0  ;;  %v13484_v38 = vadd.f32 %v5326_v2, %v4319_v62  ;;  %v4616_v2 = vsel %vm4446_vm3, %v4606_v5, %v4615_v49  ;;  %v4623_v5 = vrot.slane %v4621_v17, 2  ;;  %v12552_v62 = vld [vmem:[%s12740_s30 + $0x98] sm:$0xff] }
 0x235   : > { %v2690_v61 = vpop.f32.mrf.mxu2  ;;  %v4005_v27 = vpop.f32.mrf.mxu3 }
 0x236   : > { %v3005_v28 = vadd.f32 %v2690_v61, %v1987_v51  ;;  %v1989_v37 = vpop.f32.mrf.mxu1 }
 0x237   : > { %v1990_v54 = vadd.f32 %v1989_v37, %v13153_v11  ;;  %v3644_v11 = vrot.slane %v12389_v15, 1 }
 0x238   : > { %v4320_v0 = vadd.f32 %v4005_v27, %v3005_v28  ;;  %v4624_v28 = vor.u32 %v4623_v5, %v4620_v58 }
 0x239   : > { %11194 = vmatmul.msk.bf16.gmra.mxu1 %vm1239_vm1, %v12549_v4 }
 0x23a   : > { %v5331_v59 = vpop.f32.mrf.mxu0  ;;  %11268 = vmatmul.msk.bf16.gmra.mxu2 %vm1239_vm1, %v2328_v3  ;;  %v13494_v19 = vadd.f32 %v5328_v16, %v4320_v0  ;;  %11610 = vmatmul.msk.bf16.gmra.mxu3 %vm1239_vm1, %v3643_v14  ;;  %v2329_v16 = vrot.slane %v12552_v62, 1  ;;  %v3645_v0 = vsel %vm2291_vm2, %v3642_v42, %v3644_v11 }
 0x23c   : > { %v2330_v37 = vsel %vm2291_vm2, %v2327_v46, %v2329_v16 }
 0x23d   : > { %11684 = vmatmul.msk.bf16.gmra.mxu0 %vm1239_vm1, %v4616_v2  ;;  %v2693_v57 = vpop.f32.mrf.mxu2  ;;  %v4008_v50 = vpop.f32.mrf.mxu3  ;;  %v12390_v2 = vld [vmem:[%s12740_s30 + $0xb0] sm:$0xff] }
 0x23e   : > { %v3006_v32 = vadd.f32 %v2693_v57, %v1990_v54  ;;  %v1991_v4 = vpop.f32.mrf.mxu1  ;;  %v4627_v57 = vshrl.u32 %v12390_v2, 16 }
 0x23f   : > { %v1992_v6 = vadd.f32 %v1991_v4, %v13168_v63 }
 0x240   : > { %v4321_v44 = vadd.f32 %v4008_v50, %v3006_v32  ;;  %v4630_v32 = vshll.u32 %v12390_v2, 16  ;;  %v4629_v17 = vrot.slane %v4627_v57, 1 }
 0x242   : > { %v5333_v47 = vpop.f32.mrf.mxu0  ;;  %v13499_v13 = vadd.f32 %v5331_v59, %v4321_v44  ;;  %v4625_v59 = vsel %vm4446_vm3, %v4615_v49, %v4624_v28  ;;  %v4632_v49 = vrot.slane %v4630_v32, 2  ;;  %v12553_v44 = vld [vmem:[%s12740_s30 + $0xa0] sm:$0xff] }
 0x245   : > { %v2695_v10 = vpop.f32.mrf.mxu2  ;;  %v4010_v61 = vpop.f32.mrf.mxu3 }
 0x246   : > { %v3007_v51 = vadd.f32 %v2695_v10, %v1992_v6  ;;  %v1994_v27 = vpop.f32.mrf.mxu1 }
 0x247   : > { %v1995_v15 = vadd.f32 %v1994_v27, %v13179_v20  ;;  %v3646_v20 = vrot.slane %v12390_v2, 1 }
 0x248   : > { %v4322_v3 = vadd.f32 %v4010_v61, %v3007_v51  ;;  %v4633_v51 = vor.u32 %v4632_v49, %v4629_v17 }
 0x249   : > { %11195 = vmatmul.msk.bf16.gmra.mxu1 %vm1239_vm1, %v12551_v31 }
 0x24a   : > { %v5336_v14 = vpop.f32.mrf.mxu0  ;;  %11269 = vmatmul.msk.bf16.gmra.mxu2 %vm1239_vm1, %v2330_v37  ;;  %v13509_v63 = vadd.f32 %v5333_v47, %v4322_v3  ;;  %11611 = vmatmul.msk.bf16.gmra.mxu3 %vm1239_vm1, %v3645_v0  ;;  %v2331_v47 = vrot.slane %v12553_v44, 1  ;;  %v3647_v3 = vsel %vm2291_vm2, %v3644_v11, %v3646_v20 }
 0x24c   : > { %v2332_v27 = vsel %vm2291_vm2, %v2329_v16, %v2331_v47 }
 0x24d   : > { %11685 = vmatmul.msk.bf16.gmra.mxu0 %vm1239_vm1, %v4625_v59  ;;  %v2698_v46 = vpop.f32.mrf.mxu2  ;;  %v4013_v42 = vpop.f32.mrf.mxu3  ;;  %v12391_v59 = vld [vmem:[%s12740_s30 + $0xb8] sm:$0xff] }
 0x24e   : > { %v3008_v54 = vadd.f32 %v2698_v46, %v1995_v15  ;;  %v1996_v31 = vpop.f32.mrf.mxu1  ;;  %v4636_v46 = vshrl.u32 %v12391_v59, 16 }
 0x24f   : > { %v1997_v58 = vadd.f32 %v1996_v31, %v13193_v7 }
 0x250   : > { %v4323_v50 = vadd.f32 %v4013_v42, %v3008_v54  ;;  %v4639_v54 = vshll.u32 %v12391_v59, 16  ;;  %v4638_v32 = vrot.slane %v4636_v46, 1 }
 0x252   : > { %v5338_v26 = vpop.f32.mrf.mxu0  ;;  %v13514_v4 = vadd.f32 %v5336_v14, %v4323_v50  ;;  %v4634_v14 = vsel %vm4446_vm3, %v4624_v28, %v4633_v51  ;;  %v4641_v28 = vrot.slane %v4639_v54, 2  ;;  %v12554_v50 = vld [vmem:[%s12740_s30 + $0xa8] sm:$0xff] }
 0x255   : > { %v2700_v5 = vpop.f32.mrf.mxu2  ;;  %v4015_v10 = vpop.f32.mrf.mxu3 }
 0x256   : > { %v3009_v6 = vadd.f32 %v2700_v5, %v1997_v58  ;;  %v1999_v61 = vpop.f32.mrf.mxu1 }
 0x257   : > { %v2000_v2 = vadd.f32 %v1999_v61, %v13204_v24  ;;  %v3648_v24 = vrot.slane %v12391_v59, 1 }
 0x258   : > { %v4324_v37 = vadd.f32 %v4015_v10, %v3009_v6  ;;  %v4642_v6 = vor.u32 %v4641_v28, %v4638_v32 }
 0x259   : > { %11196 = vmatmul.msk.bf16.gmra.mxu1 %vm1239_vm1, %v12552_v62 }
 0x25a   : > { %v5341_v0 = vpop.f32.mrf.mxu0  ;;  %11270 = vmatmul.msk.bf16.gmra.mxu2 %vm1239_vm1, %v2332_v27  ;;  %v13524_v7 = vadd.f32 %v5338_v26, %v4324_v37  ;;  %11612 = vmatmul.msk.bf16.gmra.mxu3 %vm1239_vm1, %v3647_v3  ;;  %v2333_v26 = vrot.slane %v12554_v50, 1  ;;  %v3649_v37 = vsel %vm2291_vm2, %v3646_v20, %v3648_v24 }
 0x25c   : > { %v2334_v61 = vsel %vm2291_vm2, %v2331_v47, %v2333_v26 }
 0x25d   : > { %11686 = vmatmul.msk.bf16.gmra.mxu0 %vm1239_vm1, %v4634_v14  ;;  %v2703_v16 = vpop.f32.mrf.mxu2  ;;  %v4018_v11 = vpop.f32.mrf.mxu3  ;;  %v12392_v14 = vld [vmem:[%s12740_s30 + $0xc0] sm:$0xff] }
 0x25e   : > { %v3010_v15 = vadd.f32 %v2703_v16, %v2000_v2  ;;  %v2001_v62 = vpop.f32.mrf.mxu1  ;;  %v4645_v16 = vshrl.u32 %v12392_v14, 16 }
 0x25f   : > { %v2002_v17 = vadd.f32 %v2001_v62, %v13218_v35 }
 0x260   : > { %v4325_v42 = vadd.f32 %v4018_v11, %v3010_v15  ;;  %v4648_v15 = vshll.u32 %v12392_v14, 16  ;;  %v4647_v54 = vrot.slane %v4645_v16, 1 }
 0x262   : > { %v5343_v57 = vpop.f32.mrf.mxu0  ;;  %v13529_v31 = vadd.f32 %v5341_v0, %v4325_v42  ;;  %v4643_v0 = vsel %vm4446_vm3, %v4633_v51, %v4642_v6  ;;  %v4650_v51 = vrot.slane %v4648_v15, 2  ;;  %v12555_v42 = vld [vmem:[%s12740_s30 + $0xb0] sm:$0xff] }
 0x265   : > { %v2705_v49 = vpop.f32.mrf.mxu2  ;;  %v4020_v5 = vpop.f32.mrf.mxu3 }
 0x266   : > { %v3011_v58 = vadd.f32 %v2705_v49, %v2002_v17  ;;  %v2004_v10 = vpop.f32.mrf.mxu1 }
 0x267   : > { %v2005_v59 = vadd.f32 %v2004_v10, %v13229_v55  ;;  %v3650_v55 = vrot.slane %v12392_v14, 1 }
 0x268   : > { %v4326_v27 = vadd.f32 %v4020_v5, %v3011_v58  ;;  %v4651_v58 = vor.u32 %v4650_v51, %v4647_v54 }
 0x269   : > { %11197 = vmatmul.msk.bf16.gmra.mxu1 %vm1239_vm1, %v12553_v44 }
 0x26a   : > { %v5346_v3 = vpop.f32.mrf.mxu0  ;;  %11271 = vmatmul.msk.bf16.gmra.mxu2 %vm1239_vm1, %v2334_v61  ;;  %v13539_v35 = vadd.f32 %v5343_v57, %v4326_v27  ;;  %11613 = vmatmul.msk.bf16.gmra.mxu3 %vm1239_vm1, %v3649_v37  ;;  %v2335_v57 = vrot.slane %v12555_v42, 1  ;;  %v3651_v27 = vsel %vm2291_vm2, %v3648_v24, %v3650_v55 }
 0x26c   : > { %v2336_v10 = vsel %vm2291_vm2, %v2333_v26, %v2335_v57 }
 0x26d   : > { %11687 = vmatmul.msk.bf16.gmra.mxu0 %vm1239_vm1, %v4643_v0  ;;  %v2708_v47 = vpop.f32.mrf.mxu2  ;;  %v4023_v20 = vpop.f32.mrf.mxu3  ;;  %v12393_v0 = vld [vmem:[%s12740_s30 + $0xc8] sm:$0xff] }
 0x26e   : > { %v3012_v2 = vadd.f32 %v2708_v47, %v2005_v59  ;;  %v2006_v44 = vpop.f32.mrf.mxu1  ;;  %v4654_v47 = vshrl.u32 %v12393_v0, 16 }
 0x26f   : > { %v2007_v32 = vadd.f32 %v2006_v44, %v13243_v33 }
 0x270   : > { %v4327_v11 = vadd.f32 %v4023_v20, %v3012_v2  ;;  %v4657_v2 = vshll.u32 %v12393_v0, 16  ;;  %v4656_v15 = vrot.slane %v4654_v47, 1 }
 0x272   : > { %v5348_v46 = vpop.f32.mrf.mxu0  ;;  %v13544_v62 = vadd.f32 %v5346_v3, %v4327_v11  ;;  %v4652_v3 = vsel %vm4446_vm3, %v4642_v6, %v4651_v58  ;;  %v4659_v6 = vrot.slane %v4657_v2, 2  ;;  %v12556_v11 = vld [vmem:[%s12740_s30 + $0xb8] sm:$0xff] }
 0x275   : > { %v2710_v28 = vpop.f32.mrf.mxu2  ;;  %v4025_v49 = vpop.f32.mrf.mxu3 }
 0x276   : > { %v3013_v17 = vadd.f32 %v2710_v28, %v2007_v32  ;;  %v2009_v5 = vpop.f32.mrf.mxu1 }
 0x277   : > { %v2010_v14 = vadd.f32 %v2009_v5, %v13254_v41  ;;  %v3652_v41 = vrot.slane %v12393_v0, 1 }
 0x278   : > { %v4328_v61 = vadd.f32 %v4025_v49, %v3013_v17  ;;  %v4660_v17 = vor.u32 %v4659_v6, %v4656_v15 }
 0x279   : > { %11198 = vmatmul.msk.bf16.gmra.mxu1 %vm1239_vm1, %v12554_v50 }
 0x27a   : > { %v5351_v37 = vpop.f32.mrf.mxu0  ;;  %11272 = vmatmul.msk.bf16.gmra.mxu2 %vm1239_vm1, %v2336_v10  ;;  %v13554_v33 = vadd.f32 %v5348_v46, %v4328_v61  ;;  %11614 = vmatmul.msk.bf16.gmra.mxu3 %vm1239_vm1, %v3651_v27  ;;  %v2337_v46 = vrot.slane %v12556_v11, 1  ;;  %v3653_v61 = vsel %vm2291_vm2, %v3650_v55, %v3652_v41 }
 0x27c   : > { %v2338_v5 = vsel %vm2291_vm2, %v2335_v57, %v2337_v46 }
 0x27d   : > { %11688 = vmatmul.msk.bf16.gmra.mxu0 %vm1239_vm1, %v4652_v3  ;;  %v2713_v26 = vpop.f32.mrf.mxu2  ;;  %v4028_v24 = vpop.f32.mrf.mxu3  ;;  %v12394_v3 = vld [vmem:[%s12740_s30 + $0xd0] sm:$0xff] }
 0x27e   : > { %v3014_v59 = vadd.f32 %v2713_v26, %v2010_v14  ;;  %v2011_v50 = vpop.f32.mrf.mxu1  ;;  %v4663_v26 = vshrl.u32 %v12394_v3, 16 }
 0x27f   : > { %v2012_v54 = vadd.f32 %v2011_v50, %v13268_v21 }
 0x280   : > { %v4329_v20 = vadd.f32 %v4028_v24, %v3014_v59  ;;  %v4666_v59 = vshll.u32 %v12394_v3, 16  ;;  %v4665_v2 = vrot.slane %v4663_v26, 1 }
 0x282   : > { %v5353_v16 = vpop.f32.mrf.mxu0  ;;  %v13559_v44 = vadd.f32 %v5351_v37, %v4329_v20  ;;  %v4661_v37 = vsel %vm4446_vm3, %v4651_v58, %v4660_v17  ;;  %v4668_v58 = vrot.slane %v4666_v59, 2  ;;  %v12557_v20 = vld [vmem:[%s12740_s30 + $0xc0] sm:$0xff] }
 0x285   : > { %v2715_v51 = vpop.f32.mrf.mxu2  ;;  %v4030_v28 = vpop.f32.mrf.mxu3 }
 0x286   : > { %v3015_v32 = vadd.f32 %v2715_v51, %v2012_v54  ;;  %v2014_v49 = vpop.f32.mrf.mxu1 }
 0x287   : > { %v2015_v0 = vadd.f32 %v2014_v49, %v13279_v8  ;;  %v3654_v8 = vrot.slane %v12394_v3, 1 }
 0x288   : > { %v4330_v10 = vadd.f32 %v4030_v28, %v3015_v32  ;;  %v4669_v32 = vor.u32 %v4668_v58, %v4665_v2 }
 0x289   : > { %11199 = vmatmul.msk.bf16.gmra.mxu1 %vm1239_vm1, %v12555_v42 }
 0x28a   : > { %v5356_v27 = vpop.f32.mrf.mxu0  ;;  %11273 = vmatmul.msk.bf16.gmra.mxu2 %vm1239_vm1, %v2338_v5  ;;  %v13569_v21 = vadd.f32 %v5353_v16, %v4330_v10  ;;  %11615 = vmatmul.msk.bf16.gmra.mxu3 %vm1239_vm1, %v3653_v61  ;;  %v2339_v16 = vrot.slane %v12557_v20, 1  ;;  %v3655_v10 = vsel %vm2291_vm2, %v3652_v41, %v3654_v8 }
 0x28c   : > { %v2340_v49 = vsel %vm2291_vm2, %v2337_v46, %v2339_v16 }
 0x28d   : > { %11689 = vmatmul.msk.bf16.gmra.mxu0 %vm1239_vm1, %v4661_v37  ;;  %v2718_v57 = vpop.f32.mrf.mxu2  ;;  %v4033_v55 = vpop.f32.mrf.mxu3  ;;  %v12395_v37 = vld [vmem:[%s12740_s30 + $0xd8] sm:$0xff] }
 0x28e   : > { %v3016_v14 = vadd.f32 %v2718_v57, %v2015_v0  ;;  %v2016_v42 = vpop.f32.mrf.mxu1  ;;  %v4672_v57 = vshrl.u32 %v12395_v37, 16 }
 0x28f   : > { %v2017_v15 = vadd.f32 %v2016_v42, %v13293_v30 }
 0x290   : > { %v4331_v24 = vadd.f32 %v4033_v55, %v3016_v14  ;;  %v4675_v14 = vshll.u32 %v12395_v37, 16  ;;  %v4674_v59 = vrot.slane %v4672_v57, 1 }
 0x292   : > { %v5358_v47 = vpop.f32.mrf.mxu0  ;;  %v13574_v50 = vadd.f32 %v5356_v27, %v4331_v24  ;;  %v4670_v27 = vsel %vm4446_vm3, %v4660_v17, %v4669_v32  ;;  %v4677_v17 = vrot.slane %v4675_v14, 2  ;;  %v12558_v24 = vld [vmem:[%s12740_s30 + $0xc8] sm:$0xff] }
 0x295   : > { %v2720_v6 = vpop.f32.mrf.mxu2  ;;  %v4035_v51 = vpop.f32.mrf.mxu3 }
 0x296   : > { %v3017_v54 = vadd.f32 %v2720_v6, %v2017_v15  ;;  %v2019_v28 = vpop.f32.mrf.mxu1 }
 0x297   : > { %v2020_v3 = vadd.f32 %v2019_v28, %v13304_v43  ;;  %v3656_v43 = vrot.slane %v12395_v37, 1 }
 0x298   : > { %v4332_v5 = vadd.f32 %v4035_v51, %v3017_v54  ;;  %v4678_v54 = vor.u32 %v4677_v17, %v4674_v59  ;;  %v16268_v59 = vld [vmem:[#allocation104_spill] sm:$0xff] }
 0x299   : > { %11200 = vmatmul.msk.bf16.gmra.mxu1 %vm1239_vm1, %v12556_v11 }
 0x29a   : > { %v5361_v61 = vpop.f32.mrf.mxu0  ;;  %11274 = vmatmul.msk.bf16.gmra.mxu2 %vm1239_vm1, %v2340_v49  ;;  %v13584_v30 = vadd.f32 %v5358_v47, %v4332_v5  ;;  %11616 = vmatmul.msk.bf16.gmra.mxu3 %vm1239_vm1, %v3655_v10  ;;  %v2341_v47 = vrot.slane %v12558_v24, 1  ;;  %v3657_v5 = vsel %vm2291_vm2, %v3654_v8, %v3656_v43 }
 0x29c   : > { %v2342_v28 = vsel %vm2291_vm2, %v2339_v16, %v2341_v47 }
 0x29d   : > { %11690 = vmatmul.msk.bf16.gmra.mxu0 %vm1239_vm1, %v4670_v27  ;;  %v2723_v46 = vpop.f32.mrf.mxu2  ;;  %v4038_v41 = vpop.f32.mrf.mxu3  ;;  %v12396_v27 = vld [vmem:[%s12740_s30 + $0xe0] sm:$0xff] }
 0x29e   : > { %v3018_v0 = vadd.f32 %v2723_v46, %v2020_v3  ;;  %v2021_v11 = vpop.f32.mrf.mxu1  ;;  %v4681_v46 = vshrl.u32 %v12396_v27, 16 }
 0x29f   : > { %v2022_v2 = vadd.f32 %v2021_v11, %v13318_v60 }
 0x2a0   : > { %v4333_v55 = vadd.f32 %v4038_v41, %v3018_v0  ;;  %v4684_v0 = vshll.u32 %v12396_v27, 16  ;;  %v4683_v14 = vrot.slane %v4681_v46, 1 }
 0x2a2   : > { %v5363_v26 = vpop.f32.mrf.mxu0  ;;  %v13589_v42 = vadd.f32 %v5361_v61, %v4333_v55  ;;  %v4679_v61 = vsel %vm4446_vm3, %v4669_v32, %v4678_v54  ;;  %v4686_v32 = vrot.slane %v4684_v0, 2  ;;  %v12559_v55 = vld [vmem:[%s12740_s30 + $0xd0] sm:$0xff] }
 0x2a5   : > { %v2725_v58 = vpop.f32.mrf.mxu2  ;;  %v4040_v6 = vpop.f32.mrf.mxu3 }
 0x2a6   : > { %v3019_v15 = vadd.f32 %v2725_v58, %v2022_v2  ;;  %v2024_v51 = vpop.f32.mrf.mxu1 }
 0x2a7   : > { %v2025_v37 = vadd.f32 %v2024_v51, %v13329_v53  ;;  %v3658_v53 = vrot.slane %v12396_v27, 1 }
 0x2a8   : > { %v4334_v49 = vadd.f32 %v4040_v6, %v3019_v15  ;;  %v4687_v6 = vor.u32 %v4686_v32, %v4683_v14 }
 0x2a9   : > { %11201 = vmatmul.msk.bf16.gmra.mxu1 %vm1239_vm1, %v12557_v20 }
 0x2aa   : > { %v5366_v10 = vpop.f32.mrf.mxu0  ;;  %11275 = vmatmul.msk.bf16.gmra.mxu2 %vm1239_vm1, %v2342_v28  ;;  %v13599_v60 = vadd.f32 %v5363_v26, %v4334_v49  ;;  %11617 = vmatmul.msk.bf16.gmra.mxu3 %vm1239_vm1, %v3657_v5  ;;  %v2343_v26 = vrot.slane %v12559_v55, 1  ;;  %v3659_v5 = vsel %vm2291_vm2, %v3656_v43, %v3658_v53 }
 0x2ac   : > { %v2344_v28 = vsel %vm2291_vm2, %v2341_v47, %v2343_v26 }
 0x2ad   : > { %11691 = vmatmul.msk.bf16.gmra.mxu0 %vm1239_vm1, %v4679_v61  ;;  %v2728_v16 = vpop.f32.mrf.mxu2  ;;  %v4043_v8 = vpop.f32.mrf.mxu3 }
 0x2ae   : > { %v3020_v3 = vadd.f32 %v2728_v16, %v2025_v37  ;;  %v2026_v20 = vpop.f32.mrf.mxu1  ;;  %v12397_v37 = vld [vmem:[%s12740_s30 + $0xe8] sm:$0xff]  ;;  %v16270_v16 = vld [vmem:[#allocation2_spill] sm:$0xff] }
 0x2af   : > { %v2027_v17 = vadd.f32 %v2026_v20, %v16268_v59  ;;  %v4690_v46 = vshrl.u32 %v12397_v37, 16  ;;  %v4693_v0 = vshll.u32 %v12397_v37, 16 }
 0x2b0   : > { %v4335_v41 = vadd.f32 %v4043_v8, %v3020_v3 }
 0x2b1   : > { %v4692_v14 = vrot.slane %v4690_v46, 1 }
 0x2b2   : > { %v5368_v57 = vpop.f32.mrf.mxu0  ;;  %v13604_v11 = vadd.f32 %v5366_v10, %v4335_v41  ;;  %v4688_v10 = vsel %vm4446_vm3, %v4678_v54, %v4687_v6  ;;  %v4695_v54 = vrot.slane %v4693_v0, 2 }
 0x2b5   : > { %v2730_v2 = vpop.f32.mrf.mxu2  ;;  %v4045_v15 = vpop.f32.mrf.mxu3 }
 0x2b6   : > { %v3021_v58 = vadd.f32 %v2730_v2, %v2027_v17  ;;  %v2029_v51 = vpop.f32.mrf.mxu1  ;;  %v16272_v17 = vld [vmem:[#allocation5_spill] sm:$0xff] }
 0x2b7   : > { %v2030_v3 = vadd.f32 %v2029_v51, %v16270_v16 }
 0x2b8   : > { %v4336_v49 = vadd.f32 %v4045_v15, %v3021_v58  ;;  %v3660_v58 = vrot.slane %v12397_v37, 1 }
 0x2b9   : > { %11202 = vmatmul.msk.bf16.gmra.mxu1 %vm1239_vm1, %v12558_v24 }
 0x2ba   : > { %v5371_v61 = vpop.f32.mrf.mxu0  ;;  %11276 = vmatmul.msk.bf16.gmra.mxu2 %vm1239_vm1, %v2344_v28  ;;  %v13614_v27 = vadd.f32 %v5368_v57, %v4336_v49  ;;  %11618 = vmatmul.msk.bf16.gmra.mxu3 %vm1239_vm1, %v3659_v5  ;;  %v12560_v57 = vld [vmem:[%s12740_s30 + $0xd8] sm:$0xff]  ;;  %v4696_v49 = vor.u32 %v4695_v54, %v4692_v14 }
 0x2bb   : > { %v2345_v59 = vrot.slane %v12560_v57, 1 }
 0x2bc   : > { %16269 = vst [vmem:[#allocation104_spill] sm:$0xff] %v13614_v27 }
 0x2bd   : > { %11692 = vmatmul.msk.bf16.gmra.mxu0 %vm1239_vm1, %v4688_v10  ;;  %v2733_v47 = vpop.f32.mrf.mxu2  ;;  %v4048_v43 = vpop.f32.mrf.mxu3  ;;  %v2346_v10 = vsel %vm2291_vm2, %v2343_v26, %v2345_v59 }
 0x2be   : > { %v3022_v8 = vadd.f32 %v2733_v47, %v2030_v3  ;;  %v2031_v24 = vpop.f32.mrf.mxu1  ;;  %v3661_v3 = vsel %vm2291_vm2, %v3658_v53, %v3660_v58 }
 0x2bf   : > { %v2032_v2 = vadd.f32 %v2031_v24, %v16272_v17 }
 0x2c0   : > { %v4337_v20 = vadd.f32 %v4048_v43, %v3022_v8  ;;  %v12398_v8 = vld [vmem:[%s12740_s30 + $0xf0] sm:$0xff] }
 0x2c1   : > { %v16274_v43 = vld [vmem:[#allocation8_spill] sm:$0xff]  ;;  %v4699_v24 = vshrl.u32 %v12398_v8, 16 }
 0x2c2   : > { %v5373_v41 = vpop.f32.mrf.mxu0  ;;  %v13619_v32 = vadd.f32 %v5371_v61, %v4337_v20  ;;  %v4697_v61 = vsel %vm4446_vm3, %v4687_v6, %v4696_v49  ;;  %v4702_v20 = vshll.u32 %v12398_v8, 16 }
 0x2c3   : > { %v4701_v17 = vrot.slane %v4699_v24, 1  ;;  %v12399_v24 = vld [vmem:[%s12740_s30 + $0xf8] sm:$0xff] }
 0x2c4   : > { %16271 = vst [vmem:[#allocation2_spill] sm:$0xff] %v13619_v32  ;;  %v4704_v6 = vrot.slane %v4702_v20, 2  ;;  %v16278_v20 = vld [vmem:[#allocation14_spill] sm:$0xff] }
 0x2c5   : > { %v2735_v15 = vpop.f32.mrf.mxu2  ;;  %v4050_v28 = vpop.f32.mrf.mxu3 }
 0x2c6   : > { %v3023_v51 = vadd.f32 %v2735_v15, %v2032_v2  ;;  %v2034_v5 = vpop.f32.mrf.mxu1 }
 0x2c7   : > { %v2035_v46 = vadd.f32 %v2034_v5, %v16274_v43  ;;  %v3662_v5 = vrot.slane %v12398_v8, 1 }
 0x2c8   : > { %v4338_v16 = vadd.f32 %v4050_v28, %v3023_v51  ;;  %v16276_v51 = vld [vmem:[#allocation11_spill] sm:$0xff] }
 0x2c9   : > { %11203 = vmatmul.msk.bf16.gmra.mxu1 %vm1239_vm1, %v12559_v55 }
 0x2ca   : > { %v5376_v47 = vpop.f32.mrf.mxu0  ;;  %11277 = vmatmul.msk.bf16.gmra.mxu2 %vm1239_vm1, %v2346_v10  ;;  %v13629_v37 = vadd.f32 %v5373_v41, %v4338_v16  ;;  %11619 = vmatmul.msk.bf16.gmra.mxu3 %vm1239_vm1, %v3661_v3  ;;  %v12561_v41 = vld [vmem:[%s12740_s30 + $0xe0] sm:$0xff] }
 0x2cb   : > { %v2347_v15 = vrot.slane %v12561_v41, 1 }
 0x2cc   : > { %16273 = vst [vmem:[#allocation5_spill] sm:$0xff] %v13629_v37 }
 0x2cd   : > { %11693 = vmatmul.msk.bf16.gmra.mxu0 %vm1239_vm1, %v4697_v61  ;;  %v2738_v26 = vpop.f32.mrf.mxu2  ;;  %v4053_v53 = vpop.f32.mrf.mxu3  ;;  %v4705_v61 = vor.u32 %v4704_v6, %v4701_v17  ;;  %v4708_v17 = vshrl.u32 %v12399_v24, 16  ;;  %v4711_v6 = vshll.u32 %v12399_v24, 16 }
 0x2ce   : > { %v3024_v0 = vadd.f32 %v2738_v26, %v2035_v46  ;;  %v2036_v55 = vpop.f32.mrf.mxu1  ;;  %v2348_v46 = vsel %vm2291_vm2, %v2345_v59, %v2347_v15 }
 0x2cf   : > { %v2037_v28 = vadd.f32 %v2036_v55, %v16276_v51 }
 0x2d0   : > { %v4339_v14 = vadd.f32 %v4053_v53, %v3024_v0  ;;  %v3663_v0 = vsel %vm2291_vm2, %v3660_v58, %v3662_v5 }
 0x2d2   : > { %v5378_v54 = vpop.f32.mrf.mxu0  ;;  %v13634_v2 = vadd.f32 %v5376_v47, %v4339_v14  ;;  %v4706_v47 = vsel %vm4446_vm3, %v4696_v49, %v4705_v61  ;;  %v4713_v49 = vrot.slane %v4711_v6, 2  ;;  %v16282_v6 = vld [vmem:[#allocation20_spill] sm:$0xff] }
 0x2d4   : > { %16275 = vst [vmem:[#allocation8_spill] sm:$0xff] %v13634_v2 }
 0x2d5   : > { %v2740_v10 = vpop.f32.mrf.mxu2  ;;  %v4055_v3 = vpop.f32.mrf.mxu3 }
 0x2d6   : > { %v3025_v16 = vadd.f32 %v2740_v10, %v2037_v28  ;;  %v2039_v43 = vpop.f32.mrf.mxu1  ;;  %v4710_v10 = vrot.slane %v4708_v17, 1  ;;  %v12400_v17 = vld [vmem:[%s12740_s30 + $0x100] sm:$0xff] }
 0x2d7   : > { %v2040_v55 = vadd.f32 %v2039_v43, %v16278_v20  ;;  %v3664_v43 = vrot.slane %v12399_v24, 1 }
 0x2d8   : > { %v4340_v26 = vadd.f32 %v4055_v3, %v3025_v16 }
 0x2d9   : > { %11204 = vmatmul.msk.bf16.gmra.mxu1 %vm1239_vm1, %v12560_v57 }
 0x2da   : > { %v5381_v53 = vpop.f32.mrf.mxu0  ;;  %11278 = vmatmul.msk.bf16.gmra.mxu2 %vm1239_vm1, %v2348_v46  ;;  %v13644_v8 = vadd.f32 %v5378_v54, %v4340_v26  ;;  %11620 = vmatmul.msk.bf16.gmra.mxu3 %vm1239_vm1, %v3663_v0  ;;  %v12562_v54 = vld [vmem:[%s12740_s30 + $0xe8] sm:$0xff]  ;;  %v16280_v46 = vld [vmem:[#allocation17_spill] sm:$0xff] }
 0x2db   : > { %v2349_v3 = vrot.slane %v12562_v54, 1 }
 0x2dc   : > { %16277 = vst [vmem:[#allocation11_spill] sm:$0xff] %v13644_v8 }
 0x2dd   : > { %11694 = vmatmul.msk.bf16.gmra.mxu0 %vm1239_vm1, %v4706_v47  ;;  %v2743_v59 = vpop.f32.mrf.mxu2  ;;  %v4058_v58 = vpop.f32.mrf.mxu3  ;;  %v2350_v8 = vsel %vm2291_vm2, %v2347_v15, %v2349_v3 }
 0x2de   : > { %v3026_v14 = vadd.f32 %v2743_v59, %v2040_v55  ;;  %v2041_v57 = vpop.f32.mrf.mxu1  ;;  %v4714_v55 = vor.u32 %v4713_v49, %v4710_v10  ;;  %v4717_v10 = vshrl.u32 %v12400_v17, 16  ;;  %v4720_v49 = vshll.u32 %v12400_v17, 16 }
 0x2df   : > { %v2042_v26 = vadd.f32 %v2041_v57, %v16280_v46 }
 0x2e0   : > { %v4341_v51 = vadd.f32 %v4058_v58, %v3026_v14  ;;  %v3665_v14 = vsel %vm2291_vm2, %v3662_v5, %v3664_v43 }
 0x2e2   : > { %v5383_v28 = vpop.f32.mrf.mxu0  ;;  %v13649_v16 = vadd.f32 %v5381_v53, %v4341_v51  ;;  %v4715_v53 = vsel %vm4446_vm3, %v4705_v61, %v4714_v55  ;;  %v4722_v61 = vrot.slane %v4720_v49, 2  ;;  %v16286_v49 = vld [vmem:[#allocation26_spill] sm:$0xff] }
 0x2e4   : > { %16279 = vst [vmem:[#allocation14_spill] sm:$0xff] %v13649_v16 }
 0x2e5   : > { %v2745_v0 = vpop.f32.mrf.mxu2  ;;  %v4060_v20 = vpop.f32.mrf.mxu3 }
 0x2e6   : > { %v3027_v47 = vadd.f32 %v2745_v0, %v2042_v26  ;;  %v2044_v59 = vpop.f32.mrf.mxu1  ;;  %v4719_v26 = vrot.slane %v4717_v10, 1  ;;  %v12401_v10 = vld [vmem:[%s12740_s30 + $0x108] sm:$0xff] }
 0x2e7   : > { %v2045_v57 = vadd.f32 %v2044_v59, %v16282_v6  ;;  %v3666_v59 = vrot.slane %v12400_v17, 1 }
 0x2e8   : > { %v4342_v2 = vadd.f32 %v4060_v20, %v3027_v47  ;;  %v16284_v47 = vld [vmem:[#allocation23_spill] sm:$0xff] }
 0x2e9   : > { %11205 = vmatmul.msk.bf16.gmra.mxu1 %vm1239_vm1, %v12561_v41 }
 0x2ea   : > { %v5386_v58 = vpop.f32.mrf.mxu0  ;;  %11279 = vmatmul.msk.bf16.gmra.mxu2 %vm1239_vm1, %v2350_v8  ;;  %v13659_v24 = vadd.f32 %v5383_v28, %v4342_v2  ;;  %11621 = vmatmul.msk.bf16.gmra.mxu3 %vm1239_vm1, %v3665_v14  ;;  %v12563_v2 = vld [vmem:[%s12740_s30 + $0xf0] sm:$0xff] }
 0x2eb   : > { %v2351_v28 = vrot.slane %v12563_v2, 1 }
 0x2ec   : > { %16281 = vst [vmem:[#allocation17_spill] sm:$0xff] %v13659_v24 }
 0x2ed   : > { %11695 = vmatmul.msk.bf16.gmra.mxu0 %vm1239_vm1, %v4715_v53  ;;  %v2748_v15 = vpop.f32.mrf.mxu2  ;;  %v4063_v5 = vpop.f32.mrf.mxu3  ;;  %v2352_v24 = vsel %vm2291_vm2, %v2349_v3, %v2351_v28 }
 0x2ee   : > { %v3028_v51 = vadd.f32 %v2748_v15, %v2045_v57  ;;  %v2046_v41 = vpop.f32.mrf.mxu1  ;;  %v4723_v57 = vor.u32 %v4722_v61, %v4719_v26  ;;  %v4726_v26 = vshrl.u32 %v12401_v10, 16  ;;  %v4729_v61 = vshll.u32 %v12401_v10, 16 }
 0x2ef   : > { %v2047_v20 = vadd.f32 %v2046_v41, %v16284_v47 }
 0x2f0   : > { %v4343_v46 = vadd.f32 %v4063_v5, %v3028_v51  ;;  %v3667_v51 = vsel %vm2291_vm2, %v3664_v43, %v3666_v59 }
 0x2f2   : > { %v5388_v8 = vpop.f32.mrf.mxu0  ;;  %v13664_v0 = vadd.f32 %v5386_v58, %v4343_v46  ;;  %v4724_v58 = vsel %vm4446_vm3, %v4714_v55, %v4723_v57  ;;  %v4731_v55 = vrot.slane %v4729_v61, 2  ;;  %v16290_v61 = vld [vmem:[#allocation32_spill] sm:$0xff] }
 0x2f4   : > { %16283 = vst [vmem:[#allocation20_spill] sm:$0xff] %v13664_v0 }
 0x2f5   : > { %v2750_v14 = vpop.f32.mrf.mxu2  ;;  %v4065_v6 = vpop.f32.mrf.mxu3 }
 0x2f6   : > { %v3029_v53 = vadd.f32 %v2750_v14, %v2047_v20  ;;  %v2049_v15 = vpop.f32.mrf.mxu1  ;;  %v4728_v20 = vrot.slane %v4726_v26, 1  ;;  %v12402_v26 = vld [vmem:[%s12740_s30 + $0x110] sm:$0xff] }
 0x2f7   : > { %v2050_v41 = vadd.f32 %v2049_v15, %v16286_v49  ;;  %v3668_v15 = vrot.slane %v12401_v10, 1 }
 0x2f8   : > { %v4344_v16 = vadd.f32 %v4065_v6, %v3029_v53  ;;  %v16288_v53 = vld [vmem:[#allocation29_spill] sm:$0xff] }
 0x2f9   : > { %11206 = vmatmul.msk.bf16.gmra.mxu1 %vm1239_vm1, %v12562_v54 }
 0x2fa   : > { %v5391_v5 = vpop.f32.mrf.mxu0  ;;  %11280 = vmatmul.msk.bf16.gmra.mxu2 %vm1239_vm1, %v2352_v24  ;;  %v13674_v17 = vadd.f32 %v5388_v8, %v4344_v16  ;;  %11622 = vmatmul.msk.bf16.gmra.mxu3 %vm1239_vm1, %v3667_v51  ;;  %v12564_v16 = vld [vmem:[%s12740_s30 + $0xf8] sm:$0xff] }
 0x2fb   : > { %v2353_v8 = vrot.slane %v12564_v16, 1 }
 0x2fc   : > { %16285 = vst [vmem:[#allocation23_spill] sm:$0xff] %v13674_v17 }
 0x2fd   : > { %11696 = vmatmul.msk.bf16.gmra.mxu0 %vm1239_vm1, %v4724_v58  ;;  %v2753_v3 = vpop.f32.mrf.mxu2  ;;  %v4068_v43 = vpop.f32.mrf.mxu3  ;;  %v2354_v17 = vsel %vm2291_vm2, %v2351_v28, %v2353_v8 }
 0x2fe   : > { %v3030_v46 = vadd.f32 %v2753_v3, %v2050_v41  ;;  %v2051_v54 = vpop.f32.mrf.mxu1  ;;  %v4732_v41 = vor.u32 %v4731_v55, %v4728_v20  ;;  %v4735_v20 = vshrl.u32 %v12402_v26, 16  ;;  %v4738_v55 = vshll.u32 %v12402_v26, 16 }
 0x2ff   : > { %v2052_v6 = vadd.f32 %v2051_v54, %v16288_v53 }
 0x300   : > { %v4345_v47 = vadd.f32 %v4068_v43, %v3030_v46  ;;  %v3669_v46 = vsel %vm2291_vm2, %v3666_v59, %v3668_v15 }
 0x302   : > { %v5393_v24 = vpop.f32.mrf.mxu0  ;;  %v13679_v14 = vadd.f32 %v5391_v5, %v4345_v47  ;;  %v4733_v5 = vsel %vm4446_vm3, %v4723_v57, %v4732_v41  ;;  %v4740_v57 = vrot.slane %v4738_v55, 2  ;;  %v16294_v55 = vld [vmem:[#allocation38_spill] sm:$0xff] }
 0x304   : > { %16287 = vst [vmem:[#allocation26_spill] sm:$0xff] %v13679_v14 }
 0x305   : > { %v2755_v51 = vpop.f32.mrf.mxu2  ;;  %v4070_v49 = vpop.f32.mrf.mxu3 }
 0x306   : > { %v3031_v58 = vadd.f32 %v2755_v51, %v2052_v6  ;;  %v2054_v3 = vpop.f32.mrf.mxu1  ;;  %v4737_v6 = vrot.slane %v4735_v20, 1  ;;  %v12403_v20 = vld [vmem:[%s12740_s30 + $0x118] sm:$0xff] }
 0x307   : > { %v2055_v54 = vadd.f32 %v2054_v3, %v16290_v61  ;;  %v3670_v3 = vrot.slane %v12402_v26, 1 }
 0x308   : > { %v4346_v0 = vadd.f32 %v4070_v49, %v3031_v58  ;;  %v16292_v58 = vld [vmem:[#allocation35_spill] sm:$0xff] }
 0x309   : > { %11207 = vmatmul.msk.bf16.gmra.mxu1 %vm1239_vm1, %v12563_v2 }
 0x30a   : > { %v5396_v43 = vpop.f32.mrf.mxu0  ;;  %11281 = vmatmul.msk.bf16.gmra.mxu2 %vm1239_vm1, %v2354_v17  ;;  %v13689_v10 = vadd.f32 %v5393_v24, %v4346_v0  ;;  %11623 = vmatmul.msk.bf16.gmra.mxu3 %vm1239_vm1, %v3669_v46  ;;  %v12565_v0 = vld [vmem:[%s12740_s30 + $0x100] sm:$0xff] }
 0x30b   : > { %v2355_v24 = vrot.slane %v12565_v0, 1 }
 0x30c   : > { %16289 = vst [vmem:[#allocation29_spill] sm:$0xff] %v13689_v10 }
 0x30d   : > { %11697 = vmatmul.msk.bf16.gmra.mxu0 %vm1239_vm1, %v4733_v5  ;;  %v2758_v28 = vpop.f32.mrf.mxu2  ;;  %v4073_v59 = vpop.f32.mrf.mxu3  ;;  %v2356_v10 = vsel %vm2291_vm2, %v2353_v8, %v2355_v24 }
 0x30e   : > { %v3032_v47 = vadd.f32 %v2758_v28, %v2055_v54  ;;  %v2056_v2 = vpop.f32.mrf.mxu1  ;;  %v4741_v54 = vor.u32 %v4740_v57, %v4737_v6  ;;  %v4744_v6 = vshrl.u32 %v12403_v20, 16  ;;  %v4747_v57 = vshll.u32 %v12403_v20, 16 }
 0x30f   : > { %v2057_v49 = vadd.f32 %v2056_v2, %v16292_v58 }
 0x310   : > { %v4347_v53 = vadd.f32 %v4073_v59, %v3032_v47  ;;  %v3671_v47 = vsel %vm2291_vm2, %v3668_v15, %v3670_v3 }
 0x312   : > { %v5398_v17 = vpop.f32.mrf.mxu0  ;;  %v13694_v51 = vadd.f32 %v5396_v43, %v4347_v53  ;;  %v4742_v43 = vsel %vm4446_vm3, %v4732_v41, %v4741_v54  ;;  %v4749_v41 = vrot.slane %v4747_v57, 2  ;;  %v16298_v57 = vld [vmem:[#allocation44_spill] sm:$0xff] }
 0x314   : > { %16291 = vst [vmem:[#allocation32_spill] sm:$0xff] %v13694_v51 }
 0x315   : > { %v2760_v46 = vpop.f32.mrf.mxu2  ;;  %v4075_v61 = vpop.f32.mrf.mxu3 }
 0x316   : > { %v3033_v5 = vadd.f32 %v2760_v46, %v2057_v49  ;;  %v2059_v28 = vpop.f32.mrf.mxu1  ;;  %v4746_v49 = vrot.slane %v4744_v6, 1  ;;  %v12404_v6 = vld [vmem:[%s12740_s30 + $0x120] sm:$0xff] }
 0x317   : > { %v2060_v2 = vadd.f32 %v2059_v28, %v16294_v55  ;;  %v3672_v28 = vrot.slane %v12403_v20, 1 }
 0x318   : > { %v4348_v14 = vadd.f32 %v4075_v61, %v3033_v5  ;;  %v16296_v5 = vld [vmem:[#allocation41_spill] sm:$0xff] }
 0x319   : > { %11208 = vmatmul.msk.bf16.gmra.mxu1 %vm1239_vm1, %v12564_v16 }
 0x31a   : > { %v5401_v59 = vpop.f32.mrf.mxu0  ;;  %11282 = vmatmul.msk.bf16.gmra.mxu2 %vm1239_vm1, %v2356_v10  ;;  %v13704_v26 = vadd.f32 %v5398_v17, %v4348_v14  ;;  %11624 = vmatmul.msk.bf16.gmra.mxu3 %vm1239_vm1, %v3671_v47  ;;  %v12566_v14 = vld [vmem:[%s12740_s30 + $0x108] sm:$0xff] }
 0x31b   : > { %v2357_v17 = vrot.slane %v12566_v14, 1 }
 0x31c   : > { %16293 = vst [vmem:[#allocation35_spill] sm:$0xff] %v13704_v26 }
 0x31d   : > { %11698 = vmatmul.msk.bf16.gmra.mxu0 %vm1239_vm1, %v4742_v43  ;;  %v2763_v8 = vpop.f32.mrf.mxu2  ;;  %v4078_v15 = vpop.f32.mrf.mxu3  ;;  %v2358_v26 = vsel %vm2291_vm2, %v2355_v24, %v2357_v17 }
 0x31e   : > { %v3034_v53 = vadd.f32 %v2763_v8, %v2060_v2  ;;  %v2061_v16 = vpop.f32.mrf.mxu1  ;;  %v4750_v2 = vor.u32 %v4749_v41, %v4746_v49  ;;  %v4753_v49 = vshrl.u32 %v12404_v6, 16  ;;  %v4756_v41 = vshll.u32 %v12404_v6, 16 }
 0x31f   : > { %v2062_v61 = vadd.f32 %v2061_v16, %v16296_v5 }
 0x320   : > { %v4349_v58 = vadd.f32 %v4078_v15, %v3034_v53  ;;  %v3673_v53 = vsel %vm2291_vm2, %v3670_v3, %v3672_v28 }
 0x322   : > { %v5403_v10 = vpop.f32.mrf.mxu0  ;;  %v13709_v46 = vadd.f32 %v5401_v59, %v4349_v58  ;;  %v4751_v59 = vsel %vm4446_vm3, %v4741_v54, %v4750_v2  ;;  %v4758_v54 = vrot.slane %v4756_v41, 2  ;;  %v16302_v41 = vld [vmem:[#allocation52_spill] sm:$0xff] }
 0x324   : > { %16295 = vst [vmem:[#allocation38_spill] sm:$0xff] %v13709_v46 }
 0x325   : > { %v2765_v47 = vpop.f32.mrf.mxu2  ;;  %v4080_v55 = vpop.f32.mrf.mxu3 }
 0x326   : > { %v3035_v43 = vadd.f32 %v2765_v47, %v2062_v61  ;;  %v2064_v8 = vpop.f32.mrf.mxu1  ;;  %v4755_v61 = vrot.slane %v4753_v49, 1  ;;  %v12405_v49 = vld [vmem:[%s12740_s30 + $0x128] sm:$0xff] }
 0x327   : > { %v2065_v16 = vadd.f32 %v2064_v8, %v16298_v57  ;;  %v3674_v8 = vrot.slane %v12404_v6, 1 }
 0x328   : > { %v4350_v51 = vadd.f32 %v4080_v55, %v3035_v43  ;;  %v16300_v43 = vld [vmem:[#allocation48_spill] sm:$0xff] }
 0x329   : > { %11209 = vmatmul.msk.bf16.gmra.mxu1 %vm1239_vm1, %v12565_v0 }
 0x32a   : > { %v5406_v15 = vpop.f32.mrf.mxu0  ;;  %11283 = vmatmul.msk.bf16.gmra.mxu2 %vm1239_vm1, %v2358_v26  ;;  %v13719_v20 = vadd.f32 %v5403_v10, %v4350_v51  ;;  %11625 = vmatmul.msk.bf16.gmra.mxu3 %vm1239_vm1, %v3673_v53  ;;  %v12567_v51 = vld [vmem:[%s12740_s30 + $0x110] sm:$0xff] }
 0x32b   : > { %v2359_v10 = vrot.slane %v12567_v51, 1 }
 0x32c   : > { %16297 = vst [vmem:[#allocation41_spill] sm:$0xff] %v13719_v20 }
 0x32d   : > { %11699 = vmatmul.msk.bf16.gmra.mxu0 %vm1239_vm1, %v4751_v59  ;;  %v2768_v24 = vpop.f32.mrf.mxu2  ;;  %v4083_v3 = vpop.f32.mrf.mxu3  ;;  %v2360_v20 = vsel %vm2291_vm2, %v2357_v17, %v2359_v10 }
 0x32e   : > { %v3036_v58 = vadd.f32 %v2768_v24, %v2065_v16  ;;  %v2066_v0 = vpop.f32.mrf.mxu1  ;;  %v4759_v16 = vor.u32 %v4758_v54, %v4755_v61  ;;  %v4762_v61 = vshrl.u32 %v12405_v49, 16  ;;  %v4765_v54 = vshll.u32 %v12405_v49, 16 }
 0x32f   : > { %v2067_v55 = vadd.f32 %v2066_v0, %v16300_v43 }
 0x330   : > { %v4351_v5 = vadd.f32 %v4083_v3, %v3036_v58  ;;  %v3675_v58 = vsel %vm2291_vm2, %v3672_v28, %v3674_v8 }
 0x332   : > { %v5408_v26 = vpop.f32.mrf.mxu0  ;;  %v13724_v47 = vadd.f32 %v5406_v15, %v4351_v5  ;;  %v4760_v15 = vsel %vm4446_vm3, %v4750_v2, %v4759_v16  ;;  %v4767_v2 = vrot.slane %v4765_v54, 2  ;;  %v16306_v54 = vld [vmem:[#allocation58_spill] sm:$0xff] }
 0x334   : > { %16299 = vst [vmem:[#allocation44_spill] sm:$0xff] %v13724_v47 }
 0x335   : > { %v2770_v53 = vpop.f32.mrf.mxu2  ;;  %v4085_v57 = vpop.f32.mrf.mxu3 }
 0x336   : > { %v3037_v59 = vadd.f32 %v2770_v53, %v2067_v55  ;;  %v2069_v24 = vpop.f32.mrf.mxu1  ;;  %v4764_v55 = vrot.slane %v4762_v61, 1  ;;  %v12406_v61 = vld [vmem:[%s12740_s30 + $0x130] sm:$0xff] }
 0x337   : > { %v2070_v0 = vadd.f32 %v2069_v24, %v16302_v41  ;;  %v3676_v24 = vrot.slane %v12405_v49, 1 }
 0x338   : > { %v4352_v46 = vadd.f32 %v4085_v57, %v3037_v59  ;;  %v16304_v59 = vld [vmem:[#allocation55_spill] sm:$0xff] }
 0x339   : > { %11210 = vmatmul.msk.bf16.gmra.mxu1 %vm1239_vm1, %v12566_v14 }
 0x33a   : > { %v5411_v3 = vpop.f32.mrf.mxu0  ;;  %11284 = vmatmul.msk.bf16.gmra.mxu2 %vm1239_vm1, %v2360_v20  ;;  %v13734_v6 = vadd.f32 %v5408_v26, %v4352_v46  ;;  %11626 = vmatmul.msk.bf16.gmra.mxu3 %vm1239_vm1, %v3675_v58  ;;  %v12568_v46 = vld [vmem:[%s12740_s30 + $0x118] sm:$0xff] }
 0x33b   : > { %v2361_v26 = vrot.slane %v12568_v46, 1 }
 0x33c   : > { %16301 = vst [vmem:[#allocation48_spill] sm:$0xff] %v13734_v6 }
 0x33d   : > { %11700 = vmatmul.msk.bf16.gmra.mxu0 %vm1239_vm1, %v4760_v15  ;;  %v2773_v17 = vpop.f32.mrf.mxu2  ;;  %v4088_v28 = vpop.f32.mrf.mxu3  ;;  %v2362_v6 = vsel %vm2291_vm2, %v2359_v10, %v2361_v26 }
 0x33e   : > { %v3038_v5 = vadd.f32 %v2773_v17, %v2070_v0  ;;  %v2071_v14 = vpop.f32.mrf.mxu1  ;;  %v4768_v0 = vor.u32 %v4767_v2, %v4764_v55  ;;  %v4771_v55 = vshrl.u32 %v12406_v61, 16  ;;  %v4774_v2 = vshll.u32 %v12406_v61, 16 }
 0x33f   : > { %v2072_v57 = vadd.f32 %v2071_v14, %v16304_v59 }
 0x340   : > { %v4353_v43 = vadd.f32 %v4088_v28, %v3038_v5  ;;  %v3677_v5 = vsel %vm2291_vm2, %v3674_v8, %v3676_v24 }
 0x342   : > { %v5413_v20 = vpop.f32.mrf.mxu0  ;;  %v13739_v53 = vadd.f32 %v5411_v3, %v4353_v43  ;;  %v4769_v3 = vsel %vm4446_vm3, %v4759_v16, %v4768_v0  ;;  %v4776_v16 = vrot.slane %v4774_v2, 2  ;;  %v16310_v2 = vld [vmem:[#allocation64_spill] sm:$0xff] }
 0x344   : > { %16303 = vst [vmem:[#allocation52_spill] sm:$0xff] %v13739_v53 }
 0x345   : > { %v2775_v58 = vpop.f32.mrf.mxu2  ;;  %v4090_v41 = vpop.f32.mrf.mxu3 }
 0x346   : > { %v3039_v15 = vadd.f32 %v2775_v58, %v2072_v57  ;;  %v2074_v17 = vpop.f32.mrf.mxu1  ;;  %v4773_v57 = vrot.slane %v4771_v55, 1  ;;  %v12407_v55 = vld [vmem:[%s12740_s30 + $0x138] sm:$0xff] }
 0x347   : > { %v2075_v14 = vadd.f32 %v2074_v17, %v16306_v54  ;;  %v3678_v17 = vrot.slane %v12406_v61, 1 }
 0x348   : > { %v4354_v47 = vadd.f32 %v4090_v41, %v3039_v15  ;;  %v16308_v15 = vld [vmem:[#allocation61_spill] sm:$0xff] }
 0x349   : > { %11211 = vmatmul.msk.bf16.gmra.mxu1 %vm1239_vm1, %v12567_v51 }
 0x34a   : > { %v5416_v28 = vpop.f32.mrf.mxu0  ;;  %11285 = vmatmul.msk.bf16.gmra.mxu2 %vm1239_vm1, %v2362_v6  ;;  %v13749_v49 = vadd.f32 %v5413_v20, %v4354_v47  ;;  %11627 = vmatmul.msk.bf16.gmra.mxu3 %vm1239_vm1, %v3677_v5  ;;  %v12569_v47 = vld [vmem:[%s12740_s30 + $0x120] sm:$0xff] }
 0x34b   : > { %v2363_v20 = vrot.slane %v12569_v47, 1 }
 0x34c   : > { %16305 = vst [vmem:[#allocation55_spill] sm:$0xff] %v13749_v49 }
 0x34d   : > { %11701 = vmatmul.msk.bf16.gmra.mxu0 %vm1239_vm1, %v4769_v3  ;;  %v2778_v10 = vpop.f32.mrf.mxu2  ;;  %v4093_v8 = vpop.f32.mrf.mxu3  ;;  %v2364_v49 = vsel %vm2291_vm2, %v2361_v26, %v2363_v20 }
 0x34e   : > { %v3040_v43 = vadd.f32 %v2778_v10, %v2075_v14  ;;  %v2076_v51 = vpop.f32.mrf.mxu1  ;;  %v4777_v14 = vor.u32 %v4776_v16, %v4773_v57  ;;  %v4780_v57 = vshrl.u32 %v12407_v55, 16  ;;  %v4783_v16 = vshll.u32 %v12407_v55, 16 }
 0x34f   : > { %v2077_v41 = vadd.f32 %v2076_v51, %v16308_v15 }
 0x350   : > { %v4355_v59 = vadd.f32 %v4093_v8, %v3040_v43  ;;  %v3679_v43 = vsel %vm2291_vm2, %v3676_v24, %v3678_v17 }
 0x352   : > { %v5418_v6 = vpop.f32.mrf.mxu0  ;;  %v13754_v58 = vadd.f32 %v5416_v28, %v4355_v59  ;;  %v4778_v28 = vsel %vm4446_vm3, %v4768_v0, %v4777_v14  ;;  %v4785_v0 = vrot.slane %v4783_v16, 2  ;;  %v16314_v16 = vld [vmem:[#allocation70_spill] sm:$0xff] }
 0x354   : > { %16307 = vst [vmem:[#allocation58_spill] sm:$0xff] %v13754_v58 }
 0x355   : > { %v2780_v5 = vpop.f32.mrf.mxu2  ;;  %v4095_v54 = vpop.f32.mrf.mxu3 }
 0x356   : > { %v3041_v3 = vadd.f32 %v2780_v5, %v2077_v41  ;;  %v2079_v10 = vpop.f32.mrf.mxu1  ;;  %v4782_v41 = vrot.slane %v4780_v57, 1  ;;  %v12408_v57 = vld [vmem:[%s12740_s30 + $0x140] sm:$0xff] }
 0x357   : > { %v2080_v51 = vadd.f32 %v2079_v10, %v16310_v2  ;;  %v3680_v10 = vrot.slane %v12407_v55, 1 }
 0x358   : > { %v4356_v53 = vadd.f32 %v4095_v54, %v3041_v3  ;;  %v16312_v3 = vld [vmem:[#allocation67_spill] sm:$0xff] }
 0x359   : > { %11212 = vmatmul.msk.bf16.gmra.mxu1 %vm1239_vm1, %v12568_v46 }
 0x35a   : > { %v5421_v8 = vpop.f32.mrf.mxu0  ;;  %11286 = vmatmul.msk.bf16.gmra.mxu2 %vm1239_vm1, %v2364_v49  ;;  %v13764_v61 = vadd.f32 %v5418_v6, %v4356_v53  ;;  %11628 = vmatmul.msk.bf16.gmra.mxu3 %vm1239_vm1, %v3679_v43  ;;  %v12570_v53 = vld [vmem:[%s12740_s30 + $0x128] sm:$0xff] }
 0x35b   : > { %v2365_v6 = vrot.slane %v12570_v53, 1 }
 0x35c   : > { %16309 = vst [vmem:[#allocation61_spill] sm:$0xff] %v13764_v61 }
 0x35d   : > { %11702 = vmatmul.msk.bf16.gmra.mxu0 %vm1239_vm1, %v4778_v28  ;;  %v2783_v26 = vpop.f32.mrf.mxu2  ;;  %v4098_v24 = vpop.f32.mrf.mxu3  ;;  %v2366_v61 = vsel %vm2291_vm2, %v2363_v20, %v2365_v6 }
 0x35e   : > { %v3042_v59 = vadd.f32 %v2783_v26, %v2080_v51  ;;  %v2081_v46 = vpop.f32.mrf.mxu1  ;;  %v4786_v51 = vor.u32 %v4785_v0, %v4782_v41  ;;  %v4789_v41 = vshrl.u32 %v12408_v57, 16  ;;  %v4792_v0 = vshll.u32 %v12408_v57, 16 }
 0x35f   : > { %v2082_v54 = vadd.f32 %v2081_v46, %v16312_v3 }
 0x360   : > { %v4357_v15 = vadd.f32 %v4098_v24, %v3042_v59  ;;  %v3681_v59 = vsel %vm2291_vm2, %v3678_v17, %v3680_v10 }
 0x362   : > { %v5423_v49 = vpop.f32.mrf.mxu0  ;;  %v13769_v5 = vadd.f32 %v5421_v8, %v4357_v15  ;;  %v4787_v8 = vsel %vm4446_vm3, %v4777_v14, %v4786_v51  ;;  %v4794_v14 = vrot.slane %v4792_v0, 2  ;;  %v16318_v0 = vld [vmem:[#allocation76_spill] sm:$0xff] }
 0x364   : > { %16311 = vst [vmem:[#allocation64_spill] sm:$0xff] %v13769_v5 }
 0x365   : > { %v2785_v43 = vpop.f32.mrf.mxu2  ;;  %v4100_v2 = vpop.f32.mrf.mxu3 }
 0x366   : > { %v3043_v28 = vadd.f32 %v2785_v43, %v2082_v54  ;;  %v2084_v26 = vpop.f32.mrf.mxu1  ;;  %v4791_v54 = vrot.slane %v4789_v41, 1  ;;  %v12409_v41 = vld [vmem:[%s12740_s30 + $0x148] sm:$0xff] }
 0x367   : > { %v2085_v46 = vadd.f32 %v2084_v26, %v16314_v16  ;;  %v3682_v26 = vrot.slane %v12408_v57, 1 }
 0x368   : > { %v4358_v58 = vadd.f32 %v4100_v2, %v3043_v28  ;;  %v16316_v28 = vld [vmem:[#allocation73_spill] sm:$0xff] }
 0x369   : > { %11213 = vmatmul.msk.bf16.gmra.mxu1 %vm1239_vm1, %v12569_v47 }
 0x36a   : > { %v5426_v24 = vpop.f32.mrf.mxu0  ;;  %11287 = vmatmul.msk.bf16.gmra.mxu2 %vm1239_vm1, %v2366_v61  ;;  %v13779_v55 = vadd.f32 %v5423_v49, %v4358_v58  ;;  %11629 = vmatmul.msk.bf16.gmra.mxu3 %vm1239_vm1, %v3681_v59  ;;  %v12571_v58 = vld [vmem:[%s12740_s30 + $0x130] sm:$0xff] }
 0x36b   : > { %v2367_v49 = vrot.slane %v12571_v58, 1 }
 0x36c   : > { %16313 = vst [vmem:[#allocation67_spill] sm:$0xff] %v13779_v55 }
 0x36d   : > { %11703 = vmatmul.msk.bf16.gmra.mxu0 %vm1239_vm1, %v4787_v8  ;;  %v2788_v20 = vpop.f32.mrf.mxu2  ;;  %v4103_v17 = vpop.f32.mrf.mxu3  ;;  %v2368_v55 = vsel %vm2291_vm2, %v2365_v6, %v2367_v49 }
 0x36e   : > { %v3044_v15 = vadd.f32 %v2788_v20, %v2085_v46  ;;  %v2086_v47 = vpop.f32.mrf.mxu1  ;;  %v4795_v46 = vor.u32 %v4794_v14, %v4791_v54  ;;  %v4798_v54 = vshrl.u32 %v12409_v41, 16  ;;  %v4801_v14 = vshll.u32 %v12409_v41, 16 }
 0x36f   : > { %v2087_v2 = vadd.f32 %v2086_v47, %v16316_v28 }
 0x370   : > { %v4359_v3 = vadd.f32 %v4103_v17, %v3044_v15  ;;  %v3683_v15 = vsel %vm2291_vm2, %v3680_v10, %v3682_v26 }
 0x372   : > { %v5428_v61 = vpop.f32.mrf.mxu0  ;;  %v13784_v43 = vadd.f32 %v5426_v24, %v4359_v3  ;;  %v4796_v24 = vsel %vm4446_vm3, %v4786_v51, %v4795_v46  ;;  %v4803_v51 = vrot.slane %v4801_v14, 2  ;;  %v16322_v14 = vld [vmem:[#allocation82_spill] sm:$0xff] }
 0x374   : > { %16315 = vst [vmem:[#allocation70_spill] sm:$0xff] %v13784_v43 }
 0x375   : > { %v2790_v59 = vpop.f32.mrf.mxu2  ;;  %v4105_v16 = vpop.f32.mrf.mxu3 }
 0x376   : > { %v3045_v8 = vadd.f32 %v2790_v59, %v2087_v2  ;;  %v2089_v20 = vpop.f32.mrf.mxu1  ;;  %v4800_v2 = vrot.slane %v4798_v54, 1  ;;  %v12410_v54 = vld [vmem:[%s12740_s30 + $0x150] sm:$0xff] }
 0x377   : > { %v2090_v47 = vadd.f32 %v2089_v20, %v16318_v0  ;;  %v3684_v20 = vrot.slane %v12409_v41, 1 }
 0x378   : > { %v4360_v5 = vadd.f32 %v4105_v16, %v3045_v8  ;;  %v16320_v8 = vld [vmem:[#allocation79_spill] sm:$0xff] }
 0x379   : > { %11214 = vmatmul.msk.bf16.gmra.mxu1 %vm1239_vm1, %v12570_v53 }
 0x37a   : > { %v5431_v17 = vpop.f32.mrf.mxu0  ;;  %11288 = vmatmul.msk.bf16.gmra.mxu2 %vm1239_vm1, %v2368_v55  ;;  %v13794_v57 = vadd.f32 %v5428_v61, %v4360_v5  ;;  %11630 = vmatmul.msk.bf16.gmra.mxu3 %vm1239_vm1, %v3683_v15  ;;  %v12572_v5 = vld [vmem:[%s12740_s30 + $0x138] sm:$0xff] }
 0x37b   : > { %v2369_v61 = vrot.slane %v12572_v5, 1 }
 0x37c   : > { %16317 = vst [vmem:[#allocation73_spill] sm:$0xff] %v13794_v57 }
 0x37d   : > { %11704 = vmatmul.msk.bf16.gmra.mxu0 %vm1239_vm1, %v4796_v24  ;;  %v2793_v6 = vpop.f32.mrf.mxu2  ;;  %v4108_v10 = vpop.f32.mrf.mxu3  ;;  %v2370_v57 = vsel %vm2291_vm2, %v2367_v49, %v2369_v61 }
 0x37e   : > { %v3046_v3 = vadd.f32 %v2793_v6, %v2090_v47  ;;  %v2091_v53 = vpop.f32.mrf.mxu1  ;;  %v4804_v47 = vor.u32 %v4803_v51, %v4800_v2  ;;  %v4807_v2 = vshrl.u32 %v12410_v54, 16  ;;  %v4810_v51 = vshll.u32 %v12410_v54, 16 }
 0x37f   : > { %v2092_v16 = vadd.f32 %v2091_v53, %v16320_v8 }
 0x380   : > { %v4361_v28 = vadd.f32 %v4108_v10, %v3046_v3  ;;  %v3685_v3 = vsel %vm2291_vm2, %v3682_v26, %v3684_v20 }
 0x382   : > { %v5433_v55 = vpop.f32.mrf.mxu0  ;;  %v13799_v59 = vadd.f32 %v5431_v17, %v4361_v28  ;;  %v4805_v17 = vsel %vm4446_vm3, %v4795_v46, %v4804_v47  ;;  %v4812_v46 = vrot.slane %v4810_v51, 2  ;;  %v16326_v51 = vld [vmem:[#allocation88_spill] sm:$0xff] }
 0x384   : > { %16319 = vst [vmem:[#allocation76_spill] sm:$0xff] %v13799_v59 }
 0x385   : > { %v2795_v15 = vpop.f32.mrf.mxu2  ;;  %v4110_v0 = vpop.f32.mrf.mxu3 }
 0x386   : > { %v3047_v24 = vadd.f32 %v2795_v15, %v2092_v16  ;;  %v2094_v6 = vpop.f32.mrf.mxu1  ;;  %v4809_v16 = vrot.slane %v4807_v2, 1  ;;  %v12411_v2 = vld [vmem:[%s12740_s30 + $0x158] sm:$0xff] }
 0x387   : > { %v2095_v53 = vadd.f32 %v2094_v6, %v16322_v14  ;;  %v3686_v6 = vrot.slane %v12410_v54, 1 }
 0x388   : > { %v4362_v43 = vadd.f32 %v4110_v0, %v3047_v24  ;;  %v16324_v24 = vld [vmem:[#allocation85_spill] sm:$0xff] }
 0x389   : > { %11215 = vmatmul.msk.bf16.gmra.mxu1 %vm1239_vm1, %v12571_v58 }
 0x38a   : > { %v5436_v10 = vpop.f32.mrf.mxu0  ;;  %11289 = vmatmul.msk.bf16.gmra.mxu2 %vm1239_vm1, %v2370_v57  ;;  %v13809_v41 = vadd.f32 %v5433_v55, %v4362_v43  ;;  %11631 = vmatmul.msk.bf16.gmra.mxu3 %vm1239_vm1, %v3685_v3  ;;  %v12573_v43 = vld [vmem:[%s12740_s30 + $0x140] sm:$0xff] }
 0x38b   : > { %v2371_v55 = vrot.slane %v12573_v43, 1 }
 0x38c   : > { %16321 = vst [vmem:[#allocation79_spill] sm:$0xff] %v13809_v41 }
 0x38d   : > { %11705 = vmatmul.msk.bf16.gmra.mxu0 %vm1239_vm1, %v4805_v17  ;;  %v2798_v49 = vpop.f32.mrf.mxu2  ;;  %v4113_v26 = vpop.f32.mrf.mxu3  ;;  %v2372_v41 = vsel %vm2291_vm2, %v2369_v61, %v2371_v55 }
 0x38e   : > { %v3048_v28 = vadd.f32 %v2798_v49, %v2095_v53  ;;  %v2096_v58 = vpop.f32.mrf.mxu1  ;;  %v4813_v53 = vor.u32 %v4812_v46, %v4809_v16  ;;  %v4816_v16 = vshrl.u32 %v12411_v2, 16  ;;  %v4819_v46 = vshll.u32 %v12411_v2, 16 }
 0x38f   : > { %v2097_v0 = vadd.f32 %v2096_v58, %v16324_v24 }
 0x390   : > { %v4363_v8 = vadd.f32 %v4113_v26, %v3048_v28  ;;  %v3687_v28 = vsel %vm2291_vm2, %v3684_v20, %v3686_v6 }
 0x392   : > { %v5438_v57 = vpop.f32.mrf.mxu0  ;;  %v13814_v15 = vadd.f32 %v5436_v10, %v4363_v8  ;;  %v4814_v10 = vsel %vm4446_vm3, %v4804_v47, %v4813_v53  ;;  %v4821_v47 = vrot.slane %v4819_v46, 2  ;;  %v16330_v46 = vld [vmem:[#allocation94_spill] sm:$0xff] }
 0x394   : > { %16323 = vst [vmem:[#allocation82_spill] sm:$0xff] %v13814_v15 }
 0x395   : > { %v2800_v3 = vpop.f32.mrf.mxu2  ;;  %v4115_v14 = vpop.f32.mrf.mxu3 }
 0x396   : > { %v3049_v17 = vadd.f32 %v2800_v3, %v2097_v0  ;;  %v2099_v49 = vpop.f32.mrf.mxu1  ;;  %v4818_v0 = vrot.slane %v4816_v16, 1  ;;  %v12412_v16 = vld [vmem:[%s12740_s30 + $0x160] sm:$0xff] }
 0x397   : > { %v2100_v58 = vadd.f32 %v2099_v49, %v16326_v51  ;;  %v3688_v49 = vrot.slane %v12411_v2, 1 }
 0x398   : > { %v4364_v59 = vadd.f32 %v4115_v14, %v3049_v17  ;;  %v16328_v17 = vld [vmem:[#allocation91_spill] sm:$0xff] }
 0x399   : > { %11216 = vmatmul.msk.bf16.gmra.mxu1 %vm1239_vm1, %v12572_v5 }
 0x39a   : > { %v5441_v26 = vpop.f32.mrf.mxu0  ;;  %11290 = vmatmul.msk.bf16.gmra.mxu2 %vm1239_vm1, %v2372_v41  ;;  %v13824_v54 = vadd.f32 %v5438_v57, %v4364_v59  ;;  %11632 = vmatmul.msk.bf16.gmra.mxu3 %vm1239_vm1, %v3687_v28  ;;  %v12574_v59 = vld [vmem:[%s12740_s30 + $0x148] sm:$0xff] }
 0x39b   : > { %v2373_v57 = vrot.slane %v12574_v59, 1 }
 0x39c   : > { %16325 = vst [vmem:[#allocation85_spill] sm:$0xff] %v13824_v54 }
 0x39d   : > { %11706 = vmatmul.msk.bf16.gmra.mxu0 %vm1239_vm1, %v4814_v10  ;;  %v2803_v61 = vpop.f32.mrf.mxu2  ;;  %v4118_v20 = vpop.f32.mrf.mxu3  ;;  %v2374_v54 = vsel %vm2291_vm2, %v2371_v55, %v2373_v57 }
 0x39e   : > { %v3050_v8 = vadd.f32 %v2803_v61, %v2100_v58  ;;  %v2101_v5 = vpop.f32.mrf.mxu1  ;;  %v4822_v58 = vor.u32 %v4821_v47, %v4818_v0  ;;  %v4825_v0 = vshrl.u32 %v12412_v16, 16  ;;  %v4828_v47 = vshll.u32 %v12412_v16, 16 }
 0x39f   : > { %v2102_v14 = vadd.f32 %v2101_v5, %v16328_v17 }
 0x3a0   : > { %v4365_v24 = vadd.f32 %v4118_v20, %v3050_v8  ;;  %v3689_v8 = vsel %vm2291_vm2, %v3686_v6, %v3688_v49 }
 0x3a2   : > { %v5443_v41 = vpop.f32.mrf.mxu0  ;;  %v13829_v3 = vadd.f32 %v5441_v26, %v4365_v24  ;;  %v4823_v26 = vsel %vm4446_vm3, %v4813_v53, %v4822_v58  ;;  %v4830_v53 = vrot.slane %v4828_v47, 2  ;;  %v16334_v47 = vld [vmem:[#allocation100_spill] sm:$0xff] }
 0x3a4   : > { %16327 = vst [vmem:[#allocation88_spill] sm:$0xff] %v13829_v3 }
 0x3a5   : > { %v2805_v28 = vpop.f32.mrf.mxu2  ;;  %v4120_v51 = vpop.f32.mrf.mxu3 }
 0x3a6   : > { %v3051_v10 = vadd.f32 %v2805_v28, %v2102_v14  ;;  %v2104_v61 = vpop.f32.mrf.mxu1  ;;  %v4827_v14 = vrot.slane %v4825_v0, 1  ;;  %v12413_v0 = vld [vmem:[%s12740_s30 + $0x168] sm:$0xff] }
 0x3a7   : > { %v2105_v5 = vadd.f32 %v2104_v61, %v16330_v46  ;;  %v3690_v61 = vrot.slane %v12412_v16, 1 }
 0x3a8   : > { %v4366_v15 = vadd.f32 %v4120_v51, %v3051_v10  ;;  %v16332_v10 = vld [vmem:[#allocation97_spill] sm:$0xff] }
 0x3a9   : > { %11217 = vmatmul.msk.bf16.gmra.mxu1 %vm1239_vm1, %v12573_v43 }
 0x3aa   : > { %v5446_v20 = vpop.f32.mrf.mxu0  ;;  %11291 = vmatmul.msk.bf16.gmra.mxu2 %vm1239_vm1, %v2374_v54  ;;  %v13839_v2 = vadd.f32 %v5443_v41, %v4366_v15  ;;  %11633 = vmatmul.msk.bf16.gmra.mxu3 %vm1239_vm1, %v3689_v8  ;;  %v12575_v15 = vld [vmem:[%s12740_s30 + $0x150] sm:$0xff] }
 0x3ab   : > { %v2375_v41 = vrot.slane %v12575_v15, 1 }
 0x3ac   : > { %16329 = vst [vmem:[#allocation91_spill] sm:$0xff] %v13839_v2 }
 0x3ad   : > { %11707 = vmatmul.msk.bf16.gmra.mxu0 %vm1239_vm1, %v4823_v26  ;;  %v2808_v55 = vpop.f32.mrf.mxu2  ;;  %v4123_v6 = vpop.f32.mrf.mxu3  ;;  %v2376_v2 = vsel %vm2291_vm2, %v2373_v57, %v2375_v41 }
 0x3ae   : > { %v3052_v24 = vadd.f32 %v2808_v55, %v2105_v5  ;;  %v2106_v43 = vpop.f32.mrf.mxu1  ;;  %v4831_v5 = vor.u32 %v4830_v53, %v4827_v14  ;;  %v4834_v14 = vshrl.u32 %v12413_v0, 16  ;;  %v4837_v53 = vshll.u32 %v12413_v0, 16 }
 0x3af   : > { %v2107_v51 = vadd.f32 %v2106_v43, %v16332_v10 }
 0x3b0   : > { %v4367_v17 = vadd.f32 %v4123_v6, %v3052_v24  ;;  %v3691_v24 = vsel %vm2291_vm2, %v3688_v49, %v3690_v61 }
 0x3b2   : > { %v5448_v54 = vpop.f32.mrf.mxu0  ;;  %v13844_v28 = vadd.f32 %v5446_v20, %v4367_v17  ;;  %v4832_v20 = vsel %vm4446_vm3, %v4822_v58, %v4831_v5  ;;  %v4839_v58 = vrot.slane %v4837_v53, 2  ;;  %v16338_v53 = vld [vmem:[#allocation3_spill] sm:$0xff] }
 0x3b4   : > { %16331 = vst [vmem:[#allocation94_spill] sm:$0xff] %v13844_v28 }
 0x3b5   : > { %v2810_v8 = vpop.f32.mrf.mxu2  ;;  %v4125_v46 = vpop.f32.mrf.mxu3 }
 0x3b6   : > { %v3053_v26 = vadd.f32 %v2810_v8, %v2107_v51  ;;  %v2109_v55 = vpop.f32.mrf.mxu1  ;;  %v4836_v51 = vrot.slane %v4834_v14, 1  ;;  %v12414_v14 = vld [vmem:[%s12740_s30 + $0x170] sm:$0xff] }
 0x3b7   : > { %v2110_v43 = vadd.f32 %v2109_v55, %v16334_v47  ;;  %v3692_v55 = vrot.slane %v12413_v0, 1 }
 0x3b8   : > { %v4368_v3 = vadd.f32 %v4125_v46, %v3053_v26  ;;  %v16336_v26 = vld [vmem:[#allocation103_spill] sm:$0xff] }
 0x3b9   : > { %11218 = vmatmul.msk.bf16.gmra.mxu1 %vm1239_vm1, %v12574_v59 }
 0x3ba   : > { %v5451_v6 = vpop.f32.mrf.mxu0  ;;  %11292 = vmatmul.msk.bf16.gmra.mxu2 %vm1239_vm1, %v2376_v2  ;;  %v13854_v16 = vadd.f32 %v5448_v54, %v4368_v3  ;;  %11634 = vmatmul.msk.bf16.gmra.mxu3 %vm1239_vm1, %v3691_v24  ;;  %v12576_v3 = vld [vmem:[%s12740_s30 + $0x158] sm:$0xff] }
 0x3bb   : > { %v2377_v54 = vrot.slane %v12576_v3, 1 }
 0x3bc   : > { %16333 = vst [vmem:[#allocation97_spill] sm:$0xff] %v13854_v16 }
 0x3bd   : > { %11708 = vmatmul.msk.bf16.gmra.mxu0 %vm1239_vm1, %v4832_v20  ;;  %v2813_v57 = vpop.f32.mrf.mxu2  ;;  %v4128_v49 = vpop.f32.mrf.mxu3  ;;  %v2378_v16 = vsel %vm2291_vm2, %v2375_v41, %v2377_v54 }
 0x3be   : > { %v3054_v17 = vadd.f32 %v2813_v57, %v2110_v43  ;;  %v2111_v59 = vpop.f32.mrf.mxu1  ;;  %v4840_v43 = vor.u32 %v4839_v58, %v4836_v51  ;;  %v4843_v51 = vshrl.u32 %v12414_v14, 16  ;;  %v4846_v58 = vshll.u32 %v12414_v14, 16 }
 0x3bf   : > { %v2112_v46 = vadd.f32 %v2111_v59, %v16336_v26 }
 0x3c0   : > { %v4369_v10 = vadd.f32 %v4128_v49, %v3054_v17  ;;  %v3693_v17 = vsel %vm2291_vm2, %v3690_v61, %v3692_v55 }
 0x3c2   : > { %v5453_v2 = vpop.f32.mrf.mxu0  ;;  %v13859_v8 = vadd.f32 %v5451_v6, %v4369_v10  ;;  %v4841_v6 = vsel %vm4446_vm3, %v4831_v5, %v4840_v43  ;;  %v4848_v5 = vrot.slane %v4846_v58, 2  ;;  %v16342_v58 = vld [vmem:[#allocation9_spill] sm:$0xff] }
 0x3c4   : > { %16335 = vst [vmem:[#allocation100_spill] sm:$0xff] %v13859_v8 }
 0x3c5   : > { %v2815_v24 = vpop.f32.mrf.mxu2  ;;  %v4130_v47 = vpop.f32.mrf.mxu3 }
 0x3c6   : > { %v3055_v20 = vadd.f32 %v2815_v24, %v2112_v46  ;;  %v2114_v57 = vpop.f32.mrf.mxu1  ;;  %v4845_v46 = vrot.slane %v4843_v51, 1  ;;  %v12415_v51 = vld [vmem:[%s12740_s30 + $0x178] sm:$0xff] }
 0x3c7   : > { %v2115_v59 = vadd.f32 %v2114_v57, %v16338_v53  ;;  %v3694_v57 = vrot.slane %v12414_v14, 1 }
 0x3c8   : > { %v4370_v28 = vadd.f32 %v4130_v47, %v3055_v20  ;;  %v16340_v20 = vld [vmem:[#allocation6_spill] sm:$0xff] }
 0x3c9   : > { %11219 = vmatmul.msk.bf16.gmra.mxu1 %vm1239_vm1, %v12575_v15 }
 0x3ca   : > { %v5456_v49 = vpop.f32.mrf.mxu0  ;;  %11293 = vmatmul.msk.bf16.gmra.mxu2 %vm1239_vm1, %v2378_v16  ;;  %v13869_v0 = vadd.f32 %v5453_v2, %v4370_v28  ;;  %11635 = vmatmul.msk.bf16.gmra.mxu3 %vm1239_vm1, %v3693_v17  ;;  %v12577_v28 = vld [vmem:[%s12740_s30 + $0x160] sm:$0xff] }
 0x3cb   : > { %v2379_v2 = vrot.slane %v12577_v28, 1 }
 0x3cc   : > { %16337 = vst [vmem:[#allocation103_spill] sm:$0xff] %v13869_v0 }
 0x3cd   : > { %11709 = vmatmul.msk.bf16.gmra.mxu0 %vm1239_vm1, %v4841_v6  ;;  %v2818_v41 = vpop.f32.mrf.mxu2  ;;  %v4133_v61 = vpop.f32.mrf.mxu3  ;;  %v2380_v0 = vsel %vm2291_vm2, %v2377_v54, %v2379_v2 }
 0x3ce   : > { %v3056_v10 = vadd.f32 %v2818_v41, %v2115_v59  ;;  %v2116_v15 = vpop.f32.mrf.mxu1  ;;  %v4849_v59 = vor.u32 %v4848_v5, %v4845_v46  ;;  %v4852_v46 = vshrl.u32 %v12415_v51, 16  ;;  %v4855_v5 = vshll.u32 %v12415_v51, 16 }
 0x3cf   : > { %v2117_v47 = vadd.f32 %v2116_v15, %v16340_v20 }
 0x3d0   : > { %v4371_v26 = vadd.f32 %v4133_v61, %v3056_v10  ;;  %v3695_v10 = vsel %vm2291_vm2, %v3692_v55, %v3694_v57 }
 0x3d2   : > { %v5458_v16 = vpop.f32.mrf.mxu0  ;;  %v13874_v24 = vadd.f32 %v5456_v49, %v4371_v26  ;;  %v4850_v49 = vsel %vm4446_vm3, %v4840_v43, %v4849_v59  ;;  %v4857_v43 = vrot.slane %v4855_v5, 2  ;;  %v16346_v5 = vld [vmem:[#allocation15_spill] sm:$0xff] }
 0x3d4   : > { %16339 = vst [vmem:[#allocation3_spill] sm:$0xff] %v13874_v24 }
 0x3d5   : > { %v2820_v17 = vpop.f32.mrf.mxu2  ;;  %v4135_v53 = vpop.f32.mrf.mxu3 }
 0x3d6   : > { %v3057_v6 = vadd.f32 %v2820_v17, %v2117_v47  ;;  %v2119_v41 = vpop.f32.mrf.mxu1  ;;  %v4854_v47 = vrot.slane %v4852_v46, 1  ;;  %v12416_v46 = vld [vmem:[%s12740_s30 + $0x180] sm:$0xff] }
 0x3d7   : > { %v2120_v15 = vadd.f32 %v2119_v41, %v16342_v58  ;;  %v3696_v41 = vrot.slane %v12415_v51, 1 }
 0x3d8   : > { %v4372_v8 = vadd.f32 %v4135_v53, %v3057_v6  ;;  %v16344_v6 = vld [vmem:[#allocation12_spill] sm:$0xff] }
 0x3d9   : > { %11220 = vmatmul.msk.bf16.gmra.mxu1 %vm1239_vm1, %v12576_v3 }
 0x3da   : > { %v5461_v61 = vpop.f32.mrf.mxu0  ;;  %11294 = vmatmul.msk.bf16.gmra.mxu2 %vm1239_vm1, %v2380_v0  ;;  %v13884_v14 = vadd.f32 %v5458_v16, %v4372_v8  ;;  %11636 = vmatmul.msk.bf16.gmra.mxu3 %vm1239_vm1, %v3695_v10  ;;  %v12578_v8 = vld [vmem:[%s12740_s30 + $0x168] sm:$0xff] }
 0x3db   : > { %v2381_v16 = vrot.slane %v12578_v8, 1 }
 0x3dc   : > { %16341 = vst [vmem:[#allocation6_spill] sm:$0xff] %v13884_v14 }
 0x3dd   : > { %11710 = vmatmul.msk.bf16.gmra.mxu0 %vm1239_vm1, %v4850_v49  ;;  %v2823_v54 = vpop.f32.mrf.mxu2  ;;  %v4138_v55 = vpop.f32.mrf.mxu3  ;;  %v2382_v14 = vsel %vm2291_vm2, %v2379_v2, %v2381_v16 }
 0x3de   : > { %v3058_v26 = vadd.f32 %v2823_v54, %v2120_v15  ;;  %v2121_v3 = vpop.f32.mrf.mxu1  ;;  %v4858_v15 = vor.u32 %v4857_v43, %v4854_v47  ;;  %v4861_v47 = vshrl.u32 %v12416_v46, 16  ;;  %v4864_v43 = vshll.u32 %v12416_v46, 16 }
 0x3df   : > { %v2122_v53 = vadd.f32 %v2121_v3, %v16344_v6 }
 0x3e0   : > { %v4373_v20 = vadd.f32 %v4138_v55, %v3058_v26  ;;  %v3697_v26 = vsel %vm2291_vm2, %v3694_v57, %v3696_v41 }
 0x3e2   : > { %v5463_v0 = vpop.f32.mrf.mxu0  ;;  %v13889_v17 = vadd.f32 %v5461_v61, %v4373_v20  ;;  %v4859_v61 = vsel %vm4446_vm3, %v4849_v59, %v4858_v15  ;;  %v4866_v59 = vrot.slane %v4864_v43, 2  ;;  %v16350_v43 = vld [vmem:[#allocation21_spill] sm:$0xff] }
 0x3e4   : > { %16343 = vst [vmem:[#allocation9_spill] sm:$0xff] %v13889_v17 }
 0x3e5   : > { %v2825_v10 = vpop.f32.mrf.mxu2  ;;  %v4140_v58 = vpop.f32.mrf.mxu3 }
 0x3e6   : > { %v3059_v49 = vadd.f32 %v2825_v10, %v2122_v53  ;;  %v2124_v54 = vpop.f32.mrf.mxu1  ;;  %v4863_v53 = vrot.slane %v4861_v47, 1  ;;  %v12417_v47 = vld [vmem:[%s12740_s30 + $0x188] sm:$0xff] }
 0x3e7   : > { %v2125_v3 = vadd.f32 %v2124_v54, %v16346_v5  ;;  %v3698_v54 = vrot.slane %v12416_v46, 1 }
 0x3e8   : > { %v4374_v24 = vadd.f32 %v4140_v58, %v3059_v49  ;;  %v16348_v49 = vld [vmem:[#allocation18_spill] sm:$0xff] }
 0x3e9   : > { %11221 = vmatmul.msk.bf16.gmra.mxu1 %vm1239_vm1, %v12577_v28 }
 0x3ea   : > { %v5466_v55 = vpop.f32.mrf.mxu0  ;;  %11295 = vmatmul.msk.bf16.gmra.mxu2 %vm1239_vm1, %v2382_v14  ;;  %v13899_v51 = vadd.f32 %v5463_v0, %v4374_v24  ;;  %11637 = vmatmul.msk.bf16.gmra.mxu3 %vm1239_vm1, %v3697_v26  ;;  %v12579_v24 = vld [vmem:[%s12740_s30 + $0x170] sm:$0xff] }
 0x3eb   : > { %v2383_v0 = vrot.slane %v12579_v24, 1 }
 0x3ec   : > { %16345 = vst [vmem:[#allocation12_spill] sm:$0xff] %v13899_v51 }
 0x3ed   : > { %11711 = vmatmul.msk.bf16.gmra.mxu0 %vm1239_vm1, %v4859_v61  ;;  %v2828_v2 = vpop.f32.mrf.mxu2  ;;  %v4143_v57 = vpop.f32.mrf.mxu3  ;;  %v2384_v51 = vsel %vm2291_vm2, %v2381_v16, %v2383_v0 }
 0x3ee   : > { %v3060_v20 = vadd.f32 %v2828_v2, %v2125_v3  ;;  %v2126_v28 = vpop.f32.mrf.mxu1  ;;  %v4867_v3 = vor.u32 %v4866_v59, %v4863_v53  ;;  %v4870_v53 = vshrl.u32 %v12417_v47, 16  ;;  %v4873_v59 = vshll.u32 %v12417_v47, 16 }
 0x3ef   : > { %v2127_v58 = vadd.f32 %v2126_v28, %v16348_v49 }
 0x3f0   : > { %v4375_v6 = vadd.f32 %v4143_v57, %v3060_v20  ;;  %v3699_v20 = vsel %vm2291_vm2, %v3696_v41, %v3698_v54 }
 0x3f2   : > { %v5468_v14 = vpop.f32.mrf.mxu0  ;;  %v13904_v10 = vadd.f32 %v5466_v55, %v4375_v6  ;;  %v4868_v55 = vsel %vm4446_vm3, %v4858_v15, %v4867_v3  ;;  %v4875_v15 = vrot.slane %v4873_v59, 2  ;;  %v16354_v59 = vld [vmem:[#allocation27_spill] sm:$0xff] }
 0x3f4   : > { %16347 = vst [vmem:[#allocation15_spill] sm:$0xff] %v13904_v10 }
 0x3f5   : > { %v2830_v26 = vpop.f32.mrf.mxu2  ;;  %v4145_v5 = vpop.f32.mrf.mxu3 }
 0x3f6   : > { %v3061_v61 = vadd.f32 %v2830_v26, %v2127_v58  ;;  %v2129_v2 = vpop.f32.mrf.mxu1  ;;  %v4872_v58 = vrot.slane %v4870_v53, 1  ;;  %v12418_v53 = vld [vmem:[%s12740_s30 + $0x190] sm:$0xff] }
 0x3f7   : > { %v2130_v28 = vadd.f32 %v2129_v2, %v16350_v43  ;;  %v3700_v2 = vrot.slane %v12417_v47, 1 }
 0x3f8   : > { %v4376_v17 = vadd.f32 %v4145_v5, %v3061_v61  ;;  %v16352_v61 = vld [vmem:[#allocation24_spill] sm:$0xff] }
 0x3f9   : > { %11222 = vmatmul.msk.bf16.gmra.mxu1 %vm1239_vm1, %v12578_v8 }
 0x3fa   : > { %v5471_v57 = vpop.f32.mrf.mxu0  ;;  %11296 = vmatmul.msk.bf16.gmra.mxu2 %vm1239_vm1, %v2384_v51  ;;  %v13914_v46 = vadd.f32 %v5468_v14, %v4376_v17  ;;  %11638 = vmatmul.msk.bf16.gmra.mxu3 %vm1239_vm1, %v3699_v20  ;;  %v12580_v17 = vld [vmem:[%s12740_s30 + $0x178] sm:$0xff] }
 0x3fb   : > { %v2385_v14 = vrot.slane %v12580_v17, 1 }
 0x3fc   : > { %16349 = vst [vmem:[#allocation18_spill] sm:$0xff] %v13914_v46 }
 0x3fd   : > { %11712 = vmatmul.msk.bf16.gmra.mxu0 %vm1239_vm1, %v4868_v55  ;;  %v2833_v16 = vpop.f32.mrf.mxu2  ;;  %v4148_v41 = vpop.f32.mrf.mxu3  ;;  %v2386_v46 = vsel %vm2291_vm2, %v2383_v0, %v2385_v14 }
 0x3fe   : > { %v3062_v6 = vadd.f32 %v2833_v16, %v2130_v28  ;;  %v2131_v8 = vpop.f32.mrf.mxu1  ;;  %v4876_v28 = vor.u32 %v4875_v15, %v4872_v58  ;;  %v4879_v58 = vshrl.u32 %v12418_v53, 16  ;;  %v4882_v15 = vshll.u32 %v12418_v53, 16 }
 0x3ff   : > { %v2132_v5 = vadd.f32 %v2131_v8, %v16352_v61 }
 0x400   : > { %v4377_v49 = vadd.f32 %v4148_v41, %v3062_v6  ;;  %v3701_v6 = vsel %vm2291_vm2, %v3698_v54, %v3700_v2 }
 0x402   : > { %v5473_v51 = vpop.f32.mrf.mxu0  ;;  %v13919_v26 = vadd.f32 %v5471_v57, %v4377_v49  ;;  %v4877_v57 = vsel %vm4446_vm3, %v4867_v3, %v4876_v28  ;;  %v4884_v3 = vrot.slane %v4882_v15, 2  ;;  %v16358_v15 = vld [vmem:[#allocation33_spill] sm:$0xff] }
 0x404   : > { %16351 = vst [vmem:[#allocation21_spill] sm:$0xff] %v13919_v26 }
 0x405   : > { %v2835_v20 = vpop.f32.mrf.mxu2  ;;  %v4150_v43 = vpop.f32.mrf.mxu3 }
 0x406   : > { %v3063_v55 = vadd.f32 %v2835_v20, %v2132_v5  ;;  %v2134_v16 = vpop.f32.mrf.mxu1  ;;  %v4881_v5 = vrot.slane %v4879_v58, 1  ;;  %v12419_v58 = vld [vmem:[%s12740_s30 + $0x198] sm:$0xff] }
 0x407   : > { %v2135_v8 = vadd.f32 %v2134_v16, %v16354_v59  ;;  %v3702_v16 = vrot.slane %v12418_v53, 1 }
 0x408   : > { %v4378_v10 = vadd.f32 %v4150_v43, %v3063_v55  ;;  %v16356_v55 = vld [vmem:[#allocation30_spill] sm:$0xff] }
 0x409   : > { %11223 = vmatmul.msk.bf16.gmra.mxu1 %vm1239_vm1, %v12579_v24 }
 0x40a   : > { %v5476_v41 = vpop.f32.mrf.mxu0  ;;  %11297 = vmatmul.msk.bf16.gmra.mxu2 %vm1239_vm1, %v2386_v46  ;;  %v13929_v47 = vadd.f32 %v5473_v51, %v4378_v10  ;;  %11639 = vmatmul.msk.bf16.gmra.mxu3 %vm1239_vm1, %v3701_v6  ;;  %v12581_v10 = vld [vmem:[%s12740_s30 + $0x180] sm:$0xff] }
 0x40b   : > { %v2387_v51 = vrot.slane %v12581_v10, 1 }
 0x40c   : > { %16353 = vst [vmem:[#allocation24_spill] sm:$0xff] %v13929_v47 }
 0x40d   : > { %11713 = vmatmul.msk.bf16.gmra.mxu0 %vm1239_vm1, %v4877_v57  ;;  %v2838_v0 = vpop.f32.mrf.mxu2  ;;  %v4153_v54 = vpop.f32.mrf.mxu3  ;;  %v2388_v47 = vsel %vm2291_vm2, %v2385_v14, %v2387_v51 }
 0x40e   : > { %v3064_v49 = vadd.f32 %v2838_v0, %v2135_v8  ;;  %v2136_v24 = vpop.f32.mrf.mxu1  ;;  %v4885_v8 = vor.u32 %v4884_v3, %v4881_v5  ;;  %v4888_v5 = vshrl.u32 %v12419_v58, 16  ;;  %v4891_v3 = vshll.u32 %v12419_v58, 16 }
 0x40f   : > { %v2137_v43 = vadd.f32 %v2136_v24, %v16356_v55 }
 0x410   : > { %v4379_v61 = vadd.f32 %v4153_v54, %v3064_v49  ;;  %v3703_v49 = vsel %vm2291_vm2, %v3700_v2, %v3702_v16 }
 0x412   : > { %v5478_v46 = vpop.f32.mrf.mxu0  ;;  %v13934_v20 = vadd.f32 %v5476_v41, %v4379_v61  ;;  %v4886_v41 = vsel %vm4446_vm3, %v4876_v28, %v4885_v8  ;;  %v4893_v28 = vrot.slane %v4891_v3, 2  ;;  %v16362_v3 = vld [vmem:[#allocation39_spill] sm:$0xff] }
 0x414   : > { %16355 = vst [vmem:[#allocation27_spill] sm:$0xff] %v13934_v20 }
 0x415   : > { %v2840_v6 = vpop.f32.mrf.mxu2  ;;  %v4155_v59 = vpop.f32.mrf.mxu3 }
 0x416   : > { %v3065_v57 = vadd.f32 %v2840_v6, %v2137_v43  ;;  %v2139_v0 = vpop.f32.mrf.mxu1  ;;  %v4890_v43 = vrot.slane %v4888_v5, 1  ;;  %v12420_v5 = vld [vmem:[%s12740_s30 + $0x1a0] sm:$0xff] }
 0x417   : > { %v2140_v24 = vadd.f32 %v2139_v0, %v16358_v15  ;;  %v3704_v0 = vrot.slane %v12419_v58, 1 }
 0x418   : > { %v4380_v26 = vadd.f32 %v4155_v59, %v3065_v57  ;;  %v16360_v57 = vld [vmem:[#allocation36_spill] sm:$0xff] }
 0x419   : > { %11224 = vmatmul.msk.bf16.gmra.mxu1 %vm1239_vm1, %v12580_v17 }
 0x41a   : > { %v5481_v54 = vpop.f32.mrf.mxu0  ;;  %11298 = vmatmul.msk.bf16.gmra.mxu2 %vm1239_vm1, %v2388_v47  ;;  %v13944_v53 = vadd.f32 %v5478_v46, %v4380_v26  ;;  %11640 = vmatmul.msk.bf16.gmra.mxu3 %vm1239_vm1, %v3703_v49  ;;  %v12582_v26 = vld [vmem:[%s12740_s30 + $0x188] sm:$0xff] }
 0x41b   : > { %v2389_v46 = vrot.slane %v12582_v26, 1 }
 0x41c   : > { %16357 = vst [vmem:[#allocation30_spill] sm:$0xff] %v13944_v53 }
 0x41d   : > { %11714 = vmatmul.msk.bf16.gmra.mxu0 %vm1239_vm1, %v4886_v41  ;;  %v2843_v14 = vpop.f32.mrf.mxu2  ;;  %v4158_v2 = vpop.f32.mrf.mxu3  ;;  %v2390_v53 = vsel %vm2291_vm2, %v2387_v51, %v2389_v46 }
 0x41e   : > { %v3066_v61 = vadd.f32 %v2843_v14, %v2140_v24  ;;  %v2141_v17 = vpop.f32.mrf.mxu1  ;;  %v4894_v24 = vor.u32 %v4893_v28, %v4890_v43  ;;  %v4897_v43 = vshrl.u32 %v12420_v5, 16  ;;  %v4900_v28 = vshll.u32 %v12420_v5, 16 }
 0x41f   : > { %v2142_v59 = vadd.f32 %v2141_v17, %v16360_v57 }
 0x420   : > { %v4381_v55 = vadd.f32 %v4158_v2, %v3066_v61  ;;  %v3705_v61 = vsel %vm2291_vm2, %v3702_v16, %v3704_v0 }
 0x422   : > { %v5483_v47 = vpop.f32.mrf.mxu0  ;;  %v13949_v6 = vadd.f32 %v5481_v54, %v4381_v55  ;;  %v4895_v54 = vsel %vm4446_vm3, %v4885_v8, %v4894_v24  ;;  %v4902_v8 = vrot.slane %v4900_v28, 2  ;;  %v16366_v28 = vld [vmem:[#allocation46_spill] sm:$0xff] }
 0x424   : > { %16359 = vst [vmem:[#allocation33_spill] sm:$0xff] %v13949_v6 }
 0x425   : > { %v2845_v49 = vpop.f32.mrf.mxu2  ;;  %v4160_v15 = vpop.f32.mrf.mxu3 }
 0x426   : > { %v3067_v41 = vadd.f32 %v2845_v49, %v2142_v59  ;;  %v2144_v14 = vpop.f32.mrf.mxu1  ;;  %v4899_v59 = vrot.slane %v4897_v43, 1  ;;  %v12421_v43 = vld [vmem:[%s12740_s30 + $0x1a8] sm:$0xff] }
 0x427   : > { %v2145_v17 = vadd.f32 %v2144_v14, %v16362_v3  ;;  %v3706_v14 = vrot.slane %v12420_v5, 1 }
 0x428   : > { %v4382_v20 = vadd.f32 %v4160_v15, %v3067_v41  ;;  %v16364_v41 = vld [vmem:[#allocation42_spill] sm:$0xff] }
 0x429   : > { %11225 = vmatmul.msk.bf16.gmra.mxu1 %vm1239_vm1, %v12581_v10 }
 0x42a   : > { %v5486_v2 = vpop.f32.mrf.mxu0  ;;  %11299 = vmatmul.msk.bf16.gmra.mxu2 %vm1239_vm1, %v2390_v53  ;;  %v13959_v58 = vadd.f32 %v5483_v47, %v4382_v20  ;;  %11641 = vmatmul.msk.bf16.gmra.mxu3 %vm1239_vm1, %v3705_v61  ;;  %v12583_v20 = vld [vmem:[%s12740_s30 + $0x190] sm:$0xff] }
 0x42b   : > { %v2391_v47 = vrot.slane %v12583_v20, 1 }
 0x42c   : > { %16361 = vst [vmem:[#allocation36_spill] sm:$0xff] %v13959_v58 }
 0x42d   : > { %11715 = vmatmul.msk.bf16.gmra.mxu0 %vm1239_vm1, %v4895_v54  ;;  %v2848_v51 = vpop.f32.mrf.mxu2  ;;  %v4163_v16 = vpop.f32.mrf.mxu3  ;;  %v2392_v58 = vsel %vm2291_vm2, %v2389_v46, %v2391_v47 }
 0x42e   : > { %v3068_v55 = vadd.f32 %v2848_v51, %v2145_v17  ;;  %v2146_v10 = vpop.f32.mrf.mxu1  ;;  %v4903_v17 = vor.u32 %v4902_v8, %v4899_v59  ;;  %v4906_v59 = vshrl.u32 %v12421_v43, 16  ;;  %v4909_v8 = vshll.u32 %v12421_v43, 16 }
 0x42f   : > { %v2147_v15 = vadd.f32 %v2146_v10, %v16364_v41 }
 0x430   : > { %v4383_v57 = vadd.f32 %v4163_v16, %v3068_v55  ;;  %v3707_v55 = vsel %vm2291_vm2, %v3704_v0, %v3706_v14 }
 0x432   : > { %v5488_v53 = vpop.f32.mrf.mxu0  ;;  %v13964_v49 = vadd.f32 %v5486_v2, %v4383_v57  ;;  %v4904_v2 = vsel %vm4446_vm3, %v4894_v24, %v4903_v17  ;;  %v4911_v24 = vrot.slane %v4909_v8, 2  ;;  %v16370_v8 = vld [vmem:[#allocation53_spill] sm:$0xff] }
 0x434   : > { %16363 = vst [vmem:[#allocation39_spill] sm:$0xff] %v13964_v49 }
 0x435   : > { %v2850_v61 = vpop.f32.mrf.mxu2  ;;  %v4165_v3 = vpop.f32.mrf.mxu3 }
 0x436   : > { %v3069_v54 = vadd.f32 %v2850_v61, %v2147_v15  ;;  %v2149_v51 = vpop.f32.mrf.mxu1  ;;  %v4908_v15 = vrot.slane %v4906_v59, 1  ;;  %v12422_v59 = vld [vmem:[%s12740_s30 + $0x1b0] sm:$0xff] }
 0x437   : > { %v2150_v10 = vadd.f32 %v2149_v51, %v16366_v28  ;;  %v3708_v51 = vrot.slane %v12421_v43, 1 }
 0x438   : > { %v4384_v6 = vadd.f32 %v4165_v3, %v3069_v54  ;;  %v16368_v54 = vld [vmem:[#allocation50_spill] sm:$0xff] }
 0x439   : > { %11226 = vmatmul.msk.bf16.gmra.mxu1 %vm1239_vm1, %v12582_v26 }
 0x43a   : > { %v5491_v16 = vpop.f32.mrf.mxu0  ;;  %11300 = vmatmul.msk.bf16.gmra.mxu2 %vm1239_vm1, %v2392_v58  ;;  %v13974_v5 = vadd.f32 %v5488_v53, %v4384_v6  ;;  %11642 = vmatmul.msk.bf16.gmra.mxu3 %vm1239_vm1, %v3707_v55  ;;  %v12584_v6 = vld [vmem:[%s12740_s30 + $0x198] sm:$0xff] }
 0x43b   : > { %v2393_v53 = vrot.slane %v12584_v6, 1 }
 0x43c   : > { %16365 = vst [vmem:[#allocation42_spill] sm:$0xff] %v13974_v5 }
 0x43d   : > { %11716 = vmatmul.msk.bf16.gmra.mxu0 %vm1239_vm1, %v4904_v2  ;;  %v2853_v46 = vpop.f32.mrf.mxu2  ;;  %v4168_v0 = vpop.f32.mrf.mxu3  ;;  %v2394_v5 = vsel %vm2291_vm2, %v2391_v47, %v2393_v53 }
 0x43e   : > { %v3070_v57 = vadd.f32 %v2853_v46, %v2150_v10  ;;  %v2151_v26 = vpop.f32.mrf.mxu1  ;;  %v4912_v10 = vor.u32 %v4911_v24, %v4908_v15  ;;  %v4915_v15 = vshrl.u32 %v12422_v59, 16  ;;  %v4918_v24 = vshll.u32 %v12422_v59, 16 }
 0x43f   : > { %v2152_v3 = vadd.f32 %v2151_v26, %v16368_v54 }
 0x440   : > { %v4385_v41 = vadd.f32 %v4168_v0, %v3070_v57  ;;  %v3709_v57 = vsel %vm2291_vm2, %v3706_v14, %v3708_v51 }
 0x442   : > { %v5493_v58 = vpop.f32.mrf.mxu0  ;;  %v13979_v61 = vadd.f32 %v5491_v16, %v4385_v41  ;;  %v4913_v16 = vsel %vm4446_vm3, %v4903_v17, %v4912_v10  ;;  %v4920_v17 = vrot.slane %v4918_v24, 2  ;;  %v16374_v24 = vld [vmem:[#allocation59_spill] sm:$0xff] }
 0x444   : > { %16367 = vst [vmem:[#allocation46_spill] sm:$0xff] %v13979_v61 }
 0x445   : > { %v2855_v55 = vpop.f32.mrf.mxu2  ;;  %v4170_v28 = vpop.f32.mrf.mxu3 }
 0x446   : > { %v3071_v2 = vadd.f32 %v2855_v55, %v2152_v3  ;;  %v2154_v46 = vpop.f32.mrf.mxu1  ;;  %v4917_v3 = vrot.slane %v4915_v15, 1  ;;  %v12423_v15 = vld [vmem:[%s12740_s30 + $0x1b8] sm:$0xff] }
 0x447   : > { %v2155_v26 = vadd.f32 %v2154_v46, %v16370_v8  ;;  %v3710_v46 = vrot.slane %v12422_v59, 1 }
 0x448   : > { %v4386_v49 = vadd.f32 %v4170_v28, %v3071_v2  ;;  %v16372_v2 = vld [vmem:[#allocation56_spill] sm:$0xff] }
 0x449   : > { %11227 = vmatmul.msk.bf16.gmra.mxu1 %vm1239_vm1, %v12583_v20 }
 0x44a   : > { %v5496_v0 = vpop.f32.mrf.mxu0  ;;  %11301 = vmatmul.msk.bf16.gmra.mxu2 %vm1239_vm1, %v2394_v5  ;;  %v13989_v43 = vadd.f32 %v5493_v58, %v4386_v49  ;;  %11643 = vmatmul.msk.bf16.gmra.mxu3 %vm1239_vm1, %v3709_v57  ;;  %v12585_v49 = vld [vmem:[%s12740_s30 + $0x1a0] sm:$0xff] }
 0x44b   : > { %v2395_v58 = vrot.slane %v12585_v49, 1 }
 0x44c   : > { %16369 = vst [vmem:[#allocation50_spill] sm:$0xff] %v13989_v43 }
 0x44d   : > { %11717 = vmatmul.msk.bf16.gmra.mxu0 %vm1239_vm1, %v4913_v16  ;;  %v2858_v47 = vpop.f32.mrf.mxu2  ;;  %v4173_v14 = vpop.f32.mrf.mxu3  ;;  %v2396_v43 = vsel %vm2291_vm2, %v2393_v53, %v2395_v58 }
 0x44e   : > { %v3072_v41 = vadd.f32 %v2858_v47, %v2155_v26  ;;  %v2156_v20 = vpop.f32.mrf.mxu1  ;;  %v4921_v26 = vor.u32 %v4920_v17, %v4917_v3  ;;  %v4924_v3 = vshrl.u32 %v12423_v15, 16  ;;  %v4927_v17 = vshll.u32 %v12423_v15, 16 }
 0x44f   : > { %v2157_v28 = vadd.f32 %v2156_v20, %v16372_v2 }
 0x450   : > { %v4387_v54 = vadd.f32 %v4173_v14, %v3072_v41  ;;  %v3711_v41 = vsel %vm2291_vm2, %v3708_v51, %v3710_v46 }
 0x452   : > { %v5498_v5 = vpop.f32.mrf.mxu0  ;;  %v13994_v55 = vadd.f32 %v5496_v0, %v4387_v54  ;;  %v4922_v0 = vsel %vm4446_vm3, %v4912_v10, %v4921_v26  ;;  %v4929_v10 = vrot.slane %v4927_v17, 2  ;;  %v16378_v17 = vld [vmem:[#allocation65_spill] sm:$0xff] }
 0x454   : > { %16371 = vst [vmem:[#allocation53_spill] sm:$0xff] %v13994_v55 }
 0x455   : > { %v2860_v57 = vpop.f32.mrf.mxu2  ;;  %v4175_v8 = vpop.f32.mrf.mxu3 }
 0x456   : > { %v3073_v16 = vadd.f32 %v2860_v57, %v2157_v28  ;;  %v2159_v47 = vpop.f32.mrf.mxu1  ;;  %v4926_v28 = vrot.slane %v4924_v3, 1  ;;  %v12424_v3 = vld [vmem:[%s12740_s30 + $0x1c0] sm:$0xff] }
 0x457   : > { %v2160_v20 = vadd.f32 %v2159_v47, %v16374_v24  ;;  %v3712_v47 = vrot.slane %v12423_v15, 1 }
 0x458   : > { %v4388_v61 = vadd.f32 %v4175_v8, %v3073_v16  ;;  %v16376_v16 = vld [vmem:[#allocation62_spill] sm:$0xff] }
 0x459   : > { %11228 = vmatmul.msk.bf16.gmra.mxu1 %vm1239_vm1, %v12584_v6 }
 0x45a   : > { %v5501_v14 = vpop.f32.mrf.mxu0  ;;  %11302 = vmatmul.msk.bf16.gmra.mxu2 %vm1239_vm1, %v2396_v43  ;;  %v14004_v59 = vadd.f32 %v5498_v5, %v4388_v61  ;;  %11644 = vmatmul.msk.bf16.gmra.mxu3 %vm1239_vm1, %v3711_v41  ;;  %v12586_v61 = vld [vmem:[%s12740_s30 + $0x1a8] sm:$0xff] }
 0x45b   : > { %v2397_v5 = vrot.slane %v12586_v61, 1 }
 0x45c   : > { %16373 = vst [vmem:[#allocation56_spill] sm:$0xff] %v14004_v59 }
 0x45d   : > { %11718 = vmatmul.msk.bf16.gmra.mxu0 %vm1239_vm1, %v4922_v0  ;;  %v2863_v53 = vpop.f32.mrf.mxu2  ;;  %v4178_v51 = vpop.f32.mrf.mxu3  ;;  %v2398_v59 = vsel %vm2291_vm2, %v2395_v58, %v2397_v5 }
 0x45e   : > { %v3074_v54 = vadd.f32 %v2863_v53, %v2160_v20  ;;  %v2161_v6 = vpop.f32.mrf.mxu1  ;;  %v4930_v20 = vor.u32 %v4929_v10, %v4926_v28  ;;  %v4933_v28 = vshrl.u32 %v12424_v3, 16  ;;  %v4936_v10 = vshll.u32 %v12424_v3, 16 }
 0x45f   : > { %v2162_v8 = vadd.f32 %v2161_v6, %v16376_v16 }
 0x460   : > { %v4389_v2 = vadd.f32 %v4178_v51, %v3074_v54  ;;  %v3713_v54 = vsel %vm2291_vm2, %v3710_v46, %v3712_v47 }
 0x462   : > { %v5503_v43 = vpop.f32.mrf.mxu0  ;;  %v14009_v57 = vadd.f32 %v5501_v14, %v4389_v2  ;;  %v4931_v14 = vsel %vm4446_vm3, %v4921_v26, %v4930_v20  ;;  %v4938_v26 = vrot.slane %v4936_v10, 2  ;;  %v16382_v10 = vld [vmem:[#allocation71_spill] sm:$0xff] }
 0x464   : > { %16375 = vst [vmem:[#allocation59_spill] sm:$0xff] %v14009_v57 }
 0x465   : > { %v2865_v41 = vpop.f32.mrf.mxu2  ;;  %v4180_v24 = vpop.f32.mrf.mxu3 }
 0x466   : > { %v3075_v0 = vadd.f32 %v2865_v41, %v2162_v8  ;;  %v2164_v53 = vpop.f32.mrf.mxu1  ;;  %v4935_v8 = vrot.slane %v4933_v28, 1  ;;  %v12425_v28 = vld [vmem:[%s12740_s30 + $0x1c8] sm:$0xff] }
 0x467   : > { %v2165_v6 = vadd.f32 %v2164_v53, %v16378_v17  ;;  %v3714_v53 = vrot.slane %v12424_v3, 1 }
 0x468   : > { %v4390_v55 = vadd.f32 %v4180_v24, %v3075_v0  ;;  %v16380_v0 = vld [vmem:[#allocation68_spill] sm:$0xff] }
 0x469   : > { %11229 = vmatmul.msk.bf16.gmra.mxu1 %vm1239_vm1, %v12585_v49 }
 0x46a   : > { %v5506_v51 = vpop.f32.mrf.mxu0  ;;  %11303 = vmatmul.msk.bf16.gmra.mxu2 %vm1239_vm1, %v2398_v59  ;;  %v14019_v15 = vadd.f32 %v5503_v43, %v4390_v55  ;;  %11645 = vmatmul.msk.bf16.gmra.mxu3 %vm1239_vm1, %v3713_v54  ;;  %v12587_v55 = vld [vmem:[%s12740_s30 + $0x1b0] sm:$0xff] }
 0x46b   : > { %v2399_v43 = vrot.slane %v12587_v55, 1 }
 0x46c   : > { %16377 = vst [vmem:[#allocation62_spill] sm:$0xff] %v14019_v15 }
 0x46d   : > { %11719 = vmatmul.msk.bf16.gmra.mxu0 %vm1239_vm1, %v4931_v14  ;;  %v2868_v58 = vpop.f32.mrf.mxu2  ;;  %v4183_v46 = vpop.f32.mrf.mxu3  ;;  %v2400_v15 = vsel %vm2291_vm2, %v2397_v5, %v2399_v43 }
 0x46e   : > { %v3076_v2 = vadd.f32 %v2868_v58, %v2165_v6  ;;  %v2166_v49 = vpop.f32.mrf.mxu1  ;;  %v4939_v6 = vor.u32 %v4938_v26, %v4935_v8  ;;  %v4942_v8 = vshrl.u32 %v12425_v28, 16  ;;  %v4945_v26 = vshll.u32 %v12425_v28, 16 }
 0x46f   : > { %v2167_v24 = vadd.f32 %v2166_v49, %v16380_v0 }
 0x470   : > { %v4391_v16 = vadd.f32 %v4183_v46, %v3076_v2  ;;  %v3715_v2 = vsel %vm2291_vm2, %v3712_v47, %v3714_v53 }
 0x472   : > { %v5508_v59 = vpop.f32.mrf.mxu0  ;;  %v14024_v41 = vadd.f32 %v5506_v51, %v4391_v16  ;;  %v4940_v51 = vsel %vm4446_vm3, %v4930_v20, %v4939_v6  ;;  %v4947_v20 = vrot.slane %v4945_v26, 2  ;;  %v16386_v26 = vld [vmem:[#allocation77_spill] sm:$0xff] }
 0x474   : > { %16379 = vst [vmem:[#allocation65_spill] sm:$0xff] %v14024_v41 }
 0x475   : > { %v2870_v54 = vpop.f32.mrf.mxu2  ;;  %v4185_v17 = vpop.f32.mrf.mxu3 }
 0x476   : > { %v3077_v14 = vadd.f32 %v2870_v54, %v2167_v24  ;;  %v2169_v58 = vpop.f32.mrf.mxu1  ;;  %v4944_v24 = vrot.slane %v4942_v8, 1  ;;  %v12426_v8 = vld [vmem:[%s12740_s30 + $0x1d0] sm:$0xff] }
 0x477   : > { %v2170_v49 = vadd.f32 %v2169_v58, %v16382_v10  ;;  %v3716_v58 = vrot.slane %v12425_v28, 1 }
 0x478   : > { %v4392_v57 = vadd.f32 %v4185_v17, %v3077_v14  ;;  %v16384_v14 = vld [vmem:[#allocation74_spill] sm:$0xff] }
 0x479   : > { %11230 = vmatmul.msk.bf16.gmra.mxu1 %vm1239_vm1, %v12586_v61 }
 0x47a   : > { %v5511_v46 = vpop.f32.mrf.mxu0  ;;  %11304 = vmatmul.msk.bf16.gmra.mxu2 %vm1239_vm1, %v2400_v15  ;;  %v14034_v3 = vadd.f32 %v5508_v59, %v4392_v57  ;;  %11646 = vmatmul.msk.bf16.gmra.mxu3 %vm1239_vm1, %v3715_v2  ;;  %v12588_v57 = vld [vmem:[%s12740_s30 + $0x1b8] sm:$0xff] }
 0x47b   : > { %v2401_v59 = vrot.slane %v12588_v57, 1 }
 0x47c   : > { %16381 = vst [vmem:[#allocation68_spill] sm:$0xff] %v14034_v3 }
 0x47d   : > { %11720 = vmatmul.msk.bf16.gmra.mxu0 %vm1239_vm1, %v4940_v51  ;;  %v2873_v5 = vpop.f32.mrf.mxu2  ;;  %v4188_v47 = vpop.f32.mrf.mxu3  ;;  %v2402_v3 = vsel %vm2291_vm2, %v2399_v43, %v2401_v59 }
 0x47e   : > { %v3078_v16 = vadd.f32 %v2873_v5, %v2170_v49  ;;  %v2171_v61 = vpop.f32.mrf.mxu1  ;;  %v4948_v49 = vor.u32 %v4947_v20, %v4944_v24  ;;  %v4951_v24 = vshrl.u32 %v12426_v8, 16  ;;  %v4954_v20 = vshll.u32 %v12426_v8, 16 }
 0x47f   : > { %v2172_v17 = vadd.f32 %v2171_v61, %v16384_v14 }
 0x480   : > { %v4393_v0 = vadd.f32 %v4188_v47, %v3078_v16  ;;  %v3717_v16 = vsel %vm2291_vm2, %v3714_v53, %v3716_v58 }
 0x482   : > { %v5513_v15 = vpop.f32.mrf.mxu0  ;;  %v14039_v54 = vadd.f32 %v5511_v46, %v4393_v0  ;;  %v4949_v46 = vsel %vm4446_vm3, %v4939_v6, %v4948_v49  ;;  %v4956_v6 = vrot.slane %v4954_v20, 2  ;;  %v16390_v20 = vld [vmem:[#allocation83_spill] sm:$0xff] }
 0x484   : > { %16383 = vst [vmem:[#allocation71_spill] sm:$0xff] %v14039_v54 }
 0x485   : > { %v2875_v2 = vpop.f32.mrf.mxu2  ;;  %v4190_v10 = vpop.f32.mrf.mxu3 }
 0x486   : > { %v3079_v51 = vadd.f32 %v2875_v2, %v2172_v17  ;;  %v2174_v5 = vpop.f32.mrf.mxu1  ;;  %v4953_v17 = vrot.slane %v4951_v24, 1  ;;  %v12427_v24 = vld [vmem:[%s12740_s30 + $0x1d8] sm:$0xff] }
 0x487   : > { %v2175_v61 = vadd.f32 %v2174_v5, %v16386_v26  ;;  %v3718_v5 = vrot.slane %v12426_v8, 1 }
 0x488   : > { %v4394_v41 = vadd.f32 %v4190_v10, %v3079_v51  ;;  %v16388_v51 = vld [vmem:[#allocation80_spill] sm:$0xff] }
 0x489   : > { %11231 = vmatmul.msk.bf16.gmra.mxu1 %vm1239_vm1, %v12587_v55 }
 0x48a   : > { %v5516_v47 = vpop.f32.mrf.mxu0  ;;  %11305 = vmatmul.msk.bf16.gmra.mxu2 %vm1239_vm1, %v2402_v3  ;;  %v14049_v28 = vadd.f32 %v5513_v15, %v4394_v41  ;;  %11647 = vmatmul.msk.bf16.gmra.mxu3 %vm1239_vm1, %v3717_v16  ;;  %v12589_v41 = vld [vmem:[%s12740_s30 + $0x1c0] sm:$0xff] }
 0x48b   : > { %v2403_v15 = vrot.slane %v12589_v41, 1 }
 0x48c   : > { %16385 = vst [vmem:[#allocation74_spill] sm:$0xff] %v14049_v28 }
 0x48d   : > { %11721 = vmatmul.msk.bf16.gmra.mxu0 %vm1239_vm1, %v4949_v46  ;;  %v2878_v43 = vpop.f32.mrf.mxu2  ;;  %v4193_v53 = vpop.f32.mrf.mxu3  ;;  %v2404_v28 = vsel %vm2291_vm2, %v2401_v59, %v2403_v15 }
 0x48e   : > { %v3080_v0 = vadd.f32 %v2878_v43, %v2175_v61  ;;  %v2176_v55 = vpop.f32.mrf.mxu1  ;;  %v4957_v61 = vor.u32 %v4956_v6, %v4953_v17  ;;  %v4960_v17 = vshrl.u32 %v12427_v24, 16  ;;  %v4963_v6 = vshll.u32 %v12427_v24, 16 }
 0x48f   : > { %v2177_v10 = vadd.f32 %v2176_v55, %v16388_v51 }
 0x490   : > { %v4395_v14 = vadd.f32 %v4193_v53, %v3080_v0  ;;  %v3719_v0 = vsel %vm2291_vm2, %v3716_v58, %v3718_v5 }
 0x492   : > { %v5518_v3 = vpop.f32.mrf.mxu0  ;;  %v14054_v2 = vadd.f32 %v5516_v47, %v4395_v14  ;;  %v4958_v47 = vsel %vm4446_vm3, %v4948_v49, %v4957_v61  ;;  %v4965_v49 = vrot.slane %v4963_v6, 2  ;;  %v16394_v6 = vld [vmem:[#allocation89_spill] sm:$0xff] }
 0x494   : > { %16387 = vst [vmem:[#allocation77_spill] sm:$0xff] %v14054_v2 }
 0x495   : > { %v2880_v16 = vpop.f32.mrf.mxu2  ;;  %v4195_v26 = vpop.f32.mrf.mxu3 }
 0x496   : > { %v3081_v46 = vadd.f32 %v2880_v16, %v2177_v10  ;;  %v2179_v43 = vpop.f32.mrf.mxu1  ;;  %v4962_v10 = vrot.slane %v4960_v17, 1  ;;  %v12428_v17 = vld [vmem:[%s12740_s30 + $0x1e0] sm:$0xff] }
 0x497   : > { %v2180_v55 = vadd.f32 %v2179_v43, %v16390_v20  ;;  %v3720_v43 = vrot.slane %v12427_v24, 1 }
 0x498   : > { %v4396_v54 = vadd.f32 %v4195_v26, %v3081_v46  ;;  %v16392_v46 = vld [vmem:[#allocation86_spill] sm:$0xff] }
 0x499   : > { %11232 = vmatmul.msk.bf16.gmra.mxu1 %vm1239_vm1, %v12588_v57 }
 0x49a   : > { %v5521_v53 = vpop.f32.mrf.mxu0  ;;  %11306 = vmatmul.msk.bf16.gmra.mxu2 %vm1239_vm1, %v2404_v28  ;;  %v14064_v8 = vadd.f32 %v5518_v3, %v4396_v54  ;;  %11648 = vmatmul.msk.bf16.gmra.mxu3 %vm1239_vm1, %v3719_v0  ;;  %v12590_v54 = vld [vmem:[%s12740_s30 + $0x1c8] sm:$0xff] }
 0x49b   : > { %v2405_v3 = vrot.slane %v12590_v54, 1 }
 0x49c   : > { %16389 = vst [vmem:[#allocation80_spill] sm:$0xff] %v14064_v8 }
 0x49d   : > { %11722 = vmatmul.msk.bf16.gmra.mxu0 %vm1239_vm1, %v4958_v47  ;;  %v2883_v59 = vpop.f32.mrf.mxu2  ;;  %v4198_v58 = vpop.f32.mrf.mxu3  ;;  %v2406_v8 = vsel %vm2291_vm2, %v2403_v15, %v2405_v3 }
 0x49e   : > { %v3082_v14 = vadd.f32 %v2883_v59, %v2180_v55  ;;  %v2181_v57 = vpop.f32.mrf.mxu1  ;;  %v4966_v55 = vor.u32 %v4965_v49, %v4962_v10  ;;  %v4969_v10 = vshrl.u32 %v12428_v17, 16  ;;  %v4972_v49 = vshll.u32 %v12428_v17, 16 }
 0x49f   : > { %v2182_v26 = vadd.f32 %v2181_v57, %v16392_v46 }
 0x4a0   : > { %v4397_v51 = vadd.f32 %v4198_v58, %v3082_v14  ;;  %v3721_v14 = vsel %vm2291_vm2, %v3718_v5, %v3720_v43 }
 0x4a2   : > { %v5523_v28 = vpop.f32.mrf.mxu0  ;;  %v14069_v16 = vadd.f32 %v5521_v53, %v4397_v51  ;;  %v4967_v53 = vsel %vm4446_vm3, %v4957_v61, %v4966_v55  ;;  %v4974_v61 = vrot.slane %v4972_v49, 2  ;;  %v16398_v49 = vld [vmem:[#allocation95_spill] sm:$0xff] }
 0x4a4   : > { %16391 = vst [vmem:[#allocation83_spill] sm:$0xff] %v14069_v16 }
 0x4a5   : > { %v2885_v0 = vpop.f32.mrf.mxu2  ;;  %v4200_v20 = vpop.f32.mrf.mxu3 }
 0x4a6   : > { %v3083_v47 = vadd.f32 %v2885_v0, %v2182_v26  ;;  %v2184_v59 = vpop.f32.mrf.mxu1  ;;  %v4971_v26 = vrot.slane %v4969_v10, 1  ;;  %v12429_v10 = vld [vmem:[%s12740_s30 + $0x1e8] sm:$0xff] }
 0x4a7   : > { %v2185_v57 = vadd.f32 %v2184_v59, %v16394_v6  ;;  %v3722_v59 = vrot.slane %v12428_v17, 1 }
 0x4a8   : > { %v4398_v2 = vadd.f32 %v4200_v20, %v3083_v47  ;;  %v16396_v47 = vld [vmem:[#allocation92_spill] sm:$0xff] }
 0x4a9   : > { %11233 = vmatmul.msk.bf16.gmra.mxu1 %vm1239_vm1, %v12589_v41 }
 0x4aa   : > { %v5526_v58 = vpop.f32.mrf.mxu0  ;;  %11307 = vmatmul.msk.bf16.gmra.mxu2 %vm1239_vm1, %v2406_v8  ;;  %v14079_v24 = vadd.f32 %v5523_v28, %v4398_v2  ;;  %11649 = vmatmul.msk.bf16.gmra.mxu3 %vm1239_vm1, %v3721_v14  ;;  %v12591_v2 = vld [vmem:[%s12740_s30 + $0x1d0] sm:$0xff] }
 0x4ab   : > { %v2407_v28 = vrot.slane %v12591_v2, 1 }
 0x4ac   : > { %16393 = vst [vmem:[#allocation86_spill] sm:$0xff] %v14079_v24 }
 0x4ad   : > { %11723 = vmatmul.msk.bf16.gmra.mxu0 %vm1239_vm1, %v4967_v53  ;;  %v2888_v15 = vpop.f32.mrf.mxu2  ;;  %v4203_v5 = vpop.f32.mrf.mxu3  ;;  %v2408_v24 = vsel %vm2291_vm2, %v2405_v3, %v2407_v28 }
 0x4ae   : > { %v3084_v51 = vadd.f32 %v2888_v15, %v2185_v57  ;;  %v2186_v41 = vpop.f32.mrf.mxu1  ;;  %v4975_v57 = vor.u32 %v4974_v61, %v4971_v26  ;;  %v4978_v26 = vshrl.u32 %v12429_v10, 16  ;;  %v4981_v61 = vshll.u32 %v12429_v10, 16 }
 0x4af   : > { %v2187_v20 = vadd.f32 %v2186_v41, %v16396_v47 }
 0x4b0   : > { %v4399_v46 = vadd.f32 %v4203_v5, %v3084_v51  ;;  %v3723_v51 = vsel %vm2291_vm2, %v3720_v43, %v3722_v59 }
 0x4b2   : > { %v5528_v8 = vpop.f32.mrf.mxu0  ;;  %v14084_v0 = vadd.f32 %v5526_v58, %v4399_v46  ;;  %v4976_v58 = vsel %vm4446_vm3, %v4966_v55, %v4975_v57  ;;  %v4983_v55 = vrot.slane %v4981_v61, 2  ;;  %v16402_v61 = vld [vmem:[#allocation101_spill] sm:$0xff] }
 0x4b4   : > { %16395 = vst [vmem:[#allocation89_spill] sm:$0xff] %v14084_v0 }
 0x4b5   : > { %v2890_v14 = vpop.f32.mrf.mxu2  ;;  %v4205_v6 = vpop.f32.mrf.mxu3 }
 0x4b6   : > { %v3085_v53 = vadd.f32 %v2890_v14, %v2187_v20  ;;  %v2189_v15 = vpop.f32.mrf.mxu1  ;;  %v4980_v20 = vrot.slane %v4978_v26, 1  ;;  %v12430_v26 = vld [vmem:[%s12740_s30 + $0x1f0] sm:$0xff] }
 0x4b7   : > { %v2190_v41 = vadd.f32 %v2189_v15, %v16398_v49  ;;  %v3724_v15 = vrot.slane %v12429_v10, 1 }
 0x4b8   : > { %v4400_v16 = vadd.f32 %v4205_v6, %v3085_v53  ;;  %v16400_v53 = vld [vmem:[#allocation98_spill] sm:$0xff] }
 0x4b9   : > { %11234 = vmatmul.msk.bf16.gmra.mxu1 %vm1239_vm1, %v12590_v54 }
 0x4ba   : > { %v5531_v5 = vpop.f32.mrf.mxu0  ;;  %11308 = vmatmul.msk.bf16.gmra.mxu2 %vm1239_vm1, %v2408_v24  ;;  %v14094_v17 = vadd.f32 %v5528_v8, %v4400_v16  ;;  %11650 = vmatmul.msk.bf16.gmra.mxu3 %vm1239_vm1, %v3723_v51  ;;  %v12592_v16 = vld [vmem:[%s12740_s30 + $0x1d8] sm:$0xff] }
 0x4bb   : > { %v2409_v8 = vrot.slane %v12592_v16, 1 }
 0x4bc   : > { %16397 = vst [vmem:[#allocation92_spill] sm:$0xff] %v14094_v17 }
 0x4bd   : > { %11724 = vmatmul.msk.bf16.gmra.mxu0 %vm1239_vm1, %v4976_v58  ;;  %v2893_v3 = vpop.f32.mrf.mxu2  ;;  %v4208_v43 = vpop.f32.mrf.mxu3  ;;  %v2410_v17 = vsel %vm2291_vm2, %v2407_v28, %v2409_v8 }
 0x4be   : > { %v3086_v46 = vadd.f32 %v2893_v3, %v2190_v41  ;;  %v2191_v54 = vpop.f32.mrf.mxu1  ;;  %v4984_v41 = vor.u32 %v4983_v55, %v4980_v20  ;;  %v4987_v20 = vshrl.u32 %v12430_v26, 16  ;;  %v4990_v55 = vshll.u32 %v12430_v26, 16 }
 0x4bf   : > { %v2192_v6 = vadd.f32 %v2191_v54, %v16400_v53 }
 0x4c0   : > { %v4401_v47 = vadd.f32 %v4208_v43, %v3086_v46  ;;  %v3725_v46 = vsel %vm2291_vm2, %v3722_v59, %v3724_v15 }
 0x4c2   : > { %v5533_v24 = vpop.f32.mrf.mxu0  ;;  %v14099_v14 = vadd.f32 %v5531_v5, %v4401_v47  ;;  %v4985_v5 = vsel %vm4446_vm3, %v4975_v57, %v4984_v41  ;;  %v4992_v57 = vrot.slane %v4990_v55, 2  ;;  %v16406_v55 = vld [vmem:[#allocation4_spill] sm:$0xff] }
 0x4c4   : > { %16399 = vst [vmem:[#allocation95_spill] sm:$0xff] %v14099_v14 }
 0x4c5   : > { %v2895_v51 = vpop.f32.mrf.mxu2  ;;  %v4210_v49 = vpop.f32.mrf.mxu3 }
 0x4c6   : > { %v3087_v58 = vadd.f32 %v2895_v51, %v2192_v6  ;;  %v2194_v3 = vpop.f32.mrf.mxu1  ;;  %v4989_v6 = vrot.slane %v4987_v20, 1  ;;  %v12431_v20 = vld [vmem:[%s12740_s30 + $0x1f8] sm:$0xff] }
 0x4c7   : > { %v2195_v54 = vadd.f32 %v2194_v3, %v16402_v61  ;;  %v3726_v3 = vrot.slane %v12430_v26, 1 }
 0x4c8   : > { %v4402_v0 = vadd.f32 %v4210_v49, %v3087_v58  ;;  %v16404_v58 = vld [vmem:[#allocation105_spill] sm:$0xff] }
 0x4c9   : > { %11235 = vmatmul.msk.bf16.gmra.mxu1 %vm1239_vm1, %v12591_v2 }
 0x4ca   : > { %v5536_v43 = vpop.f32.mrf.mxu0  ;;  %11309 = vmatmul.msk.bf16.gmra.mxu2 %vm1239_vm1, %v2410_v17  ;;  %v14109_v10 = vadd.f32 %v5533_v24, %v4402_v0  ;;  %11651 = vmatmul.msk.bf16.gmra.mxu3 %vm1239_vm1, %v3725_v46  ;;  %v12593_v0 = vld [vmem:[%s12740_s30 + $0x1e0] sm:$0xff] }
 0x4cb   : > { %v2411_v24 = vrot.slane %v12593_v0, 1 }
 0x4cc   : > { %16401 = vst [vmem:[#allocation98_spill] sm:$0xff] %v14109_v10 }
 0x4cd   : > { %11725 = vmatmul.msk.bf16.gmra.mxu0 %vm1239_vm1, %v4985_v5  ;;  %v2898_v28 = vpop.f32.mrf.mxu2  ;;  %v4213_v59 = vpop.f32.mrf.mxu3  ;;  %v2412_v10 = vsel %vm2291_vm2, %v2409_v8, %v2411_v24 }
 0x4ce   : > { %v3088_v47 = vadd.f32 %v2898_v28, %v2195_v54  ;;  %v2196_v2 = vpop.f32.mrf.mxu1  ;;  %v4993_v54 = vor.u32 %v4992_v57, %v4989_v6  ;;  %v4996_v6 = vshrl.u32 %v12431_v20, 16  ;;  %v4999_v57 = vshll.u32 %v12431_v20, 16 }
 0x4cf   : > { %v2197_v49 = vadd.f32 %v2196_v2, %v16404_v58 }
 0x4d0   : > { %v4403_v53 = vadd.f32 %v4213_v59, %v3088_v47  ;;  %v3727_v47 = vsel %vm2291_vm2, %v3724_v15, %v3726_v3 }
 0x4d2   : > { %v5538_v17 = vpop.f32.mrf.mxu0  ;;  %v14114_v51 = vadd.f32 %v5536_v43, %v4403_v53  ;;  %v4994_v43 = vsel %vm4446_vm3, %v4984_v41, %v4993_v54  ;;  %v5001_v41 = vrot.slane %v4999_v57, 2  ;;  %v16410_v57 = vld [vmem:[#allocation10_spill] sm:$0xff] }
 0x4d4   : > { %16403 = vst [vmem:[#allocation101_spill] sm:$0xff] %v14114_v51 }
 0x4d5   : > { %v2900_v46 = vpop.f32.mrf.mxu2  ;;  %v4215_v61 = vpop.f32.mrf.mxu3 }
 0x4d6   : > { %v3089_v5 = vadd.f32 %v2900_v46, %v2197_v49  ;;  %v2199_v28 = vpop.f32.mrf.mxu1  ;;  %v4998_v49 = vrot.slane %v4996_v6, 1  ;;  %v12432_v6 = vld [vmem:[%s12740_s30 + $0x200] sm:$0xff] }
 0x4d7   : > { %v2200_v2 = vadd.f32 %v2199_v28, %v16406_v55  ;;  %v3728_v28 = vrot.slane %v12431_v20, 1 }
 0x4d8   : > { %v4404_v14 = vadd.f32 %v4215_v61, %v3089_v5  ;;  %v16408_v5 = vld [vmem:[#allocation7_spill] sm:$0xff] }
 0x4d9   : > { %11236 = vmatmul.msk.bf16.gmra.mxu1 %vm1239_vm1, %v12592_v16 }
 0x4da   : > { %v5541_v59 = vpop.f32.mrf.mxu0  ;;  %11310 = vmatmul.msk.bf16.gmra.mxu2 %vm1239_vm1, %v2412_v10  ;;  %v14124_v26 = vadd.f32 %v5538_v17, %v4404_v14  ;;  %11652 = vmatmul.msk.bf16.gmra.mxu3 %vm1239_vm1, %v3727_v47  ;;  %v12594_v14 = vld [vmem:[%s12740_s30 + $0x1e8] sm:$0xff] }
 0x4db   : > { %v2413_v17 = vrot.slane %v12594_v14, 1 }
 0x4dc   : > { %16405 = vst [vmem:[#allocation105_spill] sm:$0xff] %v14124_v26 }
 0x4dd   : > { %11726 = vmatmul.msk.bf16.gmra.mxu0 %vm1239_vm1, %v4994_v43  ;;  %v2903_v8 = vpop.f32.mrf.mxu2  ;;  %v4218_v15 = vpop.f32.mrf.mxu3  ;;  %v2414_v26 = vsel %vm2291_vm2, %v2411_v24, %v2413_v17 }
 0x4de   : > { %v3090_v53 = vadd.f32 %v2903_v8, %v2200_v2  ;;  %v2201_v16 = vpop.f32.mrf.mxu1  ;;  %v5002_v2 = vor.u32 %v5001_v41, %v4998_v49  ;;  %v5005_v49 = vshrl.u32 %v12432_v6, 16  ;;  %v5008_v41 = vshll.u32 %v12432_v6, 16 }
 0x4df   : > { %v2202_v61 = vadd.f32 %v2201_v16, %v16408_v5 }
 0x4e0   : > { %v4405_v58 = vadd.f32 %v4218_v15, %v3090_v53  ;;  %v3729_v53 = vsel %vm2291_vm2, %v3726_v3, %v3728_v28 }
 0x4e2   : > { %v5543_v10 = vpop.f32.mrf.mxu0  ;;  %v14129_v46 = vadd.f32 %v5541_v59, %v4405_v58  ;;  %v5003_v59 = vsel %vm4446_vm3, %v4993_v54, %v5002_v2  ;;  %v5010_v54 = vrot.slane %v5008_v41, 2  ;;  %v16414_v41 = vld [vmem:[#allocation16_spill] sm:$0xff] }
 0x4e4   : > { %16407 = vst [vmem:[#allocation4_spill] sm:$0xff] %v14129_v46 }
 0x4e5   : > { %v2905_v47 = vpop.f32.mrf.mxu2  ;;  %v4220_v55 = vpop.f32.mrf.mxu3 }
 0x4e6   : > { %v3091_v43 = vadd.f32 %v2905_v47, %v2202_v61  ;;  %v2204_v8 = vpop.f32.mrf.mxu1  ;;  %v5007_v61 = vrot.slane %v5005_v49, 1  ;;  %v12433_v49 = vld [vmem:[%s12740_s30 + $0x208] sm:$0xff] }
 0x4e7   : > { %v2205_v16 = vadd.f32 %v2204_v8, %v16410_v57  ;;  %v3730_v8 = vrot.slane %v12432_v6, 1 }
 0x4e8   : > { %v4406_v51 = vadd.f32 %v4220_v55, %v3091_v43  ;;  %v16412_v43 = vld [vmem:[#allocation13_spill] sm:$0xff] }
 0x4e9   : > { %11237 = vmatmul.msk.bf16.gmra.mxu1 %vm1239_vm1, %v12593_v0 }
 0x4ea   : > { %v5546_v15 = vpop.f32.mrf.mxu0  ;;  %11311 = vmatmul.msk.bf16.gmra.mxu2 %vm1239_vm1, %v2414_v26  ;;  %v14139_v20 = vadd.f32 %v5543_v10, %v4406_v51  ;;  %11653 = vmatmul.msk.bf16.gmra.mxu3 %vm1239_vm1, %v3729_v53  ;;  %v12595_v51 = vld [vmem:[%s12740_s30 + $0x1f0] sm:$0xff] }
 0x4eb   : > { %v2415_v10 = vrot.slane %v12595_v51, 1 }
 0x4ec   : > { %16409 = vst [vmem:[#allocation7_spill] sm:$0xff] %v14139_v20 }
 0x4ed   : > { %11727 = vmatmul.msk.bf16.gmra.mxu0 %vm1239_vm1, %v5003_v59  ;;  %v2908_v24 = vpop.f32.mrf.mxu2  ;;  %v4223_v3 = vpop.f32.mrf.mxu3  ;;  %v2416_v20 = vsel %vm2291_vm2, %v2413_v17, %v2415_v10 }
 0x4ee   : > { %v3092_v58 = vadd.f32 %v2908_v24, %v2205_v16  ;;  %v2206_v0 = vpop.f32.mrf.mxu1  ;;  %v5011_v16 = vor.u32 %v5010_v54, %v5007_v61  ;;  %v5014_v61 = vshrl.u32 %v12433_v49, 16  ;;  %v5017_v54 = vshll.u32 %v12433_v49, 16 }
 0x4ef   : > { %v2207_v55 = vadd.f32 %v2206_v0, %v16412_v43 }
 0x4f0   : > { %v4407_v5 = vadd.f32 %v4223_v3, %v3092_v58  ;;  %v3731_v58 = vsel %vm2291_vm2, %v3728_v28, %v3730_v8 }
 0x4f2   : > { %v5548_v26 = vpop.f32.mrf.mxu0  ;;  %v14144_v47 = vadd.f32 %v5546_v15, %v4407_v5  ;;  %v5012_v15 = vsel %vm4446_vm3, %v5002_v2, %v5011_v16  ;;  %v5019_v2 = vrot.slane %v5017_v54, 2  ;;  %v16418_v54 = vld [vmem:[#allocation22_spill] sm:$0xff] }
 0x4f4   : > { %16411 = vst [vmem:[#allocation10_spill] sm:$0xff] %v14144_v47 }
 0x4f5   : > { %v2910_v53 = vpop.f32.mrf.mxu2  ;;  %v4225_v57 = vpop.f32.mrf.mxu3 }
 0x4f6   : > { %v3093_v59 = vadd.f32 %v2910_v53, %v2207_v55  ;;  %v2209_v24 = vpop.f32.mrf.mxu1  ;;  %v5016_v55 = vrot.slane %v5014_v61, 1  ;;  %v12434_v61 = vld [vmem:[%s12740_s30 + $0x210] sm:$0xff] }
 0x4f7   : > { %v2210_v0 = vadd.f32 %v2209_v24, %v16414_v41  ;;  %v3732_v24 = vrot.slane %v12433_v49, 1 }
 0x4f8   : > { %v4408_v46 = vadd.f32 %v4225_v57, %v3093_v59  ;;  %v16416_v59 = vld [vmem:[#allocation19_spill] sm:$0xff] }
 0x4f9   : > { %11238 = vmatmul.msk.bf16.gmra.mxu1 %vm1239_vm1, %v12594_v14 }
 0x4fa   : > { %v5551_v3 = vpop.f32.mrf.mxu0  ;;  %11312 = vmatmul.msk.bf16.gmra.mxu2 %vm1239_vm1, %v2416_v20  ;;  %v14154_v6 = vadd.f32 %v5548_v26, %v4408_v46  ;;  %11654 = vmatmul.msk.bf16.gmra.mxu3 %vm1239_vm1, %v3731_v58  ;;  %v12596_v46 = vld [vmem:[%s12740_s30 + $0x1f8] sm:$0xff] }
 0x4fb   : > { %v2417_v26 = vrot.slane %v12596_v46, 1 }
 0x4fc   : > { %16413 = vst [vmem:[#allocation13_spill] sm:$0xff] %v14154_v6 }
 0x4fd   : > { %11728 = vmatmul.msk.bf16.gmra.mxu0 %vm1239_vm1, %v5012_v15  ;;  %v2913_v17 = vpop.f32.mrf.mxu2  ;;  %v4228_v28 = vpop.f32.mrf.mxu3  ;;  %v2418_v6 = vsel %vm2291_vm2, %v2415_v10, %v2417_v26 }
 0x4fe   : > { %v3094_v5 = vadd.f32 %v2913_v17, %v2210_v0  ;;  %v2211_v14 = vpop.f32.mrf.mxu1  ;;  %v5020_v0 = vor.u32 %v5019_v2, %v5016_v55  ;;  %v5023_v55 = vshrl.u32 %v12434_v61, 16  ;;  %v5026_v2 = vshll.u32 %v12434_v61, 16 }
 0x4ff   : > { %v2212_v57 = vadd.f32 %v2211_v14, %v16416_v59 }
 0x500   : > { %v4409_v43 = vadd.f32 %v4228_v28, %v3094_v5  ;;  %v3733_v5 = vsel %vm2291_vm2, %v3730_v8, %v3732_v24 }
 0x502   : > { %v5553_v20 = vpop.f32.mrf.mxu0  ;;  %v14159_v53 = vadd.f32 %v5551_v3, %v4409_v43  ;;  %v5021_v3 = vsel %vm4446_vm3, %v5011_v16, %v5020_v0  ;;  %v5028_v16 = vrot.slane %v5026_v2, 2  ;;  %v16422_v2 = vld [vmem:[#allocation28_spill] sm:$0xff] }
 0x504   : > { %16415 = vst [vmem:[#allocation16_spill] sm:$0xff] %v14159_v53 }
 0x505   : > { %v2915_v58 = vpop.f32.mrf.mxu2  ;;  %v4230_v41 = vpop.f32.mrf.mxu3 }
 0x506   : > { %v3095_v15 = vadd.f32 %v2915_v58, %v2212_v57  ;;  %v2214_v17 = vpop.f32.mrf.mxu1  ;;  %v5025_v57 = vrot.slane %v5023_v55, 1  ;;  %v12435_v55 = vld [vmem:[%s12740_s30 + $0x218] sm:$0xff] }
 0x507   : > { %v2215_v14 = vadd.f32 %v2214_v17, %v16418_v54  ;;  %v3734_v17 = vrot.slane %v12434_v61, 1 }
 0x508   : > { %v4410_v47 = vadd.f32 %v4230_v41, %v3095_v15  ;;  %v16420_v15 = vld [vmem:[#allocation25_spill] sm:$0xff] }
 0x509   : > { %11239 = vmatmul.msk.bf16.gmra.mxu1 %vm1239_vm1, %v12595_v51 }
 0x50a   : > { %v5556_v28 = vpop.f32.mrf.mxu0  ;;  %11313 = vmatmul.msk.bf16.gmra.mxu2 %vm1239_vm1, %v2418_v6  ;;  %v14169_v49 = vadd.f32 %v5553_v20, %v4410_v47  ;;  %11655 = vmatmul.msk.bf16.gmra.mxu3 %vm1239_vm1, %v3733_v5  ;;  %v12597_v47 = vld [vmem:[%s12740_s30 + $0x200] sm:$0xff] }
 0x50b   : > { %v2419_v20 = vrot.slane %v12597_v47, 1 }
 0x50c   : > { %16417 = vst [vmem:[#allocation19_spill] sm:$0xff] %v14169_v49 }
 0x50d   : > { %11729 = vmatmul.msk.bf16.gmra.mxu0 %vm1239_vm1, %v5021_v3  ;;  %v2918_v10 = vpop.f32.mrf.mxu2  ;;  %v4233_v8 = vpop.f32.mrf.mxu3  ;;  %v2420_v49 = vsel %vm2291_vm2, %v2417_v26, %v2419_v20 }
 0x50e   : > { %v3096_v43 = vadd.f32 %v2918_v10, %v2215_v14  ;;  %v2216_v51 = vpop.f32.mrf.mxu1  ;;  %v5029_v14 = vor.u32 %v5028_v16, %v5025_v57  ;;  %v5032_v57 = vshrl.u32 %v12435_v55, 16  ;;  %v5035_v16 = vshll.u32 %v12435_v55, 16 }
 0x50f   : > { %v2217_v41 = vadd.f32 %v2216_v51, %v16420_v15 }
 0x510   : > { %v4411_v59 = vadd.f32 %v4233_v8, %v3096_v43  ;;  %v3735_v43 = vsel %vm2291_vm2, %v3732_v24, %v3734_v17 }
 0x512   : > { %v5558_v6 = vpop.f32.mrf.mxu0  ;;  %v14174_v58 = vadd.f32 %v5556_v28, %v4411_v59  ;;  %v5030_v28 = vsel %vm4446_vm3, %v5020_v0, %v5029_v14  ;;  %v5037_v0 = vrot.slane %v5035_v16, 2  ;;  %v16426_v16 = vld [vmem:[#allocation34_spill] sm:$0xff] }
 0x514   : > { %16419 = vst [vmem:[#allocation22_spill] sm:$0xff] %v14174_v58 }
 0x515   : > { %v2920_v5 = vpop.f32.mrf.mxu2  ;;  %v4235_v54 = vpop.f32.mrf.mxu3 }
 0x516   : > { %v3097_v3 = vadd.f32 %v2920_v5, %v2217_v41  ;;  %v2219_v10 = vpop.f32.mrf.mxu1  ;;  %v5034_v41 = vrot.slane %v5032_v57, 1  ;;  %v14199_v57 = vld [vmem:[%s12740_s30 + $0x220] sm:$0xff] }
 0x517   : > { %v2220_v51 = vadd.f32 %v2219_v10, %v16422_v2  ;;  %v3736_v10 = vrot.slane %v12435_v55, 1 }
 0x518   : > { %v4412_v53 = vadd.f32 %v4235_v54, %v3097_v3  ;;  %v16424_v3 = vld [vmem:[#allocation31_spill] sm:$0xff] }
 0x519   : > { %11240 = vmatmul.msk.bf16.gmra.mxu1 %vm1239_vm1, %v12596_v46 }
 0x51a   : > { %v5561_v8 = vpop.f32.mrf.mxu0  ;;  %11314 = vmatmul.msk.bf16.gmra.mxu2 %vm1239_vm1, %v2420_v49  ;;  %v14184_v61 = vadd.f32 %v5558_v6, %v4412_v53  ;;  %11656 = vmatmul.msk.bf16.gmra.mxu3 %vm1239_vm1, %v3735_v43  ;;  %v12598_v53 = vld [vmem:[%s12740_s30 + $0x208] sm:$0xff] }
 0x51b   : > { %v2421_v6 = vrot.slane %v12598_v53, 1 }
 0x51c   : > { %16421 = vst [vmem:[#allocation25_spill] sm:$0xff] %v14184_v61 }
 0x51d   : > { %11730 = vmatmul.msk.bf16.gmra.mxu0 %vm1239_vm1, %v5030_v28  ;;  %v2923_v26 = vpop.f32.mrf.mxu2  ;;  %v4238_v24 = vpop.f32.mrf.mxu3  ;;  %v2422_v61 = vsel %vm2291_vm2, %v2419_v20, %v2421_v6 }
 0x51e   : > { %v3098_v59 = vadd.f32 %v2923_v26, %v2220_v51  ;;  %v2221_v46 = vpop.f32.mrf.mxu1  ;;  %v5038_v51 = vor.u32 %v5037_v0, %v5034_v41 }
 0x51f   : > { %v2222_v54 = vadd.f32 %v2221_v46, %v16424_v3 }
 0x520   : > { %v4413_v15 = vadd.f32 %v4238_v24, %v3098_v59  ;;  %v3737_v59 = vsel %vm2291_vm2, %v3734_v17, %v3736_v10 }
 0x522   : > { %v5563_v49 = vpop.f32.mrf.mxu0  ;;  %v14189_v5 = vadd.f32 %v5561_v8, %v4413_v15  ;;  %v5039_v8 = vsel %vm4446_vm3, %v5029_v14, %v5038_v51 }
 0x524   : > { %16423 = vst [vmem:[#allocation28_spill] sm:$0xff] %v14189_v5 }
 0x525   : > { %v2925_v43 = vpop.f32.mrf.mxu2  ;;  %v4240_v2 = vpop.f32.mrf.mxu3 }
 0x526   : > { %v3099_v28 = vadd.f32 %v2925_v43, %v2222_v54  ;;  %v2224_v26 = vpop.f32.mrf.mxu1 }
 0x527   : > { %v2225_v46 = vadd.f32 %v2224_v26, %v16426_v16  ;;  %v3738_v26 = vrot.slane %v14199_v57, 1 }
 0x528   : > { %v4414_v58 = vadd.f32 %v4240_v2, %v3099_v28  ;;  %v16428_v28 = vld [vmem:[#allocation37_spill] sm:$0xff] }
 0x529   : > { %11241 = vmatmul.msk.bf16.gmra.mxu1 %vm1239_vm1, %v12597_v47  ;;  %v5041_v47 = vshrl.u32 %v14199_v57, 16 }
 0x52a   : > { %v5566_v24 = vpop.f32.mrf.mxu0  ;;  %11315 = vmatmul.msk.bf16.gmra.mxu2 %vm1239_vm1, %v2422_v61  ;;  %v14201_v55 = vadd.f32 %v5563_v49, %v4414_v58  ;;  %11657 = vmatmul.msk.bf16.gmra.mxu3 %vm1239_vm1, %v3737_v59  ;;  %v5044_v61 = vshll.u32 %v14199_v57, 16  ;;  %v12599_v49 = vld [vmem:[%s12740_s30 + $0x210] sm:$0xff] }
 0x52b   : > { %v5043_v3 = vrot.slane %v5041_v47, 1  ;;  %v2423_v43 = vrot.slane %v12599_v49, 1 }
 0x52c   : > { %16425 = vst [vmem:[#allocation31_spill] sm:$0xff] %v14201_v55  ;;  %v5046_v54 = vrot.slane %v5044_v61, 2  ;;  %v14219_v61 = vld [vmem:[%s12740_s30 + $0x228] sm:$0xff] }
 0x52d   : > { %11731 = vmatmul.msk.bf16.gmra.mxu0 %vm1239_vm1, %v5039_v8  ;;  %v2928_v20 = vpop.f32.mrf.mxu2  ;;  %v4243_v15 = vpop.f32.mrf.mxu3  ;;  %v2424_v55 = vsel %vm2291_vm2, %v2421_v6, %v2423_v43 }
 0x52e   : > { %v3100_v17 = vadd.f32 %v2928_v20, %v2225_v46  ;;  %v2226_v41 = vpop.f32.mrf.mxu1  ;;  %v5047_v46 = vor.u32 %v5046_v54, %v5043_v3 }
 0x52f   : > { %v2227_v2 = vadd.f32 %v2226_v41, %v16428_v28  ;;  %v16430_v41 = vld [vmem:[#allocation40_spill] sm:$0xff] }
 0x530   : > { %v4415_v14 = vadd.f32 %v4243_v15, %v3100_v17  ;;  %v3739_v15 = vsel %vm2291_vm2, %v3736_v10, %v3738_v26 }
 0x532   : > { %v5568_v0 = vpop.f32.mrf.mxu0  ;;  %v14208_v58 = vadd.f32 %v5566_v24, %v4415_v14  ;;  %v5048_v24 = vsel %vm4446_vm3, %v5038_v51, %v5047_v46 }
 0x534   : > { %16427 = vst [vmem:[#allocation34_spill] sm:$0xff] %v14208_v58 }
 0x535   : > { %v2930_v59 = vpop.f32.mrf.mxu2  ;;  %v4245_v16 = vpop.f32.mrf.mxu3 }
 0x536   : > { %v3101_v8 = vadd.f32 %v2930_v59, %v2227_v2  ;;  %v2229_v20 = vpop.f32.mrf.mxu1 }
 0x537   : > { %v2230_v6 = vadd.f32 %v2229_v20, %v16430_v41  ;;  %v4439_v20 = vld [vmem:[%s12740_s30 + $0x230] sm:$0x3] }
 0x538   : > { %v4416_v17 = vadd.f32 %v4245_v16, %v3101_v8  ;;  %v12600_v8 = vld [vmem:[%s12740_s30 + $0x218] sm:$0xff]  ;;  %v4444_v58 = vunpack.c.l.b16 %v4439_v20 }
 0x539   : > { %11242 = vmatmul.msk.bf16.gmra.mxu1 %vm1239_vm1, %v12598_v53  ;;  %v5050_v53 = vshrl.u32 %v14219_v61, 16  ;;  %v2425_v16 = vrot.slane %v12600_v8, 1 }
 0x53a   : > { %v5571_v47 = vpop.f32.mrf.mxu0  ;;  %11316 = vmatmul.msk.bf16.gmra.mxu2 %vm1239_vm1, %v2424_v55  ;;  %v14221_v57 = vadd.f32 %v5568_v0, %v4416_v17  ;;  %11658 = vmatmul.msk.bf16.gmra.mxu3 %vm1239_vm1, %v3739_v15  ;;  %v5053_v55 = vshll.u32 %v14219_v61, 16  ;;  %v16432_v17 = vld [vmem:[#allocation43_spill] sm:$0xff] }
 0x53b   : > { %v5052_v2 = vrot.slane %v5050_v53, 1 }
 0x53c   : > { %16429 = vst [vmem:[#allocation37_spill] sm:$0xff] %v14221_v57  ;;  %v5055_v0 = vrot.slane %v5053_v55, 2 }
 0x53d   : > { %11732 = vmatmul.msk.bf16.gmra.mxu0 %vm1239_vm1, %v5048_v24  ;;  %v2933_v10 = vpop.f32.mrf.mxu2  ;;  %v4248_v3 = vpop.f32.mrf.mxu3  ;;  %v3740_v24 = vrot.slane %v14219_v61, 1 }
 0x53e   : > { %v3102_v14 = vadd.f32 %v2933_v10, %v2230_v6  ;;  %v2231_v51 = vpop.f32.mrf.mxu1  ;;  %v5056_v57 = vor.u32 %v5055_v0, %v5052_v2 }
 0x53f   : > { %v2232_v15 = vadd.f32 %v2231_v51, %v16432_v17  ;;  %v3741_v53 = vsel %vm2291_vm2, %v3738_v26, %v3740_v24  ;;  %v14240_v51 = vpack.c.b16 %v4444_v58, %v4444_v58 }
 0x540   : > { %v4417_v54 = vadd.f32 %v4248_v3, %v3102_v14  ;;  %v2426_v14 = vsel %vm2291_vm2, %v2423_v43, %v2425_v16  ;;  %v5057_v61 = vsel %vm4446_vm3, %v5047_v46, %v5056_v57  ;;  %v16435_v43 = vld [vmem:[#allocation47_spill] sm:$0xff] }
 0x541   : > { %16433 = vst [vmem:[#allocation43_spill] sm:$0xff] %v14240_v51  ;;  %v5059_v17 = vshrl.u32 %v14240_v51, 16 }
 0x542   : > { %v5573_v28 = vpop.f32.mrf.mxu0  ;;  %v14228_v59 = vadd.f32 %v5571_v47, %v4417_v54  ;;  %v3260_v47 = vld [vmem:[%s12740_s30 + $0x230] sm:$0x1] }
 0x543   : > { %v3537_v0 = vunpack.c.l.b16 %v3260_v47 }
 0x544   : > { %16431 = vst [vmem:[#allocation40_spill] sm:$0xff] %v14228_v59 }
 0x545   : > { %v2935_v41 = vpop.f32.mrf.mxu2  ;;  %v4250_v10 = vpop.f32.mrf.mxu3  ;;  %v3606_v58 = vpack.c.b16 %v3537_v0, %v3537_v0 }
 0x546   : > { %v3103_v6 = vadd.f32 %v2935_v41, %v2232_v15  ;;  %v2234_v5 = vpop.f32.mrf.mxu1  ;;  %v5062_v15 = vshll.u32 %v14240_v51, 16 }
 0x547   : > { %v2235_v2 = vadd.f32 %v2234_v5, %v16435_v43 }
 0x548   : > { %v4418_v3 = vadd.f32 %v4250_v10, %v3103_v6  ;;  %v6602_v6 = vld [vmem:[%s12740_s30 + $0x20] sm:$0xc]  ;;  %v6603_v10 = vld [vmem:[%s12740_s30 + $0x24] sm:$0xf] }
 0x549   : > { %11243 = vmatmul.msk.bf16.gmra.mxu1 %vm1239_vm1, %v12599_v49  ;;  %v6880_v43 = vunpack.c.l.b16 %v6603_v10  ;;  %v9240_v10 = vld [vmem:[%s12740_s30 + $0x20] sm:$0x8] }
 0x54a   : > { %v5576_v55 = vpop.f32.mrf.mxu0  ;;  %11317 = vmatmul.msk.bf16.gmra.mxu2 %vm1239_vm1, %v2426_v14  ;;  %11659 = vmatmul.msk.bf16.gmra.mxu3 %vm1239_vm1, %v3741_v53  ;;  %v14243_v54 = vadd.f32 %v5573_v28, %v4418_v3  ;;  %v5061_v28 = vrot.slane %v5059_v17, 1  ;;  %v5064_v3 = vrot.slane %v5062_v15, 2  ;;  %v16437_v53 = vld [vmem:[#allocation45_spill] sm:$0xff] }
 0x54b   : > { %v2427_v47 = vrot.slane %v16437_v53, 1 }
 0x54c   : > { %16434 = vst [vmem:[#allocation107_spill] sm:$0xff] %v14243_v54  ;;  %v3742_v54 = vrot.slane %v3606_v58, 1  ;;  %v5065_v0 = vor.u32 %v5064_v3, %v5061_v28 }
 0x54d   : > { %11733 = vmatmul.msk.bf16.gmra.mxu0 %vm1239_vm1, %v5057_v61  ;;  %v2938_v26 = vpop.f32.mrf.mxu2  ;;  %v4253_v49 = vpop.f32.mrf.mxu3  ;;  %v6879_v61 = vunpack.c.l.b16 %v6602_v6  ;;  %v2428_v17 = vsel %vm2291_vm2, %v2425_v16, %v2427_v47  ;;  %v16441_v47 = vld [vmem:[#allocation49_spill] sm:$0xff] }
 0x54e   : > { %v3104_v20 = vadd.f32 %v2938_v26, %v2235_v2  ;;  %v2236_v46 = vpop.f32.mrf.mxu1  ;;  %v16438_v2 = vld [vmem:[#allocation51_spill] sm:$0xff] }
 0x54f   : > { %v2237_v26 = vadd.f32 %v2236_v46, %v16438_v2  ;;  %v7016_v15 = vpack.c.b16 %v6880_v43, %v6879_v61  ;;  %v16442_v61 = vunpack.c.l.b16 %v16441_v47  ;;  %v14284_v47 = vld [vmem:[%s12740_s30 + $0x30] sm:$0xff] }
 0x550   : > { %v4419_v41 = vadd.f32 %v4253_v49, %v3104_v20 }
 0x551   : > { %v7926_v16 = vshrl.u32 %v7016_v15, 16  ;;  %v7085_v27 = vrot.slane %v7016_v15, 2 }
 0x552   : > { %v5578_v14 = vpop.f32.mrf.mxu0  ;;  %v14251_v5 = vadd.f32 %v5576_v55, %v4419_v41  ;;  %v3743_v55 = vsel %vm2291_vm2, %v3740_v24, %v3742_v54  ;;  %v5762_v41 = vld [vmem:[%s12740_s30 + $0x10] sm:$0xc]  ;;  %v7929_v24 = vshll.u32 %v7016_v15, 16 }
 0x553   : > { %v5767_v58 = vunpack.c.l.b16 %v5762_v41 }
 0x554   : > { %16436 = vst [vmem:[#allocation47_spill] sm:$0xff] %v14251_v5  ;;  %v14259_v5 = vld [vmem:[%s12740_s30 + $0x28] sm:$0xff] }
 0x555   : > { %v2940_v51 = vpop.f32.mrf.mxu2  ;;  %v4255_v20 = vpop.f32.mrf.mxu3  ;;  %v7934_v54 = vshrl.u32 %v14259_v5, 16  ;;  %v7937_v3 = vshll.u32 %v14259_v5, 16  ;;  %v5768_v2 = vpack.c.b16 %v16442_v61, %v5767_v58 }
 0x556   : > { %v3105_v59 = vadd.f32 %v2940_v51, %v2237_v26  ;;  %v2239_v49 = vpop.f32.mrf.mxu1  ;;  %v5066_v51 = vsel %vm4446_vm3, %v5056_v57, %v5065_v0  ;;  %v7928_v26 = vrot.slane %v7926_v16, 2  ;;  %v7931_v0 = vrot.slane %v7929_v24, 3 }
 0x558   : > { %v4420_v37 = vadd.f32 %v4255_v20, %v3105_v59  ;;  %v16440_v59 = vld [vmem:[#allocation54_spill] sm:$0xff]  ;;  %v7932_v58 = vor.u32 %v7931_v0, %v7928_v26  ;;  %v7943_v26 = vshrl.u32 %v14284_v47, 16 }
 0x559   : > { %11244 = vmatmul.msk.bf16.gmra.mxu1 %vm1239_vm1, %v12600_v8  ;;  %v2240_v28 = vadd.f32 %v2239_v49, %v16440_v59  ;;  %v7936_v49 = vrot.slane %v7934_v54, 2 }
 0x55a   : > { %v5581_v6 = vpop.f32.mrf.mxu0  ;;  %11318 = vmatmul.msk.bf16.gmra.mxu2 %vm1239_vm1, %v2428_v17  ;;  %v14264_v46 = vadd.f32 %v5578_v14, %v4420_v37  ;;  %11660 = vmatmul.msk.bf16.gmra.mxu3 %vm1239_vm1, %v3743_v55  ;;  %v9245_v37 = vunpack.c.l.b16 %v9240_v10  ;;  %v7939_v17 = vrot.slane %v7937_v3, 3  ;;  %v16443_v10 = vld [vmem:[#allocation57_spill] sm:$0xff] }
 0x55c   : > { %16439 = vst [vmem:[#allocation45_spill] sm:$0xff] %v14264_v46  ;;  %v9246_v41 = vpack.c.b16 %v6880_v43, %v9245_v37  ;;  %v5770_v46 = vrot.slane %v5768_v2, 2  ;;  %v7940_v16 = vor.u32 %v7939_v17, %v7936_v49  ;;  %v9249_v43 = vrot.slane %v14259_v5, 3 }
 0x55d   : > { %11734 = vmatmul.msk.bf16.gmra.mxu0 %vm1239_vm1, %v5066_v51  ;;  %v2943_v8 = vpop.f32.mrf.mxu2  ;;  %v4258_v57 = vpop.f32.mrf.mxu3  ;;  %v12601_v51 = vld [vmem:[%s12740_s30 + $0x18] sm:$0xff] }
 0x55e   : > { %v3106_v53 = vadd.f32 %v2943_v8, %v2240_v28  ;;  %v2241_v14 = vpop.f32.mrf.mxu1  ;;  %v5771_v32 = vrot.slane %v12601_v51, 2  ;;  %v7086_v28 = vrot.slane %v14259_v5, 2  ;;  %v9248_v3 = vrot.slane %v9246_v41, 3 }
 0x55f   : > { %v2242_v8 = vadd.f32 %v2241_v14, %v16443_v10  ;;  %v7941_v14 = vsel %vm7924_vm5, %v7932_v58, %v7940_v16  ;;  %v7945_v10 = vrot.slane %v7943_v26, 2 }
 0x560   : > { %v4421_v20 = vadd.f32 %v4258_v57, %v3106_v53  ;;  %v5772_v57 = vsel %vm5769_vm4, %v5770_v46, %v5771_v32  ;;  %v7087_v15 = vsel %vm5769_vm4, %v7085_v27, %v7086_v28  ;;  %v9250_v2 = vsel %vm9247_vm6, %v9248_v3, %v9249_v43  ;;  %v16444_v46 = vld [vmem:[#allocation60_spill] sm:$0xff]  ;;  %v16445_v3 = vld [vmem:[#allocation63_spill] sm:$0xff] }
 0x562   : > { %v5583_v55 = vpop.f32.mrf.mxu0  ;;  %v14274_v59 = vadd.f32 %v5581_v6, %v4421_v20  ;;  %v7946_v20 = vshll.u32 %v14284_v47, 16 }
 0x565   : > { %v2945_v53 = vpop.f32.mrf.mxu2  ;;  %v4260_v54 = vpop.f32.mrf.mxu3 }
 0x566   : > { %v3107_v24 = vadd.f32 %v2945_v53, %v2242_v8  ;;  %v2244_v6 = vpop.f32.mrf.mxu1  ;;  %v7948_v8 = vrot.slane %v7946_v20, 3  ;;  %v12602_v53 = vld [vmem:[%s12740_s30 + $0x20] sm:$0xff] }
 0x567   : > { %v2245_v27 = vadd.f32 %v2244_v6, %v16444_v46 }
 0x568   : > { %v4422_v37 = vadd.f32 %v4260_v54, %v3107_v24  ;;  %v5773_v24 = vrot.slane %v12602_v53, 2  ;;  %v7088_v54 = vrot.slane %v14284_v47, 2 }
 0x569   : > { %11741 = vmatmul.msk.bf16.vlgmr.msra.gmra.mxu1 %vm1239_vm1, %v5772_v57  ;;  %v7949_v57 = vor.u32 %v7948_v8, %v7945_v10 }
 0x56a   : > { %v5586_v61 = vpop.f32.mrf.mxu0  ;;  %12083 = vmatmul.msk.bf16.vlgmr.msra.gmra.mxu2 %vm1239_vm1, %v7087_v15  ;;  %v14289_v5 = vadd.f32 %v5583_v55, %v4422_v37  ;;  %12157 = vmatmul.msk.bf16.vlgmr.msra.gmra.mxu3 %vm1239_vm1, %v7941_v14  ;;  %v7089_v26 = vsel %vm5769_vm4, %v7086_v28, %v7088_v54 }
 0x56d   : > { %12231 = vmatmul.msk.bf16.vlgmr.msra.gmra.mxu0 %vm1239_vm1, %v9250_v2  ;;  %v2948_v0 = vpop.f32.mrf.mxu2  ;;  %v4263_v17 = vpop.f32.mrf.mxu3  ;;  %v9251_v2 = vrot.slane %v14284_v47, 3 }
 0x56e   : > { %v3108_v49 = vadd.f32 %v2948_v0, %v2245_v27  ;;  %v2246_v41 = vpop.f32.mrf.mxu1  ;;  %v5774_v27 = vsel %vm5769_vm4, %v5771_v32, %v5773_v24  ;;  %v14306_v0 = vld [vmem:[%s12740_s30 + $0x38] sm:$0xff]  ;;  %v16446_v32 = vld [vmem:[#allocation66_spill] sm:$0xff] }
 0x56f   : > { %v2247_v6 = vadd.f32 %v2246_v41, %v16445_v3  ;;  %v7952_v28 = vshrl.u32 %v14306_v0, 16 }
 0x570   : > { %v4423_v51 = vadd.f32 %v4263_v17, %v3108_v49  ;;  %v9252_v17 = vsel %vm9247_vm6, %v9249_v43, %v9251_v2 }
 0x572   : > { %v5588_v58 = vpop.f32.mrf.mxu0  ;;  %v14296_v55 = vadd.f32 %v5586_v61, %v4423_v51  ;;  %v7950_v61 = vsel %vm7924_vm5, %v7940_v16, %v7949_v57  ;;  %v7955_v16 = vshll.u32 %v14306_v0, 16 }
 0x574   : > { %v7957_v43 = vrot.slane %v7955_v16, 3 }
 0x575   : > { %v2950_v15 = vpop.f32.mrf.mxu2  ;;  %v4265_v14 = vpop.f32.mrf.mxu3 }
 0x576   : > { %v3109_v37 = vadd.f32 %v2950_v15, %v2247_v6  ;;  %v2249_v46 = vpop.f32.mrf.mxu1  ;;  %v7954_v6 = vrot.slane %v7952_v28, 2 }
 0x577   : > { %v2250_v47 = vadd.f32 %v2249_v46, %v16446_v32  ;;  %v7090_v46 = vrot.slane %v14306_v0, 2 }
 0x578   : > { %v4424_v20 = vadd.f32 %v4265_v14, %v3109_v37  ;;  %v12603_v37 = vld [vmem:[%s12740_s30 + $0x28] sm:$0xff] }
 0x579   : > { %11742 = vmatmul.msk.bf16.gmra.mxu1 %vm1239_vm1, %v5774_v27  ;;  %v5775_v14 = vrot.slane %v12603_v37, 2  ;;  %v16448_v27 = vld [vmem:[#allocation69_spill] sm:$0xff]  ;;  %v7091_v16 = vsel %vm5769_vm4, %v7088_v54, %v7090_v46 }
 0x57a   : > { %v5591_v49 = vpop.f32.mrf.mxu0  ;;  %12084 = vmatmul.msk.bf16.gmra.mxu2 %vm1239_vm1, %v7089_v26  ;;  %v14311_v41 = vadd.f32 %v5588_v58, %v4424_v20  ;;  %12158 = vmatmul.msk.bf16.gmra.mxu3 %vm1239_vm1, %v7950_v61  ;;  %v7958_v20 = vor.u32 %v7957_v43, %v7954_v6 }
 0x57b   : > { %v5776_v28 = vsel %vm5769_vm4, %v5773_v24, %v5775_v14  ;;  %v16450_v24 = vld [vmem:[#allocation72_spill] sm:$0xff] }
 0x57d   : > { %12232 = vmatmul.msk.bf16.gmra.mxu0 %vm1239_vm1, %v9252_v17  ;;  %v2953_v51 = vpop.f32.mrf.mxu2  ;;  %v4268_v8 = vpop.f32.mrf.mxu3 }
 0x57e   : > { %v3110_v10 = vadd.f32 %v2953_v51, %v2250_v47  ;;  %v2251_v53 = vpop.f32.mrf.mxu1  ;;  %v9253_v47 = vrot.slane %v14306_v0, 3 }
 0x57f   : > { %v2252_v26 = vadd.f32 %v2251_v53, %v16448_v27 }
 0x580   : > { %v4425_v3 = vadd.f32 %v4268_v8, %v3110_v10  ;;  %v14328_v8 = vld [vmem:[%s12740_s30 + $0x40] sm:$0xff]  ;;  %v9254_v53 = vsel %vm9247_vm6, %v9251_v2, %v9253_v47 }
 0x581   : > { %v7961_v54 = vshrl.u32 %v14328_v8, 16 }
 0x582   : > { %v5593_v15 = vpop.f32.mrf.mxu0  ;;  %v14318_v58 = vadd.f32 %v5591_v49, %v4425_v3  ;;  %v7959_v49 = vsel %vm7924_vm5, %v7949_v57, %v7958_v20  ;;  %v7964_v57 = vshll.u32 %v14328_v8, 16 }
 0x584   : > { %16447 = vst [vmem:[#allocation51_spill] sm:$0xff] %v14318_v58  ;;  %v7966_v2 = vrot.slane %v7964_v57, 3 }
 0x585   : > { %v2955_v61 = vpop.f32.mrf.mxu2  ;;  %v4270_v32 = vpop.f32.mrf.mxu3 }
 0x586   : > { %v3111_v17 = vadd.f32 %v2955_v61, %v2252_v26  ;;  %v2254_v51 = vpop.f32.mrf.mxu1 }
 0x587   : > { %v2255_v0 = vadd.f32 %v2254_v51, %v16450_v24  ;;  %v7092_v51 = vrot.slane %v14328_v8, 2 }
 0x588   : > { %v4426_v10 = vadd.f32 %v4270_v32, %v3111_v17  ;;  %v7963_v17 = vrot.slane %v7961_v54, 2 }
 0x589   : > { %11743 = vmatmul.msk.bf16.gmra.mxu1 %vm1239_vm1, %v5776_v28  ;;  %v12604_v28 = vld [vmem:[%s12740_s30 + $0x30] sm:$0xff]  ;;  %v7093_v57 = vsel %vm5769_vm4, %v7090_v46, %v7092_v51 }
 0x58a   : > { %v5596_v3 = vpop.f32.mrf.mxu0  ;;  %12085 = vmatmul.msk.bf16.gmra.mxu2 %vm1239_vm1, %v7091_v16  ;;  %v14333_v6 = vadd.f32 %v5593_v15, %v4426_v10  ;;  %12159 = vmatmul.msk.bf16.gmra.mxu3 %vm1239_vm1, %v7959_v49  ;;  %v5777_v16 = vrot.slane %v12604_v28, 2  ;;  %v16452_v10 = vld [vmem:[#allocation75_spill] sm:$0xff]  ;;  %v7967_v24 = vor.u32 %v7966_v2, %v7963_v17 }
 0x58c   : > { %16449 = vst [vmem:[#allocation54_spill] sm:$0xff] %v14333_v6  ;;  %v5778_v54 = vsel %vm5769_vm4, %v5775_v14, %v5777_v16  ;;  %v16454_v14 = vld [vmem:[#allocation78_spill] sm:$0xff] }
 0x58d   : > { %12233 = vmatmul.msk.bf16.gmra.mxu0 %vm1239_vm1, %v9254_v53  ;;  %v2958_v43 = vpop.f32.mrf.mxu2  ;;  %v4273_v27 = vpop.f32.mrf.mxu3 }
 0x58e   : > { %v3112_v37 = vadd.f32 %v2958_v43, %v2255_v0  ;;  %v2256_v26 = vpop.f32.mrf.mxu1  ;;  %v9255_v0 = vrot.slane %v14328_v8, 3 }
 0x58f   : > { %v2257_v49 = vadd.f32 %v2256_v26, %v16452_v10 }
 0x590   : > { %v4427_v61 = vadd.f32 %v4273_v27, %v3112_v37  ;;  %v14350_v27 = vld [vmem:[%s12740_s30 + $0x48] sm:$0xff] }
 0x591   : > { %v7973_v46 = vshll.u32 %v14350_v27, 16 }
 0x592   : > { %v5598_v32 = vpop.f32.mrf.mxu0  ;;  %v14340_v15 = vadd.f32 %v5596_v3, %v4427_v61  ;;  %v7968_v3 = vsel %vm7924_vm5, %v7958_v20, %v7967_v24 }
 0x594   : > { %16451 = vst [vmem:[#allocation49_spill] sm:$0xff] %v14340_v15 }
 0x595   : > { %v2960_v6 = vpop.f32.mrf.mxu2  ;;  %v4275_v58 = vpop.f32.mrf.mxu3 }
 0x596   : > { %v3113_v53 = vadd.f32 %v2960_v6, %v2257_v49  ;;  %v2259_v43 = vpop.f32.mrf.mxu1  ;;  %v9256_v6 = vsel %vm9247_vm6, %v9253_v47, %v9255_v0  ;;  %v7975_v47 = vrot.slane %v7973_v46, 3 }
 0x597   : > { %v2260_v8 = vadd.f32 %v2259_v43, %v16454_v14  ;;  %v7094_v43 = vrot.slane %v14350_v27, 2 }
 0x598   : > { %v4428_v37 = vadd.f32 %v4275_v58, %v3113_v53  ;;  %v7970_v58 = vshrl.u32 %v14350_v27, 16 }
 0x599   : > { %11744 = vmatmul.msk.bf16.gmra.mxu1 %vm1239_vm1, %v5778_v54  ;;  %v12605_v54 = vld [vmem:[%s12740_s30 + $0x38] sm:$0xff]  ;;  %v7095_v46 = vsel %vm5769_vm4, %v7092_v51, %v7094_v43 }
 0x59a   : > { %v5601_v61 = vpop.f32.mrf.mxu0  ;;  %12086 = vmatmul.msk.bf16.gmra.mxu2 %vm1239_vm1, %v7093_v57  ;;  %v14355_v26 = vadd.f32 %v5598_v32, %v4428_v37  ;;  %12160 = vmatmul.msk.bf16.gmra.mxu3 %vm1239_vm1, %v7968_v3  ;;  %v7972_v49 = vrot.slane %v7970_v58, 2  ;;  %v5779_v57 = vrot.slane %v12605_v54, 2  ;;  %v16456_v37 = vld [vmem:[#allocation81_spill] sm:$0xff] }
 0x59c   : > { %16453 = vst [vmem:[#allocation57_spill] sm:$0xff] %v14355_v26  ;;  %v7976_v14 = vor.u32 %v7975_v47, %v7972_v49  ;;  %v5780_v58 = vsel %vm5769_vm4, %v5777_v16, %v5779_v57  ;;  %v16458_v16 = vld [vmem:[#allocation84_spill] sm:$0xff] }
 0x59d   : > { %12234 = vmatmul.msk.bf16.gmra.mxu0 %vm1239_vm1, %v9256_v6  ;;  %v2963_v20 = vpop.f32.mrf.mxu2  ;;  %v4278_v2 = vpop.f32.mrf.mxu3 }
 0x59e   : > { %v3114_v17 = vadd.f32 %v2963_v20, %v2260_v8  ;;  %v2261_v28 = vpop.f32.mrf.mxu1  ;;  %v9257_v8 = vrot.slane %v14350_v27, 3 }
 0x59f   : > { %v2262_v3 = vadd.f32 %v2261_v28, %v16456_v37 }
 0x5a0   : > { %v4429_v10 = vadd.f32 %v4278_v2, %v3114_v17  ;;  %v14372_v2 = vld [vmem:[%s12740_s30 + $0x50] sm:$0xff] }
 0x5a1   : > { %v7982_v51 = vshll.u32 %v14372_v2, 16 }
 0x5a2   : > { %v5603_v53 = vpop.f32.mrf.mxu0  ;;  %v14362_v32 = vadd.f32 %v5601_v61, %v4429_v10  ;;  %v7977_v61 = vsel %vm7924_vm5, %v7967_v24, %v7976_v14 }
 0x5a4   : > { %16455 = vst [vmem:[#allocation60_spill] sm:$0xff] %v14362_v32 }
 0x5a5   : > { %v2965_v26 = vpop.f32.mrf.mxu2  ;;  %v4280_v15 = vpop.f32.mrf.mxu3 }
 0x5a6   : > { %v3115_v6 = vadd.f32 %v2965_v26, %v2262_v3  ;;  %v2264_v20 = vpop.f32.mrf.mxu1  ;;  %v9258_v26 = vsel %vm9247_vm6, %v9255_v0, %v9257_v8  ;;  %v7984_v0 = vrot.slane %v7982_v51, 3 }
 0x5a7   : > { %v2265_v27 = vadd.f32 %v2264_v20, %v16458_v16  ;;  %v7096_v20 = vrot.slane %v14372_v2, 2 }
 0x5a8   : > { %v4430_v17 = vadd.f32 %v4280_v15, %v3115_v6  ;;  %v7979_v15 = vshrl.u32 %v14372_v2, 16 }
 0x5a9   : > { %11745 = vmatmul.msk.bf16.gmra.mxu1 %vm1239_vm1, %v5780_v58  ;;  %v12606_v58 = vld [vmem:[%s12740_s30 + $0x40] sm:$0xff]  ;;  %v7097_v51 = vsel %vm5769_vm4, %v7094_v43, %v7096_v20 }
 0x5aa   : > { %v5606_v10 = vpop.f32.mrf.mxu0  ;;  %12087 = vmatmul.msk.bf16.gmra.mxu2 %vm1239_vm1, %v7095_v46  ;;  %v14377_v28 = vadd.f32 %v5603_v53, %v4430_v17  ;;  %12161 = vmatmul.msk.bf16.gmra.mxu3 %vm1239_vm1, %v7977_v61  ;;  %v7981_v3 = vrot.slane %v7979_v15, 2  ;;  %v5781_v46 = vrot.slane %v12606_v58, 2  ;;  %v16460_v17 = vld [vmem:[#allocation87_spill] sm:$0xff] }
 0x5ac   : > { %16457 = vst [vmem:[#allocation63_spill] sm:$0xff] %v14377_v28  ;;  %v7985_v16 = vor.u32 %v7984_v0, %v7981_v3  ;;  %v5782_v15 = vsel %vm5769_vm4, %v5779_v57, %v5781_v46  ;;  %v16462_v57 = vld [vmem:[#allocation90_spill] sm:$0xff] }
 0x5ad   : > { %12235 = vmatmul.msk.bf16.gmra.mxu0 %vm1239_vm1, %v9258_v26  ;;  %v2968_v24 = vpop.f32.mrf.mxu2  ;;  %v4283_v47 = vpop.f32.mrf.mxu3 }
 0x5ae   : > { %v3116_v49 = vadd.f32 %v2968_v24, %v2265_v27  ;;  %v2266_v54 = vpop.f32.mrf.mxu1  ;;  %v9259_v27 = vrot.slane %v14372_v2, 3 }
 0x5af   : > { %v2267_v61 = vadd.f32 %v2266_v54, %v16460_v17 }
 0x5b0   : > { %v4431_v37 = vadd.f32 %v4283_v47, %v3116_v49  ;;  %v14394_v47 = vld [vmem:[%s12740_s30 + $0x58] sm:$0xff] }
 0x5b1   : > { %v7991_v43 = vshll.u32 %v14394_v47, 16 }
 0x5b2   : > { %v5608_v6 = vpop.f32.mrf.mxu0  ;;  %v14384_v53 = vadd.f32 %v5606_v10, %v4431_v37  ;;  %v7986_v10 = vsel %vm7924_vm5, %v7976_v14, %v7985_v16 }
 0x5b4   : > { %16459 = vst [vmem:[#allocation66_spill] sm:$0xff] %v14384_v53 }
 0x5b5   : > { %v2970_v28 = vpop.f32.mrf.mxu2  ;;  %v4285_v32 = vpop.f32.mrf.mxu3 }
 0x5b6   : > { %v3117_v26 = vadd.f32 %v2970_v28, %v2267_v61  ;;  %v2269_v24 = vpop.f32.mrf.mxu1  ;;  %v9260_v28 = vsel %vm9247_vm6, %v9257_v8, %v9259_v27  ;;  %v7993_v8 = vrot.slane %v7991_v43, 3 }
 0x5b7   : > { %v2270_v2 = vadd.f32 %v2269_v24, %v16462_v57  ;;  %v7098_v24 = vrot.slane %v14394_v47, 2 }
 0x5b8   : > { %v4432_v49 = vadd.f32 %v4285_v32, %v3117_v26  ;;  %v7988_v32 = vshrl.u32 %v14394_v47, 16 }
 0x5b9   : > { %11746 = vmatmul.msk.bf16.gmra.mxu1 %vm1239_vm1, %v5782_v15  ;;  %v12607_v15 = vld [vmem:[%s12740_s30 + $0x48] sm:$0xff]  ;;  %v7099_v43 = vsel %vm5769_vm4, %v7096_v20, %v7098_v24 }
 0x5ba   : > { %v5611_v37 = vpop.f32.mrf.mxu0  ;;  %12088 = vmatmul.msk.bf16.gmra.mxu2 %vm1239_vm1, %v7097_v51  ;;  %v14399_v54 = vadd.f32 %v5608_v6, %v4432_v49  ;;  %12162 = vmatmul.msk.bf16.gmra.mxu3 %vm1239_vm1, %v7986_v10  ;;  %v7990_v61 = vrot.slane %v7988_v32, 2  ;;  %v5783_v51 = vrot.slane %v12607_v15, 2  ;;  %v16464_v49 = vld [vmem:[#allocation93_spill] sm:$0xff] }
 0x5bc   : > { %16461 = vst [vmem:[#allocation69_spill] sm:$0xff] %v14399_v54  ;;  %v7994_v57 = vor.u32 %v7993_v8, %v7990_v61  ;;  %v5784_v32 = vsel %vm5769_vm4, %v5781_v46, %v5783_v51  ;;  %v16466_v46 = vld [vmem:[#allocation96_spill] sm:$0xff] }
 0x5bd   : > { %12236 = vmatmul.msk.bf16.gmra.mxu0 %vm1239_vm1, %v9260_v28  ;;  %v2973_v14 = vpop.f32.mrf.mxu2  ;;  %v4288_v0 = vpop.f32.mrf.mxu3 }
 0x5be   : > { %v3118_v3 = vadd.f32 %v2973_v14, %v2270_v2  ;;  %v2271_v58 = vpop.f32.mrf.mxu1  ;;  %v9261_v2 = vrot.slane %v14394_v47, 3 }
 0x5bf   : > { %v2272_v10 = vadd.f32 %v2271_v58, %v16464_v49 }
 0x5c0   : > { %v4433_v17 = vadd.f32 %v4288_v0, %v3118_v3  ;;  %v14416_v0 = vld [vmem:[%s12740_s30 + $0x60] sm:$0xff] }
 0x5c1   : > { %v8000_v20 = vshll.u32 %v14416_v0, 16 }
 0x5c2   : > { %v5613_v26 = vpop.f32.mrf.mxu0  ;;  %v14406_v6 = vadd.f32 %v5611_v37, %v4433_v17  ;;  %v7995_v37 = vsel %vm7924_vm5, %v7985_v16, %v7994_v57 }
 0x5c4   : > { %16463 = vst [vmem:[#allocation72_spill] sm:$0xff] %v14406_v6 }
 0x5c5   : > { %v2975_v54 = vpop.f32.mrf.mxu2  ;;  %v4290_v53 = vpop.f32.mrf.mxu3 }
 0x5c6   : > { %v3119_v28 = vadd.f32 %v2975_v54, %v2272_v10  ;;  %v2274_v14 = vpop.f32.mrf.mxu1  ;;  %v9262_v54 = vsel %vm9247_vm6, %v9259_v27, %v9261_v2  ;;  %v8002_v27 = vrot.slane %v8000_v20, 3 }
 0x5c7   : > { %v2275_v47 = vadd.f32 %v2274_v14, %v16466_v46  ;;  %v7100_v14 = vrot.slane %v14416_v0, 2 }
 0x5c8   : > { %v4434_v3 = vadd.f32 %v4290_v53, %v3119_v28  ;;  %v7997_v53 = vshrl.u32 %v14416_v0, 16 }
 0x5c9   : > { %11747 = vmatmul.msk.bf16.gmra.mxu1 %vm1239_vm1, %v5784_v32  ;;  %v12608_v32 = vld [vmem:[%s12740_s30 + $0x50] sm:$0xff]  ;;  %v7101_v20 = vsel %vm5769_vm4, %v7098_v24, %v7100_v14 }
 0x5ca   : > { %v5616_v17 = vpop.f32.mrf.mxu0  ;;  %12089 = vmatmul.msk.bf16.gmra.mxu2 %vm1239_vm1, %v7099_v43  ;;  %v14421_v58 = vadd.f32 %v5613_v26, %v4434_v3  ;;  %12163 = vmatmul.msk.bf16.gmra.mxu3 %vm1239_vm1, %v7995_v37  ;;  %v7999_v10 = vrot.slane %v7997_v53, 2  ;;  %v5785_v43 = vrot.slane %v12608_v32, 2  ;;  %v16468_v3 = vld [vmem:[#allocation99_spill] sm:$0xff] }
 0x5cc   : > { %16465 = vst [vmem:[#allocation75_spill] sm:$0xff] %v14421_v58  ;;  %v8003_v46 = vor.u32 %v8002_v27, %v7999_v10  ;;  %v5786_v53 = vsel %vm5769_vm4, %v5783_v51, %v5785_v43  ;;  %v16470_v51 = vld [vmem:[#allocation102_spill] sm:$0xff] }
 0x5cd   : > { %12237 = vmatmul.msk.bf16.gmra.mxu0 %vm1239_vm1, %v9262_v54  ;;  %v2978_v16 = vpop.f32.mrf.mxu2  ;;  %v4293_v8 = vpop.f32.mrf.mxu3 }
 0x5ce   : > { %v3120_v61 = vadd.f32 %v2978_v16, %v2275_v47  ;;  %v2276_v15 = vpop.f32.mrf.mxu1  ;;  %v9263_v47 = vrot.slane %v14416_v0, 3 }
 0x5cf   : > { %v2277_v37 = vadd.f32 %v2276_v15, %v16468_v3 }
 0x5d0   : > { %v4435_v49 = vadd.f32 %v4293_v8, %v3120_v61  ;;  %v14438_v8 = vld [vmem:[%s12740_s30 + $0x68] sm:$0xff] }
 0x5d1   : > { %v8009_v24 = vshll.u32 %v14438_v8, 16 }
 0x5d2   : > { %v5618_v28 = vpop.f32.mrf.mxu0  ;;  %v14428_v26 = vadd.f32 %v5616_v17, %v4435_v49  ;;  %v8004_v17 = vsel %vm7924_vm5, %v7994_v57, %v8003_v46 }
 0x5d4   : > { %16467 = vst [vmem:[#allocation78_spill] sm:$0xff] %v14428_v26 }
 0x5d5   : > { %v2980_v58 = vpop.f32.mrf.mxu2  ;;  %v4295_v6 = vpop.f32.mrf.mxu3 }
 0x5d6   : > { %v3121_v54 = vadd.f32 %v2980_v58, %v2277_v37  ;;  %v2279_v16 = vpop.f32.mrf.mxu1  ;;  %v9264_v58 = vsel %vm9247_vm6, %v9261_v2, %v9263_v47  ;;  %v8011_v2 = vrot.slane %v8009_v24, 3 }
 0x5d7   : > { %v2280_v15 = vadd.f32 %v2279_v16, %v16470_v51  ;;  %v7102_v16 = vrot.slane %v14438_v8, 2 }
 0x5d8   : > { %v4436_v61 = vadd.f32 %v4295_v6, %v3121_v54  ;;  %v8006_v6 = vshrl.u32 %v14438_v8, 16 }
 0x5d9   : > { %11748 = vmatmul.msk.bf16.gmra.mxu1 %vm1239_vm1, %v5786_v53  ;;  %v7103_v24 = vsel %vm5769_vm4, %v7100_v14, %v7102_v16 }
 0x5da   : > { %v5621_v49 = vpop.f32.mrf.mxu0  ;;  %12090 = vmatmul.msk.bf16.gmra.mxu2 %vm1239_vm1, %v7101_v20  ;;  %12164 = vmatmul.msk.bf16.gmra.mxu3 %vm1239_vm1, %v8004_v17  ;;  %v14444_v0 = vadd.f32 %v5618_v28, %v4436_v61  ;;  %v8008_v37 = vrot.slane %v8006_v6, 2  ;;  %v12609_v28 = vld [vmem:[%s12740_s30 + $0x58] sm:$0xff]  ;;  %v16472_v61 = vld [vmem:[#allocation106_spill] sm:$0xff] }
 0x5db   : > { %v5787_v20 = vrot.slane %v12609_v28, 2 }
 0x5dc   : > { %16469 = vst [vmem:[#allocation81_spill] sm:$0xff] %v14444_v0  ;;  %v8012_v51 = vor.u32 %v8011_v2, %v8008_v37 }
 0x5dd   : > { %12238 = vmatmul.msk.bf16.gmra.mxu0 %vm1239_vm1, %v9264_v58  ;;  %v2983_v57 = vpop.f32.mrf.mxu2  ;;  %v4298_v27 = vpop.f32.mrf.mxu3  ;;  %v5788_v6 = vsel %vm5769_vm4, %v5785_v43, %v5787_v20 }
 0x5de   : > { %v3122_v10 = vadd.f32 %v2983_v57, %v2280_v15  ;;  %v2281_v32 = vpop.f32.mrf.mxu1  ;;  %v9265_v15 = vrot.slane %v14438_v8, 3 }
 0x5df   : > { %v2282_v17 = vadd.f32 %v2281_v32, %v16472_v61 }
 0x5e0   : > { %v4437_v3 = vadd.f32 %v4298_v27, %v3122_v10  ;;  %v14460_v27 = vld [vmem:[%s12740_s30 + $0x70] sm:$0xff] }
 0x5e1   : > { %v8018_v14 = vshll.u32 %v14460_v27, 16 }
 0x5e2   : > { %v5623_v54 = vpop.f32.mrf.mxu0  ;;  %v14450_v53 = vadd.f32 %v5621_v49, %v4437_v3  ;;  %v8013_v49 = vsel %vm7924_vm5, %v8003_v46, %v8012_v51 }
 0x5e3   : > { %v8020_v61 = vrot.slane %v8018_v14, 3 }
 0x5e4   : > { %16471 = vst [vmem:[#allocation84_spill] sm:$0xff] %v14450_v53  ;;  %v14493_v53 = vld [vmem:[%s12740_s30 + $0x78] sm:$0xff] }
 0x5e5   : > { %v2985_v0 = vpop.f32.mrf.mxu2  ;;  %v4300_v26 = vpop.f32.mrf.mxu3 }
 0x5e6   : > { %v3123_v58 = vadd.f32 %v2985_v0, %v2282_v17  ;;  %v6126_v57 = vpop.f32.mrf.mxu1  ;;  %v9266_v0 = vsel %vm9247_vm6, %v9263_v47, %v9265_v15  ;;  %v14475_v47 = vld [vmem:[%s16156_s2] ss:$0 sm:$0xff] }
 0x5e7   : > { %v6466_v43 = vadd.f32 %v6126_v57, %v13359_v29  ;;  %v14480_v17 = vld [vmem:[%s16157_s3] ss:$0 sm:$0xff] }
 0x5e8   : > { %v4438_v10 = vadd.f32 %v4300_v26, %v3123_v58  ;;  %v8015_v26 = vshrl.u32 %v14460_v27, 16  ;;  %v12610_v57 = vld [vmem:[%s12740_s30 + $0x60] sm:$0xff] }
 0x5e9   : > { %11749 = vmatmul.msk.bf16.gmra.mxu1 %vm1239_vm1, %v5788_v6  ;;  %v5789_v6 = vrot.slane %v12610_v57, 2 }
 0x5ea   : > { %v9604_v3 = vpop.f32.mrf.mxu0  ;;  %12091 = vmatmul.msk.bf16.gmra.mxu2 %vm1239_vm1, %v7103_v24  ;;  %v14465_v32 = vadd.f32 %v5623_v54, %v4438_v10  ;;  %12165 = vmatmul.msk.bf16.gmra.mxu3 %vm1239_vm1, %v8013_v49  ;;  %v8017_v54 = vrot.slane %v8015_v26, 2  ;;  %v7104_v24 = vrot.slane %v14460_v27, 2 }
 0x5ec   : > { %16473 = vst [vmem:[#allocation87_spill] sm:$0xff] %v14465_v32 }
 0x5ed   : > { %12239 = vmatmul.msk.bf16.gmra.mxu0 %vm1239_vm1, %v9266_v0  ;;  %v7441_v46 = vpop.f32.mrf.mxu2  ;;  %v8764_v37 = vpop.f32.mrf.mxu3  ;;  %v8021_v0 = vor.u32 %v8020_v61, %v8017_v54  ;;  %v8024_v54 = vshrl.u32 %v14493_v53, 16 }
 0x5ee   : > { %v7781_v8 = vadd.f32 %v7441_v46, %v6466_v43  ;;  %v6128_v2 = vpop.f32.mrf.mxu1  ;;  %v9267_v46 = vrot.slane %v14460_v27, 3 }
 0x5ef   : > { %v6467_v49 = vadd.f32 %v6128_v2, %v13369_v1 }
 0x5f0   : > { %v9104_v28 = vadd.f32 %v8764_v37, %v7781_v8  ;;  %v5790_v37 = vsel %vm5769_vm4, %v5787_v20, %v5789_v6  ;;  %v9268_v20 = vsel %vm9247_vm6, %v9265_v15, %v9267_v46 }
 0x5f2   : > { %v9944_v29 = vadd.f32 %v9604_v3, %v9104_v28  ;;  %v9606_v58 = vpop.f32.mrf.mxu0  ;;  %v7105_v28 = vsel %vm5769_vm4, %v7102_v16, %v7104_v24 }
 0x5f4   : > { %v10084_v10 = vmul.f32 %v14475_v47, %v9944_v29  ;;  %v8022_v29 = vsel %vm7924_vm5, %v8012_v51, %v8021_v0 }
 0x5f5   : > { %v7443_v43 = vpop.f32.mrf.mxu2  ;;  %v8766_v14 = vpop.f32.mrf.mxu3 }
 0x5f6   : > { %v10224_v3 = vadd.f32 %v14480_v17, %v10084_v10  ;;  %v7782_v26 = vadd.f32 %v7443_v43, %v6467_v49  ;;  %v6131_v8 = vpop.f32.mrf.mxu1 }
 0x5f7   : > { %v6468_v51 = vadd.f32 %v6131_v8, %v13374_v56 }
 0x5f8   : > { %v10360_v57 = vmax.f32 %v10224_v3, 0.0  ;;  %v9105_v32 = vadd.f32 %v8766_v14, %v7782_v26  ;;  %v8026_v26 = vrot.slane %v8024_v54, 2 }
 0x5f9   : > { %11750 = vmatmul.msk.bf16.gmra.mxu1 %vm1239_vm1, %v5790_v37 }
 0x5fa   : > { %v10496_v1 = vpack.c.bf16 %v10360_v57, %v10360_v57  ;;  %v9945_v27 = vadd.f32 %v9606_v58, %v9105_v32  ;;  %v9609_v2 = vpop.f32.mrf.mxu0  ;;  %12092 = vmatmul.msk.bf16.gmra.mxu2 %vm1239_vm1, %v7105_v28  ;;  %12166 = vmatmul.msk.bf16.gmra.mxu3 %vm1239_vm1, %v8022_v29  ;;  %v8027_v32 = vshll.u32 %v14493_v53, 16  ;;  %v12611_v28 = vld [vmem:[%s12740_s30 + $0x68] sm:$0xff]  ;;  %v7106_v29 = vrot.slane %v14493_v53, 2 }
 0x5fb   : > { %v5791_v57 = vrot.slane %v12611_v28, 2 }
 0x5fc   : > { %10633 = vst.msk [vmem:[%s14498_s21] sm:$0xf] %vm10632_vm7, %v10496_v1  ;;  %v10085_v16 = vmul.f32 %v14475_v47, %v9945_v27  ;;  %v8029_v14 = vrot.slane %v8027_v32, 3 }
 0x5fd   : > { %12240 = vmatmul.msk.bf16.gmra.mxu0 %vm1239_vm1, %v9268_v20  ;;  %v7446_v61 = vpop.f32.mrf.mxu2  ;;  %v8769_v10 = vpop.f32.mrf.mxu3 }
 0x5fe   : > { %v10225_v58 = vadd.f32 %v14480_v17, %v10085_v16  ;;  %v7783_v15 = vadd.f32 %v7446_v61, %v6468_v51  ;;  %v6133_v49 = vpop.f32.mrf.mxu1  ;;  %v8030_v20 = vor.u32 %v8029_v14, %v8026_v26 }
 0x5ff   : > { %v6469_v27 = vadd.f32 %v6133_v49, %v13384_v36 }
 0x600   : > { %v10361_v43 = vmax.f32 %v10225_v58, 0.0  ;;  %v9106_v3 = vadd.f32 %v8769_v10, %v7783_v15  ;;  %v5792_v58 = vsel %vm5769_vm4, %v5789_v6, %v5791_v57  ;;  %v7107_v15 = vsel %vm5769_vm4, %v7104_v24, %v7106_v29 }
 0x602   : > { %v10497_v37 = vpack.c.bf16 %v10361_v43, %v10361_v43  ;;  %v9946_v56 = vadd.f32 %v9609_v2, %v9106_v3  ;;  %v9611_v8 = vpop.f32.mrf.mxu0  ;;  %v9269_v2 = vrot.slane %v14493_v53, 3  ;;  %v8031_v3 = vsel %vm7924_vm5, %v8021_v0, %v8030_v20 }
 0x604   : > { %10634 = vst.msk [vmem:[%s14498_s21 + $0x4] sm:$0xf] %vm10632_vm7, %v10497_v37  ;;  %v10086_v1 = vmul.f32 %v14475_v47, %v9946_v56  ;;  %v14524_v37 = vld [vmem:[%s12740_s30 + $0x80] sm:$0xff]  ;;  %v9270_v53 = vsel %vm9247_vm6, %v9267_v46, %v9269_v2 }
 0x605   : > { %v7448_v16 = vpop.f32.mrf.mxu2  ;;  %v8771_v32 = vpop.f32.mrf.mxu3  ;;  %v8033_v0 = vshrl.u32 %v14524_v37, 16  ;;  %v8036_v14 = vshll.u32 %v14524_v37, 16 }
 0x606   : > { %v10226_v51 = vadd.f32 %v14480_v17, %v10086_v1  ;;  %v7784_v54 = vadd.f32 %v7448_v16, %v6469_v27  ;;  %v6136_v61 = vpop.f32.mrf.mxu1 }
 0x607   : > { %v6470_v24 = vadd.f32 %v6136_v61, %v13389_v40 }
 0x608   : > { %v10362_v10 = vmax.f32 %v10226_v51, 0.0  ;;  %v9107_v43 = vadd.f32 %v8771_v32, %v7784_v54  ;;  %v8035_v51 = vrot.slane %v8033_v0, 2  ;;  %v8038_v54 = vrot.slane %v8036_v14, 3 }
 0x609   : > { %11751 = vmatmul.msk.bf16.gmra.mxu1 %vm1239_vm1, %v5792_v58  ;;  %v12612_v58 = vld [vmem:[%s12740_s30 + $0x70] sm:$0xff] }
 0x60a   : > { %v10498_v36 = vpack.c.bf16 %v10362_v10, %v10362_v10  ;;  %v9947_v49 = vadd.f32 %v9611_v8, %v9107_v43  ;;  %v9614_v26 = vpop.f32.mrf.mxu0  ;;  %12093 = vmatmul.msk.bf16.gmra.mxu2 %vm1239_vm1, %v7107_v15  ;;  %12167 = vmatmul.msk.bf16.gmra.mxu3 %vm1239_vm1, %v8031_v3  ;;  %v5793_v15 = vrot.slane %v12612_v58, 2  ;;  %v7108_v10 = vrot.slane %v14524_v37, 2 }
 0x60c   : > { %10635 = vst.msk [vmem:[%s14498_s21 + $0x8] sm:$0xf] %vm10632_vm7, %v10498_v36  ;;  %v10087_v6 = vmul.f32 %v14475_v47, %v9947_v49  ;;  %v8039_v36 = vor.u32 %v8038_v54, %v8035_v51  ;;  %v5794_v14 = vsel %vm5769_vm4, %v5791_v57, %v5793_v15 }
 0x60d   : > { %12241 = vmatmul.msk.bf16.gmra.mxu0 %vm1239_vm1, %v9270_v53  ;;  %v7451_v56 = vpop.f32.mrf.mxu2  ;;  %v8774_v28 = vpop.f32.mrf.mxu3 }
 0x60e   : > { %v10227_v8 = vadd.f32 %v14480_v17, %v10087_v6  ;;  %v7785_v46 = vadd.f32 %v7451_v56, %v6470_v24  ;;  %v6138_v1 = vpop.f32.mrf.mxu1  ;;  %v7109_v56 = vsel %vm5769_vm4, %v7106_v29, %v7108_v10 }
 0x60f   : > { %v6471_v3 = vadd.f32 %v6138_v1, %v13399_v12 }
 0x610   : > { %v10363_v27 = vmax.f32 %v10227_v8, 0.0  ;;  %v9108_v16 = vadd.f32 %v8774_v28, %v7785_v46  ;;  %v8040_v28 = vsel %vm7924_vm5, %v8030_v20, %v8039_v36 }
 0x612   : > { %v10499_v32 = vpack.c.bf16 %v10363_v27, %v10363_v27  ;;  %v9948_v40 = vadd.f32 %v9614_v26, %v9108_v16  ;;  %v9616_v61 = vpop.f32.mrf.mxu0  ;;  %v9271_v26 = vrot.slane %v14524_v37, 3  ;;  %v14550_v27 = vld [vmem:[%s12740_s30 + $0x88] sm:$0xff] }
 0x613   : > { %v8042_v20 = vshrl.u32 %v14550_v27, 16  ;;  %v8045_v51 = vshll.u32 %v14550_v27, 16 }
 0x614   : > { %10636 = vst.msk [vmem:[%s14498_s21 + $0xc] sm:$0xf] %vm10632_vm7, %v10499_v32  ;;  %v10088_v43 = vmul.f32 %v14475_v47, %v9948_v40  ;;  %v9272_v37 = vsel %vm9247_vm6, %v9269_v2, %v9271_v26 }
 0x615   : > { %v7453_v49 = vpop.f32.mrf.mxu2  ;;  %v8776_v24 = vpop.f32.mrf.mxu3 }
 0x616   : > { %v10228_v53 = vadd.f32 %v14480_v17, %v10088_v43  ;;  %v7786_v6 = vadd.f32 %v7453_v49, %v6471_v3  ;;  %v6141_v0 = vpop.f32.mrf.mxu1  ;;  %v8044_v3 = vrot.slane %v8042_v20, 2  ;;  %v8047_v49 = vrot.slane %v8045_v51, 3 }
 0x617   : > { %v6472_v29 = vadd.f32 %v6141_v0, %v13404_v25 }
 0x618   : > { %v10364_v8 = vmax.f32 %v10228_v53, 0.0  ;;  %v9109_v46 = vadd.f32 %v8776_v24, %v7786_v6  ;;  %v12613_v24 = vld [vmem:[%s12740_s30 + $0x78] sm:$0xff] }
 0x619   : > { %11752 = vmatmul.msk.bf16.gmra.mxu1 %vm1239_vm1, %v5794_v14  ;;  %v5795_v0 = vrot.slane %v12613_v24, 2  ;;  %v7110_v14 = vrot.slane %v14550_v27, 2 }
 0x61a   : > { %v10500_v12 = vpack.c.bf16 %v10364_v8, %v10364_v8  ;;  %v9949_v1 = vadd.f32 %v9616_v61, %v9109_v46  ;;  %v9619_v16 = vpop.f32.mrf.mxu0  ;;  %12094 = vmatmul.msk.bf16.gmra.mxu2 %vm1239_vm1, %v7109_v56  ;;  %12168 = vmatmul.msk.bf16.gmra.mxu3 %vm1239_vm1, %v8040_v28  ;;  %v8048_v46 = vor.u32 %v8047_v49, %v8044_v3 }
 0x61b   : > { %v7111_v20 = vsel %vm5769_vm4, %v7108_v10, %v7110_v14 }
 0x61c   : > { %10637 = vst.msk [vmem:[%s14498_s21 + $0x10] sm:$0xf] %vm10632_vm7, %v10500_v12  ;;  %v10089_v57 = vmul.f32 %v14475_v47, %v9949_v1 }
 0x61d   : > { %12242 = vmatmul.msk.bf16.gmra.mxu0 %vm1239_vm1, %v9272_v37  ;;  %v7456_v54 = vpop.f32.mrf.mxu2  ;;  %v8779_v40 = vpop.f32.mrf.mxu3 }
 0x61e   : > { %v10229_v32 = vadd.f32 %v14480_v17, %v10089_v57  ;;  %v7787_v2 = vadd.f32 %v7456_v54, %v6472_v29  ;;  %v6143_v61 = vpop.f32.mrf.mxu1  ;;  %v5796_v29 = vsel %vm5769_vm4, %v5793_v15, %v5795_v0 }
 0x61f   : > { %v6473_v8 = vadd.f32 %v6143_v61, %v13415_v45 }
 0x620   : > { %v10365_v58 = vmax.f32 %v10229_v32, 0.0  ;;  %v9110_v43 = vadd.f32 %v8779_v40, %v7787_v2  ;;  %v8049_v32 = vsel %vm7924_vm5, %v8039_v36, %v8048_v46  ;;  %v14576_v2 = vld [vmem:[%s12740_s30 + $0x90] sm:$0xff] }
 0x621   : > { %v8051_v36 = vshrl.u32 %v14576_v2, 16 }
 0x622   : > { %v10501_v53 = vpack.c.bf16 %v10365_v58, %v10365_v58  ;;  %v9950_v25 = vadd.f32 %v9619_v16, %v9110_v43  ;;  %v9621_v6 = vpop.f32.mrf.mxu0  ;;  %v9273_v16 = vrot.slane %v14550_v27, 3  ;;  %v8054_v58 = vshll.u32 %v14576_v2, 16 }
 0x623   : > { %v8053_v24 = vrot.slane %v8051_v36, 2 }
 0x624   : > { %10638 = vst.msk [vmem:[%s14498_s21 + $0x14] sm:$0xf] %vm10632_vm7, %v10501_v53  ;;  %v10090_v56 = vmul.f32 %v14475_v47, %v9950_v25  ;;  %v9274_v27 = vsel %vm9247_vm6, %v9271_v26, %v9273_v16 }
 0x625   : > { %v7458_v28 = vpop.f32.mrf.mxu2  ;;  %v8781_v37 = vpop.f32.mrf.mxu3 }
 0x626   : > { %v10230_v12 = vadd.f32 %v14480_v17, %v10090_v56  ;;  %v7788_v1 = vadd.f32 %v7458_v28, %v6473_v8  ;;  %v6146_v57 = vpop.f32.mrf.mxu1  ;;  %v8056_v56 = vrot.slane %v8054_v58, 3 }
 0x627   : > { %v6474_v10 = vadd.f32 %v6146_v57, %v13420_v52 }
 0x628   : > { %v10366_v51 = vmax.f32 %v10230_v12, 0.0  ;;  %v9111_v54 = vadd.f32 %v8781_v37, %v7788_v1  ;;  %v12614_v12 = vld [vmem:[%s12740_s30 + $0x80] sm:$0xff]  ;;  %v7112_v37 = vrot.slane %v14576_v2, 2 }
 0x629   : > { %11753 = vmatmul.msk.bf16.gmra.mxu1 %vm1239_vm1, %v5796_v29  ;;  %v5797_v1 = vrot.slane %v12614_v12, 2 }
 0x62a   : > { %v10502_v45 = vpack.c.bf16 %v10366_v51, %v10366_v51  ;;  %v9951_v40 = vadd.f32 %v9621_v6, %v9111_v54  ;;  %v9624_v61 = vpop.f32.mrf.mxu0  ;;  %12095 = vmatmul.msk.bf16.gmra.mxu2 %vm1239_vm1, %v7111_v20  ;;  %12169 = vmatmul.msk.bf16.gmra.mxu3 %vm1239_vm1, %v8049_v32  ;;  %v8057_v20 = vor.u32 %v8056_v56, %v8053_v24 }
 0x62c   : > { %10639 = vst.msk [vmem:[%s14498_s21 + $0x18] sm:$0xf] %vm10632_vm7, %v10502_v45  ;;  %v10091_v15 = vmul.f32 %v14475_v47, %v9951_v40  ;;  %v9275_v40 = vrot.slane %v14576_v2, 3  ;;  %v8058_v58 = vsel %vm7924_vm5, %v8048_v46, %v8057_v20 }
 0x62d   : > { %12243 = vmatmul.msk.bf16.gmra.mxu0 %vm1239_vm1, %v9274_v27  ;;  %v7461_v43 = vpop.f32.mrf.mxu2  ;;  %v8784_v49 = vpop.f32.mrf.mxu3  ;;  %v5798_v27 = vsel %vm5769_vm4, %v5795_v0, %v5797_v1 }
 0x62e   : > { %v10231_v3 = vadd.f32 %v14480_v17, %v10091_v15  ;;  %v7789_v26 = vadd.f32 %v7461_v43, %v6474_v10  ;;  %v6148_v53 = vpop.f32.mrf.mxu1  ;;  %v7113_v15 = vsel %vm5769_vm4, %v7110_v14, %v7112_v37  ;;  %v14602_v43 = vld [vmem:[%s12740_s30 + $0x98] sm:$0xff]  ;;  %v9276_v2 = vsel %vm9247_vm6, %v9273_v16, %v9275_v40 }
 0x62f   : > { %v6475_v29 = vadd.f32 %v6148_v53, %v13431_v23  ;;  %v8060_v46 = vshrl.u32 %v14602_v43, 16 }
 0x630   : > { %v10367_v25 = vmax.f32 %v10231_v3, 0.0  ;;  %v9112_v6 = vadd.f32 %v8784_v49, %v7789_v26  ;;  %v8063_v49 = vshll.u32 %v14602_v43, 16 }
 0x632   : > { %v10503_v8 = vpack.c.bf16 %v10367_v25, %v10367_v25  ;;  %v9952_v52 = vadd.f32 %v9624_v61, %v9112_v6  ;;  %v9626_v28 = vpop.f32.mrf.mxu0 }
 0x634   : > { %10640 = vst.msk [vmem:[%s14498_s21 + $0x1c] sm:$0xf] %vm10632_vm7, %v10503_v8  ;;  %v10092_v57 = vmul.f32 %v14475_v47, %v9952_v52  ;;  %v8062_v52 = vrot.slane %v8060_v46, 2  ;;  %v14628_v46 = vld [vmem:[%s12740_s30 + $0xa0] sm:$0xff] }
 0x635   : > { %v7463_v51 = vpop.f32.mrf.mxu2  ;;  %v8786_v45 = vpop.f32.mrf.mxu3 }
 0x636   : > { %v10232_v54 = vadd.f32 %v14480_v17, %v10092_v57  ;;  %v7790_v32 = vadd.f32 %v7463_v51, %v6475_v29  ;;  %v6151_v61 = vpop.f32.mrf.mxu1  ;;  %v12615_v29 = vld [vmem:[%s12740_s30 + $0x88] sm:$0xff] }
 0x637   : > { %v6476_v14 = vadd.f32 %v6151_v61, %v13436_v34  ;;  %v5799_v51 = vrot.slane %v12615_v29, 2  ;;  %v12616_v29 = vld [vmem:[%s12740_s30 + $0x90] sm:$0xff] }
 0x638   : > { %v10368_v10 = vmax.f32 %v10232_v54, 0.0  ;;  %v9113_v36 = vadd.f32 %v8786_v45, %v7790_v32  ;;  %v7114_v54 = vrot.slane %v14602_v43, 2 }
 0x639   : > { %11754 = vmatmul.msk.bf16.gmra.mxu1 %vm1239_vm1, %v5798_v27 }
 0x63a   : > { %v10504_v23 = vpack.c.bf16 %v10368_v10, %v10368_v10  ;;  %v9953_v3 = vadd.f32 %v9626_v28, %v9113_v36  ;;  %v9629_v26 = vpop.f32.mrf.mxu0  ;;  %12096 = vmatmul.msk.bf16.gmra.mxu2 %vm1239_vm1, %v7113_v15  ;;  %12170 = vmatmul.msk.bf16.gmra.mxu3 %vm1239_vm1, %v8058_v58  ;;  %v8065_v28 = vrot.slane %v8063_v49, 3  ;;  %v9277_v58 = vrot.slane %v14602_v43, 3 }
 0x63c   : > { %10641 = vst.msk [vmem:[%s14498_s21 + $0x20] sm:$0xf] %vm10632_vm7, %v10504_v23  ;;  %v10093_v0 = vmul.f32 %v14475_v47, %v9953_v3  ;;  %v8066_v61 = vor.u32 %v8065_v28, %v8062_v52  ;;  %v5800_v3 = vsel %vm5769_vm4, %v5797_v1, %v5799_v51  ;;  %v9278_v43 = vsel %vm9247_vm6, %v9275_v40, %v9277_v58 }
 0x63d   : > { %12244 = vmatmul.msk.bf16.gmra.mxu0 %vm1239_vm1, %v9276_v2  ;;  %v7466_v53 = vpop.f32.mrf.mxu2  ;;  %v8789_v6 = vpop.f32.mrf.mxu3 }
 0x63e   : > { %v10233_v25 = vadd.f32 %v14480_v17, %v10093_v0  ;;  %v7791_v16 = vadd.f32 %v7466_v53, %v6476_v14  ;;  %v6153_v24 = vpop.f32.mrf.mxu1  ;;  %v8067_v14 = vsel %vm7924_vm5, %v8057_v20, %v8066_v61  ;;  %v8069_v20 = vshrl.u32 %v14628_v46, 16 }
 0x63f   : > { %v6477_v45 = vadd.f32 %v6153_v24, %v13447_v48 }
 0x640   : > { %v10369_v56 = vmax.f32 %v10233_v25, 0.0  ;;  %v9114_v8 = vadd.f32 %v8789_v6, %v7791_v16  ;;  %v8072_v25 = vshll.u32 %v14628_v46, 16  ;;  %v8071_v28 = vrot.slane %v8069_v20, 2 }
 0x642   : > { %v10505_v12 = vpack.c.bf16 %v10369_v56, %v10369_v56  ;;  %v9954_v34 = vadd.f32 %v9629_v26, %v9114_v8  ;;  %v9631_v57 = vpop.f32.mrf.mxu0  ;;  %v7115_v26 = vsel %vm5769_vm4, %v7112_v37, %v7114_v54 }
 0x644   : > { %10642 = vst.msk [vmem:[%s14498_s21 + $0x24] sm:$0xf] %vm10632_vm7, %v10505_v12  ;;  %v10094_v32 = vmul.f32 %v14475_v47, %v9954_v34  ;;  %v8074_v12 = vrot.slane %v8072_v25, 3 }
 0x645   : > { %v7468_v27 = vpop.f32.mrf.mxu2  ;;  %v8791_v36 = vpop.f32.mrf.mxu3 }
 0x646   : > { %v10234_v15 = vadd.f32 %v14480_v17, %v10094_v32  ;;  %v7792_v10 = vadd.f32 %v7468_v27, %v6477_v45  ;;  %v6156_v23 = vpop.f32.mrf.mxu1  ;;  %v5801_v32 = vrot.slane %v12616_v29, 2  ;;  %v7116_v45 = vrot.slane %v14628_v46, 2 }
 0x647   : > { %v6478_v37 = vadd.f32 %v6156_v23, %v13452_v18 }
 0x648   : > { %v10370_v2 = vmax.f32 %v10234_v15, 0.0  ;;  %v9115_v0 = vadd.f32 %v8791_v36, %v7792_v10  ;;  %v8075_v10 = vor.u32 %v8074_v12, %v8071_v28 }
 0x649   : > { %11755 = vmatmul.msk.bf16.gmra.mxu1 %vm1239_vm1, %v5800_v3 }
 0x64a   : > { %v10506_v48 = vpack.c.bf16 %v10370_v2, %v10370_v2  ;;  %v9955_v49 = vadd.f32 %v9631_v57, %v9115_v0  ;;  %v9634_v53 = vpop.f32.mrf.mxu0  ;;  %12097 = vmatmul.msk.bf16.gmra.mxu2 %vm1239_vm1, %v7115_v26  ;;  %12171 = vmatmul.msk.bf16.gmra.mxu3 %vm1239_vm1, %v8067_v14  ;;  %v9279_v2 = vrot.slane %v14628_v46, 3  ;;  %v5802_v14 = vsel %vm5769_vm4, %v5799_v51, %v5801_v32 }
 0x64c   : > { %10643 = vst.msk [vmem:[%s14498_s21 + $0x28] sm:$0xf] %vm10632_vm7, %v10506_v48  ;;  %v10095_v1 = vmul.f32 %v14475_v47, %v9955_v49  ;;  %v7117_v48 = vsel %vm5769_vm4, %v7114_v54, %v7116_v45  ;;  %v9280_v46 = vsel %vm9247_vm6, %v9277_v58, %v9279_v2 }
 0x64d   : > { %12245 = vmatmul.msk.bf16.gmra.mxu0 %vm1239_vm1, %v9278_v43  ;;  %v7471_v16 = vpop.f32.mrf.mxu2  ;;  %v8794_v24 = vpop.f32.mrf.mxu3  ;;  %v8076_v43 = vsel %vm7924_vm5, %v8066_v61, %v8075_v10 }
 0x64e   : > { %v10235_v6 = vadd.f32 %v14480_v17, %v10095_v1  ;;  %v7793_v40 = vadd.f32 %v7471_v16, %v6478_v37  ;;  %v6158_v56 = vpop.f32.mrf.mxu1  ;;  %v14654_v1 = vld [vmem:[%s12740_s30 + $0xa8] sm:$0xff] }
 0x64f   : > { %v6479_v15 = vadd.f32 %v6158_v56, %v13463_v22  ;;  %v8078_v61 = vshrl.u32 %v14654_v1, 16  ;;  %v8081_v25 = vshll.u32 %v14654_v1, 16  ;;  %v7118_v29 = vrot.slane %v14654_v1, 2 }
 0x650   : > { %v10371_v8 = vmax.f32 %v10235_v6, 0.0  ;;  %v9116_v52 = vadd.f32 %v8794_v24, %v7793_v40 }
 0x651   : > { %v8083_v28 = vrot.slane %v8081_v25, 3 }
 0x652   : > { %v10507_v34 = vpack.c.bf16 %v10371_v8, %v10371_v8  ;;  %v9956_v18 = vadd.f32 %v9634_v53, %v9116_v52  ;;  %v9636_v57 = vpop.f32.mrf.mxu0  ;;  %v8080_v52 = vrot.slane %v8078_v61, 2 }
 0x654   : > { %10644 = vst.msk [vmem:[%s14498_s21 + $0x2c] sm:$0xf] %vm10632_vm7, %v10507_v34  ;;  %v10096_v27 = vmul.f32 %v14475_v47, %v9956_v18  ;;  %v12617_v18 = vld [vmem:[%s12740_s30 + $0x98] sm:$0xff] }
 0x655   : > { %v7473_v36 = vpop.f32.mrf.mxu2  ;;  %v8796_v26 = vpop.f32.mrf.mxu3 }
 0x656   : > { %v10236_v23 = vadd.f32 %v14480_v17, %v10096_v27  ;;  %v7794_v3 = vadd.f32 %v7473_v36, %v6479_v15  ;;  %v6161_v0 = vpop.f32.mrf.mxu1  ;;  %v8084_v36 = vor.u32 %v8083_v28, %v8080_v52  ;;  %v12618_v28 = vld [vmem:[%s12740_s30 + $0xa0] sm:$0xff] }
 0x657   : > { %v6480_v54 = vadd.f32 %v6161_v0, %v13468_v39 }
 0x658   : > { %v10372_v49 = vmax.f32 %v10236_v23, 0.0  ;;  %v9117_v53 = vadd.f32 %v8796_v26, %v7794_v3 }
 0x659   : > { %11756 = vmatmul.msk.bf16.gmra.mxu1 %vm1239_vm1, %v5802_v14  ;;  %v9281_v14 = vrot.slane %v14654_v1, 3 }
 0x65a   : > { %v10508_v22 = vpack.c.bf16 %v10372_v49, %v10372_v49  ;;  %v9957_v37 = vadd.f32 %v9636_v57, %v9117_v53  ;;  %v9639_v20 = vpop.f32.mrf.mxu0  ;;  %12098 = vmatmul.msk.bf16.gmra.mxu2 %vm1239_vm1, %v7117_v48  ;;  %12172 = vmatmul.msk.bf16.gmra.mxu3 %vm1239_vm1, %v8076_v43  ;;  %v5803_v57 = vrot.slane %v12617_v18, 2  ;;  %v7119_v53 = vsel %vm5769_vm4, %v7116_v45, %v7118_v29 }
 0x65b   : > { %v9282_v1 = vsel %vm9247_vm6, %v9279_v2, %v9281_v14 }
 0x65c   : > { %10645 = vst.msk [vmem:[%s14498_s21 + $0x30] sm:$0xf] %vm10632_vm7, %v10508_v22  ;;  %v10097_v51 = vmul.f32 %v14475_v47, %v9957_v37  ;;  %v5804_v49 = vsel %vm5769_vm4, %v5801_v32, %v5803_v57  ;;  %v8085_v37 = vsel %vm7924_vm5, %v8075_v10, %v8084_v36 }
 0x65d   : > { %12246 = vmatmul.msk.bf16.gmra.mxu0 %vm1239_vm1, %v9280_v46  ;;  %v7476_v16 = vpop.f32.mrf.mxu2  ;;  %v8799_v40 = vpop.f32.mrf.mxu3 }
 0x65e   : > { %v10237_v6 = vadd.f32 %v14480_v17, %v10097_v51  ;;  %v7795_v58 = vadd.f32 %v7476_v16, %v6480_v54  ;;  %v6163_v24 = vpop.f32.mrf.mxu1 }
 0x65f   : > { %v6481_v15 = vadd.f32 %v6163_v24, %v13479_v9 }
 0x660   : > { %v10373_v56 = vmax.f32 %v10237_v6, 0.0  ;;  %v9118_v8 = vadd.f32 %v8799_v40, %v7795_v58 }
 0x662   : > { %v10509_v12 = vpack.c.bf16 %v10373_v56, %v10373_v56  ;;  %v9958_v39 = vadd.f32 %v9639_v20, %v9118_v8  ;;  %v9641_v34 = vpop.f32.mrf.mxu0  ;;  %v14680_v20 = vld [vmem:[%s12740_s30 + $0xb0] sm:$0xff] }
 0x663   : > { %v8087_v10 = vshrl.u32 %v14680_v20, 16  ;;  %v8090_v54 = vshll.u32 %v14680_v20, 16 }
 0x664   : > { %10646 = vst.msk [vmem:[%s14498_s21 + $0x34] sm:$0xf] %vm10632_vm7, %v10509_v12  ;;  %v10098_v27 = vmul.f32 %v14475_v47, %v9958_v39  ;;  %v5805_v12 = vrot.slane %v12618_v28, 2  ;;  %v7120_v39 = vrot.slane %v14680_v20, 2 }
 0x665   : > { %v7478_v23 = vpop.f32.mrf.mxu2  ;;  %v8801_v0 = vpop.f32.mrf.mxu3  ;;  %v8089_v24 = vrot.slane %v8087_v10, 2  ;;  %v8092_v56 = vrot.slane %v8090_v54, 3 }
 0x666   : > { %v10238_v3 = vadd.f32 %v14480_v17, %v10098_v27  ;;  %v7796_v26 = vadd.f32 %v7478_v23, %v6481_v15  ;;  %v6166_v48 = vpop.f32.mrf.mxu1 }
 0x667   : > { %v6482_v45 = vadd.f32 %v6166_v48, %v13484_v38  ;;  %v8093_v27 = vor.u32 %v8092_v56, %v8089_v24 }
 0x668   : > { %v10374_v43 = vmax.f32 %v10238_v3, 0.0  ;;  %v9119_v22 = vadd.f32 %v8801_v0, %v7796_v26  ;;  %v9283_v0 = vrot.slane %v14680_v20, 3 }
 0x669   : > { %11757 = vmatmul.msk.bf16.gmra.mxu1 %vm1239_vm1, %v5804_v49  ;;  %v5806_v49 = vsel %vm5769_vm4, %v5803_v57, %v5805_v12 }
 0x66a   : > { %v10510_v9 = vpack.c.bf16 %v10374_v43, %v10374_v43  ;;  %v9959_v46 = vadd.f32 %v9641_v34, %v9119_v22  ;;  %v9644_v51 = vpop.f32.mrf.mxu0  ;;  %12099 = vmatmul.msk.bf16.gmra.mxu2 %vm1239_vm1, %v7119_v53  ;;  %12173 = vmatmul.msk.bf16.gmra.mxu3 %vm1239_vm1, %v8085_v37  ;;  %v7121_v53 = vsel %vm5769_vm4, %v7118_v29, %v7120_v39 }
 0x66b   : > { %v8094_v37 = vsel %vm7924_vm5, %v8084_v36, %v8093_v27  ;;  %v9284_v20 = vsel %vm9247_vm6, %v9281_v14, %v9283_v0 }
 0x66c   : > { %10647 = vst.msk [vmem:[%s14498_s21 + $0x38] sm:$0xf] %vm10632_vm7, %v10510_v9  ;;  %v10099_v32 = vmul.f32 %v14475_v47, %v9959_v46  ;;  %v14706_v9 = vld [vmem:[%s12740_s30 + $0xb8] sm:$0xff] }
 0x66d   : > { %12247 = vmatmul.msk.bf16.gmra.mxu0 %vm1239_vm1, %v9282_v1  ;;  %v7481_v61 = vpop.f32.mrf.mxu2  ;;  %v8804_v16 = vpop.f32.mrf.mxu3  ;;  %v8096_v36 = vshrl.u32 %v14706_v9, 16  ;;  %v8099_v1 = vshll.u32 %v14706_v9, 16  ;;  %v7122_v56 = vrot.slane %v14706_v9, 2 }
 0x66e   : > { %v10239_v25 = vadd.f32 %v14480_v17, %v10099_v32  ;;  %v7797_v2 = vadd.f32 %v7481_v61, %v6482_v45  ;;  %v6168_v6 = vpop.f32.mrf.mxu1 }
 0x66f   : > { %v6483_v18 = vadd.f32 %v6168_v6, %v13494_v19 }
 0x670   : > { %v10375_v58 = vmax.f32 %v10239_v25, 0.0  ;;  %v9120_v40 = vadd.f32 %v8804_v16, %v7797_v2  ;;  %v8098_v2 = vrot.slane %v8096_v36, 2  ;;  %v8101_v16 = vrot.slane %v8099_v1, 3 }
 0x672   : > { %v10511_v8 = vpack.c.bf16 %v10375_v58, %v10375_v58  ;;  %v9960_v38 = vadd.f32 %v9644_v51, %v9120_v40  ;;  %v9646_v52 = vpop.f32.mrf.mxu0  ;;  %v12619_v40 = vld [vmem:[%s12740_s30 + $0xa8] sm:$0xff] }
 0x673   : > { %v5807_v24 = vrot.slane %v12619_v40, 2 }
 0x674   : > { %10648 = vst.msk [vmem:[%s14498_s21 + $0x3c] sm:$0xf] %vm10632_vm7, %v10511_v8  ;;  %v10100_v34 = vmul.f32 %v14475_v47, %v9960_v38 }
 0x675   : > { %v7483_v15 = vpop.f32.mrf.mxu2  ;;  %v8806_v26 = vpop.f32.mrf.mxu3 }
 0x676   : > { %v10240_v23 = vadd.f32 %v14480_v17, %v10100_v34  ;;  %v7798_v3 = vadd.f32 %v7483_v15, %v6483_v18  ;;  %v6171_v48 = vpop.f32.mrf.mxu1 }
 0x677   : > { %v6484_v29 = vadd.f32 %v6171_v48, %v13499_v13  ;;  %v7123_v48 = vsel %vm5769_vm4, %v7120_v39, %v7122_v56 }
 0x678   : > { %v10376_v43 = vmax.f32 %v10240_v23, 0.0  ;;  %v9121_v22 = vadd.f32 %v8806_v26, %v7798_v3  ;;  %v9285_v23 = vrot.slane %v14706_v9, 3  ;;  %v5808_v26 = vsel %vm5769_vm4, %v5805_v12, %v5807_v24 }
 0x679   : > { %11758 = vmatmul.msk.bf16.gmra.mxu1 %vm1239_vm1, %v5806_v49 }
 0x67a   : > { %v10512_v19 = vpack.c.bf16 %v10376_v43, %v10376_v43  ;;  %v9961_v46 = vadd.f32 %v9646_v52, %v9121_v22  ;;  %v9649_v51 = vpop.f32.mrf.mxu0  ;;  %12100 = vmatmul.msk.bf16.gmra.mxu2 %vm1239_vm1, %v7121_v53  ;;  %12174 = vmatmul.msk.bf16.gmra.mxu3 %vm1239_vm1, %v8094_v37  ;;  %v8102_v52 = vor.u32 %v8101_v16, %v8098_v2  ;;  %v14732_v22 = vld [vmem:[%s12740_s30 + $0xc0] sm:$0xff] }
 0x67b   : > { %v9286_v9 = vsel %vm9247_vm6, %v9283_v0, %v9285_v23 }
 0x67c   : > { %10649 = vst.msk [vmem:[%s14498_s21 + $0x40] sm:$0xf] %vm10632_vm7, %v10512_v19  ;;  %v10101_v57 = vmul.f32 %v14475_v47, %v9961_v46  ;;  %v8103_v43 = vsel %vm7924_vm5, %v8093_v27, %v8102_v52  ;;  %v8105_v27 = vshrl.u32 %v14732_v22, 16  ;;  %v8108_v46 = vshll.u32 %v14732_v22, 16 }
 0x67d   : > { %12248 = vmatmul.msk.bf16.gmra.mxu0 %vm1239_vm1, %v9284_v20  ;;  %v7486_v32 = vpop.f32.mrf.mxu2  ;;  %v8809_v10 = vpop.f32.mrf.mxu3 }
 0x67e   : > { %v10241_v45 = vadd.f32 %v14480_v17, %v10101_v57  ;;  %v7799_v14 = vadd.f32 %v7486_v32, %v6484_v29  ;;  %v6173_v54 = vpop.f32.mrf.mxu1  ;;  %v8107_v32 = vrot.slane %v8105_v27, 2 }
 0x67f   : > { %v6485_v38 = vadd.f32 %v6173_v54, %v13509_v63  ;;  %v12620_v54 = vld [vmem:[%s12740_s30 + $0xb0] sm:$0xff] }
 0x680   : > { %v10377_v61 = vmax.f32 %v10241_v45, 0.0  ;;  %v9122_v25 = vadd.f32 %v8809_v10, %v7799_v14  ;;  %v8110_v45 = vrot.slane %v8108_v46, 3 }
 0x682   : > { %v10513_v6 = vpack.c.bf16 %v10377_v61, %v10377_v61  ;;  %v9962_v13 = vadd.f32 %v9649_v51, %v9122_v25  ;;  %v9651_v58 = vpop.f32.mrf.mxu0  ;;  %v5809_v61 = vrot.slane %v12620_v54, 2  ;;  %v7124_v25 = vrot.slane %v14732_v22, 2 }
 0x684   : > { %10650 = vst.msk [vmem:[%s14498_s21 + $0x44] sm:$0xf] %vm10632_vm7, %v10513_v6  ;;  %v10102_v8 = vmul.f32 %v14475_v47, %v9962_v13  ;;  %v8111_v6 = vor.u32 %v8110_v45, %v8107_v32 }
 0x685   : > { %v7488_v28 = vpop.f32.mrf.mxu2  ;;  %v8811_v15 = vpop.f32.mrf.mxu3 }
 0x686   : > { %v10242_v34 = vadd.f32 %v14480_v17, %v10102_v8  ;;  %v7800_v18 = vadd.f32 %v7488_v28, %v6485_v38  ;;  %v6176_v3 = vpop.f32.mrf.mxu1  ;;  %v9287_v38 = vrot.slane %v14732_v22, 3 }
 0x687   : > { %v6486_v39 = vadd.f32 %v6176_v3, %v13514_v4 }
 0x688   : > { %v10378_v49 = vmax.f32 %v10242_v34, 0.0  ;;  %v9123_v53 = vadd.f32 %v8811_v15, %v7800_v18  ;;  %v5810_v34 = vsel %vm5769_vm4, %v5807_v24, %v5809_v61  ;;  %v7125_v18 = vsel %vm5769_vm4, %v7122_v56, %v7124_v25 }
 0x689   : > { %11759 = vmatmul.msk.bf16.gmra.mxu1 %vm1239_vm1, %v5808_v26  ;;  %v8112_v26 = vsel %vm7924_vm5, %v8102_v52, %v8111_v6 }
 0x68a   : > { %v10514_v63 = vpack.c.bf16 %v10378_v49, %v10378_v49  ;;  %v9963_v37 = vadd.f32 %v9651_v58, %v9123_v53  ;;  %v9654_v19 = vpop.f32.mrf.mxu0  ;;  %12101 = vmatmul.msk.bf16.gmra.mxu2 %vm1239_vm1, %v7123_v48  ;;  %12175 = vmatmul.msk.bf16.gmra.mxu3 %vm1239_vm1, %v8103_v43  ;;  %v14758_v48 = vld [vmem:[%s12740_s30 + $0xc8] sm:$0xff]  ;;  %v9288_v43 = vsel %vm9247_vm6, %v9285_v23, %v9287_v38 }
 0x68b   : > { %v8114_v52 = vshrl.u32 %v14758_v48, 16  ;;  %v8117_v22 = vshll.u32 %v14758_v48, 16  ;;  %v9289_v54 = vrot.slane %v14758_v48, 3 }
 0x68c   : > { %10651 = vst.msk [vmem:[%s14498_s21 + $0x48] sm:$0xf] %vm10632_vm7, %v10514_v63  ;;  %v10103_v12 = vmul.f32 %v14475_v47, %v9963_v37 }
 0x68d   : > { %12249 = vmatmul.msk.bf16.gmra.mxu0 %vm1239_vm1, %v9286_v9  ;;  %v7491_v51 = vpop.f32.mrf.mxu2  ;;  %v8814_v57 = vpop.f32.mrf.mxu3  ;;  %v8116_v27 = vrot.slane %v8114_v52, 2  ;;  %v8119_v46 = vrot.slane %v8117_v22, 3  ;;  %v12622_v22 = vld [vmem:[%s12740_s30 + $0xc0] sm:$0xff] }
 0x68e   : > { %v10243_v20 = vadd.f32 %v14480_v17, %v10103_v12  ;;  %v7801_v0 = vadd.f32 %v7491_v51, %v6486_v39  ;;  %v6178_v29 = vpop.f32.mrf.mxu1 }
 0x68f   : > { %v6487_v16 = vadd.f32 %v6178_v29, %v13524_v7  ;;  %v7126_v29 = vrot.slane %v14758_v48, 2  ;;  %v8120_v32 = vor.u32 %v8119_v46, %v8116_v27 }
 0x690   : > { %v10379_v36 = vmax.f32 %v10243_v20, 0.0  ;;  %v9124_v1 = vadd.f32 %v8814_v57, %v7801_v0  ;;  %v12621_v0 = vld [vmem:[%s12740_s30 + $0xb8] sm:$0xff] }
 0x691   : > { %v5811_v57 = vrot.slane %v12621_v0, 2 }
 0x692   : > { %v10515_v14 = vpack.c.bf16 %v10379_v36, %v10379_v36  ;;  %v9964_v4 = vadd.f32 %v9654_v19, %v9124_v1  ;;  %v9656_v10 = vpop.f32.mrf.mxu0 }
 0x694   : > { %10652 = vst.msk [vmem:[%s14498_s21 + $0x4c] sm:$0xf] %vm10632_vm7, %v10515_v14  ;;  %v10104_v2 = vmul.f32 %v14475_v47, %v9964_v4 }
 0x695   : > { %v7493_v13 = vpop.f32.mrf.mxu2  ;;  %v8816_v8 = vpop.f32.mrf.mxu3 }
 0x696   : > { %v10244_v58 = vadd.f32 %v14480_v17, %v10104_v2  ;;  %v7802_v40 = vadd.f32 %v7493_v13, %v6487_v16  ;;  %v6181_v28 = vpop.f32.mrf.mxu1  ;;  %v5812_v16 = vsel %vm5769_vm4, %v5809_v61, %v5811_v57  ;;  %v7127_v13 = vsel %vm5769_vm4, %v7124_v25, %v7126_v29 }
 0x697   : > { %v6488_v56 = vadd.f32 %v6181_v28, %v13529_v31  ;;  %v14784_v28 = vld [vmem:[%s12740_s30 + $0xd0] sm:$0xff] }
 0x698   : > { %v10380_v15 = vmax.f32 %v10244_v58, 0.0  ;;  %v9125_v3 = vadd.f32 %v8816_v8, %v7802_v40  ;;  %v8121_v8 = vsel %vm7924_vm5, %v8111_v6, %v8120_v32  ;;  %v8123_v6 = vshrl.u32 %v14784_v28, 16 }
 0x699   : > { %11760 = vmatmul.msk.bf16.gmra.mxu1 %vm1239_vm1, %v5810_v34 }
 0x69a   : > { %v10516_v7 = vpack.c.bf16 %v10380_v15, %v10380_v15  ;;  %v9965_v49 = vadd.f32 %v9656_v10, %v9125_v3  ;;  %v9659_v53 = vpop.f32.mrf.mxu0  ;;  %12102 = vmatmul.msk.bf16.gmra.mxu2 %vm1239_vm1, %v7125_v18  ;;  %12176 = vmatmul.msk.bf16.gmra.mxu3 %vm1239_vm1, %v8112_v26  ;;  %v9290_v15 = vsel %vm9247_vm6, %v9287_v38, %v9289_v54  ;;  %v8126_v3 = vshll.u32 %v14784_v28, 16 }
 0x69c   : > { %10653 = vst.msk [vmem:[%s14498_s21 + $0x50] sm:$0xf] %vm10632_vm7, %v10516_v7  ;;  %v10105_v24 = vmul.f32 %v14475_v47, %v9965_v49 }
 0x69d   : > { %12250 = vmatmul.msk.bf16.gmra.mxu0 %vm1239_vm1, %v9288_v43  ;;  %v7496_v63 = vpop.f32.mrf.mxu2  ;;  %v8819_v19 = vpop.f32.mrf.mxu3 }
 0x69e   : > { %v10245_v37 = vadd.f32 %v14480_v17, %v10105_v24  ;;  %v7803_v23 = vadd.f32 %v7496_v63, %v6488_v56  ;;  %v6183_v9 = vpop.f32.mrf.mxu1  ;;  %v8125_v24 = vrot.slane %v8123_v6, 2  ;;  %v5813_v63 = vrot.slane %v12622_v22, 2  ;;  %v12625_v6 = vld [vmem:[%s12740_s30 + $0xc8] sm:$0xff] }
 0x69f   : > { %v6489_v1 = vadd.f32 %v6183_v9, %v13539_v35 }
 0x6a0   : > { %v10381_v12 = vmax.f32 %v10245_v37, 0.0  ;;  %v9126_v39 = vadd.f32 %v8819_v19, %v7803_v23  ;;  %v7128_v37 = vrot.slane %v14784_v28, 2  ;;  %v5814_v0 = vsel %vm5769_vm4, %v5811_v57, %v5813_v63 }
 0x6a2   : > { %v10517_v51 = vpack.c.bf16 %v10381_v12, %v10381_v12  ;;  %v9966_v31 = vadd.f32 %v9659_v53, %v9126_v39  ;;  %v9661_v20 = vpop.f32.mrf.mxu0  ;;  %v14812_v39 = vld [vmem:[%s16157_s3] ss:$0 sm:$0xff] }
 0x6a4   : > { %10654 = vst.msk [vmem:[%s14498_s21 + $0x54] sm:$0xf] %vm10632_vm7, %v10517_v51  ;;  %v10106_v36 = vmul.f32 %v14475_v47, %v9966_v31  ;;  %v9291_v31 = vrot.slane %v14784_v28, 3 }
 0x6a5   : > { %v7498_v45 = vpop.f32.mrf.mxu2  ;;  %v8821_v10 = vpop.f32.mrf.mxu3 }
 0x6a6   : > { %v10246_v14 = vadd.f32 %v14480_v17, %v10106_v36  ;;  %v7804_v4 = vadd.f32 %v7498_v45, %v6489_v1  ;;  %v6186_v2 = vpop.f32.mrf.mxu1  ;;  %v7129_v36 = vsel %vm5769_vm4, %v7126_v29, %v7128_v37 }
 0x6a7   : > { %v6490_v25 = vadd.f32 %v6186_v2, %v13544_v62 }
 0x6a8   : > { %v10382_v58 = vmax.f32 %v10246_v14, 0.0  ;;  %v9127_v40 = vadd.f32 %v8821_v10, %v7804_v4  ;;  %v14820_v14 = vld [vmem:[%s12740_s30 + $0xd8] sm:$0xff] }
 0x6a9   : > { %11761 = vmatmul.msk.bf16.gmra.mxu1 %vm1239_vm1, %v5812_v16  ;;  %v9292_v16 = vsel %vm9247_vm6, %v9289_v54, %v9291_v31 }
 0x6aa   : > { %v10518_v35 = vpack.c.bf16 %v10382_v58, %v10382_v58  ;;  %v9967_v34 = vadd.f32 %v9661_v20, %v9127_v40  ;;  %v9664_v18 = vpop.f32.mrf.mxu0  ;;  %12103 = vmatmul.msk.bf16.gmra.mxu2 %vm1239_vm1, %v7127_v13  ;;  %12177 = vmatmul.msk.bf16.gmra.mxu3 %vm1239_vm1, %v8121_v8  ;;  %v8135_v13 = vshll.u32 %v14820_v14, 16 }
 0x6ac   : > { %10655 = vst.msk [vmem:[%s14498_s21 + $0x58] sm:$0xf] %vm10632_vm7, %v10518_v35  ;;  %v10107_v61 = vmul.f32 %v14475_v47, %v9967_v34  ;;  %v8128_v47 = vrot.slane %v8126_v3, 3  ;;  %v5815_v3 = vrot.slane %v12625_v6, 2 }
 0x6ad   : > { %12251 = vmatmul.msk.bf16.gmra.mxu0 %vm1239_vm1, %v9290_v15  ;;  %v7501_v26 = vpop.f32.mrf.mxu2  ;;  %v8824_v7 = vpop.f32.mrf.mxu3  ;;  %v8137_v15 = vrot.slane %v8135_v13, 3 }
 0x6ae   : > { %v10247_v48 = vadd.f32 %v14480_v17, %v10107_v61  ;;  %v7805_v38 = vadd.f32 %v7501_v26, %v6490_v25  ;;  %v6188_v49 = vpop.f32.mrf.mxu1  ;;  %v14805_v17 = vld [vmem:[%s16156_s2] ss:$0 sm:$0xff]  ;;  %v8129_v9 = vor.u32 %v8128_v47, %v8125_v24  ;;  %v7130_v26 = vrot.slane %v14820_v14, 2 }
 0x6af   : > { %v6491_v19 = vadd.f32 %v6188_v49, %v13554_v33  ;;  %v9293_v47 = vrot.slane %v14820_v14, 3 }
 0x6b0   : > { %v10383_v53 = vmax.f32 %v10247_v48, 0.0  ;;  %v9128_v43 = vadd.f32 %v8824_v7, %v7805_v38  ;;  %v8130_v45 = vsel %vm7924_vm5, %v8120_v32, %v8129_v9  ;;  %v8132_v32 = vshrl.u32 %v14820_v14, 16 }
 0x6b2   : > { %v10519_v56 = vpack.c.bf16 %v10383_v53, %v10383_v53  ;;  %v9968_v62 = vadd.f32 %v9664_v18, %v9128_v43  ;;  %v9666_v52 = vpop.f32.mrf.mxu0  ;;  %v8134_v18 = vrot.slane %v8132_v32, 2 }
 0x6b4   : > { %10656 = vst.msk [vmem:[%s14498_s21 + $0x5c] sm:$0xf] %vm10632_vm7, %v10519_v56  ;;  %v10108_v23 = vmul.f32 %v14805_v17, %v9968_v62  ;;  %v8138_v7 = vor.u32 %v8137_v15, %v8134_v18  ;;  %v5816_v62 = vsel %vm5769_vm4, %v5813_v63, %v5815_v3 }
 0x6b5   : > { %v7503_v12 = vpop.f32.mrf.mxu2  ;;  %v8826_v51 = vpop.f32.mrf.mxu3 }
 0x6b6   : > { %v10248_v27 = vadd.f32 %v14812_v39, %v10108_v23  ;;  %v7806_v46 = vadd.f32 %v7503_v12, %v6491_v19  ;;  %v6191_v20 = vpop.f32.mrf.mxu1  ;;  %v8139_v19 = vsel %vm7924_vm5, %v8129_v9, %v8138_v7  ;;  %v14846_v12 = vld [vmem:[%s12740_s30 + $0xe0] sm:$0xff] }
 0x6b7   : > { %v6492_v29 = vadd.f32 %v6191_v20, %v13559_v44  ;;  %v8141_v9 = vshrl.u32 %v14846_v12, 16  ;;  %v8144_v20 = vshll.u32 %v14846_v12, 16  ;;  %v7132_v32 = vrot.slane %v14846_v12, 2 }
 0x6b8   : > { %v10384_v33 = vmax.f32 %v10248_v27, 0.0  ;;  %v9129_v1 = vadd.f32 %v8826_v51, %v7806_v46  ;;  %v9294_v51 = vsel %vm9247_vm6, %v9291_v31, %v9293_v47 }
 0x6b9   : > { %11762 = vmatmul.msk.bf16.gmra.mxu1 %vm1239_vm1, %v5814_v0 }
 0x6ba   : > { %v10520_v4 = vpack.c.bf16 %v10384_v33, %v10384_v33  ;;  %v9969_v10 = vadd.f32 %v9666_v52, %v9129_v1  ;;  %v9669_v2 = vpop.f32.mrf.mxu0  ;;  %12104 = vmatmul.msk.bf16.gmra.mxu2 %vm1239_vm1, %v7129_v36  ;;  %12178 = vmatmul.msk.bf16.gmra.mxu3 %vm1239_vm1, %v8130_v45  ;;  %v7131_v52 = vsel %vm5769_vm4, %v7128_v37, %v7130_v26 }
 0x6bc   : > { %10657 = vst.msk [vmem:[%s14498_s21 + $0x60] sm:$0xf] %vm10632_vm7, %v10520_v4  ;;  %v10109_v57 = vmul.f32 %v14805_v17, %v9969_v10  ;;  %v8143_v4 = vrot.slane %v8141_v9, 2  ;;  %v8146_v10 = vrot.slane %v8144_v20, 3 }
 0x6bd   : > { %12252 = vmatmul.msk.bf16.gmra.mxu0 %vm1239_vm1, %v9292_v16  ;;  %v7506_v58 = vpop.f32.mrf.mxu2  ;;  %v8829_v8 = vpop.f32.mrf.mxu3 }
 0x6be   : > { %v10249_v40 = vadd.f32 %v14812_v39, %v10109_v57  ;;  %v7807_v54 = vadd.f32 %v7506_v58, %v6492_v29  ;;  %v6193_v28 = vpop.f32.mrf.mxu1  ;;  %v12626_v57 = vld [vmem:[%s12740_s30 + $0xd0] sm:$0xff] }
 0x6bf   : > { %v6493_v38 = vadd.f32 %v6193_v28, %v13569_v21  ;;  %v5817_v29 = vrot.slane %v12626_v57, 2 }
 0x6c0   : > { %v10385_v35 = vmax.f32 %v10249_v40, 0.0  ;;  %v9130_v34 = vadd.f32 %v8829_v8, %v7807_v54  ;;  %v8147_v40 = vor.u32 %v8146_v10, %v8143_v4 }
 0x6c1   : > { %v5818_v15 = vsel %vm5769_vm4, %v5815_v3, %v5817_v29 }
 0x6c2   : > { %v10521_v61 = vpack.c.bf16 %v10385_v35, %v10385_v35  ;;  %v9970_v44 = vadd.f32 %v9669_v2, %v9130_v34  ;;  %v9671_v25 = vpop.f32.mrf.mxu0  ;;  %v9295_v34 = vrot.slane %v14846_v12, 3  ;;  %v8148_v6 = vsel %vm7924_vm5, %v8138_v7, %v8147_v40 }
 0x6c4   : > { %10658 = vst.msk [vmem:[%s14498_s21 + $0x64] sm:$0xf] %vm10632_vm7, %v10521_v61  ;;  %v10110_v48 = vmul.f32 %v14805_v17, %v9970_v44  ;;  %v7133_v61 = vsel %vm5769_vm4, %v7130_v26, %v7132_v32 }
 0x6c5   : > { %v7508_v49 = vpop.f32.mrf.mxu2  ;;  %v8831_v24 = vpop.f32.mrf.mxu3 }
 0x6c6   : > { %v10250_v53 = vadd.f32 %v14812_v39, %v10110_v48  ;;  %v7808_v43 = vadd.f32 %v7508_v49, %v6493_v38  ;;  %v6196_v56 = vpop.f32.mrf.mxu1  ;;  %v14872_v48 = vld [vmem:[%s12740_s30 + $0xe8] sm:$0xff] }
 0x6c7   : > { %v6494_v37 = vadd.f32 %v6196_v56, %v13574_v50  ;;  %v8150_v7 = vshrl.u32 %v14872_v48, 16 }
 0x6c8   : > { %v10386_v22 = vmax.f32 %v10250_v53, 0.0  ;;  %v9131_v23 = vadd.f32 %v8831_v24, %v7808_v43  ;;  %v9296_v53 = vsel %vm9247_vm6, %v9293_v47, %v9295_v34  ;;  %v8153_v43 = vshll.u32 %v14872_v48, 16 }
 0x6c9   : > { %11763 = vmatmul.msk.bf16.gmra.mxu1 %vm1239_vm1, %v5816_v62 }
 0x6ca   : > { %v10522_v21 = vpack.c.bf16 %v10386_v22, %v10386_v22  ;;  %v9971_v27 = vadd.f32 %v9671_v25, %v9131_v23  ;;  %v9674_v46 = vpop.f32.mrf.mxu0  ;;  %12105 = vmatmul.msk.bf16.gmra.mxu2 %vm1239_vm1, %v7131_v52  ;;  %12179 = vmatmul.msk.bf16.gmra.mxu3 %vm1239_vm1, %v8139_v19  ;;  %v8152_v19 = vrot.slane %v8150_v7, 2  ;;  %v8155_v12 = vrot.slane %v8153_v43, 3 }
 0x6cc   : > { %10659 = vst.msk [vmem:[%s14498_s21 + $0x68] sm:$0xf] %vm10632_vm7, %v10522_v21  ;;  %v10111_v63 = vmul.f32 %v14805_v17, %v9971_v27  ;;  %v8156_v20 = vor.u32 %v8155_v12, %v8152_v19 }
 0x6cd   : > { %12253 = vmatmul.msk.bf16.gmra.mxu0 %vm1239_vm1, %v9294_v51  ;;  %v7511_v0 = vpop.f32.mrf.mxu2  ;;  %v8834_v33 = vpop.f32.mrf.mxu3 }
 0x6ce   : > { %v10251_v36 = vadd.f32 %v14812_v39, %v10111_v63  ;;  %v7809_v31 = vadd.f32 %v7511_v0, %v6494_v37  ;;  %v6198_v1 = vpop.f32.mrf.mxu1  ;;  %v7134_v63 = vrot.slane %v14872_v48, 2 }
 0x6cf   : > { %v6495_v58 = vadd.f32 %v6198_v1, %v13584_v30  ;;  %v9297_v1 = vrot.slane %v14872_v48, 3 }
 0x6d0   : > { %v10387_v45 = vmax.f32 %v10251_v36, 0.0  ;;  %v9132_v14 = vadd.f32 %v8834_v33, %v7809_v31  ;;  %v7135_v4 = vsel %vm5769_vm4, %v7132_v32, %v7134_v63 }
 0x6d2   : > { %v10523_v2 = vpack.c.bf16 %v10387_v45, %v10387_v45  ;;  %v9972_v50 = vadd.f32 %v9674_v46, %v9132_v14  ;;  %v9676_v16 = vpop.f32.mrf.mxu0  ;;  %v12627_v46 = vld [vmem:[%s12740_s30 + $0xd8] sm:$0xff] }
 0x6d3   : > { %v5819_v51 = vrot.slane %v12627_v46, 2 }
 0x6d4   : > { %10660 = vst.msk [vmem:[%s14498_s21 + $0x6c] sm:$0xf] %vm10632_vm7, %v10523_v2  ;;  %v10112_v13 = vmul.f32 %v14805_v17, %v9972_v50  ;;  %v8157_v50 = vsel %vm7924_vm5, %v8147_v40, %v8156_v20 }
 0x6d5   : > { %v7513_v54 = vpop.f32.mrf.mxu2  ;;  %v8836_v35 = vpop.f32.mrf.mxu3  ;;  %v5820_v14 = vsel %vm5769_vm4, %v5817_v29, %v5819_v51 }
 0x6d6   : > { %v10252_v8 = vadd.f32 %v14812_v39, %v10112_v13  ;;  %v7810_v28 = vadd.f32 %v7513_v54, %v6495_v58  ;;  %v6201_v18 = vpop.f32.mrf.mxu1  ;;  %v9298_v58 = vsel %vm9247_vm6, %v9295_v34, %v9297_v1 }
 0x6d7   : > { %v6496_v26 = vadd.f32 %v6201_v18, %v13589_v42 }
 0x6d8   : > { %v10388_v44 = vmax.f32 %v10252_v8, 0.0  ;;  %v9133_v25 = vadd.f32 %v8836_v35, %v7810_v28 }
 0x6d9   : > { %11764 = vmatmul.msk.bf16.gmra.mxu1 %vm1239_vm1, %v5818_v15 }
 0x6da   : > { %v10524_v30 = vpack.c.bf16 %v10388_v44, %v10388_v44  ;;  %v9973_v38 = vadd.f32 %v9676_v16, %v9133_v25  ;;  %v9679_v49 = vpop.f32.mrf.mxu0  ;;  %12106 = vmatmul.msk.bf16.gmra.mxu2 %vm1239_vm1, %v7133_v61  ;;  %12180 = vmatmul.msk.bf16.gmra.mxu3 %vm1239_vm1, %v8148_v6  ;;  %v14898_v16 = vld [vmem:[%s12740_s30 + $0xf0] sm:$0xff] }
 0x6db   : > { %v8159_v40 = vshrl.u32 %v14898_v16, 16  ;;  %v8162_v54 = vshll.u32 %v14898_v16, 16 }
 0x6dc   : > { %10661 = vst.msk [vmem:[%s14498_s21 + $0x70] sm:$0xf] %vm10632_vm7, %v10524_v30  ;;  %v10113_v3 = vmul.f32 %v14805_v17, %v9973_v38  ;;  %v12628_v30 = vld [vmem:[%s12740_s30 + $0xe0] sm:$0xff] }
 0x6dd   : > { %12254 = vmatmul.msk.bf16.gmra.mxu0 %vm1239_vm1, %v9296_v53  ;;  %v7516_v24 = vpop.f32.mrf.mxu2  ;;  %v8839_v62 = vpop.f32.mrf.mxu3  ;;  %v8161_v44 = vrot.slane %v8159_v40, 2  ;;  %v8164_v25 = vrot.slane %v8162_v54, 3  ;;  %v5821_v38 = vrot.slane %v12628_v30, 2  ;;  %v16476_v40 = vld [vmem:[#allocation5_spill] sm:$0xff]  ;;  %v14950_v30 = vld [vmem:[%s12740_s30 + $0x100] sm:$0xff] }
 0x6de   : > { %v10253_v56 = vadd.f32 %v14812_v39, %v10113_v3  ;;  %v7811_v47 = vadd.f32 %v7516_v24, %v6496_v26  ;;  %v6203_v52 = vpop.f32.mrf.mxu1  ;;  %v16474_v3 = vld [vmem:[#allocation104_spill] sm:$0xff] }
 0x6df   : > { %v6497_v9 = vadd.f32 %v6203_v52, %v13599_v60  ;;  %v8165_v7 = vor.u32 %v8164_v25, %v8161_v44 }
 0x6e0   : > { %v10389_v22 = vmax.f32 %v10253_v56, 0.0  ;;  %v9134_v23 = vadd.f32 %v8839_v62, %v7811_v47  ;;  %v9299_v62 = vrot.slane %v14898_v16, 3 }
 0x6e2   : > { %v10525_v21 = vpack.c.bf16 %v10389_v22, %v10389_v22  ;;  %v9974_v42 = vadd.f32 %v9679_v49, %v9134_v23  ;;  %v9681_v27 = vpop.f32.mrf.mxu0  ;;  %v7136_v49 = vrot.slane %v14898_v16, 2  ;;  %v5822_v22 = vsel %vm5769_vm4, %v5819_v51, %v5821_v38 }
 0x6e4   : > { %10662 = vst.msk [vmem:[%s14498_s21 + $0x74] sm:$0xf] %vm10632_vm7, %v10525_v21  ;;  %v10114_v37 = vmul.f32 %v14805_v17, %v9974_v42  ;;  %v7137_v23 = vsel %vm5769_vm4, %v7134_v63, %v7136_v49  ;;  %v8166_v21 = vsel %vm7924_vm5, %v8156_v20, %v8165_v7  ;;  %v14924_v42 = vld [vmem:[%s12740_s30 + $0xf8] sm:$0xff]  ;;  %v16475_v63 = vld [vmem:[#allocation2_spill] sm:$0xff] }
 0x6e5   : > { %v7518_v0 = vpop.f32.mrf.mxu2  ;;  %v8841_v33 = vpop.f32.mrf.mxu3  ;;  %v8168_v20 = vshrl.u32 %v14924_v42, 16 }
 0x6e6   : > { %v10254_v36 = vadd.f32 %v14812_v39, %v10114_v37  ;;  %v7812_v31 = vadd.f32 %v7518_v0, %v6497_v9  ;;  %v6206_v45 = vpop.f32.mrf.mxu1  ;;  %v9300_v9 = vsel %vm9247_vm6, %v9297_v1, %v9299_v62 }
 0x6e7   : > { %v6498_v32 = vadd.f32 %v6206_v45, %v13604_v11 }
 0x6e8   : > { %v10390_v10 = vmax.f32 %v10254_v36, 0.0  ;;  %v9135_v2 = vadd.f32 %v8841_v33, %v7812_v31  ;;  %v8171_v36 = vshll.u32 %v14924_v42, 16 }
 0x6e9   : > { %11765 = vmatmul.msk.bf16.gmra.mxu1 %vm1239_vm1, %v5820_v14 }
 0x6ea   : > { %v10526_v60 = vpack.c.bf16 %v10390_v10, %v10390_v10  ;;  %v9975_v57 = vadd.f32 %v9681_v27, %v9135_v2  ;;  %v9684_v13 = vpop.f32.mrf.mxu0  ;;  %12107 = vmatmul.msk.bf16.gmra.mxu2 %vm1239_vm1, %v7135_v4  ;;  %12181 = vmatmul.msk.bf16.gmra.mxu3 %vm1239_vm1, %v8157_v50  ;;  %v8170_v2 = vrot.slane %v8168_v20, 2  ;;  %v8173_v50 = vrot.slane %v8171_v36, 3  ;;  %v16478_v20 = vld [vmem:[#allocation11_spill] sm:$0xff] }
 0x6ec   : > { %10663 = vst.msk [vmem:[%s14498_s21 + $0x78] sm:$0xf] %vm10632_vm7, %v10526_v60  ;;  %v10115_v29 = vmul.f32 %v14805_v17, %v9975_v57 }
 0x6ed   : > { %12255 = vmatmul.msk.bf16.gmra.mxu0 %vm1239_vm1, %v9298_v58  ;;  %v7521_v8 = vpop.f32.mrf.mxu2  ;;  %v8844_v34 = vpop.f32.mrf.mxu3 }
 0x6ee   : > { %v10255_v28 = vadd.f32 %v14812_v39, %v10115_v29  ;;  %v7813_v35 = vadd.f32 %v7521_v8, %v6498_v32  ;;  %v6208_v18 = vpop.f32.mrf.mxu1  ;;  %v7138_v29 = vrot.slane %v14924_v42, 2  ;;  %v8174_v8 = vor.u32 %v8173_v50, %v8170_v2 }
 0x6ef   : > { %v6499_v26 = vadd.f32 %v6208_v18, %v16474_v3 }
 0x6f0   : > { %v10391_v15 = vmax.f32 %v10255_v28, 0.0  ;;  %v9136_v61 = vadd.f32 %v8844_v34, %v7813_v35  ;;  %v7139_v25 = vsel %vm5769_vm4, %v7136_v49, %v7138_v29  ;;  %v16477_v49 = vld [vmem:[#allocation8_spill] sm:$0xff] }
 0x6f2   : > { %v10527_v6 = vpack.c.bf16 %v10391_v15, %v10391_v15  ;;  %v9976_v11 = vadd.f32 %v9684_v13, %v9136_v61  ;;  %v9686_v48 = vpop.f32.mrf.mxu0  ;;  %v12629_v13 = vld [vmem:[%s12740_s30 + $0xe8] sm:$0xff]  ;;  %v9301_v15 = vrot.slane %v14924_v42, 3 }
 0x6f3   : > { %v5823_v58 = vrot.slane %v12629_v13, 2  ;;  %v14976_v13 = vld [vmem:[%s12740_s30 + $0x108] sm:$0xff] }
 0x6f4   : > { %10664 = vst.msk [vmem:[%s14498_s21 + $0x7c] sm:$0xf] %vm10632_vm7, %v10527_v6  ;;  %v10116_v53 = vmul.f32 %v14805_v17, %v9976_v11 }
 0x6f5   : > { %v7523_v43 = vpop.f32.mrf.mxu2  ;;  %v8846_v47 = vpop.f32.mrf.mxu3  ;;  %v5824_v44 = vsel %vm5769_vm4, %v5821_v38, %v5823_v58 }
 0x6f6   : > { %v10256_v24 = vadd.f32 %v14812_v39, %v10116_v53  ;;  %v7814_v56 = vadd.f32 %v7523_v43, %v6499_v26  ;;  %v6211_v52 = vpop.f32.mrf.mxu1  ;;  %v9302_v43 = vsel %vm9247_vm6, %v9299_v62, %v9301_v15 }
 0x6f7   : > { %v6500_v0 = vadd.f32 %v6211_v52, %v16475_v63  ;;  %v7140_v63 = vrot.slane %v14950_v30, 2 }
 0x6f8   : > { %v10392_v19 = vmax.f32 %v10256_v24, 0.0  ;;  %v9137_v12 = vadd.f32 %v8846_v47, %v7814_v56  ;;  %v8180_v56 = vshll.u32 %v14950_v30, 16 }
 0x6f9   : > { %11766 = vmatmul.msk.bf16.gmra.mxu1 %vm1239_vm1, %v5822_v22  ;;  %v7141_v50 = vsel %vm5769_vm4, %v7138_v29, %v7140_v63  ;;  %v16479_v29 = vld [vmem:[#allocation14_spill] sm:$0xff] }
 0x6fa   : > { %v10528_v27 = vpack.c.bf16 %v10392_v19, %v10392_v19  ;;  %v9977_v46 = vadd.f32 %v9686_v48, %v9137_v12  ;;  %v9689_v37 = vpop.f32.mrf.mxu0  ;;  %12108 = vmatmul.msk.bf16.gmra.mxu2 %vm1239_vm1, %v7137_v23  ;;  %12182 = vmatmul.msk.bf16.gmra.mxu3 %vm1239_vm1, %v8166_v21  ;;  %v8175_v48 = vsel %vm7924_vm5, %v8165_v7, %v8174_v8  ;;  %v8177_v7 = vshrl.u32 %v14950_v30, 16 }
 0x6fb   : > { %v8182_v42 = vrot.slane %v8180_v56, 3 }
 0x6fc   : > { %10665 = vst.msk [vmem:[%s14498_s21 + $0x80] sm:$0xf] %vm10632_vm7, %v10528_v27  ;;  %v10117_v51 = vmul.f32 %v14805_v17, %v9977_v46  ;;  %v8179_v21 = vrot.slane %v8177_v7, 2  ;;  %v16480_v7 = vld [vmem:[#allocation17_spill] sm:$0xff] }
 0x6fd   : > { %12256 = vmatmul.msk.bf16.gmra.mxu0 %vm1239_vm1, %v9300_v9  ;;  %v7526_v31 = vpop.f32.mrf.mxu2  ;;  %v8849_v45 = vpop.f32.mrf.mxu3  ;;  %v12630_v9 = vld [vmem:[%s12740_s30 + $0xf0] sm:$0xff] }
 0x6fe   : > { %v10257_v33 = vadd.f32 %v14812_v39, %v10117_v51  ;;  %v7815_v1 = vadd.f32 %v7526_v31, %v6500_v0  ;;  %v6213_v14 = vpop.f32.mrf.mxu1  ;;  %v5825_v51 = vrot.slane %v12630_v9, 2  ;;  %v8183_v31 = vor.u32 %v8182_v42, %v8179_v21  ;;  %v15002_v9 = vld [vmem:[%s12740_s30 + $0x110] sm:$0xff] }
 0x6ff   : > { %v6501_v54 = vadd.f32 %v6213_v14, %v16476_v40 }
 0x700   : > { %v10393_v4 = vmax.f32 %v10257_v33, 0.0  ;;  %v9138_v10 = vadd.f32 %v8849_v45, %v7815_v1  ;;  %v5826_v2 = vsel %vm5769_vm4, %v5823_v58, %v5825_v51 }
 0x702   : > { %v10529_v16 = vpack.c.bf16 %v10393_v4, %v10393_v4  ;;  %v9978_v60 = vadd.f32 %v9689_v37, %v9138_v10  ;;  %v9691_v57 = vpop.f32.mrf.mxu0  ;;  %v9303_v4 = vrot.slane %v14950_v30, 3 }
 0x704   : > { %10666 = vst.msk [vmem:[%s14498_s21 + $0x84] sm:$0xf] %vm10632_vm7, %v10529_v16  ;;  %v10118_v32 = vmul.f32 %v14805_v17, %v9978_v60 }
 0x705   : > { %v7528_v28 = vpop.f32.mrf.mxu2  ;;  %v8851_v18 = vpop.f32.mrf.mxu3 }
 0x706   : > { %v10258_v35 = vadd.f32 %v14812_v39, %v10118_v32  ;;  %v7816_v34 = vadd.f32 %v7528_v28, %v6501_v54  ;;  %v6216_v61 = vpop.f32.mrf.mxu1  ;;  %v9304_v28 = vsel %vm9247_vm6, %v9301_v15, %v9303_v4 }
 0x707   : > { %v6502_v24 = vadd.f32 %v6216_v61, %v16477_v49  ;;  %v7142_v49 = vrot.slane %v14976_v13, 2 }
 0x708   : > { %v10394_v6 = vmax.f32 %v10258_v35, 0.0  ;;  %v9139_v11 = vadd.f32 %v8851_v18, %v7816_v34  ;;  %v8189_v34 = vshll.u32 %v14976_v13, 16 }
 0x709   : > { %11767 = vmatmul.msk.bf16.gmra.mxu1 %vm1239_vm1, %v5824_v44  ;;  %v7143_v42 = vsel %vm5769_vm4, %v7140_v63, %v7142_v49  ;;  %v16481_v63 = vld [vmem:[#allocation20_spill] sm:$0xff] }
 0x70a   : > { %v10530_v53 = vpack.c.bf16 %v10394_v6, %v10394_v6  ;;  %v9979_v3 = vadd.f32 %v9691_v57, %v9139_v11  ;;  %v9694_v26 = vpop.f32.mrf.mxu0  ;;  %12109 = vmatmul.msk.bf16.gmra.mxu2 %vm1239_vm1, %v7139_v25  ;;  %12183 = vmatmul.msk.bf16.gmra.mxu3 %vm1239_vm1, %v8175_v48  ;;  %v8184_v57 = vsel %vm7924_vm5, %v8174_v8, %v8183_v31  ;;  %v8186_v8 = vshrl.u32 %v14976_v13, 16 }
 0x70b   : > { %v8191_v30 = vrot.slane %v8189_v34, 3 }
 0x70c   : > { %10667 = vst.msk [vmem:[%s14498_s21 + $0x88] sm:$0xf] %vm10632_vm7, %v10530_v53  ;;  %v10119_v38 = vmul.f32 %v14805_v17, %v9979_v3  ;;  %v8188_v48 = vrot.slane %v8186_v8, 2  ;;  %v16482_v8 = vld [vmem:[#allocation23_spill] sm:$0xff] }
 0x70d   : > { %12257 = vmatmul.msk.bf16.gmra.mxu0 %vm1239_vm1, %v9302_v43  ;;  %v7531_v47 = vpop.f32.mrf.mxu2  ;;  %v8854_v22 = vpop.f32.mrf.mxu3  ;;  %v12631_v43 = vld [vmem:[%s12740_s30 + $0xf8] sm:$0xff] }
 0x70e   : > { %v10259_v52 = vadd.f32 %v14812_v39, %v10119_v38  ;;  %v7817_v62 = vadd.f32 %v7531_v47, %v6502_v24  ;;  %v6218_v23 = vpop.f32.mrf.mxu1  ;;  %v5827_v38 = vrot.slane %v12631_v43, 2  ;;  %v8192_v47 = vor.u32 %v8191_v30, %v8188_v48  ;;  %v15028_v43 = vld [vmem:[%s12740_s30 + $0x118] sm:$0xff] }
 0x70f   : > { %v6503_v36 = vadd.f32 %v6218_v23, %v16478_v20 }
 0x710   : > { %v10395_v19 = vmax.f32 %v10259_v52, 0.0  ;;  %v9140_v12 = vadd.f32 %v8854_v22, %v7817_v62  ;;  %v5828_v21 = vsel %vm5769_vm4, %v5825_v51, %v5827_v38 }
 0x712   : > { %v10531_v27 = vpack.c.bf16 %v10395_v19, %v10395_v19  ;;  %v9980_v46 = vadd.f32 %v9694_v26, %v9140_v12  ;;  %v9696_v37 = vpop.f32.mrf.mxu0  ;;  %v9305_v19 = vrot.slane %v14976_v13, 3 }
 0x714   : > { %10668 = vst.msk [vmem:[%s14498_s21 + $0x8c] sm:$0xf] %vm10632_vm7, %v10531_v27  ;;  %v10120_v0 = vmul.f32 %v14805_v17, %v9980_v46 }
 0x715   : > { %v7533_v33 = vpop.f32.mrf.mxu2  ;;  %v8856_v14 = vpop.f32.mrf.mxu3 }
 0x716   : > { %v10260_v1 = vadd.f32 %v14812_v39, %v10120_v0  ;;  %v7818_v45 = vadd.f32 %v7533_v33, %v6503_v36  ;;  %v6221_v10 = vpop.f32.mrf.mxu1  ;;  %v9306_v33 = vsel %vm9247_vm6, %v9303_v4, %v9305_v19 }
 0x717   : > { %v6504_v35 = vadd.f32 %v6221_v10, %v16479_v29  ;;  %v7144_v29 = vrot.slane %v15002_v9, 2 }
 0x718   : > { %v10396_v16 = vmax.f32 %v10260_v1, 0.0  ;;  %v9141_v60 = vadd.f32 %v8856_v14, %v7818_v45  ;;  %v8198_v45 = vshll.u32 %v15002_v9, 16 }
 0x719   : > { %11768 = vmatmul.msk.bf16.gmra.mxu1 %vm1239_vm1, %v5826_v2  ;;  %v7145_v30 = vsel %vm5769_vm4, %v7142_v49, %v7144_v29  ;;  %v16483_v49 = vld [vmem:[#allocation26_spill] sm:$0xff] }
 0x71a   : > { %v10532_v32 = vpack.c.bf16 %v10396_v16, %v10396_v16  ;;  %v9981_v40 = vadd.f32 %v9696_v37, %v9141_v60  ;;  %v9699_v54 = vpop.f32.mrf.mxu0  ;;  %12110 = vmatmul.msk.bf16.gmra.mxu2 %vm1239_vm1, %v7141_v50  ;;  %12184 = vmatmul.msk.bf16.gmra.mxu3 %vm1239_vm1, %v8184_v57  ;;  %v8193_v37 = vsel %vm7924_vm5, %v8183_v31, %v8192_v47  ;;  %v8195_v31 = vshrl.u32 %v15002_v9, 16 }
 0x71b   : > { %v8200_v13 = vrot.slane %v8198_v45, 3 }
 0x71c   : > { %10669 = vst.msk [vmem:[%s14498_s21 + $0x90] sm:$0xf] %vm10632_vm7, %v10532_v32  ;;  %v10121_v58 = vmul.f32 %v14805_v17, %v9981_v40  ;;  %v8197_v57 = vrot.slane %v8195_v31, 2  ;;  %v16484_v31 = vld [vmem:[#allocation29_spill] sm:$0xff] }
 0x71d   : > { %12258 = vmatmul.msk.bf16.gmra.mxu0 %vm1239_vm1, %v9304_v28  ;;  %v7536_v18 = vpop.f32.mrf.mxu2  ;;  %v8859_v44 = vpop.f32.mrf.mxu3  ;;  %v12632_v28 = vld [vmem:[%s12740_s30 + $0x100] sm:$0xff] }
 0x71e   : > { %v10261_v61 = vadd.f32 %v14812_v39, %v10121_v58  ;;  %v7819_v15 = vadd.f32 %v7536_v18, %v6504_v35  ;;  %v6223_v25 = vpop.f32.mrf.mxu1  ;;  %v5829_v58 = vrot.slane %v12632_v28, 2  ;;  %v8201_v18 = vor.u32 %v8200_v13, %v8197_v57  ;;  %v15054_v28 = vld [vmem:[%s12740_s30 + $0x120] sm:$0xff] }
 0x71f   : > { %v6505_v56 = vadd.f32 %v6223_v25, %v16480_v7 }
 0x720   : > { %v10397_v6 = vmax.f32 %v10261_v61, 0.0  ;;  %v9142_v11 = vadd.f32 %v8859_v44, %v7819_v15  ;;  %v5830_v48 = vsel %vm5769_vm4, %v5827_v38, %v5829_v58 }
 0x722   : > { %v10533_v53 = vpack.c.bf16 %v10397_v6, %v10397_v6  ;;  %v9982_v3 = vadd.f32 %v9699_v54, %v9142_v11  ;;  %v9701_v26 = vpop.f32.mrf.mxu0  ;;  %v9307_v6 = vrot.slane %v15002_v9, 3 }
 0x724   : > { %10670 = vst.msk [vmem:[%s14498_s21 + $0x94] sm:$0xf] %vm10632_vm7, %v10533_v53  ;;  %v10122_v24 = vmul.f32 %v14805_v17, %v9982_v3 }
 0x725   : > { %v7538_v52 = vpop.f32.mrf.mxu2  ;;  %v8861_v23 = vpop.f32.mrf.mxu3 }
 0x726   : > { %v10262_v62 = vadd.f32 %v14812_v39, %v10122_v24  ;;  %v7820_v22 = vadd.f32 %v7538_v52, %v6505_v56  ;;  %v6226_v12 = vpop.f32.mrf.mxu1  ;;  %v9308_v52 = vsel %vm9247_vm6, %v9305_v19, %v9307_v6 }
 0x727   : > { %v6506_v1 = vadd.f32 %v6226_v12, %v16481_v63  ;;  %v7146_v63 = vrot.slane %v15028_v43, 2 }
 0x728   : > { %v10398_v27 = vmax.f32 %v10262_v62, 0.0  ;;  %v9143_v46 = vadd.f32 %v8861_v23, %v7820_v22  ;;  %v8207_v22 = vshll.u32 %v15028_v43, 16 }
 0x729   : > { %11769 = vmatmul.msk.bf16.gmra.mxu1 %vm1239_vm1, %v5828_v21  ;;  %v7147_v13 = vsel %vm5769_vm4, %v7144_v29, %v7146_v63  ;;  %v16485_v29 = vld [vmem:[#allocation32_spill] sm:$0xff] }
 0x72a   : > { %v10534_v0 = vpack.c.bf16 %v10398_v27, %v10398_v27  ;;  %v9983_v20 = vadd.f32 %v9701_v26, %v9143_v46  ;;  %v9704_v36 = vpop.f32.mrf.mxu0  ;;  %12111 = vmatmul.msk.bf16.gmra.mxu2 %vm1239_vm1, %v7143_v42  ;;  %12185 = vmatmul.msk.bf16.gmra.mxu3 %vm1239_vm1, %v8193_v37  ;;  %v8202_v26 = vsel %vm7924_vm5, %v8192_v47, %v8201_v18  ;;  %v8204_v47 = vshrl.u32 %v15028_v43, 16 }
 0x72b   : > { %v8209_v9 = vrot.slane %v8207_v22, 3 }
 0x72c   : > { %10671 = vst.msk [vmem:[%s14498_s21 + $0x98] sm:$0xf] %vm10632_vm7, %v10534_v0  ;;  %v10123_v51 = vmul.f32 %v14805_v17, %v9983_v20  ;;  %v8206_v37 = vrot.slane %v8204_v47, 2  ;;  %v16486_v47 = vld [vmem:[#allocation35_spill] sm:$0xff] }
 0x72d   : > { %12259 = vmatmul.msk.bf16.gmra.mxu0 %vm1239_vm1, %v9306_v33  ;;  %v7541_v14 = vpop.f32.mrf.mxu2  ;;  %v8864_v2 = vpop.f32.mrf.mxu3  ;;  %v12633_v33 = vld [vmem:[%s12740_s30 + $0x108] sm:$0xff] }
 0x72e   : > { %v10263_v10 = vadd.f32 %v14812_v39, %v10123_v51  ;;  %v7821_v4 = vadd.f32 %v7541_v14, %v6506_v1  ;;  %v6228_v50 = vpop.f32.mrf.mxu1  ;;  %v5831_v51 = vrot.slane %v12633_v33, 2  ;;  %v8210_v14 = vor.u32 %v8209_v9, %v8206_v37  ;;  %v15080_v33 = vld [vmem:[%s12740_s30 + $0x128] sm:$0xff] }
 0x72f   : > { %v6507_v34 = vadd.f32 %v6228_v50, %v16482_v8 }
 0x730   : > { %v10399_v16 = vmax.f32 %v10263_v10, 0.0  ;;  %v9144_v60 = vadd.f32 %v8864_v2, %v7821_v4  ;;  %v5832_v57 = vsel %vm5769_vm4, %v5829_v58, %v5831_v51 }
 0x732   : > { %v10535_v32 = vpack.c.bf16 %v10399_v16, %v10399_v16  ;;  %v9984_v40 = vadd.f32 %v9704_v36, %v9144_v60  ;;  %v9706_v54 = vpop.f32.mrf.mxu0  ;;  %v9309_v16 = vrot.slane %v15028_v43, 3 }
 0x734   : > { %10672 = vst.msk [vmem:[%s14498_s21 + $0x9c] sm:$0xf] %vm10632_vm7, %v10535_v32  ;;  %v10124_v35 = vmul.f32 %v14805_v17, %v9984_v40 }
 0x735   : > { %v7543_v61 = vpop.f32.mrf.mxu2  ;;  %v8866_v25 = vpop.f32.mrf.mxu3 }
 0x736   : > { %v10264_v15 = vadd.f32 %v14812_v39, %v10124_v35  ;;  %v7822_v44 = vadd.f32 %v7543_v61, %v6507_v34  ;;  %v6231_v11 = vpop.f32.mrf.mxu1  ;;  %v9310_v61 = vsel %vm9247_vm6, %v9307_v6, %v9309_v16 }
 0x737   : > { %v6508_v62 = vadd.f32 %v6231_v11, %v16483_v49  ;;  %v7148_v49 = vrot.slane %v15054_v28, 2 }
 0x738   : > { %v10400_v53 = vmax.f32 %v10264_v15, 0.0  ;;  %v9145_v3 = vadd.f32 %v8866_v25, %v7822_v44  ;;  %v8216_v44 = vshll.u32 %v15054_v28, 16 }
 0x739   : > { %11770 = vmatmul.msk.bf16.gmra.mxu1 %vm1239_vm1, %v5830_v48  ;;  %v7149_v9 = vsel %vm5769_vm4, %v7146_v63, %v7148_v49  ;;  %v16487_v63 = vld [vmem:[#allocation38_spill] sm:$0xff] }
 0x73a   : > { %v10536_v24 = vpack.c.bf16 %v10400_v53, %v10400_v53  ;;  %v9985_v7 = vadd.f32 %v9706_v54, %v9145_v3  ;;  %v9709_v56 = vpop.f32.mrf.mxu0  ;;  %12112 = vmatmul.msk.bf16.gmra.mxu2 %vm1239_vm1, %v7145_v30  ;;  %12186 = vmatmul.msk.bf16.gmra.mxu3 %vm1239_vm1, %v8202_v26  ;;  %v8211_v54 = vsel %vm7924_vm5, %v8201_v18, %v8210_v14  ;;  %v8213_v18 = vshrl.u32 %v15054_v28, 16 }
 0x73b   : > { %v8218_v43 = vrot.slane %v8216_v44, 3 }
 0x73c   : > { %10673 = vst.msk [vmem:[%s14498_s21 + $0xa0] sm:$0xf] %vm10632_vm7, %v10536_v24  ;;  %v10125_v38 = vmul.f32 %v14805_v17, %v9985_v7  ;;  %v8215_v26 = vrot.slane %v8213_v18, 2  ;;  %v16488_v18 = vld [vmem:[#allocation41_spill] sm:$0xff] }
 0x73d   : > { %12260 = vmatmul.msk.bf16.gmra.mxu0 %vm1239_vm1, %v9308_v52  ;;  %v7546_v23 = vpop.f32.mrf.mxu2  ;;  %v8869_v21 = vpop.f32.mrf.mxu3  ;;  %v12634_v52 = vld [vmem:[%s12740_s30 + $0x110] sm:$0xff] }
 0x73e   : > { %v10265_v12 = vadd.f32 %v14812_v39, %v10125_v38  ;;  %v7823_v19 = vadd.f32 %v7546_v23, %v6508_v62  ;;  %v6233_v42 = vpop.f32.mrf.mxu1  ;;  %v5833_v38 = vrot.slane %v12634_v52, 2  ;;  %v8219_v23 = vor.u32 %v8218_v43, %v8215_v26  ;;  %v15106_v52 = vld [vmem:[%s12740_s30 + $0x130] sm:$0xff] }
 0x73f   : > { %v6509_v45 = vadd.f32 %v6233_v42, %v16484_v31 }
 0x740   : > { %v10401_v27 = vmax.f32 %v10265_v12, 0.0  ;;  %v9146_v46 = vadd.f32 %v8869_v21, %v7823_v19  ;;  %v5834_v37 = vsel %vm5769_vm4, %v5831_v51, %v5833_v38 }
 0x742   : > { %v10537_v0 = vpack.c.bf16 %v10401_v27, %v10401_v27  ;;  %v9986_v20 = vadd.f32 %v9709_v56, %v9146_v46  ;;  %v9711_v36 = vpop.f32.mrf.mxu0  ;;  %v9311_v27 = vrot.slane %v15054_v28, 3 }
 0x744   : > { %10674 = vst.msk [vmem:[%s14498_s21 + $0xa4] sm:$0xf] %vm10632_vm7, %v10537_v0  ;;  %v10126_v1 = vmul.f32 %v14805_v17, %v9986_v20 }
 0x745   : > { %v7548_v10 = vpop.f32.mrf.mxu2  ;;  %v8871_v50 = vpop.f32.mrf.mxu3 }
 0x746   : > { %v10266_v4 = vadd.f32 %v14812_v39, %v10126_v1  ;;  %v7824_v2 = vadd.f32 %v7548_v10, %v6509_v45  ;;  %v6236_v60 = vpop.f32.mrf.mxu1  ;;  %v9312_v10 = vsel %vm9247_vm6, %v9309_v16, %v9311_v27 }
 0x747   : > { %v6510_v15 = vadd.f32 %v6236_v60, %v16485_v29  ;;  %v7150_v29 = vrot.slane %v15080_v33, 2 }
 0x748   : > { %v10402_v32 = vmax.f32 %v10266_v4, 0.0  ;;  %v9147_v40 = vadd.f32 %v8871_v50, %v7824_v2  ;;  %v8225_v2 = vshll.u32 %v15080_v33, 16 }
 0x749   : > { %11771 = vmatmul.msk.bf16.gmra.mxu1 %vm1239_vm1, %v5832_v57  ;;  %v7151_v43 = vsel %vm5769_vm4, %v7148_v49, %v7150_v29  ;;  %v16489_v49 = vld [vmem:[#allocation44_spill] sm:$0xff] }
 0x74a   : > { %v10538_v35 = vpack.c.bf16 %v10402_v32, %v10402_v32  ;;  %v9987_v8 = vadd.f32 %v9711_v36, %v9147_v40  ;;  %v9714_v34 = vpop.f32.mrf.mxu0  ;;  %12113 = vmatmul.msk.bf16.gmra.mxu2 %vm1239_vm1, %v7147_v13  ;;  %12187 = vmatmul.msk.bf16.gmra.mxu3 %vm1239_vm1, %v8211_v54  ;;  %v8220_v36 = vsel %vm7924_vm5, %v8210_v14, %v8219_v23  ;;  %v8222_v14 = vshrl.u32 %v15080_v33, 16 }
 0x74b   : > { %v8227_v28 = vrot.slane %v8225_v2, 3 }
 0x74c   : > { %10675 = vst.msk [vmem:[%s14498_s21 + $0xa8] sm:$0xf] %vm10632_vm7, %v10538_v35  ;;  %v10127_v58 = vmul.f32 %v14805_v17, %v9987_v8  ;;  %v8224_v54 = vrot.slane %v8222_v14, 2 }
 0x74d   : > { %12261 = vmatmul.msk.bf16.gmra.mxu0 %vm1239_vm1, %v9310_v61  ;;  %v7551_v25 = vpop.f32.mrf.mxu2  ;;  %v8874_v48 = vpop.f32.mrf.mxu3  ;;  %v12635_v61 = vld [vmem:[%s12740_s30 + $0x118] sm:$0xff] }
 0x74e   : > { %v10267_v11 = vadd.f32 %v14812_v39, %v10127_v58  ;;  %v7825_v6 = vadd.f32 %v7551_v25, %v6510_v15  ;;  %v6238_v30 = vpop.f32.mrf.mxu1  ;;  %v5835_v58 = vrot.slane %v12635_v61, 2  ;;  %v8228_v25 = vor.u32 %v8227_v28, %v8224_v54  ;;  %v15142_v61 = vld [vmem:[%s12740_s30 + $0x138] sm:$0xff] }
 0x74f   : > { %v6511_v22 = vadd.f32 %v6238_v30, %v16486_v47 }
 0x750   : > { %v10403_v53 = vmax.f32 %v10267_v11, 0.0  ;;  %v9148_v3 = vadd.f32 %v8874_v48, %v7825_v6  ;;  %v5836_v26 = vsel %vm5769_vm4, %v5833_v38, %v5835_v58 }
 0x752   : > { %v10539_v24 = vpack.c.bf16 %v10403_v53, %v10403_v53  ;;  %v9988_v7 = vadd.f32 %v9714_v34, %v9148_v3  ;;  %v9716_v56 = vpop.f32.mrf.mxu0  ;;  %v9313_v53 = vrot.slane %v15080_v33, 3 }
 0x754   : > { %10676 = vst.msk [vmem:[%s14498_s21 + $0xac] sm:$0xf] %vm10632_vm7, %v10539_v24  ;;  %v10128_v62 = vmul.f32 %v14805_v17, %v9988_v7 }
 0x755   : > { %v7553_v12 = vpop.f32.mrf.mxu2  ;;  %v8876_v42 = vpop.f32.mrf.mxu3 }
 0x756   : > { %v10268_v19 = vadd.f32 %v14812_v39, %v10128_v62  ;;  %v7826_v21 = vadd.f32 %v7553_v12, %v6511_v22  ;;  %v6241_v46 = vpop.f32.mrf.mxu1  ;;  %v9314_v12 = vsel %vm9247_vm6, %v9311_v27, %v9313_v53 }
 0x757   : > { %v6512_v4 = vadd.f32 %v6241_v46, %v16487_v63 }
 0x758   : > { %v10404_v0 = vmax.f32 %v10268_v19, 0.0  ;;  %v9149_v20 = vadd.f32 %v8876_v42, %v7826_v21  ;;  %v8234_v21 = vshll.u32 %v15106_v52, 16 }
 0x759   : > { %11772 = vmatmul.msk.bf16.gmra.mxu1 %vm1239_vm1, %v5834_v37 }
 0x75a   : > { %v10540_v1 = vpack.c.bf16 %v10404_v0, %v10404_v0  ;;  %v9989_v31 = vadd.f32 %v9716_v56, %v9149_v20  ;;  %v9719_v45 = vpop.f32.mrf.mxu0  ;;  %12114 = vmatmul.msk.bf16.gmra.mxu2 %vm1239_vm1, %v7149_v9  ;;  %12188 = vmatmul.msk.bf16.gmra.mxu3 %vm1239_vm1, %v8220_v36  ;;  %v8229_v56 = vsel %vm7924_vm5, %v8219_v23, %v8228_v25  ;;  %v8231_v23 = vshrl.u32 %v15106_v52, 16 }
 0x75c   : > { %10677 = vst.msk [vmem:[%s14498_s21 + $0xb0] sm:$0xf] %vm10632_vm7, %v10540_v1  ;;  %v10129_v51 = vmul.f32 %v14805_v17, %v9989_v31  ;;  %v8233_v36 = vrot.slane %v8231_v23, 2  ;;  %v16492_v23 = vld [vmem:[#allocation55_spill] sm:$0xff] }
 0x75d   : > { %12262 = vmatmul.msk.bf16.gmra.mxu0 %vm1239_vm1, %v9312_v10  ;;  %v7556_v50 = vpop.f32.mrf.mxu2  ;;  %v8879_v57 = vpop.f32.mrf.mxu3 }
 0x75e   : > { %v10269_v60 = vadd.f32 %v14812_v39, %v10129_v51  ;;  %v7827_v16 = vadd.f32 %v7556_v50, %v6512_v4  ;;  %v6243_v13 = vpop.f32.mrf.mxu1  ;;  %v7152_v51 = vrot.slane %v15106_v52, 2  ;;  %v16490_v4 = vld [vmem:[#allocation48_spill] sm:$0xff] }
 0x75f   : > { %v6513_v44 = vadd.f32 %v6243_v13, %v16488_v18 }
 0x760   : > { %v10405_v32 = vmax.f32 %v10269_v60, 0.0  ;;  %v9150_v40 = vadd.f32 %v8879_v57, %v7827_v16  ;;  %v15134_v60 = vld [vmem:[%s16157_s3] ss:$0 sm:$0xff]  ;;  %v7153_v28 = vsel %vm5769_vm4, %v7150_v29, %v7152_v51  ;;  %v16491_v29 = vld [vmem:[#allocation52_spill] sm:$0xff] }
 0x762   : > { %v10541_v35 = vpack.c.bf16 %v10405_v32, %v10405_v32  ;;  %v9990_v8 = vadd.f32 %v9719_v45, %v9150_v40  ;;  %v9721_v34 = vpop.f32.mrf.mxu0  ;;  %v12636_v45 = vld [vmem:[%s12740_s30 + $0x120] sm:$0xff]  ;;  %v9315_v32 = vrot.slane %v15106_v52, 3 }
 0x763   : > { %v5837_v10 = vrot.slane %v12636_v45, 2  ;;  %v15168_v45 = vld [vmem:[%s12740_s30 + $0x140] sm:$0xff] }
 0x764   : > { %10678 = vst.msk [vmem:[%s14498_s21 + $0xb4] sm:$0xf] %vm10632_vm7, %v10541_v35  ;;  %v10130_v15 = vmul.f32 %v14805_v17, %v9990_v8 }
 0x765   : > { %v7558_v11 = vpop.f32.mrf.mxu2  ;;  %v8881_v30 = vpop.f32.mrf.mxu3  ;;  %v5838_v54 = vsel %vm5769_vm4, %v5835_v58, %v5837_v10 }
 0x766   : > { %v10270_v6 = vadd.f32 %v14812_v39, %v10130_v15  ;;  %v7828_v48 = vadd.f32 %v7558_v11, %v6513_v44  ;;  %v6246_v3 = vpop.f32.mrf.mxu1  ;;  %v9316_v11 = vsel %vm9247_vm6, %v9313_v53, %v9315_v32 }
 0x767   : > { %v6514_v19 = vadd.f32 %v6246_v3, %v16489_v49  ;;  %v7154_v49 = vrot.slane %v15142_v61, 2 }
 0x768   : > { %v10406_v24 = vmax.f32 %v10270_v6, 0.0  ;;  %v9151_v7 = vadd.f32 %v8881_v30, %v7828_v48  ;;  %v8243_v48 = vshll.u32 %v15142_v61, 16 }
 0x769   : > { %11773 = vmatmul.msk.bf16.gmra.mxu1 %vm1239_vm1, %v5836_v26 }
 0x76a   : > { %v10542_v62 = vpack.c.bf16 %v10406_v24, %v10406_v24  ;;  %v9991_v47 = vadd.f32 %v9721_v34, %v9151_v7  ;;  %v9724_v22 = vpop.f32.mrf.mxu0  ;;  %12115 = vmatmul.msk.bf16.gmra.mxu2 %vm1239_vm1, %v7151_v43  ;;  %12189 = vmatmul.msk.bf16.gmra.mxu3 %vm1239_vm1, %v8229_v56  ;;  %v8245_v52 = vrot.slane %v8243_v48, 3 }
 0x76c   : > { %10679 = vst.msk [vmem:[%s14498_s21 + $0xb8] sm:$0xf] %vm10632_vm7, %v10542_v62  ;;  %v10131_v38 = vmul.f32 %v14805_v17, %v9991_v47  ;;  %v8236_v17 = vrot.slane %v8234_v21, 3 }
 0x76d   : > { %12263 = vmatmul.msk.bf16.gmra.mxu0 %vm1239_vm1, %v9314_v12  ;;  %v7561_v42 = vpop.f32.mrf.mxu2  ;;  %v8884_v37 = vpop.f32.mrf.mxu3  ;;  %v12639_v12 = vld [vmem:[%s12740_s30 + $0x128] sm:$0xff] }
 0x76e   : > { %v10271_v46 = vadd.f32 %v14812_v39, %v10131_v38  ;;  %v7829_v27 = vadd.f32 %v7561_v42, %v6514_v19  ;;  %v6248_v9 = vpop.f32.mrf.mxu1  ;;  %v15127_v39 = vld [vmem:[%s16156_s2] ss:$0 sm:$0xff]  ;;  %v8237_v2 = vor.u32 %v8236_v17, %v8233_v36  ;;  %v5839_v38 = vrot.slane %v12639_v12, 2  ;;  %v15194_v12 = vld [vmem:[%s12740_s30 + $0x148] sm:$0xff] }
 0x76f   : > { %v6515_v14 = vadd.f32 %v6248_v9, %v16490_v4  ;;  %v7155_v17 = vsel %vm5769_vm4, %v7152_v51, %v7154_v49  ;;  %v16493_v51 = vld [vmem:[#allocation58_spill] sm:$0xff] }
 0x770   : > { %v10407_v0 = vmax.f32 %v10271_v46, 0.0  ;;  %v9152_v20 = vadd.f32 %v8884_v37, %v7829_v27  ;;  %v8238_v34 = vsel %vm7924_vm5, %v8228_v25, %v8237_v2  ;;  %v8240_v25 = vshrl.u32 %v15142_v61, 16 }
 0x771   : > { %v5840_v36 = vsel %vm5769_vm4, %v5837_v10, %v5839_v38 }
 0x772   : > { %v10543_v33 = vpack.c.bf16 %v10407_v0, %v10407_v0  ;;  %v9992_v1 = vadd.f32 %v9724_v22, %v9152_v20  ;;  %v9726_v31 = vpop.f32.mrf.mxu0  ;;  %v8242_v56 = vrot.slane %v8240_v25, 2  ;;  %v9317_v0 = vrot.slane %v15142_v61, 3  ;;  %v16494_v25 = vld [vmem:[#allocation61_spill] sm:$0xff] }
 0x774   : > { %10680 = vst.msk [vmem:[%s14498_s21 + $0xbc] sm:$0xf] %vm10632_vm7, %v10543_v33  ;;  %v10132_v63 = vmul.f32 %v15127_v39, %v9992_v1  ;;  %v8246_v42 = vor.u32 %v8245_v52, %v8242_v56 }
 0x775   : > { %v7563_v50 = vpop.f32.mrf.mxu2  ;;  %v8886_v13 = vpop.f32.mrf.mxu3 }
 0x776   : > { %v10272_v16 = vadd.f32 %v15134_v60, %v10132_v63  ;;  %v7830_v57 = vadd.f32 %v7563_v50, %v6515_v14  ;;  %v6251_v40 = vpop.f32.mrf.mxu1  ;;  %v9318_v50 = vsel %vm9247_vm6, %v9315_v32, %v9317_v0 }
 0x777   : > { %v6516_v6 = vadd.f32 %v6251_v40, %v16491_v29  ;;  %v7156_v29 = vrot.slane %v15168_v45, 2 }
 0x778   : > { %v10408_v35 = vmax.f32 %v10272_v16, 0.0  ;;  %v9153_v8 = vadd.f32 %v8886_v13, %v7830_v57  ;;  %v8252_v57 = vshll.u32 %v15168_v45, 16 }
 0x779   : > { %11774 = vmatmul.msk.bf16.gmra.mxu1 %vm1239_vm1, %v5838_v54  ;;  %v7157_v52 = vsel %vm5769_vm4, %v7154_v49, %v7156_v29  ;;  %v16495_v49 = vld [vmem:[#allocation64_spill] sm:$0xff] }
 0x77a   : > { %v10544_v15 = vpack.c.bf16 %v10408_v35, %v10408_v35  ;;  %v9993_v18 = vadd.f32 %v9726_v31, %v9153_v8  ;;  %v9729_v44 = vpop.f32.mrf.mxu0  ;;  %12116 = vmatmul.msk.bf16.gmra.mxu2 %vm1239_vm1, %v7153_v28  ;;  %12190 = vmatmul.msk.bf16.gmra.mxu3 %vm1239_vm1, %v8238_v34  ;;  %v8247_v31 = vsel %vm7924_vm5, %v8237_v2, %v8246_v42  ;;  %v8249_v2 = vshrl.u32 %v15168_v45, 16 }
 0x77b   : > { %v8254_v61 = vrot.slane %v8252_v57, 3 }
 0x77c   : > { %10681 = vst.msk [vmem:[%s14498_s21 + $0xc0] sm:$0xf] %vm10632_vm7, %v10544_v15  ;;  %v10133_v58 = vmul.f32 %v15127_v39, %v9993_v18  ;;  %v8251_v34 = vrot.slane %v8249_v2, 2  ;;  %v16496_v2 = vld [vmem:[#allocation67_spill] sm:$0xff] }
 0x77d   : > { %12264 = vmatmul.msk.bf16.gmra.mxu0 %vm1239_vm1, %v9316_v11  ;;  %v7566_v30 = vpop.f32.mrf.mxu2  ;;  %v8889_v26 = vpop.f32.mrf.mxu3  ;;  %v12640_v11 = vld [vmem:[%s12740_s30 + $0x130] sm:$0xff] }
 0x77e   : > { %v10273_v3 = vadd.f32 %v15134_v60, %v10133_v58  ;;  %v7831_v53 = vadd.f32 %v7566_v30, %v6516_v6  ;;  %v6253_v43 = vpop.f32.mrf.mxu1  ;;  %v5841_v58 = vrot.slane %v12640_v11, 2  ;;  %v8255_v30 = vor.u32 %v8254_v61, %v8251_v34  ;;  %v15220_v11 = vld [vmem:[%s12740_s30 + $0x150] sm:$0xff] }
 0x77f   : > { %v6517_v21 = vadd.f32 %v6253_v43, %v16492_v23 }
 0x780   : > { %v10409_v24 = vmax.f32 %v10273_v3, 0.0  ;;  %v9154_v7 = vadd.f32 %v8889_v26, %v7831_v53  ;;  %v5842_v56 = vsel %vm5769_vm4, %v5839_v38, %v5841_v58 }
 0x782   : > { %v10545_v62 = vpack.c.bf16 %v10409_v24, %v10409_v24  ;;  %v9994_v47 = vadd.f32 %v9729_v44, %v9154_v7  ;;  %v9731_v22 = vpop.f32.mrf.mxu0  ;;  %v9319_v24 = vrot.slane %v15168_v45, 3 }
 0x784   : > { %10682 = vst.msk [vmem:[%s14498_s21 + $0xc4] sm:$0xf] %vm10632_vm7, %v10545_v62  ;;  %v10134_v19 = vmul.f32 %v15127_v39, %v9994_v47 }
 0x785   : > { %v7568_v46 = vpop.f32.mrf.mxu2  ;;  %v8891_v9 = vpop.f32.mrf.mxu3 }
 0x786   : > { %v10274_v27 = vadd.f32 %v15134_v60, %v10134_v19  ;;  %v7832_v37 = vadd.f32 %v7568_v46, %v6517_v21  ;;  %v6256_v20 = vpop.f32.mrf.mxu1  ;;  %v9320_v46 = vsel %vm9247_vm6, %v9317_v0, %v9319_v24 }
 0x787   : > { %v6518_v16 = vadd.f32 %v6256_v20, %v16493_v51  ;;  %v7158_v51 = vrot.slane %v15194_v12, 2 }
 0x788   : > { %v10410_v33 = vmax.f32 %v10274_v27, 0.0  ;;  %v9155_v1 = vadd.f32 %v8891_v9, %v7832_v37  ;;  %v8261_v37 = vshll.u32 %v15194_v12, 16 }
 0x789   : > { %11775 = vmatmul.msk.bf16.gmra.mxu1 %vm1239_vm1, %v5840_v36  ;;  %v7159_v61 = vsel %vm5769_vm4, %v7156_v29, %v7158_v51  ;;  %v16497_v29 = vld [vmem:[#allocation70_spill] sm:$0xff] }
 0x78a   : > { %v10546_v63 = vpack.c.bf16 %v10410_v33, %v10410_v33  ;;  %v9995_v4 = vadd.f32 %v9731_v22, %v9155_v1  ;;  %v9734_v14 = vpop.f32.mrf.mxu0  ;;  %12117 = vmatmul.msk.bf16.gmra.mxu2 %vm1239_vm1, %v7155_v17  ;;  %12191 = vmatmul.msk.bf16.gmra.mxu3 %vm1239_vm1, %v8247_v31  ;;  %v8256_v22 = vsel %vm7924_vm5, %v8246_v42, %v8255_v30  ;;  %v8258_v42 = vshrl.u32 %v15194_v12, 16 }
 0x78b   : > { %v8263_v45 = vrot.slane %v8261_v37, 3 }
 0x78c   : > { %10683 = vst.msk [vmem:[%s14498_s21 + $0xc8] sm:$0xf] %vm10632_vm7, %v10546_v63  ;;  %v10135_v10 = vmul.f32 %v15127_v39, %v9995_v4  ;;  %v8260_v31 = vrot.slane %v8258_v42, 2  ;;  %v16498_v42 = vld [vmem:[#allocation73_spill] sm:$0xff] }
 0x78d   : > { %12265 = vmatmul.msk.bf16.gmra.mxu0 %vm1239_vm1, %v9318_v50  ;;  %v7571_v13 = vpop.f32.mrf.mxu2  ;;  %v8894_v54 = vpop.f32.mrf.mxu3  ;;  %v12641_v50 = vld [vmem:[%s12740_s30 + $0x138] sm:$0xff] }
 0x78e   : > { %v10275_v40 = vadd.f32 %v15134_v60, %v10135_v10  ;;  %v7833_v32 = vadd.f32 %v7571_v13, %v6518_v16  ;;  %v6258_v28 = vpop.f32.mrf.mxu1  ;;  %v5843_v10 = vrot.slane %v12641_v50, 2  ;;  %v8264_v13 = vor.u32 %v8263_v45, %v8260_v31  ;;  %v15246_v50 = vld [vmem:[%s12740_s30 + $0x158] sm:$0xff] }
 0x78f   : > { %v6519_v48 = vadd.f32 %v6258_v28, %v16494_v25 }
 0x790   : > { %v10411_v35 = vmax.f32 %v10275_v40, 0.0  ;;  %v9156_v8 = vadd.f32 %v8894_v54, %v7833_v32  ;;  %v5844_v34 = vsel %vm5769_vm4, %v5841_v58, %v5843_v10 }
 0x792   : > { %v10547_v15 = vpack.c.bf16 %v10411_v35, %v10411_v35  ;;  %v9996_v18 = vadd.f32 %v9734_v14, %v9156_v8  ;;  %v9736_v44 = vpop.f32.mrf.mxu0  ;;  %v9321_v35 = vrot.slane %v15194_v12, 3 }
 0x794   : > { %10684 = vst.msk [vmem:[%s14498_s21 + $0xcc] sm:$0xf] %vm10632_vm7, %v10547_v15  ;;  %v10136_v6 = vmul.f32 %v15127_v39, %v9996_v18 }
 0x795   : > { %v7573_v3 = vpop.f32.mrf.mxu2  ;;  %v8896_v43 = vpop.f32.mrf.mxu3 }
 0x796   : > { %v10276_v53 = vadd.f32 %v15134_v60, %v10136_v6  ;;  %v7834_v26 = vadd.f32 %v7573_v3, %v6519_v48  ;;  %v6261_v7 = vpop.f32.mrf.mxu1  ;;  %v9322_v3 = vsel %vm9247_vm6, %v9319_v24, %v9321_v35 }
 0x797   : > { %v6520_v27 = vadd.f32 %v6261_v7, %v16495_v49  ;;  %v7160_v49 = vrot.slane %v15220_v11, 2 }
 0x798   : > { %v10412_v62 = vmax.f32 %v10276_v53, 0.0  ;;  %v9157_v47 = vadd.f32 %v8896_v43, %v7834_v26  ;;  %v8270_v26 = vshll.u32 %v15220_v11, 16 }
 0x799   : > { %11776 = vmatmul.msk.bf16.gmra.mxu1 %vm1239_vm1, %v5842_v56  ;;  %v7161_v45 = vsel %vm5769_vm4, %v7158_v51, %v7160_v49  ;;  %v16499_v51 = vld [vmem:[#allocation76_spill] sm:$0xff] }
 0x79a   : > { %v10548_v19 = vpack.c.bf16 %v10412_v62, %v10412_v62  ;;  %v9997_v23 = vadd.f32 %v9736_v44, %v9157_v47  ;;  %v9739_v21 = vpop.f32.mrf.mxu0  ;;  %12118 = vmatmul.msk.bf16.gmra.mxu2 %vm1239_vm1, %v7157_v52  ;;  %12192 = vmatmul.msk.bf16.gmra.mxu3 %vm1239_vm1, %v8256_v22  ;;  %v8265_v44 = vsel %vm7924_vm5, %v8255_v30, %v8264_v13  ;;  %v8267_v30 = vshrl.u32 %v15220_v11, 16 }
 0x79b   : > { %v8272_v12 = vrot.slane %v8270_v26, 3 }
 0x79c   : > { %10685 = vst.msk [vmem:[%s14498_s21 + $0xd0] sm:$0xf] %vm10632_vm7, %v10548_v19  ;;  %v10137_v38 = vmul.f32 %v15127_v39, %v9997_v23  ;;  %v8269_v22 = vrot.slane %v8267_v30, 2  ;;  %v16500_v30 = vld [vmem:[#allocation79_spill] sm:$0xff] }
 0x79d   : > { %12266 = vmatmul.msk.bf16.gmra.mxu0 %vm1239_vm1, %v9320_v46  ;;  %v7576_v9 = vpop.f32.mrf.mxu2  ;;  %v8899_v36 = vpop.f32.mrf.mxu3  ;;  %v12642_v46 = vld [vmem:[%s12740_s30 + $0x140] sm:$0xff] }
 0x79e   : > { %v10277_v20 = vadd.f32 %v15134_v60, %v10137_v38  ;;  %v7835_v0 = vadd.f32 %v7576_v9, %v6520_v27  ;;  %v6263_v17 = vpop.f32.mrf.mxu1  ;;  %v5845_v38 = vrot.slane %v12642_v46, 2  ;;  %v8273_v9 = vor.u32 %v8272_v12, %v8269_v22  ;;  %v15272_v46 = vld [vmem:[%s12740_s30 + $0x160] sm:$0xff] }
 0x79f   : > { %v6521_v57 = vadd.f32 %v6263_v17, %v16496_v2 }
 0x7a0   : > { %v10413_v33 = vmax.f32 %v10277_v20, 0.0  ;;  %v9158_v1 = vadd.f32 %v8899_v36, %v7835_v0  ;;  %v5846_v31 = vsel %vm5769_vm4, %v5843_v10, %v5845_v38 }
 0x7a2   : > { %v10549_v63 = vpack.c.bf16 %v10413_v33, %v10413_v33  ;;  %v9998_v4 = vadd.f32 %v9739_v21, %v9158_v1  ;;  %v9741_v14 = vpop.f32.mrf.mxu0  ;;  %v9323_v33 = vrot.slane %v15220_v11, 3 }
 0x7a4   : > { %10686 = vst.msk [vmem:[%s14498_s21 + $0xd4] sm:$0xf] %vm10632_vm7, %v10549_v63  ;;  %v10138_v16 = vmul.f32 %v15127_v39, %v9998_v4 }
 0x7a5   : > { %v7578_v40 = vpop.f32.mrf.mxu2  ;;  %v8901_v28 = vpop.f32.mrf.mxu3 }
 0x7a6   : > { %v10278_v32 = vadd.f32 %v15134_v60, %v10138_v16  ;;  %v7836_v54 = vadd.f32 %v7578_v40, %v6521_v57  ;;  %v6266_v8 = vpop.f32.mrf.mxu1  ;;  %v9324_v40 = vsel %vm9247_vm6, %v9321_v35, %v9323_v33 }
 0x7a7   : > { %v6522_v53 = vadd.f32 %v6266_v8, %v16497_v29  ;;  %v7162_v29 = vrot.slane %v15246_v50, 2 }
 0x7a8   : > { %v10414_v15 = vmax.f32 %v10278_v32, 0.0  ;;  %v9159_v18 = vadd.f32 %v8901_v28, %v7836_v54  ;;  %v8279_v54 = vshll.u32 %v15246_v50, 16 }
 0x7a9   : > { %11777 = vmatmul.msk.bf16.gmra.mxu1 %vm1239_vm1, %v5844_v34  ;;  %v7163_v12 = vsel %vm5769_vm4, %v7160_v49, %v7162_v29  ;;  %v16501_v49 = vld [vmem:[#allocation82_spill] sm:$0xff] }
 0x7aa   : > { %v10550_v6 = vpack.c.bf16 %v10414_v15, %v10414_v15  ;;  %v9999_v25 = vadd.f32 %v9741_v14, %v9159_v18  ;;  %v9744_v48 = vpop.f32.mrf.mxu0  ;;  %12119 = vmatmul.msk.bf16.gmra.mxu2 %vm1239_vm1, %v7159_v61  ;;  %12193 = vmatmul.msk.bf16.gmra.mxu3 %vm1239_vm1, %v8265_v44  ;;  %v8274_v14 = vsel %vm7924_vm5, %v8264_v13, %v8273_v9  ;;  %v8276_v13 = vshrl.u32 %v15246_v50, 16 }
 0x7ab   : > { %v8281_v11 = vrot.slane %v8279_v54, 3 }
 0x7ac   : > { %10687 = vst.msk [vmem:[%s14498_s21 + $0xd8] sm:$0xf] %vm10632_vm7, %v10550_v6  ;;  %v10139_v58 = vmul.f32 %v15127_v39, %v9999_v25  ;;  %v8278_v44 = vrot.slane %v8276_v13, 2  ;;  %v16502_v13 = vld [vmem:[#allocation85_spill] sm:$0xff] }
 0x7ad   : > { %12267 = vmatmul.msk.bf16.gmra.mxu0 %vm1239_vm1, %v9322_v3  ;;  %v7581_v43 = vpop.f32.mrf.mxu2  ;;  %v8904_v56 = vpop.f32.mrf.mxu3  ;;  %v12643_v3 = vld [vmem:[%s12740_s30 + $0x148] sm:$0xff] }
 0x7ae   : > { %v10279_v7 = vadd.f32 %v15134_v60, %v10139_v58  ;;  %v7837_v24 = vadd.f32 %v7581_v43, %v6522_v53  ;;  %v6268_v52 = vpop.f32.mrf.mxu1  ;;  %v5847_v58 = vrot.slane %v12643_v3, 2  ;;  %v8282_v43 = vor.u32 %v8281_v11, %v8278_v44  ;;  %v15298_v3 = vld [vmem:[%s12740_s30 + $0x168] sm:$0xff] }
 0x7af   : > { %v6523_v37 = vadd.f32 %v6268_v52, %v16498_v42 }
 0x7b0   : > { %v10415_v62 = vmax.f32 %v10279_v7, 0.0  ;;  %v9160_v47 = vadd.f32 %v8904_v56, %v7837_v24  ;;  %v5848_v22 = vsel %vm5769_vm4, %v5845_v38, %v5847_v58 }
 0x7b2   : > { %v10551_v19 = vpack.c.bf16 %v10415_v62, %v10415_v62  ;;  %v10000_v23 = vadd.f32 %v9744_v48, %v9160_v47  ;;  %v9746_v21 = vpop.f32.mrf.mxu0  ;;  %v9325_v62 = vrot.slane %v15246_v50, 3 }
 0x7b4   : > { %10688 = vst.msk [vmem:[%s14498_s21 + $0xdc] sm:$0xf] %vm10632_vm7, %v10551_v19  ;;  %v10140_v27 = vmul.f32 %v15127_v39, %v10000_v23 }
 0x7b5   : > { %v7583_v20 = vpop.f32.mrf.mxu2  ;;  %v8906_v17 = vpop.f32.mrf.mxu3 }
 0x7b6   : > { %v10280_v0 = vadd.f32 %v15134_v60, %v10140_v27  ;;  %v7838_v36 = vadd.f32 %v7583_v20, %v6523_v37  ;;  %v6271_v1 = vpop.f32.mrf.mxu1  ;;  %v9326_v20 = vsel %vm9247_vm6, %v9323_v33, %v9325_v62 }
 0x7b7   : > { %v6524_v32 = vadd.f32 %v6271_v1, %v16499_v51  ;;  %v7164_v51 = vrot.slane %v15272_v46, 2 }
 0x7b8   : > { %v10416_v63 = vmax.f32 %v10280_v0, 0.0  ;;  %v9161_v4 = vadd.f32 %v8906_v17, %v7838_v36  ;;  %v8288_v36 = vshll.u32 %v15272_v46, 16 }
 0x7b9   : > { %11778 = vmatmul.msk.bf16.gmra.mxu1 %vm1239_vm1, %v5846_v31  ;;  %v7165_v11 = vsel %vm5769_vm4, %v7162_v29, %v7164_v51  ;;  %v16503_v29 = vld [vmem:[#allocation88_spill] sm:$0xff] }
 0x7ba   : > { %v10552_v16 = vpack.c.bf16 %v10416_v63, %v10416_v63  ;;  %v10001_v2 = vadd.f32 %v9746_v21, %v9161_v4  ;;  %v9749_v57 = vpop.f32.mrf.mxu0  ;;  %12120 = vmatmul.msk.bf16.gmra.mxu2 %vm1239_vm1, %v7161_v45  ;;  %12194 = vmatmul.msk.bf16.gmra.mxu3 %vm1239_vm1, %v8274_v14  ;;  %v8283_v21 = vsel %vm7924_vm5, %v8273_v9, %v8282_v43  ;;  %v8285_v9 = vshrl.u32 %v15272_v46, 16 }
 0x7bb   : > { %v8290_v50 = vrot.slane %v8288_v36, 3 }
 0x7bc   : > { %10689 = vst.msk [vmem:[%s14498_s21 + $0xe0] sm:$0xf] %vm10632_vm7, %v10552_v16  ;;  %v10141_v10 = vmul.f32 %v15127_v39, %v10001_v2  ;;  %v8287_v14 = vrot.slane %v8285_v9, 2  ;;  %v16504_v9 = vld [vmem:[#allocation91_spill] sm:$0xff] }
 0x7bd   : > { %12268 = vmatmul.msk.bf16.gmra.mxu0 %vm1239_vm1, %v9324_v40  ;;  %v7586_v28 = vpop.f32.mrf.mxu2  ;;  %v8909_v34 = vpop.f32.mrf.mxu3  ;;  %v12644_v40 = vld [vmem:[%s12740_s30 + $0x150] sm:$0xff] }
 0x7be   : > { %v10281_v8 = vadd.f32 %v15134_v60, %v10141_v10  ;;  %v7839_v35 = vadd.f32 %v7586_v28, %v6524_v32  ;;  %v6273_v61 = vpop.f32.mrf.mxu1  ;;  %v5849_v10 = vrot.slane %v12644_v40, 2  ;;  %v8291_v28 = vor.u32 %v8290_v50, %v8287_v14  ;;  %v15324_v40 = vld [vmem:[%s12740_s30 + $0x170] sm:$0xff] }
 0x7bf   : > { %v6525_v26 = vadd.f32 %v6273_v61, %v16500_v30 }
 0x7c0   : > { %v10417_v15 = vmax.f32 %v10281_v8, 0.0  ;;  %v9162_v18 = vadd.f32 %v8909_v34, %v7839_v35  ;;  %v5850_v44 = vsel %vm5769_vm4, %v5847_v58, %v5849_v10 }
 0x7c2   : > { %v10553_v6 = vpack.c.bf16 %v10417_v15, %v10417_v15  ;;  %v10002_v25 = vadd.f32 %v9749_v57, %v9162_v18  ;;  %v9751_v48 = vpop.f32.mrf.mxu0  ;;  %v9327_v15 = vrot.slane %v15272_v46, 3 }
 0x7c4   : > { %10690 = vst.msk [vmem:[%s14498_s21 + $0xe4] sm:$0xf] %vm10632_vm7, %v10553_v6  ;;  %v10142_v53 = vmul.f32 %v15127_v39, %v10002_v25 }
 0x7c5   : > { %v7588_v7 = vpop.f32.mrf.mxu2  ;;  %v8911_v52 = vpop.f32.mrf.mxu3 }
 0x7c6   : > { %v10282_v24 = vadd.f32 %v15134_v60, %v10142_v53  ;;  %v7840_v56 = vadd.f32 %v7588_v7, %v6525_v26  ;;  %v6276_v47 = vpop.f32.mrf.mxu1  ;;  %v9328_v7 = vsel %vm9247_vm6, %v9325_v62, %v9327_v15 }
 0x7c7   : > { %v6526_v0 = vadd.f32 %v6276_v47, %v16501_v49  ;;  %v7166_v49 = vrot.slane %v15298_v3, 2 }
 0x7c8   : > { %v10418_v19 = vmax.f32 %v10282_v24, 0.0  ;;  %v9163_v23 = vadd.f32 %v8911_v52, %v7840_v56  ;;  %v8297_v56 = vshll.u32 %v15298_v3, 16 }
 0x7c9   : > { %11779 = vmatmul.msk.bf16.gmra.mxu1 %vm1239_vm1, %v5848_v22  ;;  %v7167_v50 = vsel %vm5769_vm4, %v7164_v51, %v7166_v49  ;;  %v16505_v51 = vld [vmem:[#allocation94_spill] sm:$0xff] }
 0x7ca   : > { %v10554_v27 = vpack.c.bf16 %v10418_v19, %v10418_v19  ;;  %v10003_v42 = vadd.f32 %v9751_v48, %v9163_v23  ;;  %v9754_v37 = vpop.f32.mrf.mxu0  ;;  %12121 = vmatmul.msk.bf16.gmra.mxu2 %vm1239_vm1, %v7163_v12  ;;  %12195 = vmatmul.msk.bf16.gmra.mxu3 %vm1239_vm1, %v8283_v21  ;;  %v8292_v48 = vsel %vm7924_vm5, %v8282_v43, %v8291_v28  ;;  %v8294_v43 = vshrl.u32 %v15298_v3, 16 }
 0x7cb   : > { %v8299_v46 = vrot.slane %v8297_v56, 3 }
 0x7cc   : > { %10691 = vst.msk [vmem:[%s14498_s21 + $0xe8] sm:$0xf] %vm10632_vm7, %v10554_v27  ;;  %v10143_v38 = vmul.f32 %v15127_v39, %v10003_v42  ;;  %v8296_v21 = vrot.slane %v8294_v43, 2  ;;  %v16506_v43 = vld [vmem:[#allocation97_spill] sm:$0xff] }
 0x7cd   : > { %12269 = vmatmul.msk.bf16.gmra.mxu0 %vm1239_vm1, %v9326_v20  ;;  %v7591_v17 = vpop.f32.mrf.mxu2  ;;  %v8914_v31 = vpop.f32.mrf.mxu3  ;;  %v12645_v20 = vld [vmem:[%s12740_s30 + $0x158] sm:$0xff] }
 0x7ce   : > { %v10283_v1 = vadd.f32 %v15134_v60, %v10143_v38  ;;  %v7841_v33 = vadd.f32 %v7591_v17, %v6526_v0  ;;  %v6278_v45 = vpop.f32.mrf.mxu1  ;;  %v5851_v38 = vrot.slane %v12645_v20, 2  ;;  %v8300_v17 = vor.u32 %v8299_v46, %v8296_v21  ;;  %v15350_v20 = vld [vmem:[%s12740_s30 + $0x178] sm:$0xff] }
 0x7cf   : > { %v6527_v54 = vadd.f32 %v6278_v45, %v16502_v13 }
 0x7d0   : > { %v10419_v63 = vmax.f32 %v10283_v1, 0.0  ;;  %v9164_v4 = vadd.f32 %v8914_v31, %v7841_v33  ;;  %v5852_v14 = vsel %vm5769_vm4, %v5849_v10, %v5851_v38 }
 0x7d2   : > { %v10555_v16 = vpack.c.bf16 %v10419_v63, %v10419_v63  ;;  %v10004_v2 = vadd.f32 %v9754_v37, %v9164_v4  ;;  %v9756_v57 = vpop.f32.mrf.mxu0  ;;  %v9329_v63 = vrot.slane %v15298_v3, 3 }
 0x7d4   : > { %10692 = vst.msk [vmem:[%s14498_s21 + $0xec] sm:$0xf] %vm10632_vm7, %v10555_v16  ;;  %v10144_v32 = vmul.f32 %v15127_v39, %v10004_v2 }
 0x7d5   : > { %v7593_v8 = vpop.f32.mrf.mxu2  ;;  %v8916_v61 = vpop.f32.mrf.mxu3 }
 0x7d6   : > { %v10284_v35 = vadd.f32 %v15134_v60, %v10144_v32  ;;  %v7842_v34 = vadd.f32 %v7593_v8, %v6527_v54  ;;  %v6281_v18 = vpop.f32.mrf.mxu1  ;;  %v9330_v8 = vsel %vm9247_vm6, %v9327_v15, %v9329_v63 }
 0x7d7   : > { %v6528_v24 = vadd.f32 %v6281_v18, %v16503_v29  ;;  %v7168_v29 = vrot.slane %v15324_v40, 2 }
 0x7d8   : > { %v10420_v6 = vmax.f32 %v10284_v35, 0.0  ;;  %v9165_v25 = vadd.f32 %v8916_v61, %v7842_v34  ;;  %v8306_v34 = vshll.u32 %v15324_v40, 16 }
 0x7d9   : > { %11780 = vmatmul.msk.bf16.gmra.mxu1 %vm1239_vm1, %v5850_v44  ;;  %v7169_v46 = vsel %vm5769_vm4, %v7166_v49, %v7168_v29  ;;  %v16507_v49 = vld [vmem:[#allocation100_spill] sm:$0xff] }
 0x7da   : > { %v10556_v53 = vpack.c.bf16 %v10420_v6, %v10420_v6  ;;  %v10005_v30 = vadd.f32 %v9756_v57, %v9165_v25  ;;  %v9759_v26 = vpop.f32.mrf.mxu0  ;;  %12122 = vmatmul.msk.bf16.gmra.mxu2 %vm1239_vm1, %v7165_v11  ;;  %12196 = vmatmul.msk.bf16.gmra.mxu3 %vm1239_vm1, %v8292_v48  ;;  %v8301_v57 = vsel %vm7924_vm5, %v8291_v28, %v8300_v17  ;;  %v8303_v28 = vshrl.u32 %v15324_v40, 16 }
 0x7db   : > { %v8308_v3 = vrot.slane %v8306_v34, 3 }
 0x7dc   : > { %10693 = vst.msk [vmem:[%s14498_s21 + $0xf0] sm:$0xf] %vm10632_vm7, %v10556_v53  ;;  %v10145_v58 = vmul.f32 %v15127_v39, %v10005_v30  ;;  %v8305_v48 = vrot.slane %v8303_v28, 2  ;;  %v16508_v28 = vld [vmem:[#allocation103_spill] sm:$0xff] }
 0x7dd   : > { %12270 = vmatmul.msk.bf16.gmra.mxu0 %vm1239_vm1, %v9328_v7  ;;  %v7596_v52 = vpop.f32.mrf.mxu2  ;;  %v8919_v22 = vpop.f32.mrf.mxu3  ;;  %v12646_v7 = vld [vmem:[%s12740_s30 + $0x160] sm:$0xff] }
 0x7de   : > { %v10285_v47 = vadd.f32 %v15134_v60, %v10145_v58  ;;  %v7843_v62 = vadd.f32 %v7596_v52, %v6528_v24  ;;  %v6283_v12 = vpop.f32.mrf.mxu1  ;;  %v5853_v58 = vrot.slane %v12646_v7, 2  ;;  %v8309_v52 = vor.u32 %v8308_v3, %v8305_v48  ;;  %v15376_v7 = vld [vmem:[%s12740_s30 + $0x180] sm:$0xff] }
 0x7df   : > { %v6529_v36 = vadd.f32 %v6283_v12, %v16504_v9 }
 0x7e0   : > { %v10421_v19 = vmax.f32 %v10285_v47, 0.0  ;;  %v9166_v23 = vadd.f32 %v8919_v22, %v7843_v62  ;;  %v5854_v21 = vsel %vm5769_vm4, %v5851_v38, %v5853_v58 }
 0x7e2   : > { %v10557_v27 = vpack.c.bf16 %v10421_v19, %v10421_v19  ;;  %v10006_v42 = vadd.f32 %v9759_v26, %v9166_v23  ;;  %v9761_v37 = vpop.f32.mrf.mxu0  ;;  %v9331_v19 = vrot.slane %v15324_v40, 3 }
 0x7e4   : > { %10694 = vst.msk [vmem:[%s14498_s21 + $0xf4] sm:$0xf] %vm10632_vm7, %v10557_v27  ;;  %v10146_v0 = vmul.f32 %v15127_v39, %v10006_v42 }
 0x7e5   : > { %v7598_v1 = vpop.f32.mrf.mxu2  ;;  %v8921_v45 = vpop.f32.mrf.mxu3 }
 0x7e6   : > { %v10286_v33 = vadd.f32 %v15134_v60, %v10146_v0  ;;  %v7844_v31 = vadd.f32 %v7598_v1, %v6529_v36  ;;  %v6286_v4 = vpop.f32.mrf.mxu1  ;;  %v9332_v1 = vsel %vm9247_vm6, %v9329_v63, %v9331_v19 }
 0x7e7   : > { %v6530_v35 = vadd.f32 %v6286_v4, %v16505_v51  ;;  %v7170_v51 = vrot.slane %v15350_v20, 2 }
 0x7e8   : > { %v10422_v16 = vmax.f32 %v10286_v33, 0.0  ;;  %v9167_v2 = vadd.f32 %v8921_v45, %v7844_v31  ;;  %v8315_v31 = vshll.u32 %v15350_v20, 16 }
 0x7e9   : > { %11781 = vmatmul.msk.bf16.gmra.mxu1 %vm1239_vm1, %v5852_v14  ;;  %v7171_v3 = vsel %vm5769_vm4, %v7168_v29, %v7170_v51  ;;  %v16509_v29 = vld [vmem:[#allocation3_spill] sm:$0xff] }
 0x7ea   : > { %v10558_v32 = vpack.c.bf16 %v10422_v16, %v10422_v16  ;;  %v10007_v13 = vadd.f32 %v9761_v37, %v9167_v2  ;;  %v9764_v54 = vpop.f32.mrf.mxu0  ;;  %12123 = vmatmul.msk.bf16.gmra.mxu2 %vm1239_vm1, %v7167_v50  ;;  %12197 = vmatmul.msk.bf16.gmra.mxu3 %vm1239_vm1, %v8301_v57  ;;  %v8310_v37 = vsel %vm7924_vm5, %v8300_v17, %v8309_v52  ;;  %v8312_v17 = vshrl.u32 %v15350_v20, 16 }
 0x7eb   : > { %v8317_v40 = vrot.slane %v8315_v31, 3 }
 0x7ec   : > { %10695 = vst.msk [vmem:[%s14498_s21 + $0xf8] sm:$0xf] %vm10632_vm7, %v10558_v32  ;;  %v10147_v10 = vmul.f32 %v15127_v39, %v10007_v13  ;;  %v8314_v57 = vrot.slane %v8312_v17, 2  ;;  %v16510_v17 = vld [vmem:[#allocation6_spill] sm:$0xff] }
 0x7ed   : > { %12271 = vmatmul.msk.bf16.gmra.mxu0 %vm1239_vm1, %v9330_v8  ;;  %v7601_v61 = vpop.f32.mrf.mxu2  ;;  %v8924_v44 = vpop.f32.mrf.mxu3  ;;  %v12647_v8 = vld [vmem:[%s12740_s30 + $0x168] sm:$0xff] }
 0x7ee   : > { %v10287_v18 = vadd.f32 %v15134_v60, %v10147_v10  ;;  %v7845_v15 = vadd.f32 %v7601_v61, %v6530_v35  ;;  %v6288_v11 = vpop.f32.mrf.mxu1  ;;  %v5855_v10 = vrot.slane %v12647_v8, 2  ;;  %v8318_v61 = vor.u32 %v8317_v40, %v8314_v57  ;;  %v15402_v8 = vld [vmem:[%s12740_s30 + $0x188] sm:$0xff] }
 0x7ef   : > { %v6531_v56 = vadd.f32 %v6288_v11, %v16506_v43 }
 0x7f0   : > { %v10423_v6 = vmax.f32 %v10287_v18, 0.0  ;;  %v9168_v25 = vadd.f32 %v8924_v44, %v7845_v15  ;;  %v5856_v48 = vsel %vm5769_vm4, %v5853_v58, %v5855_v10 }
 0x7f2   : > { %v10559_v53 = vpack.c.bf16 %v10423_v6, %v10423_v6  ;;  %v10008_v30 = vadd.f32 %v9764_v54, %v9168_v25  ;;  %v9766_v26 = vpop.f32.mrf.mxu0  ;;  %v9333_v6 = vrot.slane %v15350_v20, 3 }
 0x7f4   : > { %10696 = vst.msk [vmem:[%s14498_s21 + $0xfc] sm:$0xf] %vm10632_vm7, %v10559_v53  ;;  %v10148_v24 = vmul.f32 %v15127_v39, %v10008_v30 }
 0x7f5   : > { %v7603_v47 = vpop.f32.mrf.mxu2  ;;  %v8926_v12 = vpop.f32.mrf.mxu3 }
 0x7f6   : > { %v10288_v62 = vadd.f32 %v15134_v60, %v10148_v24  ;;  %v7846_v22 = vadd.f32 %v7603_v47, %v6531_v56  ;;  %v6291_v23 = vpop.f32.mrf.mxu1  ;;  %v9334_v47 = vsel %vm9247_vm6, %v9331_v19, %v9333_v6 }
 0x7f7   : > { %v6532_v33 = vadd.f32 %v6291_v23, %v16507_v49  ;;  %v7172_v49 = vrot.slane %v15376_v7, 2 }
 0x7f8   : > { %v10424_v27 = vmax.f32 %v10288_v62, 0.0  ;;  %v9169_v42 = vadd.f32 %v8926_v12, %v7846_v22  ;;  %v8324_v22 = vshll.u32 %v15376_v7, 16 }
 0x7f9   : > { %11782 = vmatmul.msk.bf16.gmra.mxu1 %vm1239_vm1, %v5854_v21  ;;  %v7173_v40 = vsel %vm5769_vm4, %v7170_v51, %v7172_v49  ;;  %v16511_v51 = vld [vmem:[#allocation9_spill] sm:$0xff] }
 0x7fa   : > { %v10560_v0 = vpack.c.bf16 %v10424_v27, %v10424_v27  ;;  %v10009_v9 = vadd.f32 %v9766_v26, %v9169_v42  ;;  %v9769_v36 = vpop.f32.mrf.mxu0  ;;  %12124 = vmatmul.msk.bf16.gmra.mxu2 %vm1239_vm1, %v7169_v46  ;;  %12198 = vmatmul.msk.bf16.gmra.mxu3 %vm1239_vm1, %v8310_v37  ;;  %v8319_v26 = vsel %vm7924_vm5, %v8309_v52, %v8318_v61  ;;  %v8321_v52 = vshrl.u32 %v15376_v7, 16 }
 0x7fb   : > { %v8326_v20 = vrot.slane %v8324_v22, 3 }
 0x7fc   : > { %10697 = vst.msk [vmem:[%s14498_s21 + $0x100] sm:$0xf] %vm10632_vm7, %v10560_v0  ;;  %v10149_v38 = vmul.f32 %v15127_v39, %v10009_v9  ;;  %v8323_v37 = vrot.slane %v8321_v52, 2  ;;  %v16512_v52 = vld [vmem:[#allocation12_spill] sm:$0xff] }
 0x7fd   : > { %12272 = vmatmul.msk.bf16.gmra.mxu0 %vm1239_vm1, %v9332_v1  ;;  %v7606_v45 = vpop.f32.mrf.mxu2  ;;  %v8929_v14 = vpop.f32.mrf.mxu3  ;;  %v12648_v1 = vld [vmem:[%s12740_s30 + $0x170] sm:$0xff] }
 0x7fe   : > { %v10289_v4 = vadd.f32 %v15134_v60, %v10149_v38  ;;  %v7847_v63 = vadd.f32 %v7606_v45, %v6532_v33  ;;  %v6293_v50 = vpop.f32.mrf.mxu1  ;;  %v5857_v38 = vrot.slane %v12648_v1, 2  ;;  %v8327_v45 = vor.u32 %v8326_v20, %v8323_v37  ;;  %v15428_v1 = vld [vmem:[%s12740_s30 + $0x190] sm:$0xff] }
 0x7ff   : > { %v6533_v34 = vadd.f32 %v6293_v50, %v16508_v28 }
 0x800   : > { %v10425_v16 = vmax.f32 %v10289_v4, 0.0  ;;  %v9170_v2 = vadd.f32 %v8929_v14, %v7847_v63  ;;  %v5858_v57 = vsel %vm5769_vm4, %v5855_v10, %v5857_v38 }
 0x802   : > { %v10561_v32 = vpack.c.bf16 %v10425_v16, %v10425_v16  ;;  %v10010_v13 = vadd.f32 %v9769_v36, %v9170_v2  ;;  %v9771_v54 = vpop.f32.mrf.mxu0  ;;  %v9335_v16 = vrot.slane %v15376_v7, 3 }
 0x804   : > { %10698 = vst.msk [vmem:[%s14498_s21 + $0x104] sm:$0xf] %vm10632_vm7, %v10561_v32  ;;  %v10150_v35 = vmul.f32 %v15127_v39, %v10010_v13 }
 0x805   : > { %v7608_v18 = vpop.f32.mrf.mxu2  ;;  %v8931_v11 = vpop.f32.mrf.mxu3 }
 0x806   : > { %v10290_v15 = vadd.f32 %v15134_v60, %v10150_v35  ;;  %v7848_v44 = vadd.f32 %v7608_v18, %v6533_v34  ;;  %v6296_v25 = vpop.f32.mrf.mxu1  ;;  %v9336_v18 = vsel %vm9247_vm6, %v9333_v6, %v9335_v16 }
 0x807   : > { %v6534_v62 = vadd.f32 %v6296_v25, %v16509_v29  ;;  %v7174_v29 = vrot.slane %v15402_v8, 2 }
 0x808   : > { %v10426_v53 = vmax.f32 %v10290_v15, 0.0  ;;  %v9171_v30 = vadd.f32 %v8931_v11, %v7848_v44  ;;  %v8333_v44 = vshll.u32 %v15402_v8, 16 }
 0x809   : > { %11783 = vmatmul.msk.bf16.gmra.mxu1 %vm1239_vm1, %v5856_v48  ;;  %v7175_v20 = vsel %vm5769_vm4, %v7172_v49, %v7174_v29  ;;  %v16513_v49 = vld [vmem:[#allocation15_spill] sm:$0xff] }
 0x80a   : > { %v10562_v24 = vpack.c.bf16 %v10426_v53, %v10426_v53  ;;  %v10011_v43 = vadd.f32 %v9771_v54, %v9171_v30  ;;  %v9774_v56 = vpop.f32.mrf.mxu0  ;;  %12125 = vmatmul.msk.bf16.gmra.mxu2 %vm1239_vm1, %v7171_v3  ;;  %12199 = vmatmul.msk.bf16.gmra.mxu3 %vm1239_vm1, %v8319_v26  ;;  %v8328_v54 = vsel %vm7924_vm5, %v8318_v61, %v8327_v45  ;;  %v8330_v61 = vshrl.u32 %v15402_v8, 16 }
 0x80b   : > { %v8335_v7 = vrot.slane %v8333_v44, 3 }
 0x80c   : > { %10699 = vst.msk [vmem:[%s14498_s21 + $0x108] sm:$0xf] %vm10632_vm7, %v10562_v24  ;;  %v10151_v58 = vmul.f32 %v15127_v39, %v10011_v43  ;;  %v8332_v26 = vrot.slane %v8330_v61, 2 }
 0x80d   : > { %12273 = vmatmul.msk.bf16.gmra.mxu0 %vm1239_vm1, %v9334_v47  ;;  %v7611_v12 = vpop.f32.mrf.mxu2  ;;  %v8934_v21 = vpop.f32.mrf.mxu3  ;;  %v12649_v47 = vld [vmem:[%s12740_s30 + $0x178] sm:$0xff] }
 0x80e   : > { %v10291_v23 = vadd.f32 %v15134_v60, %v10151_v58  ;;  %v7849_v19 = vadd.f32 %v7611_v12, %v6534_v62  ;;  %v6298_v46 = vpop.f32.mrf.mxu1  ;;  %v5859_v58 = vrot.slane %v12649_v47, 2  ;;  %v8336_v12 = vor.u32 %v8335_v7, %v8332_v26  ;;  %v15464_v47 = vld [vmem:[%s12740_s30 + $0x198] sm:$0xff] }
 0x80f   : > { %v6535_v31 = vadd.f32 %v6298_v46, %v16510_v17 }
 0x810   : > { %v10427_v27 = vmax.f32 %v10291_v23, 0.0  ;;  %v9172_v42 = vadd.f32 %v8934_v21, %v7849_v19  ;;  %v5860_v37 = vsel %vm5769_vm4, %v5857_v38, %v5859_v58 }
 0x812   : > { %v10563_v0 = vpack.c.bf16 %v10427_v27, %v10427_v27  ;;  %v10012_v9 = vadd.f32 %v9774_v56, %v9172_v42  ;;  %v9776_v36 = vpop.f32.mrf.mxu0  ;;  %v9337_v27 = vrot.slane %v15402_v8, 3 }
 0x814   : > { %10700 = vst.msk [vmem:[%s14498_s21 + $0x10c] sm:$0xf] %vm10632_vm7, %v10563_v0  ;;  %v10152_v33 = vmul.f32 %v15127_v39, %v10012_v9 }
 0x815   : > { %v7613_v4 = vpop.f32.mrf.mxu2  ;;  %v8936_v50 = vpop.f32.mrf.mxu3 }
 0x816   : > { %v10292_v63 = vadd.f32 %v15134_v60, %v10152_v33  ;;  %v7850_v14 = vadd.f32 %v7613_v4, %v6535_v31  ;;  %v6301_v2 = vpop.f32.mrf.mxu1  ;;  %v9338_v4 = vsel %vm9247_vm6, %v9335_v16, %v9337_v27 }
 0x817   : > { %v6536_v15 = vadd.f32 %v6301_v2, %v16511_v51 }
 0x818   : > { %v10428_v32 = vmax.f32 %v10292_v63, 0.0  ;;  %v9173_v13 = vadd.f32 %v8936_v50, %v7850_v14  ;;  %v8342_v14 = vshll.u32 %v15428_v1, 16 }
 0x819   : > { %11784 = vmatmul.msk.bf16.gmra.mxu1 %vm1239_vm1, %v5858_v57 }
 0x81a   : > { %v10564_v35 = vpack.c.bf16 %v10428_v32, %v10428_v32  ;;  %v10013_v28 = vadd.f32 %v9776_v36, %v9173_v13  ;;  %v9779_v34 = vpop.f32.mrf.mxu0  ;;  %12126 = vmatmul.msk.bf16.gmra.mxu2 %vm1239_vm1, %v7173_v40  ;;  %12200 = vmatmul.msk.bf16.gmra.mxu3 %vm1239_vm1, %v8328_v54  ;;  %v8337_v36 = vsel %vm7924_vm5, %v8327_v45, %v8336_v12  ;;  %v8339_v45 = vshrl.u32 %v15428_v1, 16 }
 0x81c   : > { %10701 = vst.msk [vmem:[%s14498_s21 + $0x110] sm:$0xf] %vm10632_vm7, %v10564_v35  ;;  %v10153_v10 = vmul.f32 %v15127_v39, %v10013_v28  ;;  %v8341_v54 = vrot.slane %v8339_v45, 2  ;;  %v16516_v45 = vld [vmem:[#allocation24_spill] sm:$0xff] }
 0x81d   : > { %12274 = vmatmul.msk.bf16.gmra.mxu0 %vm1239_vm1, %v9336_v18  ;;  %v7616_v11 = vpop.f32.mrf.mxu2  ;;  %v8939_v48 = vpop.f32.mrf.mxu3 }
 0x81e   : > { %v10293_v25 = vadd.f32 %v15134_v60, %v10153_v10  ;;  %v7851_v6 = vadd.f32 %v7616_v11, %v6536_v15  ;;  %v6303_v3 = vpop.f32.mrf.mxu1  ;;  %v7176_v10 = vrot.slane %v15428_v1, 2  ;;  %v16514_v15 = vld [vmem:[#allocation18_spill] sm:$0xff] }
 0x81f   : > { %v6537_v22 = vadd.f32 %v6303_v3, %v16512_v52 }
 0x820   : > { %v10429_v53 = vmax.f32 %v10293_v25, 0.0  ;;  %v9174_v30 = vadd.f32 %v8939_v48, %v7851_v6  ;;  %v15456_v25 = vld [vmem:[%s16157_s3] ss:$0 sm:$0xff]  ;;  %v7177_v7 = vsel %vm5769_vm4, %v7174_v29, %v7176_v10  ;;  %v16515_v29 = vld [vmem:[#allocation21_spill] sm:$0xff] }
 0x822   : > { %v10565_v24 = vpack.c.bf16 %v10429_v53, %v10429_v53  ;;  %v10014_v43 = vadd.f32 %v9779_v34, %v9174_v30  ;;  %v9781_v56 = vpop.f32.mrf.mxu0  ;;  %v12650_v34 = vld [vmem:[%s12740_s30 + $0x180] sm:$0xff]  ;;  %v9339_v53 = vrot.slane %v15428_v1, 3 }
 0x823   : > { %v5861_v18 = vrot.slane %v12650_v34, 2  ;;  %v15490_v34 = vld [vmem:[%s12740_s30 + $0x1a0] sm:$0xff] }
 0x824   : > { %10702 = vst.msk [vmem:[%s14498_s21 + $0x114] sm:$0xf] %vm10632_vm7, %v10565_v24  ;;  %v10154_v62 = vmul.f32 %v15127_v39, %v10014_v43 }
 0x825   : > { %v7618_v23 = vpop.f32.mrf.mxu2  ;;  %v8941_v46 = vpop.f32.mrf.mxu3  ;;  %v5862_v26 = vsel %vm5769_vm4, %v5859_v58, %v5861_v18 }
 0x826   : > { %v10294_v19 = vadd.f32 %v15134_v60, %v10154_v62  ;;  %v7852_v21 = vadd.f32 %v7618_v23, %v6537_v22  ;;  %v6306_v42 = vpop.f32.mrf.mxu1  ;;  %v9340_v23 = vsel %vm9247_vm6, %v9337_v27, %v9339_v53 }
 0x827   : > { %v6538_v63 = vadd.f32 %v6306_v42, %v16513_v49  ;;  %v7178_v49 = vrot.slane %v15464_v47, 2 }
 0x828   : > { %v10430_v0 = vmax.f32 %v10294_v19, 0.0  ;;  %v9175_v9 = vadd.f32 %v8941_v46, %v7852_v21  ;;  %v8351_v21 = vshll.u32 %v15464_v47, 16 }
 0x829   : > { %11785 = vmatmul.msk.bf16.gmra.mxu1 %vm1239_vm1, %v5860_v37 }
 0x82a   : > { %v10566_v33 = vpack.c.bf16 %v10430_v0, %v10430_v0  ;;  %v10015_v17 = vadd.f32 %v9781_v56, %v9175_v9  ;;  %v9784_v31 = vpop.f32.mrf.mxu0  ;;  %12127 = vmatmul.msk.bf16.gmra.mxu2 %vm1239_vm1, %v7175_v20  ;;  %12201 = vmatmul.msk.bf16.gmra.mxu3 %vm1239_vm1, %v8337_v36  ;;  %v8353_v1 = vrot.slane %v8351_v21, 3 }
 0x82c   : > { %10703 = vst.msk [vmem:[%s14498_s21 + $0x118] sm:$0xf] %vm10632_vm7, %v10566_v33  ;;  %v10155_v38 = vmul.f32 %v15127_v39, %v10015_v17  ;;  %v8344_v39 = vrot.slane %v8342_v14, 3 }
 0x82d   : > { %12275 = vmatmul.msk.bf16.gmra.mxu0 %vm1239_vm1, %v9338_v4  ;;  %v7621_v50 = vpop.f32.mrf.mxu2  ;;  %v8944_v57 = vpop.f32.mrf.mxu3  ;;  %v12653_v4 = vld [vmem:[%s12740_s30 + $0x188] sm:$0xff] }
 0x82e   : > { %v10295_v2 = vadd.f32 %v15134_v60, %v10155_v38  ;;  %v7853_v16 = vadd.f32 %v7621_v50, %v6538_v63  ;;  %v6308_v40 = vpop.f32.mrf.mxu1  ;;  %v15449_v60 = vld [vmem:[%s16156_s2] ss:$0 sm:$0xff]  ;;  %v8345_v44 = vor.u32 %v8344_v39, %v8341_v54  ;;  %v5863_v38 = vrot.slane %v12653_v4, 2  ;;  %v15516_v4 = vld [vmem:[%s12740_s30 + $0x1a8] sm:$0xff] }
 0x82f   : > { %v6539_v61 = vadd.f32 %v6308_v40, %v16514_v15  ;;  %v7179_v39 = vsel %vm5769_vm4, %v7176_v10, %v7178_v49  ;;  %v16517_v10 = vld [vmem:[#allocation27_spill] sm:$0xff] }
 0x830   : > { %v10431_v32 = vmax.f32 %v10295_v2, 0.0  ;;  %v9176_v13 = vadd.f32 %v8944_v57, %v7853_v16  ;;  %v8346_v56 = vsel %vm7924_vm5, %v8336_v12, %v8345_v44  ;;  %v8348_v12 = vshrl.u32 %v15464_v47, 16 }
 0x831   : > { %v5864_v54 = vsel %vm5769_vm4, %v5861_v18, %v5863_v38 }
 0x832   : > { %v10567_v8 = vpack.c.bf16 %v10431_v32, %v10431_v32  ;;  %v10016_v35 = vadd.f32 %v9784_v31, %v9176_v13  ;;  %v9786_v28 = vpop.f32.mrf.mxu0  ;;  %v8350_v36 = vrot.slane %v8348_v12, 2  ;;  %v9341_v32 = vrot.slane %v15464_v47, 3  ;;  %v16518_v12 = vld [vmem:[#allocation30_spill] sm:$0xff] }
 0x834   : > { %10704 = vst.msk [vmem:[%s14498_s21 + $0x11c] sm:$0xf] %vm10632_vm7, %v10567_v8  ;;  %v10156_v51 = vmul.f32 %v15449_v60, %v10016_v35  ;;  %v8354_v50 = vor.u32 %v8353_v1, %v8350_v36 }
 0x835   : > { %v7623_v11 = vpop.f32.mrf.mxu2  ;;  %v8946_v3 = vpop.f32.mrf.mxu3 }
 0x836   : > { %v10296_v6 = vadd.f32 %v15456_v25, %v10156_v51  ;;  %v7854_v48 = vadd.f32 %v7623_v11, %v6539_v61  ;;  %v6311_v30 = vpop.f32.mrf.mxu1  ;;  %v9342_v11 = vsel %vm9247_vm6, %v9339_v53, %v9341_v32 }
 0x837   : > { %v6540_v19 = vadd.f32 %v6311_v30, %v16515_v29  ;;  %v7180_v29 = vrot.slane %v15490_v34, 2 }
 0x838   : > { %v10432_v24 = vmax.f32 %v10296_v6, 0.0  ;;  %v9177_v43 = vadd.f32 %v8946_v3, %v7854_v48  ;;  %v8360_v48 = vshll.u32 %v15490_v34, 16 }
 0x839   : > { %11786 = vmatmul.msk.bf16.gmra.mxu1 %vm1239_vm1, %v5862_v26  ;;  %v7181_v1 = vsel %vm5769_vm4, %v7178_v49, %v7180_v29  ;;  %v16519_v49 = vld [vmem:[#allocation33_spill] sm:$0xff] }
 0x83a   : > { %v10568_v62 = vpack.c.bf16 %v10432_v24, %v10432_v24  ;;  %v10017_v52 = vadd.f32 %v9786_v28, %v9177_v43  ;;  %v9789_v22 = vpop.f32.mrf.mxu0  ;;  %12128 = vmatmul.msk.bf16.gmra.mxu2 %vm1239_vm1, %v7177_v7  ;;  %12202 = vmatmul.msk.bf16.gmra.mxu3 %vm1239_vm1, %v8346_v56  ;;  %v8355_v28 = vsel %vm7924_vm5, %v8345_v44, %v8354_v50  ;;  %v8357_v44 = vshrl.u32 %v15490_v34, 16 }
 0x83b   : > { %v8362_v47 = vrot.slane %v8360_v48, 3 }
 0x83c   : > { %10705 = vst.msk [vmem:[%s14498_s21 + $0x120] sm:$0xf] %vm10632_vm7, %v10568_v62  ;;  %v10157_v58 = vmul.f32 %v15449_v60, %v10017_v52  ;;  %v8359_v56 = vrot.slane %v8357_v44, 2  ;;  %v16520_v44 = vld [vmem:[#allocation36_spill] sm:$0xff] }
 0x83d   : > { %12276 = vmatmul.msk.bf16.gmra.mxu0 %vm1239_vm1, %v9340_v23  ;;  %v7626_v46 = vpop.f32.mrf.mxu2  ;;  %v8949_v37 = vpop.f32.mrf.mxu3  ;;  %v12654_v23 = vld [vmem:[%s12740_s30 + $0x190] sm:$0xff] }
 0x83e   : > { %v10297_v42 = vadd.f32 %v15456_v25, %v10157_v58  ;;  %v7855_v27 = vadd.f32 %v7626_v46, %v6540_v19  ;;  %v6313_v20 = vpop.f32.mrf.mxu1  ;;  %v5865_v58 = vrot.slane %v12654_v23, 2  ;;  %v8363_v46 = vor.u32 %v8362_v47, %v8359_v56  ;;  %v15542_v23 = vld [vmem:[%s12740_s30 + $0x1b0] sm:$0xff] }
 0x83f   : > { %v6541_v14 = vadd.f32 %v6313_v20, %v16516_v45 }
 0x840   : > { %v10433_v0 = vmax.f32 %v10297_v42, 0.0  ;;  %v9178_v9 = vadd.f32 %v8949_v37, %v7855_v27  ;;  %v5866_v36 = vsel %vm5769_vm4, %v5863_v38, %v5865_v58 }
 0x842   : > { %v10569_v33 = vpack.c.bf16 %v10433_v0, %v10433_v0  ;;  %v10018_v17 = vadd.f32 %v9789_v22, %v9178_v9  ;;  %v9791_v31 = vpop.f32.mrf.mxu0  ;;  %v9343_v0 = vrot.slane %v15490_v34, 3 }
 0x844   : > { %10706 = vst.msk [vmem:[%s14498_s21 + $0x124] sm:$0xf] %vm10632_vm7, %v10569_v33  ;;  %v10158_v63 = vmul.f32 %v15449_v60, %v10018_v17 }
 0x845   : > { %v7628_v2 = vpop.f32.mrf.mxu2  ;;  %v8951_v40 = vpop.f32.mrf.mxu3 }
 0x846   : > { %v10298_v16 = vadd.f32 %v15456_v25, %v10158_v63  ;;  %v7856_v57 = vadd.f32 %v7628_v2, %v6541_v14  ;;  %v6316_v13 = vpop.f32.mrf.mxu1  ;;  %v9344_v2 = vsel %vm9247_vm6, %v9341_v32, %v9343_v0 }
 0x847   : > { %v6542_v6 = vadd.f32 %v6316_v13, %v16517_v10  ;;  %v7182_v10 = vrot.slane %v15516_v4, 2 }
 0x848   : > { %v10434_v8 = vmax.f32 %v10298_v16, 0.0  ;;  %v9179_v35 = vadd.f32 %v8951_v40, %v7856_v57  ;;  %v8369_v57 = vshll.u32 %v15516_v4, 16 }
 0x849   : > { %11787 = vmatmul.msk.bf16.gmra.mxu1 %vm1239_vm1, %v5864_v54  ;;  %v7183_v47 = vsel %vm5769_vm4, %v7180_v29, %v7182_v10  ;;  %v16521_v29 = vld [vmem:[#allocation39_spill] sm:$0xff] }
 0x84a   : > { %v10570_v51 = vpack.c.bf16 %v10434_v8, %v10434_v8  ;;  %v10019_v15 = vadd.f32 %v9791_v31, %v9179_v35  ;;  %v9794_v61 = vpop.f32.mrf.mxu0  ;;  %12129 = vmatmul.msk.bf16.gmra.mxu2 %vm1239_vm1, %v7179_v39  ;;  %12203 = vmatmul.msk.bf16.gmra.mxu3 %vm1239_vm1, %v8355_v28  ;;  %v8364_v31 = vsel %vm7924_vm5, %v8354_v50, %v8363_v46  ;;  %v8366_v50 = vshrl.u32 %v15516_v4, 16 }
 0x84b   : > { %v8371_v34 = vrot.slane %v8369_v57, 3 }
 0x84c   : > { %10707 = vst.msk [vmem:[%s14498_s21 + $0x128] sm:$0xf] %vm10632_vm7, %v10570_v51  ;;  %v10159_v18 = vmul.f32 %v15449_v60, %v10019_v15  ;;  %v8368_v28 = vrot.slane %v8366_v50, 2  ;;  %v16522_v50 = vld [vmem:[#allocation42_spill] sm:$0xff] }
 0x84d   : > { %12277 = vmatmul.msk.bf16.gmra.mxu0 %vm1239_vm1, %v9342_v11  ;;  %v7631_v3 = vpop.f32.mrf.mxu2  ;;  %v8954_v26 = vpop.f32.mrf.mxu3  ;;  %v12655_v11 = vld [vmem:[%s12740_s30 + $0x198] sm:$0xff] }
 0x84e   : > { %v10299_v30 = vadd.f32 %v15456_v25, %v10159_v18  ;;  %v7857_v53 = vadd.f32 %v7631_v3, %v6542_v6  ;;  %v6318_v7 = vpop.f32.mrf.mxu1  ;;  %v5867_v18 = vrot.slane %v12655_v11, 2  ;;  %v8372_v3 = vor.u32 %v8371_v34, %v8368_v28  ;;  %v15568_v11 = vld [vmem:[%s12740_s30 + $0x1b8] sm:$0xff] }
 0x84f   : > { %v6543_v21 = vadd.f32 %v6318_v7, %v16518_v12 }
 0x850   : > { %v10435_v24 = vmax.f32 %v10299_v30, 0.0  ;;  %v9180_v43 = vadd.f32 %v8954_v26, %v7857_v53  ;;  %v5868_v56 = vsel %vm5769_vm4, %v5865_v58, %v5867_v18 }
 0x852   : > { %v10571_v62 = vpack.c.bf16 %v10435_v24, %v10435_v24  ;;  %v10020_v52 = vadd.f32 %v9794_v61, %v9180_v43  ;;  %v9796_v22 = vpop.f32.mrf.mxu0  ;;  %v9345_v24 = vrot.slane %v15516_v4, 3 }
 0x854   : > { %10708 = vst.msk [vmem:[%s14498_s21 + $0x12c] sm:$0xf] %vm10632_vm7, %v10571_v62  ;;  %v10160_v19 = vmul.f32 %v15449_v60, %v10020_v52 }
 0x855   : > { %v7633_v42 = vpop.f32.mrf.mxu2  ;;  %v8956_v20 = vpop.f32.mrf.mxu3 }
 0x856   : > { %v10300_v27 = vadd.f32 %v15456_v25, %v10160_v19  ;;  %v7858_v37 = vadd.f32 %v7633_v42, %v6543_v21  ;;  %v6321_v9 = vpop.f32.mrf.mxu1  ;;  %v9346_v42 = vsel %vm9247_vm6, %v9343_v0, %v9345_v24 }
 0x857   : > { %v6544_v16 = vadd.f32 %v6321_v9, %v16519_v49  ;;  %v7184_v49 = vrot.slane %v15542_v23, 2 }
 0x858   : > { %v10436_v33 = vmax.f32 %v10300_v27, 0.0  ;;  %v9181_v17 = vadd.f32 %v8956_v20, %v7858_v37  ;;  %v8378_v37 = vshll.u32 %v15542_v23, 16 }
 0x859   : > { %11788 = vmatmul.msk.bf16.gmra.mxu1 %vm1239_vm1, %v5866_v36  ;;  %v7185_v34 = vsel %vm5769_vm4, %v7182_v10, %v7184_v49  ;;  %v16523_v10 = vld [vmem:[#allocation46_spill] sm:$0xff] }
 0x85a   : > { %v10572_v63 = vpack.c.bf16 %v10436_v33, %v10436_v33  ;;  %v10021_v45 = vadd.f32 %v9796_v22, %v9181_v17  ;;  %v9799_v14 = vpop.f32.mrf.mxu0  ;;  %12130 = vmatmul.msk.bf16.gmra.mxu2 %vm1239_vm1, %v7181_v1  ;;  %12204 = vmatmul.msk.bf16.gmra.mxu3 %vm1239_vm1, %v8364_v31  ;;  %v8373_v22 = vsel %vm7924_vm5, %v8363_v46, %v8372_v3  ;;  %v8375_v46 = vshrl.u32 %v15542_v23, 16 }
 0x85b   : > { %v8380_v4 = vrot.slane %v8378_v37, 3 }
 0x85c   : > { %10709 = vst.msk [vmem:[%s14498_s21 + $0x130] sm:$0xf] %vm10632_vm7, %v10572_v63  ;;  %v10161_v38 = vmul.f32 %v15449_v60, %v10021_v45  ;;  %v8377_v31 = vrot.slane %v8375_v46, 2  ;;  %v16524_v46 = vld [vmem:[#allocation50_spill] sm:$0xff] }
 0x85d   : > { %12278 = vmatmul.msk.bf16.gmra.mxu0 %vm1239_vm1, %v9344_v2  ;;  %v7636_v40 = vpop.f32.mrf.mxu2  ;;  %v8959_v54 = vpop.f32.mrf.mxu3  ;;  %v12656_v2 = vld [vmem:[%s12740_s30 + $0x1a0] sm:$0xff] }
 0x85e   : > { %v10301_v13 = vadd.f32 %v15456_v25, %v10161_v38  ;;  %v7859_v32 = vadd.f32 %v7636_v40, %v6544_v16  ;;  %v6323_v39 = vpop.f32.mrf.mxu1  ;;  %v5869_v38 = vrot.slane %v12656_v2, 2  ;;  %v8381_v40 = vor.u32 %v8380_v4, %v8377_v31  ;;  %v15594_v2 = vld [vmem:[%s12740_s30 + $0x1c0] sm:$0xff] }
 0x85f   : > { %v6545_v48 = vadd.f32 %v6323_v39, %v16520_v44 }
 0x860   : > { %v10437_v8 = vmax.f32 %v10301_v13, 0.0  ;;  %v9182_v35 = vadd.f32 %v8959_v54, %v7859_v32  ;;  %v5870_v28 = vsel %vm5769_vm4, %v5867_v18, %v5869_v38 }
 0x862   : > { %v10573_v51 = vpack.c.bf16 %v10437_v8, %v10437_v8  ;;  %v10022_v15 = vadd.f32 %v9799_v14, %v9182_v35  ;;  %v9801_v61 = vpop.f32.mrf.mxu0  ;;  %v9347_v8 = vrot.slane %v15542_v23, 3 }
 0x864   : > { %10710 = vst.msk [vmem:[%s14498_s21 + $0x134] sm:$0xf] %vm10632_vm7, %v10573_v51  ;;  %v10162_v6 = vmul.f32 %v15449_v60, %v10022_v15 }
 0x865   : > { %v7638_v30 = vpop.f32.mrf.mxu2  ;;  %v8961_v7 = vpop.f32.mrf.mxu3 }
 0x866   : > { %v10302_v53 = vadd.f32 %v15456_v25, %v10162_v6  ;;  %v7860_v26 = vadd.f32 %v7638_v30, %v6545_v48  ;;  %v6326_v43 = vpop.f32.mrf.mxu1  ;;  %v9348_v30 = vsel %vm9247_vm6, %v9345_v24, %v9347_v8 }
 0x867   : > { %v6546_v27 = vadd.f32 %v6326_v43, %v16521_v29  ;;  %v7186_v29 = vrot.slane %v15568_v11, 2 }
 0x868   : > { %v10438_v62 = vmax.f32 %v10302_v53, 0.0  ;;  %v9183_v52 = vadd.f32 %v8961_v7, %v7860_v26  ;;  %v8387_v26 = vshll.u32 %v15568_v11, 16 }
 0x869   : > { %11789 = vmatmul.msk.bf16.gmra.mxu1 %vm1239_vm1, %v5868_v56  ;;  %v7187_v4 = vsel %vm5769_vm4, %v7184_v49, %v7186_v29  ;;  %v16525_v49 = vld [vmem:[#allocation53_spill] sm:$0xff] }
 0x86a   : > { %v10574_v19 = vpack.c.bf16 %v10438_v62, %v10438_v62  ;;  %v10023_v12 = vadd.f32 %v9801_v61, %v9183_v52  ;;  %v9804_v21 = vpop.f32.mrf.mxu0  ;;  %12131 = vmatmul.msk.bf16.gmra.mxu2 %vm1239_vm1, %v7183_v47  ;;  %12205 = vmatmul.msk.bf16.gmra.mxu3 %vm1239_vm1, %v8373_v22  ;;  %v8382_v61 = vsel %vm7924_vm5, %v8372_v3, %v8381_v40  ;;  %v8384_v3 = vshrl.u32 %v15568_v11, 16 }
 0x86b   : > { %v8389_v23 = vrot.slane %v8387_v26, 3 }
 0x86c   : > { %10711 = vst.msk [vmem:[%s14498_s21 + $0x138] sm:$0xf] %vm10632_vm7, %v10574_v19  ;;  %v10163_v58 = vmul.f32 %v15449_v60, %v10023_v12  ;;  %v8386_v22 = vrot.slane %v8384_v3, 2  ;;  %v16526_v3 = vld [vmem:[#allocation56_spill] sm:$0xff] }
 0x86d   : > { %12279 = vmatmul.msk.bf16.gmra.mxu0 %vm1239_vm1, %v9346_v42  ;;  %v7641_v20 = vpop.f32.mrf.mxu2  ;;  %v8964_v36 = vpop.f32.mrf.mxu3  ;;  %v12657_v42 = vld [vmem:[%s12740_s30 + $0x1a8] sm:$0xff] }
 0x86e   : > { %v10303_v9 = vadd.f32 %v15456_v25, %v10163_v58  ;;  %v7861_v0 = vadd.f32 %v7641_v20, %v6546_v27  ;;  %v6328_v1 = vpop.f32.mrf.mxu1  ;;  %v5871_v58 = vrot.slane %v12657_v42, 2  ;;  %v8390_v20 = vor.u32 %v8389_v23, %v8386_v22  ;;  %v15620_v42 = vld [vmem:[%s12740_s30 + $0x1c8] sm:$0xff] }
 0x86f   : > { %v6547_v57 = vadd.f32 %v6328_v1, %v16522_v50 }
 0x870   : > { %v10439_v33 = vmax.f32 %v10303_v9, 0.0  ;;  %v9184_v17 = vadd.f32 %v8964_v36, %v7861_v0  ;;  %v5872_v31 = vsel %vm5769_vm4, %v5869_v38, %v5871_v58 }
 0x872   : > { %v10575_v63 = vpack.c.bf16 %v10439_v33, %v10439_v33  ;;  %v10024_v45 = vadd.f32 %v9804_v21, %v9184_v17  ;;  %v9806_v14 = vpop.f32.mrf.mxu0  ;;  %v9349_v33 = vrot.slane %v15568_v11, 3 }
 0x874   : > { %10712 = vst.msk [vmem:[%s14498_s21 + $0x13c] sm:$0xf] %vm10632_vm7, %v10575_v63  ;;  %v10164_v16 = vmul.f32 %v15449_v60, %v10024_v45 }
 0x875   : > { %v7643_v13 = vpop.f32.mrf.mxu2  ;;  %v8966_v39 = vpop.f32.mrf.mxu3 }
 0x876   : > { %v10304_v32 = vadd.f32 %v15456_v25, %v10164_v16  ;;  %v7862_v54 = vadd.f32 %v7643_v13, %v6547_v57  ;;  %v6331_v35 = vpop.f32.mrf.mxu1  ;;  %v9350_v13 = vsel %vm9247_vm6, %v9347_v8, %v9349_v33 }
 0x877   : > { %v6548_v53 = vadd.f32 %v6331_v35, %v16523_v10  ;;  %v7188_v10 = vrot.slane %v15594_v2, 2 }
 0x878   : > { %v10440_v51 = vmax.f32 %v10304_v32, 0.0  ;;  %v9185_v15 = vadd.f32 %v8966_v39, %v7862_v54  ;;  %v8396_v54 = vshll.u32 %v15594_v2, 16 }
 0x879   : > { %11790 = vmatmul.msk.bf16.gmra.mxu1 %vm1239_vm1, %v5870_v28  ;;  %v7189_v23 = vsel %vm5769_vm4, %v7186_v29, %v7188_v10  ;;  %v16527_v29 = vld [vmem:[#allocation59_spill] sm:$0xff] }
 0x87a   : > { %v10576_v6 = vpack.c.bf16 %v10440_v51, %v10440_v51  ;;  %v10025_v44 = vadd.f32 %v9806_v14, %v9185_v15  ;;  %v9809_v48 = vpop.f32.mrf.mxu0  ;;  %12132 = vmatmul.msk.bf16.gmra.mxu2 %vm1239_vm1, %v7185_v34  ;;  %12206 = vmatmul.msk.bf16.gmra.mxu3 %vm1239_vm1, %v8382_v61  ;;  %v8391_v14 = vsel %vm7924_vm5, %v8381_v40, %v8390_v20  ;;  %v8393_v40 = vshrl.u32 %v15594_v2, 16 }
 0x87b   : > { %v8398_v11 = vrot.slane %v8396_v54, 3 }
 0x87c   : > { %10713 = vst.msk [vmem:[%s14498_s21 + $0x140] sm:$0xf] %vm10632_vm7, %v10576_v6  ;;  %v10165_v18 = vmul.f32 %v15449_v60, %v10025_v44  ;;  %v8395_v61 = vrot.slane %v8393_v40, 2  ;;  %v16528_v40 = vld [vmem:[#allocation62_spill] sm:$0xff] }
 0x87d   : > { %12280 = vmatmul.msk.bf16.gmra.mxu0 %vm1239_vm1, %v9348_v30  ;;  %v7646_v7 = vpop.f32.mrf.mxu2  ;;  %v8969_v56 = vpop.f32.mrf.mxu3  ;;  %v12658_v30 = vld [vmem:[%s12740_s30 + $0x1b0] sm:$0xff] }
 0x87e   : > { %v10305_v43 = vadd.f32 %v15456_v25, %v10165_v18  ;;  %v7863_v24 = vadd.f32 %v7646_v7, %v6548_v53  ;;  %v6333_v47 = vpop.f32.mrf.mxu1  ;;  %v5873_v18 = vrot.slane %v12658_v30, 2  ;;  %v8399_v7 = vor.u32 %v8398_v11, %v8395_v61  ;;  %v15646_v30 = vld [vmem:[%s12740_s30 + $0x1d0] sm:$0xff] }
 0x87f   : > { %v6549_v37 = vadd.f32 %v6333_v47, %v16524_v46 }
 0x880   : > { %v10441_v62 = vmax.f32 %v10305_v43, 0.0  ;;  %v9186_v52 = vadd.f32 %v8969_v56, %v7863_v24  ;;  %v5874_v22 = vsel %vm5769_vm4, %v5871_v58, %v5873_v18 }
 0x882   : > { %v10577_v19 = vpack.c.bf16 %v10441_v62, %v10441_v62  ;;  %v10026_v12 = vadd.f32 %v9809_v48, %v9186_v52  ;;  %v9811_v21 = vpop.f32.mrf.mxu0  ;;  %v9351_v62 = vrot.slane %v15594_v2, 3 }
 0x884   : > { %10714 = vst.msk [vmem:[%s14498_s21 + $0x144] sm:$0xf] %vm10632_vm7, %v10577_v19  ;;  %v10166_v27 = vmul.f32 %v15449_v60, %v10026_v12 }
 0x885   : > { %v7648_v9 = vpop.f32.mrf.mxu2  ;;  %v8971_v1 = vpop.f32.mrf.mxu3 }
 0x886   : > { %v10306_v0 = vadd.f32 %v15456_v25, %v10166_v27  ;;  %v7864_v36 = vadd.f32 %v7648_v9, %v6549_v37  ;;  %v6336_v17 = vpop.f32.mrf.mxu1  ;;  %v9352_v9 = vsel %vm9247_vm6, %v9349_v33, %v9351_v62 }
 0x887   : > { %v6550_v32 = vadd.f32 %v6336_v17, %v16525_v49  ;;  %v7190_v49 = vrot.slane %v15620_v42, 2 }
 0x888   : > { %v10442_v63 = vmax.f32 %v10306_v0, 0.0  ;;  %v9187_v45 = vadd.f32 %v8971_v1, %v7864_v36  ;;  %v8405_v36 = vshll.u32 %v15620_v42, 16 }
 0x889   : > { %11791 = vmatmul.msk.bf16.gmra.mxu1 %vm1239_vm1, %v5872_v31  ;;  %v7191_v11 = vsel %vm5769_vm4, %v7188_v10, %v7190_v49  ;;  %v16529_v10 = vld [vmem:[#allocation65_spill] sm:$0xff] }
 0x88a   : > { %v10578_v16 = vpack.c.bf16 %v10442_v63, %v10442_v63  ;;  %v10027_v50 = vadd.f32 %v9811_v21, %v9187_v45  ;;  %v9814_v57 = vpop.f32.mrf.mxu0  ;;  %12133 = vmatmul.msk.bf16.gmra.mxu2 %vm1239_vm1, %v7187_v4  ;;  %12207 = vmatmul.msk.bf16.gmra.mxu3 %vm1239_vm1, %v8391_v14  ;;  %v8400_v21 = vsel %vm7924_vm5, %v8390_v20, %v8399_v7  ;;  %v8402_v20 = vshrl.u32 %v15620_v42, 16 }
 0x88b   : > { %v8407_v2 = vrot.slane %v8405_v36, 3 }
 0x88c   : > { %10715 = vst.msk [vmem:[%s14498_s21 + $0x148] sm:$0xf] %vm10632_vm7, %v10578_v16  ;;  %v10167_v38 = vmul.f32 %v15449_v60, %v10027_v50  ;;  %v8404_v14 = vrot.slane %v8402_v20, 2  ;;  %v16530_v20 = vld [vmem:[#allocation68_spill] sm:$0xff] }
 0x88d   : > { %12281 = vmatmul.msk.bf16.gmra.mxu0 %vm1239_vm1, %v9350_v13  ;;  %v7651_v39 = vpop.f32.mrf.mxu2  ;;  %v8974_v28 = vpop.f32.mrf.mxu3  ;;  %v12659_v13 = vld [vmem:[%s12740_s30 + $0x1b8] sm:$0xff] }
 0x88e   : > { %v10307_v35 = vadd.f32 %v15456_v25, %v10167_v38  ;;  %v7865_v8 = vadd.f32 %v7651_v39, %v6550_v32  ;;  %v6338_v34 = vpop.f32.mrf.mxu1  ;;  %v5875_v38 = vrot.slane %v12659_v13, 2  ;;  %v8408_v39 = vor.u32 %v8407_v2, %v8404_v14  ;;  %v15672_v13 = vld [vmem:[%s12740_s30 + $0x1d8] sm:$0xff] }
 0x88f   : > { %v6551_v26 = vadd.f32 %v6338_v34, %v16526_v3 }
 0x890   : > { %v10443_v51 = vmax.f32 %v10307_v35, 0.0  ;;  %v9188_v15 = vadd.f32 %v8974_v28, %v7865_v8  ;;  %v5876_v61 = vsel %vm5769_vm4, %v5873_v18, %v5875_v38 }
 0x892   : > { %v10579_v6 = vpack.c.bf16 %v10443_v51, %v10443_v51  ;;  %v10028_v44 = vadd.f32 %v9814_v57, %v9188_v15  ;;  %v9816_v48 = vpop.f32.mrf.mxu0  ;;  %v9353_v51 = vrot.slane %v15620_v42, 3 }
 0x894   : > { %10716 = vst.msk [vmem:[%s14498_s21 + $0x14c] sm:$0xf] %vm10632_vm7, %v10579_v6  ;;  %v10168_v53 = vmul.f32 %v15449_v60, %v10028_v44 }
 0x895   : > { %v7653_v43 = vpop.f32.mrf.mxu2  ;;  %v8976_v47 = vpop.f32.mrf.mxu3 }
 0x896   : > { %v10308_v24 = vadd.f32 %v15456_v25, %v10168_v53  ;;  %v7866_v56 = vadd.f32 %v7653_v43, %v6551_v26  ;;  %v6341_v52 = vpop.f32.mrf.mxu1  ;;  %v9354_v43 = vsel %vm9247_vm6, %v9351_v62, %v9353_v51 }
 0x897   : > { %v6552_v0 = vadd.f32 %v6341_v52, %v16527_v29  ;;  %v7192_v29 = vrot.slane %v15646_v30, 2 }
 0x898   : > { %v10444_v19 = vmax.f32 %v10308_v24, 0.0  ;;  %v9189_v12 = vadd.f32 %v8976_v47, %v7866_v56  ;;  %v8414_v56 = vshll.u32 %v15646_v30, 16 }
 0x899   : > { %11792 = vmatmul.msk.bf16.gmra.mxu1 %vm1239_vm1, %v5874_v22  ;;  %v7193_v2 = vsel %vm5769_vm4, %v7190_v49, %v7192_v29  ;;  %v16531_v49 = vld [vmem:[#allocation71_spill] sm:$0xff] }
 0x89a   : > { %v10580_v27 = vpack.c.bf16 %v10444_v19, %v10444_v19  ;;  %v10029_v46 = vadd.f32 %v9816_v48, %v9189_v12  ;;  %v9819_v37 = vpop.f32.mrf.mxu0  ;;  %12134 = vmatmul.msk.bf16.gmra.mxu2 %vm1239_vm1, %v7189_v23  ;;  %12208 = vmatmul.msk.bf16.gmra.mxu3 %vm1239_vm1, %v8400_v21  ;;  %v8409_v48 = vsel %vm7924_vm5, %v8399_v7, %v8408_v39  ;;  %v8411_v7 = vshrl.u32 %v15646_v30, 16 }
 0x89b   : > { %v8416_v42 = vrot.slane %v8414_v56, 3 }
 0x89c   : > { %10717 = vst.msk [vmem:[%s14498_s21 + $0x150] sm:$0xf] %vm10632_vm7, %v10580_v27  ;;  %v10169_v58 = vmul.f32 %v15449_v60, %v10029_v46  ;;  %v8413_v21 = vrot.slane %v8411_v7, 2  ;;  %v16532_v7 = vld [vmem:[#allocation74_spill] sm:$0xff] }
 0x89d   : > { %12282 = vmatmul.msk.bf16.gmra.mxu0 %vm1239_vm1, %v9352_v9  ;;  %v7656_v1 = vpop.f32.mrf.mxu2  ;;  %v8979_v31 = vpop.f32.mrf.mxu3  ;;  %v12660_v9 = vld [vmem:[%s12740_s30 + $0x1c0] sm:$0xff] }
 0x89e   : > { %v10309_v17 = vadd.f32 %v15456_v25, %v10169_v58  ;;  %v7867_v33 = vadd.f32 %v7656_v1, %v6552_v0  ;;  %v6343_v4 = vpop.f32.mrf.mxu1  ;;  %v5877_v58 = vrot.slane %v12660_v9, 2  ;;  %v8417_v1 = vor.u32 %v8416_v42, %v8413_v21  ;;  %v15698_v9 = vld [vmem:[%s12740_s30 + $0x1e0] sm:$0xff] }
 0x89f   : > { %v6553_v54 = vadd.f32 %v6343_v4, %v16528_v40 }
 0x8a0   : > { %v10445_v63 = vmax.f32 %v10309_v17, 0.0  ;;  %v9190_v45 = vadd.f32 %v8979_v31, %v7867_v33  ;;  %v5878_v14 = vsel %vm5769_vm4, %v5875_v38, %v5877_v58 }
 0x8a2   : > { %v10581_v16 = vpack.c.bf16 %v10445_v63, %v10445_v63  ;;  %v10030_v50 = vadd.f32 %v9819_v37, %v9190_v45  ;;  %v9821_v57 = vpop.f32.mrf.mxu0  ;;  %v9355_v63 = vrot.slane %v15646_v30, 3 }
 0x8a4   : > { %10718 = vst.msk [vmem:[%s14498_s21 + $0x154] sm:$0xf] %vm10632_vm7, %v10581_v16  ;;  %v10170_v32 = vmul.f32 %v15449_v60, %v10030_v50 }
 0x8a5   : > { %v7658_v35 = vpop.f32.mrf.mxu2  ;;  %v8981_v34 = vpop.f32.mrf.mxu3 }
 0x8a6   : > { %v10310_v8 = vadd.f32 %v15456_v25, %v10170_v32  ;;  %v7868_v28 = vadd.f32 %v7658_v35, %v6553_v54  ;;  %v6346_v15 = vpop.f32.mrf.mxu1  ;;  %v9356_v35 = vsel %vm9247_vm6, %v9353_v51, %v9355_v63 }
 0x8a7   : > { %v6554_v24 = vadd.f32 %v6346_v15, %v16529_v10  ;;  %v7194_v10 = vrot.slane %v15672_v13, 2 }
 0x8a8   : > { %v10446_v6 = vmax.f32 %v10310_v8, 0.0  ;;  %v9191_v44 = vadd.f32 %v8981_v34, %v7868_v28  ;;  %v8423_v28 = vshll.u32 %v15672_v13, 16 }
 0x8a9   : > { %11793 = vmatmul.msk.bf16.gmra.mxu1 %vm1239_vm1, %v5876_v61  ;;  %v7195_v42 = vsel %vm5769_vm4, %v7192_v29, %v7194_v10  ;;  %v16533_v29 = vld [vmem:[#allocation77_spill] sm:$0xff] }
 0x8aa   : > { %v10582_v53 = vpack.c.bf16 %v10446_v6, %v10446_v6  ;;  %v10031_v3 = vadd.f32 %v9821_v57, %v9191_v44  ;;  %v9824_v26 = vpop.f32.mrf.mxu0  ;;  %12135 = vmatmul.msk.bf16.gmra.mxu2 %vm1239_vm1, %v7191_v11  ;;  %12209 = vmatmul.msk.bf16.gmra.mxu3 %vm1239_vm1, %v8409_v48  ;;  %v8418_v57 = vsel %vm7924_vm5, %v8408_v39, %v8417_v1  ;;  %v8420_v39 = vshrl.u32 %v15672_v13, 16 }
 0x8ab   : > { %v8425_v30 = vrot.slane %v8423_v28, 3 }
 0x8ac   : > { %10719 = vst.msk [vmem:[%s14498_s21 + $0x158] sm:$0xf] %vm10632_vm7, %v10582_v53  ;;  %v10171_v18 = vmul.f32 %v15449_v60, %v10031_v3  ;;  %v8422_v48 = vrot.slane %v8420_v39, 2  ;;  %v16534_v39 = vld [vmem:[#allocation80_spill] sm:$0xff] }
 0x8ad   : > { %12283 = vmatmul.msk.bf16.gmra.mxu0 %vm1239_vm1, %v9354_v43  ;;  %v7661_v47 = vpop.f32.mrf.mxu2  ;;  %v8984_v22 = vpop.f32.mrf.mxu3  ;;  %v12661_v43 = vld [vmem:[%s12740_s30 + $0x1c8] sm:$0xff] }
 0x8ae   : > { %v10311_v52 = vadd.f32 %v15456_v25, %v10171_v18  ;;  %v7869_v62 = vadd.f32 %v7661_v47, %v6554_v24  ;;  %v6348_v23 = vpop.f32.mrf.mxu1  ;;  %v5879_v18 = vrot.slane %v12661_v43, 2  ;;  %v8426_v47 = vor.u32 %v8425_v30, %v8422_v48  ;;  %v15724_v43 = vld [vmem:[%s12740_s30 + $0x1e8] sm:$0xff] }
 0x8af   : > { %v6555_v36 = vadd.f32 %v6348_v23, %v16530_v20 }
 0x8b0   : > { %v10447_v19 = vmax.f32 %v10311_v52, 0.0  ;;  %v9192_v12 = vadd.f32 %v8984_v22, %v7869_v62  ;;  %v5880_v21 = vsel %vm5769_vm4, %v5877_v58, %v5879_v18 }
 0x8b2   : > { %v10583_v27 = vpack.c.bf16 %v10447_v19, %v10447_v19  ;;  %v10032_v46 = vadd.f32 %v9824_v26, %v9192_v12  ;;  %v9826_v37 = vpop.f32.mrf.mxu0  ;;  %v9357_v19 = vrot.slane %v15672_v13, 3 }
 0x8b4   : > { %10720 = vst.msk [vmem:[%s14498_s21 + $0x15c] sm:$0xf] %vm10632_vm7, %v10583_v27  ;;  %v10172_v0 = vmul.f32 %v15449_v60, %v10032_v46 }
 0x8b5   : > { %v7663_v17 = vpop.f32.mrf.mxu2  ;;  %v8986_v4 = vpop.f32.mrf.mxu3 }
 0x8b6   : > { %v10312_v33 = vadd.f32 %v15456_v25, %v10172_v0  ;;  %v7870_v31 = vadd.f32 %v7663_v17, %v6555_v36  ;;  %v6351_v45 = vpop.f32.mrf.mxu1  ;;  %v9358_v17 = vsel %vm9247_vm6, %v9355_v63, %v9357_v19 }
 0x8b7   : > { %v6556_v8 = vadd.f32 %v6351_v45, %v16531_v49  ;;  %v7196_v49 = vrot.slane %v15698_v9, 2 }
 0x8b8   : > { %v10448_v16 = vmax.f32 %v10312_v33, 0.0  ;;  %v9193_v50 = vadd.f32 %v8986_v4, %v7870_v31  ;;  %v8432_v31 = vshll.u32 %v15698_v9, 16 }
 0x8b9   : > { %11794 = vmatmul.msk.bf16.gmra.mxu1 %vm1239_vm1, %v5878_v14  ;;  %v7197_v30 = vsel %vm5769_vm4, %v7194_v10, %v7196_v49  ;;  %v16535_v10 = vld [vmem:[#allocation83_spill] sm:$0xff] }
 0x8ba   : > { %v10584_v32 = vpack.c.bf16 %v10448_v16, %v10448_v16  ;;  %v10033_v40 = vadd.f32 %v9826_v37, %v9193_v50  ;;  %v9829_v54 = vpop.f32.mrf.mxu0  ;;  %12136 = vmatmul.msk.bf16.gmra.mxu2 %vm1239_vm1, %v7193_v2  ;;  %12210 = vmatmul.msk.bf16.gmra.mxu3 %vm1239_vm1, %v8418_v57  ;;  %v8427_v37 = vsel %vm7924_vm5, %v8417_v1, %v8426_v47  ;;  %v8429_v1 = vshrl.u32 %v15698_v9, 16 }
 0x8bb   : > { %v8434_v13 = vrot.slane %v8432_v31, 3 }
 0x8bc   : > { %10721 = vst.msk [vmem:[%s14498_s21 + $0x160] sm:$0xf] %vm10632_vm7, %v10584_v32  ;;  %v10173_v38 = vmul.f32 %v15449_v60, %v10033_v40  ;;  %v8431_v57 = vrot.slane %v8429_v1, 2  ;;  %v16536_v1 = vld [vmem:[#allocation86_spill] sm:$0xff] }
 0x8bd   : > { %12284 = vmatmul.msk.bf16.gmra.mxu0 %vm1239_vm1, %v9356_v35  ;;  %v7666_v34 = vpop.f32.mrf.mxu2  ;;  %v8989_v61 = vpop.f32.mrf.mxu3  ;;  %v12662_v35 = vld [vmem:[%s12740_s30 + $0x1d0] sm:$0xff] }
 0x8be   : > { %v10313_v15 = vadd.f32 %v15456_v25, %v10173_v38  ;;  %v7871_v51 = vadd.f32 %v7666_v34, %v6556_v8  ;;  %v6353_v11 = vpop.f32.mrf.mxu1  ;;  %v5881_v38 = vrot.slane %v12662_v35, 2  ;;  %v8435_v34 = vor.u32 %v8434_v13, %v8431_v57  ;;  %v15750_v35 = vld [vmem:[%s12740_s30 + $0x1f0] sm:$0xff] }
 0x8bf   : > { %v6557_v56 = vadd.f32 %v6353_v11, %v16532_v7 }
 0x8c0   : > { %v10449_v6 = vmax.f32 %v10313_v15, 0.0  ;;  %v9194_v44 = vadd.f32 %v8989_v61, %v7871_v51  ;;  %v5882_v48 = vsel %vm5769_vm4, %v5879_v18, %v5881_v38 }
 0x8c2   : > { %v10585_v53 = vpack.c.bf16 %v10449_v6, %v10449_v6  ;;  %v10034_v3 = vadd.f32 %v9829_v54, %v9194_v44  ;;  %v9831_v26 = vpop.f32.mrf.mxu0  ;;  %v9359_v6 = vrot.slane %v15698_v9, 3 }
 0x8c4   : > { %10722 = vst.msk [vmem:[%s14498_s21 + $0x164] sm:$0xf] %vm10632_vm7, %v10585_v53  ;;  %v10174_v24 = vmul.f32 %v15449_v60, %v10034_v3 }
 0x8c5   : > { %v7668_v52 = vpop.f32.mrf.mxu2  ;;  %v8991_v23 = vpop.f32.mrf.mxu3 }
 0x8c6   : > { %v10314_v62 = vadd.f32 %v15456_v25, %v10174_v24  ;;  %v7872_v22 = vadd.f32 %v7668_v52, %v6557_v56  ;;  %v6356_v12 = vpop.f32.mrf.mxu1  ;;  %v9360_v52 = vsel %vm9247_vm6, %v9357_v19, %v9359_v6 }
 0x8c7   : > { %v6558_v33 = vadd.f32 %v6356_v12, %v16533_v29  ;;  %v7198_v29 = vrot.slane %v15724_v43, 2 }
 0x8c8   : > { %v10450_v27 = vmax.f32 %v10314_v62, 0.0  ;;  %v9195_v46 = vadd.f32 %v8991_v23, %v7872_v22  ;;  %v8441_v22 = vshll.u32 %v15724_v43, 16 }
 0x8c9   : > { %11795 = vmatmul.msk.bf16.gmra.mxu1 %vm1239_vm1, %v5880_v21  ;;  %v7199_v13 = vsel %vm5769_vm4, %v7196_v49, %v7198_v29  ;;  %v16537_v49 = vld [vmem:[#allocation89_spill] sm:$0xff] }
 0x8ca   : > { %v10586_v0 = vpack.c.bf16 %v10450_v27, %v10450_v27  ;;  %v10035_v20 = vadd.f32 %v9831_v26, %v9195_v46  ;;  %v9834_v36 = vpop.f32.mrf.mxu0  ;;  %12137 = vmatmul.msk.bf16.gmra.mxu2 %vm1239_vm1, %v7195_v42  ;;  %12211 = vmatmul.msk.bf16.gmra.mxu3 %vm1239_vm1, %v8427_v37  ;;  %v8436_v26 = vsel %vm7924_vm5, %v8426_v47, %v8435_v34  ;;  %v8438_v47 = vshrl.u32 %v15724_v43, 16 }
 0x8cb   : > { %v8443_v9 = vrot.slane %v8441_v22, 3 }
 0x8cc   : > { %10723 = vst.msk [vmem:[%s14498_s21 + $0x168] sm:$0xf] %vm10632_vm7, %v10586_v0  ;;  %v10175_v58 = vmul.f32 %v15449_v60, %v10035_v20  ;;  %v8440_v37 = vrot.slane %v8438_v47, 2 }
 0x8cd   : > { %12285 = vmatmul.msk.bf16.gmra.mxu0 %vm1239_vm1, %v9358_v17  ;;  %v7671_v4 = vpop.f32.mrf.mxu2  ;;  %v8994_v14 = vpop.f32.mrf.mxu3  ;;  %v12663_v17 = vld [vmem:[%s12740_s30 + $0x1d8] sm:$0xff] }
 0x8ce   : > { %v10315_v45 = vadd.f32 %v15456_v25, %v10175_v58  ;;  %v7873_v63 = vadd.f32 %v7671_v4, %v6558_v33  ;;  %v6358_v2 = vpop.f32.mrf.mxu1  ;;  %v5883_v58 = vrot.slane %v12663_v17, 2  ;;  %v8444_v4 = vor.u32 %v8443_v9, %v8440_v37  ;;  %v15786_v17 = vld [vmem:[%s12740_s30 + $0x1f8] sm:$0xff] }
 0x8cf   : > { %v6559_v28 = vadd.f32 %v6358_v2, %v16534_v39 }
 0x8d0   : > { %v10451_v16 = vmax.f32 %v10315_v45, 0.0  ;;  %v9196_v50 = vadd.f32 %v8994_v14, %v7873_v63  ;;  %v5884_v57 = vsel %vm5769_vm4, %v5881_v38, %v5883_v58 }
 0x8d2   : > { %v10587_v32 = vpack.c.bf16 %v10451_v16, %v10451_v16  ;;  %v10036_v40 = vadd.f32 %v9834_v36, %v9196_v50  ;;  %v9836_v54 = vpop.f32.mrf.mxu0  ;;  %v9361_v16 = vrot.slane %v15724_v43, 3 }
 0x8d4   : > { %10724 = vst.msk [vmem:[%s14498_s21 + $0x16c] sm:$0xf] %vm10632_vm7, %v10587_v32  ;;  %v10176_v8 = vmul.f32 %v15449_v60, %v10036_v40 }
 0x8d5   : > { %v7673_v15 = vpop.f32.mrf.mxu2  ;;  %v8996_v11 = vpop.f32.mrf.mxu3 }
 0x8d6   : > { %v10316_v51 = vadd.f32 %v15456_v25, %v10176_v8  ;;  %v7874_v61 = vadd.f32 %v7673_v15, %v6559_v28  ;;  %v6361_v44 = vpop.f32.mrf.mxu1  ;;  %v9362_v15 = vsel %vm9247_vm6, %v9359_v6, %v9361_v16 }
 0x8d7   : > { %v6560_v62 = vadd.f32 %v6361_v44, %v16535_v10 }
 0x8d8   : > { %v10452_v53 = vmax.f32 %v10316_v51, 0.0  ;;  %v9197_v3 = vadd.f32 %v8996_v11, %v7874_v61  ;;  %v8450_v61 = vshll.u32 %v15750_v35, 16 }
 0x8d9   : > { %11796 = vmatmul.msk.bf16.gmra.mxu1 %vm1239_vm1, %v5882_v48 }
 0x8da   : > { %v10588_v24 = vpack.c.bf16 %v10452_v53, %v10452_v53  ;;  %v10037_v7 = vadd.f32 %v9836_v54, %v9197_v3  ;;  %v9839_v56 = vpop.f32.mrf.mxu0  ;;  %12138 = vmatmul.msk.bf16.gmra.mxu2 %vm1239_vm1, %v7197_v30  ;;  %12212 = vmatmul.msk.bf16.gmra.mxu3 %vm1239_vm1, %v8436_v26  ;;  %v8445_v54 = vsel %vm7924_vm5, %v8435_v34, %v8444_v4  ;;  %v8447_v34 = vshrl.u32 %v15750_v35, 16 }
 0x8dc   : > { %10725 = vst.msk [vmem:[%s14498_s21 + $0x170] sm:$0xf] %vm10632_vm7, %v10588_v24  ;;  %v10177_v18 = vmul.f32 %v15449_v60, %v10037_v7  ;;  %v8449_v26 = vrot.slane %v8447_v34, 2  ;;  %v16540_v34 = vld [vmem:[#allocation98_spill] sm:$0xff] }
 0x8dd   : > { %12286 = vmatmul.msk.bf16.gmra.mxu0 %vm1239_vm1, %v9360_v52  ;;  %v7676_v23 = vpop.f32.mrf.mxu2  ;;  %v8999_v21 = vpop.f32.mrf.mxu3 }
 0x8de   : > { %v10317_v12 = vadd.f32 %v15456_v25, %v10177_v18  ;;  %v7875_v19 = vadd.f32 %v7676_v23, %v6560_v62  ;;  %v6363_v42 = vpop.f32.mrf.mxu1  ;;  %v7200_v18 = vrot.slane %v15750_v35, 2  ;;  %v16538_v62 = vld [vmem:[#allocation92_spill] sm:$0xff] }
 0x8df   : > { %v6561_v31 = vadd.f32 %v6363_v42, %v16536_v1 }
 0x8e0   : > { %v10453_v27 = vmax.f32 %v10317_v12, 0.0  ;;  %v9198_v46 = vadd.f32 %v8999_v21, %v7875_v19  ;;  %v15778_v12 = vld [vmem:[%s16157_s3] ss:$0 sm:$0xff]  ;;  %v7201_v9 = vsel %vm5769_vm4, %v7198_v29, %v7200_v18  ;;  %v16539_v29 = vld [vmem:[#allocation95_spill] sm:$0xff] }
 0x8e2   : > { %v10589_v0 = vpack.c.bf16 %v10453_v27, %v10453_v27  ;;  %v10038_v20 = vadd.f32 %v9839_v56, %v9198_v46  ;;  %v9841_v36 = vpop.f32.mrf.mxu0  ;;  %v12664_v56 = vld [vmem:[%s12740_s30 + $0x1e0] sm:$0xff]  ;;  %v9363_v27 = vrot.slane %v15750_v35, 3 }
 0x8e3   : > { %v5885_v52 = vrot.slane %v12664_v56, 2  ;;  %v15812_v56 = vld [vmem:[%s12740_s30 + $0x200] sm:$0xff] }
 0x8e4   : > { %10726 = vst.msk [vmem:[%s14498_s21 + $0x174] sm:$0xf] %vm10632_vm7, %v10589_v0  ;;  %v10178_v33 = vmul.f32 %v15449_v60, %v10038_v20 }
 0x8e5   : > { %v7678_v45 = vpop.f32.mrf.mxu2  ;;  %v9001_v2 = vpop.f32.mrf.mxu3  ;;  %v5886_v37 = vsel %vm5769_vm4, %v5883_v58, %v5885_v52 }
 0x8e6   : > { %v10318_v63 = vadd.f32 %v15456_v25, %v10178_v33  ;;  %v7876_v14 = vadd.f32 %v7678_v45, %v6561_v31  ;;  %v6366_v50 = vpop.f32.mrf.mxu1  ;;  %v9364_v45 = vsel %vm9247_vm6, %v9361_v16, %v9363_v27 }
 0x8e7   : > { %v6562_v51 = vadd.f32 %v6366_v50, %v16537_v49  ;;  %v7202_v49 = vrot.slane %v15786_v17, 2 }
 0x8e8   : > { %v10454_v32 = vmax.f32 %v10318_v63, 0.0  ;;  %v9199_v40 = vadd.f32 %v9001_v2, %v7876_v14  ;;  %v8459_v14 = vshll.u32 %v15786_v17, 16 }
 0x8e9   : > { %11797 = vmatmul.msk.bf16.gmra.mxu1 %vm1239_vm1, %v5884_v57 }
 0x8ea   : > { %v10590_v8 = vpack.c.bf16 %v10454_v32, %v10454_v32  ;;  %v10039_v39 = vadd.f32 %v9841_v36, %v9199_v40  ;;  %v9844_v28 = vpop.f32.mrf.mxu0  ;;  %12139 = vmatmul.msk.bf16.gmra.mxu2 %vm1239_vm1, %v7199_v13  ;;  %12213 = vmatmul.msk.bf16.gmra.mxu3 %vm1239_vm1, %v8445_v54  ;;  %v8461_v35 = vrot.slane %v8459_v14, 3 }
 0x8ec   : > { %10727 = vst.msk [vmem:[%s14498_s21 + $0x178] sm:$0xf] %vm10632_vm7, %v10590_v8  ;;  %v10179_v38 = vmul.f32 %v15449_v60, %v10039_v39  ;;  %v8452_v60 = vrot.slane %v8450_v61, 3 }
 0x8ed   : > { %12287 = vmatmul.msk.bf16.gmra.mxu0 %vm1239_vm1, %v9362_v15  ;;  %v7681_v11 = vpop.f32.mrf.mxu2  ;;  %v9004_v48 = vpop.f32.mrf.mxu3  ;;  %v12667_v15 = vld [vmem:[%s12740_s30 + $0x1e8] sm:$0xff] }
 0x8ee   : > { %v10319_v44 = vadd.f32 %v15456_v25, %v10179_v38  ;;  %v7877_v6 = vadd.f32 %v7681_v11, %v6562_v51  ;;  %v6368_v30 = vpop.f32.mrf.mxu1  ;;  %v15771_v25 = vld [vmem:[%s16156_s2] ss:$0 sm:$0xff]  ;;  %v8453_v22 = vor.u32 %v8452_v60, %v8449_v26  ;;  %v5887_v38 = vrot.slane %v12667_v15, 2  ;;  %v15838_v15 = vld [vmem:[%s12740_s30 + $0x208] sm:$0xff] }
 0x8ef   : > { %v6563_v47 = vadd.f32 %v6368_v30, %v16538_v62  ;;  %v7203_v60 = vsel %vm5769_vm4, %v7200_v18, %v7202_v49  ;;  %v16541_v18 = vld [vmem:[#allocation101_spill] sm:$0xff] }
 0x8f0   : > { %v10455_v53 = vmax.f32 %v10319_v44, 0.0  ;;  %v9200_v3 = vadd.f32 %v9004_v48, %v7877_v6  ;;  %v8454_v36 = vsel %vm7924_vm5, %v8444_v4, %v8453_v22  ;;  %v8456_v4 = vshrl.u32 %v15786_v17, 16 }
 0x8f1   : > { %v5888_v26 = vsel %vm5769_vm4, %v5885_v52, %v5887_v38 }
 0x8f2   : > { %v10591_v43 = vpack.c.bf16 %v10455_v53, %v10455_v53  ;;  %v10040_v24 = vadd.f32 %v9844_v28, %v9200_v3  ;;  %v9846_v7 = vpop.f32.mrf.mxu0  ;;  %v8458_v54 = vrot.slane %v8456_v4, 2  ;;  %v9365_v53 = vrot.slane %v15786_v17, 3  ;;  %v16542_v4 = vld [vmem:[#allocation105_spill] sm:$0xff] }
 0x8f4   : > { %10728 = vst.msk [vmem:[%s14498_s21 + $0x17c] sm:$0xf] %vm10632_vm7, %v10591_v43  ;;  %v10180_v10 = vmul.f32 %v15771_v25, %v10040_v24  ;;  %v8462_v11 = vor.u32 %v8461_v35, %v8458_v54 }
 0x8f5   : > { %v7683_v23 = vpop.f32.mrf.mxu2  ;;  %v9006_v42 = vpop.f32.mrf.mxu3 }
 0x8f6   : > { %v10320_v19 = vadd.f32 %v15778_v12, %v10180_v10  ;;  %v7878_v21 = vadd.f32 %v7683_v23, %v6563_v47  ;;  %v6371_v46 = vpop.f32.mrf.mxu1  ;;  %v9366_v23 = vsel %vm9247_vm6, %v9363_v27, %v9365_v53 }
 0x8f7   : > { %v6564_v63 = vadd.f32 %v6371_v46, %v16539_v29  ;;  %v7204_v29 = vrot.slane %v15812_v56, 2 }
 0x8f8   : > { %v10456_v0 = vmax.f32 %v10320_v19, 0.0  ;;  %v9201_v20 = vadd.f32 %v9006_v42, %v7878_v21  ;;  %v8468_v21 = vshll.u32 %v15812_v56, 16 }
 0x8f9   : > { %11798 = vmatmul.msk.bf16.gmra.mxu1 %vm1239_vm1, %v5886_v37  ;;  %v7205_v35 = vsel %vm5769_vm4, %v7202_v49, %v7204_v29  ;;  %v16543_v49 = vld [vmem:[#allocation4_spill] sm:$0xff] }
 0x8fa   : > { %v10592_v33 = vpack.c.bf16 %v10456_v0, %v10456_v0  ;;  %v10041_v1 = vadd.f32 %v9846_v7, %v9201_v20  ;;  %v9849_v31 = vpop.f32.mrf.mxu0  ;;  %12140 = vmatmul.msk.bf16.gmra.mxu2 %vm1239_vm1, %v7201_v9  ;;  %12214 = vmatmul.msk.bf16.gmra.mxu3 %vm1239_vm1, %v8454_v36  ;;  %v8463_v7 = vsel %vm7924_vm5, %v8453_v22, %v8462_v11  ;;  %v8465_v22 = vshrl.u32 %v15812_v56, 16 }
 0x8fb   : > { %v8470_v17 = vrot.slane %v8468_v21, 3 }
 0x8fc   : > { %10729 = vst.msk [vmem:[%s14498_s21 + $0x180] sm:$0xf] %vm10632_vm7, %v10592_v33  ;;  %v10181_v58 = vmul.f32 %v15771_v25, %v10041_v1  ;;  %v8467_v36 = vrot.slane %v8465_v22, 2  ;;  %v16544_v22 = vld [vmem:[#allocation7_spill] sm:$0xff] }
 0x8fd   : > { %12288 = vmatmul.msk.bf16.gmra.mxu0 %vm1239_vm1, %v9364_v45  ;;  %v7686_v2 = vpop.f32.mrf.mxu2  ;;  %v9009_v57 = vpop.f32.mrf.mxu3  ;;  %v12668_v45 = vld [vmem:[%s12740_s30 + $0x1f0] sm:$0xff] }
 0x8fe   : > { %v10321_v50 = vadd.f32 %v15778_v12, %v10181_v58  ;;  %v7879_v16 = vadd.f32 %v7686_v2, %v6564_v63  ;;  %v6373_v13 = vpop.f32.mrf.mxu1  ;;  %v5889_v58 = vrot.slane %v12668_v45, 2  ;;  %v8471_v2 = vor.u32 %v8470_v17, %v8467_v36  ;;  %v15864_v45 = vld [vmem:[%s12740_s30 + $0x210] sm:$0xff] }
 0x8ff   : > { %v6565_v61 = vadd.f32 %v6373_v13, %v16540_v34 }
 0x900   : > { %v10457_v32 = vmax.f32 %v10321_v50, 0.0  ;;  %v9202_v40 = vadd.f32 %v9009_v57, %v7879_v16  ;;  %v5890_v54 = vsel %vm5769_vm4, %v5887_v38, %v5889_v58 }
 0x902   : > { %v10593_v8 = vpack.c.bf16 %v10457_v32, %v10457_v32  ;;  %v10042_v39 = vadd.f32 %v9849_v31, %v9202_v40  ;;  %v9851_v28 = vpop.f32.mrf.mxu0  ;;  %v9367_v32 = vrot.slane %v15812_v56, 3 }
 0x904   : > { %10730 = vst.msk [vmem:[%s14498_s21 + $0x184] sm:$0xf] %vm10632_vm7, %v10593_v8  ;;  %v10182_v51 = vmul.f32 %v15771_v25, %v10042_v39 }
 0x905   : > { %v7688_v44 = vpop.f32.mrf.mxu2  ;;  %v9011_v30 = vpop.f32.mrf.mxu3 }
 0x906   : > { %v10322_v6 = vadd.f32 %v15778_v12, %v10182_v51  ;;  %v7880_v48 = vadd.f32 %v7688_v44, %v6565_v61  ;;  %v6376_v3 = vpop.f32.mrf.mxu1  ;;  %v9368_v44 = vsel %vm9247_vm6, %v9365_v53, %v9367_v32 }
 0x907   : > { %v6566_v19 = vadd.f32 %v6376_v3, %v16541_v18  ;;  %v7206_v18 = vrot.slane %v15838_v15, 2 }
 0x908   : > { %v10458_v43 = vmax.f32 %v10322_v6, 0.0  ;;  %v9203_v24 = vadd.f32 %v9011_v30, %v7880_v48  ;;  %v8477_v48 = vshll.u32 %v15838_v15, 16 }
 0x909   : > { %11799 = vmatmul.msk.bf16.gmra.mxu1 %vm1239_vm1, %v5888_v26  ;;  %v7207_v17 = vsel %vm5769_vm4, %v7204_v29, %v7206_v18  ;;  %v16545_v29 = vld [vmem:[#allocation10_spill] sm:$0xff] }
 0x90a   : > { %v10594_v10 = vpack.c.bf16 %v10458_v43, %v10458_v43  ;;  %v10043_v62 = vadd.f32 %v9851_v28, %v9203_v24  ;;  %v9854_v47 = vpop.f32.mrf.mxu0  ;;  %12141 = vmatmul.msk.bf16.gmra.mxu2 %vm1239_vm1, %v7203_v60  ;;  %12215 = vmatmul.msk.bf16.gmra.mxu3 %vm1239_vm1, %v8463_v7  ;;  %v8472_v28 = vsel %vm7924_vm5, %v8462_v11, %v8471_v2  ;;  %v8474_v11 = vshrl.u32 %v15838_v15, 16 }
 0x90b   : > { %v8479_v56 = vrot.slane %v8477_v48, 3 }
 0x90c   : > { %10731 = vst.msk [vmem:[%s14498_s21 + $0x188] sm:$0xf] %vm10632_vm7, %v10594_v10  ;;  %v10183_v52 = vmul.f32 %v15771_v25, %v10043_v62  ;;  %v8476_v7 = vrot.slane %v8474_v11, 2  ;;  %v16546_v11 = vld [vmem:[#allocation13_spill] sm:$0xff] }
 0x90d   : > { %12289 = vmatmul.msk.bf16.gmra.mxu0 %vm1239_vm1, %v9366_v23  ;;  %v7691_v42 = vpop.f32.mrf.mxu2  ;;  %v9014_v37 = vpop.f32.mrf.mxu3  ;;  %v12669_v23 = vld [vmem:[%s12740_s30 + $0x1f8] sm:$0xff] }
 0x90e   : > { %v10323_v46 = vadd.f32 %v15778_v12, %v10183_v52  ;;  %v7881_v27 = vadd.f32 %v7691_v42, %v6566_v19  ;;  %v6378_v9 = vpop.f32.mrf.mxu1  ;;  %v5891_v52 = vrot.slane %v12669_v23, 2  ;;  %v8480_v42 = vor.u32 %v8479_v56, %v8476_v7  ;;  %v15890_v23 = vld [vmem:[%s12740_s30 + $0x218] sm:$0xff] }
 0x90f   : > { %v6567_v14 = vadd.f32 %v6378_v9, %v16542_v4 }
 0x910   : > { %v10459_v0 = vmax.f32 %v10323_v46, 0.0  ;;  %v9204_v20 = vadd.f32 %v9014_v37, %v7881_v27  ;;  %v5892_v36 = vsel %vm5769_vm4, %v5889_v58, %v5891_v52 }
 0x912   : > { %v10595_v33 = vpack.c.bf16 %v10459_v0, %v10459_v0  ;;  %v10044_v1 = vadd.f32 %v9854_v47, %v9204_v20  ;;  %v9856_v31 = vpop.f32.mrf.mxu0  ;;  %v9369_v0 = vrot.slane %v15838_v15, 3 }
 0x914   : > { %10732 = vst.msk [vmem:[%s14498_s21 + $0x18c] sm:$0xf] %vm10632_vm7, %v10595_v33  ;;  %v10184_v63 = vmul.f32 %v15771_v25, %v10044_v1 }
 0x915   : > { %v7693_v50 = vpop.f32.mrf.mxu2  ;;  %v9016_v13 = vpop.f32.mrf.mxu3 }
 0x916   : > { %v10324_v16 = vadd.f32 %v15778_v12, %v10184_v63  ;;  %v7882_v57 = vadd.f32 %v7693_v50, %v6567_v14  ;;  %v6381_v40 = vpop.f32.mrf.mxu1  ;;  %v9370_v50 = vsel %vm9247_vm6, %v9367_v32, %v9369_v0 }
 0x917   : > { %v6568_v6 = vadd.f32 %v6381_v40, %v16543_v49  ;;  %v7208_v49 = vrot.slane %v15864_v45, 2 }
 0x918   : > { %v10460_v8 = vmax.f32 %v10324_v16, 0.0  ;;  %v9205_v39 = vadd.f32 %v9016_v13, %v7882_v57  ;;  %v8486_v57 = vshll.u32 %v15864_v45, 16 }
 0x919   : > { %11800 = vmatmul.msk.bf16.gmra.mxu1 %vm1239_vm1, %v5890_v54  ;;  %v7209_v56 = vsel %vm5769_vm4, %v7206_v18, %v7208_v49  ;;  %v16547_v18 = vld [vmem:[#allocation16_spill] sm:$0xff] }
 0x91a   : > { %v10596_v51 = vpack.c.bf16 %v10460_v8, %v10460_v8  ;;  %v10045_v34 = vadd.f32 %v9856_v31, %v9205_v39  ;;  %v9859_v61 = vpop.f32.mrf.mxu0  ;;  %12142 = vmatmul.msk.bf16.gmra.mxu2 %vm1239_vm1, %v7205_v35  ;;  %12216 = vmatmul.msk.bf16.gmra.mxu3 %vm1239_vm1, %v8472_v28  ;;  %v8481_v31 = vsel %vm7924_vm5, %v8471_v2, %v8480_v42  ;;  %v8483_v2 = vshrl.u32 %v15864_v45, 16 }
 0x91b   : > { %v8488_v15 = vrot.slane %v8486_v57, 3 }
 0x91c   : > { %10733 = vst.msk [vmem:[%s14498_s21 + $0x190] sm:$0xf] %vm10632_vm7, %v10596_v51  ;;  %v10185_v38 = vmul.f32 %v15771_v25, %v10045_v34  ;;  %v8485_v28 = vrot.slane %v8483_v2, 2  ;;  %v16548_v2 = vld [vmem:[#allocation19_spill] sm:$0xff] }
 0x91d   : > { %12290 = vmatmul.msk.bf16.gmra.mxu0 %vm1239_vm1, %v9368_v44  ;;  %v7696_v30 = vpop.f32.mrf.mxu2  ;;  %v9019_v26 = vpop.f32.mrf.mxu3  ;;  %v12670_v44 = vld [vmem:[%s12740_s30 + $0x200] sm:$0xff] }
 0x91e   : > { %v10325_v3 = vadd.f32 %v15778_v12, %v10185_v38  ;;  %v7883_v53 = vadd.f32 %v7696_v30, %v6568_v6  ;;  %v6383_v60 = vpop.f32.mrf.mxu1  ;;  %v5893_v38 = vrot.slane %v12670_v44, 2  ;;  %v8489_v30 = vor.u32 %v8488_v15, %v8485_v28  ;;  %v15916_v44 = vld [vmem:[%s12740_s30 + $0x220] sm:$0xff] }
 0x91f   : > { %v6569_v21 = vadd.f32 %v6383_v60, %v16544_v22 }
 0x920   : > { %v10461_v43 = vmax.f32 %v10325_v3, 0.0  ;;  %v9206_v24 = vadd.f32 %v9019_v26, %v7883_v53  ;;  %v5894_v7 = vsel %vm5769_vm4, %v5891_v52, %v5893_v38 }
 0x922   : > { %v10597_v10 = vpack.c.bf16 %v10461_v43, %v10461_v43  ;;  %v10046_v62 = vadd.f32 %v9859_v61, %v9206_v24  ;;  %v9861_v47 = vpop.f32.mrf.mxu0  ;;  %v9371_v43 = vrot.slane %v15864_v45, 3 }
 0x924   : > { %10734 = vst.msk [vmem:[%s14498_s21 + $0x194] sm:$0xf] %vm10632_vm7, %v10597_v10  ;;  %v10186_v19 = vmul.f32 %v15771_v25, %v10046_v62 }
 0x925   : > { %v7698_v46 = vpop.f32.mrf.mxu2  ;;  %v9021_v9 = vpop.f32.mrf.mxu3 }
 0x926   : > { %v10326_v27 = vadd.f32 %v15778_v12, %v10186_v19  ;;  %v7884_v37 = vadd.f32 %v7698_v46, %v6569_v21  ;;  %v6386_v20 = vpop.f32.mrf.mxu1  ;;  %v9372_v46 = vsel %vm9247_vm6, %v9369_v0, %v9371_v43 }
 0x927   : > { %v6570_v16 = vadd.f32 %v6386_v20, %v16545_v29  ;;  %v7210_v29 = vrot.slane %v15890_v23, 2 }
 0x928   : > { %v10462_v33 = vmax.f32 %v10326_v27, 0.0  ;;  %v9207_v1 = vadd.f32 %v9021_v9, %v7884_v37  ;;  %v8495_v37 = vshll.u32 %v15890_v23, 16 }
 0x929   : > { %11801 = vmatmul.msk.bf16.gmra.mxu1 %vm1239_vm1, %v5892_v36  ;;  %v7211_v15 = vsel %vm5769_vm4, %v7208_v49, %v7210_v29  ;;  %v16549_v49 = vld [vmem:[#allocation22_spill] sm:$0xff] }
 0x92a   : > { %v10598_v63 = vpack.c.bf16 %v10462_v33, %v10462_v33  ;;  %v10047_v4 = vadd.f32 %v9861_v47, %v9207_v1  ;;  %v9864_v14 = vpop.f32.mrf.mxu0  ;;  %12143 = vmatmul.msk.bf16.gmra.mxu2 %vm1239_vm1, %v7207_v17  ;;  %12217 = vmatmul.msk.bf16.gmra.mxu3 %vm1239_vm1, %v8481_v31  ;;  %v8490_v47 = vsel %vm7924_vm5, %v8480_v42, %v8489_v30  ;;  %v8492_v42 = vshrl.u32 %v15890_v23, 16 }
 0x92b   : > { %v8497_v45 = vrot.slane %v8495_v37, 3 }
 0x92c   : > { %10735 = vst.msk [vmem:[%s14498_s21 + $0x198] sm:$0xf] %vm10632_vm7, %v10598_v63  ;;  %v10187_v58 = vmul.f32 %v15771_v25, %v10047_v4  ;;  %v8494_v31 = vrot.slane %v8492_v42, 2  ;;  %v16550_v42 = vld [vmem:[#allocation25_spill] sm:$0xff] }
 0x92d   : > { %12291 = vmatmul.msk.bf16.gmra.mxu0 %vm1239_vm1, %v9370_v50  ;;  %v7701_v13 = vpop.f32.mrf.mxu2  ;;  %v9024_v54 = vpop.f32.mrf.mxu3  ;;  %v12671_v50 = vld [vmem:[%s12740_s30 + $0x208] sm:$0xff] }
 0x92e   : > { %v10327_v40 = vadd.f32 %v15778_v12, %v10187_v58  ;;  %v7885_v32 = vadd.f32 %v7701_v13, %v6570_v16  ;;  %v6388_v35 = vpop.f32.mrf.mxu1  ;;  %v5895_v58 = vrot.slane %v12671_v50, 2  ;;  %v8498_v13 = vor.u32 %v8497_v45, %v8494_v31  ;;  %v15942_v50 = vld [vmem:[%s12740_s30 + $0x228] sm:$0xff] }
 0x92f   : > { %v6571_v48 = vadd.f32 %v6388_v35, %v16546_v11 }
 0x930   : > { %v10463_v8 = vmax.f32 %v10327_v40, 0.0  ;;  %v9208_v39 = vadd.f32 %v9024_v54, %v7885_v32  ;;  %v5896_v28 = vsel %vm5769_vm4, %v5893_v38, %v5895_v58 }
 0x932   : > { %v10599_v51 = vpack.c.bf16 %v10463_v8, %v10463_v8  ;;  %v10048_v34 = vadd.f32 %v9864_v14, %v9208_v39  ;;  %v9866_v61 = vpop.f32.mrf.mxu0  ;;  %v9373_v8 = vrot.slane %v15890_v23, 3 }
 0x934   : > { %10736 = vst.msk [vmem:[%s14498_s21 + $0x19c] sm:$0xf] %vm10632_vm7, %v10599_v51  ;;  %v10188_v6 = vmul.f32 %v15771_v25, %v10048_v34 }
 0x935   : > { %v7703_v3 = vpop.f32.mrf.mxu2  ;;  %v9026_v60 = vpop.f32.mrf.mxu3 }
 0x936   : > { %v10328_v53 = vadd.f32 %v15778_v12, %v10188_v6  ;;  %v7886_v26 = vadd.f32 %v7703_v3, %v6571_v48  ;;  %v6391_v24 = vpop.f32.mrf.mxu1  ;;  %v9374_v3 = vsel %vm9247_vm6, %v9371_v43, %v9373_v8 }
 0x937   : > { %v6572_v27 = vadd.f32 %v6391_v24, %v16547_v18  ;;  %v7212_v18 = vrot.slane %v15916_v44, 2 }
 0x938   : > { %v10464_v10 = vmax.f32 %v10328_v53, 0.0  ;;  %v9209_v62 = vadd.f32 %v9026_v60, %v7886_v26  ;;  %v8504_v26 = vshll.u32 %v15916_v44, 16 }
 0x939   : > { %11802 = vmatmul.msk.bf16.gmra.mxu1 %vm1239_vm1, %v5894_v7  ;;  %v7213_v45 = vsel %vm5769_vm4, %v7210_v29, %v7212_v18  ;;  %v16551_v29 = vld [vmem:[#allocation28_spill] sm:$0xff] }
 0x93a   : > { %v10600_v19 = vpack.c.bf16 %v10464_v10, %v10464_v10  ;;  %v10049_v22 = vadd.f32 %v9866_v61, %v9209_v62  ;;  %v9869_v21 = vpop.f32.mrf.mxu0  ;;  %12144 = vmatmul.msk.bf16.gmra.mxu2 %vm1239_vm1, %v7209_v56  ;;  %12218 = vmatmul.msk.bf16.gmra.mxu3 %vm1239_vm1, %v8490_v47  ;;  %v8499_v61 = vsel %vm7924_vm5, %v8489_v30, %v8498_v13  ;;  %v8501_v30 = vshrl.u32 %v15916_v44, 16 }
 0x93b   : > { %v8506_v23 = vrot.slane %v8504_v26, 3 }
 0x93c   : > { %10737 = vst.msk [vmem:[%s14498_s21 + $0x1a0] sm:$0xf] %vm10632_vm7, %v10600_v19  ;;  %v10189_v52 = vmul.f32 %v15771_v25, %v10049_v22  ;;  %v8503_v47 = vrot.slane %v8501_v30, 2  ;;  %v16552_v30 = vld [vmem:[#allocation31_spill] sm:$0xff] }
 0x93d   : > { %12292 = vmatmul.msk.bf16.gmra.mxu0 %vm1239_vm1, %v9372_v46  ;;  %v7706_v9 = vpop.f32.mrf.mxu2  ;;  %v9029_v36 = vpop.f32.mrf.mxu3  ;;  %v12672_v46 = vld [vmem:[%s12740_s30 + $0x210] sm:$0xff] }
 0x93e   : > { %v10329_v20 = vadd.f32 %v15778_v12, %v10189_v52  ;;  %v7887_v0 = vadd.f32 %v7706_v9, %v6572_v27  ;;  %v6393_v17 = vpop.f32.mrf.mxu1  ;;  %v5897_v52 = vrot.slane %v12672_v46, 2  ;;  %v8507_v9 = vor.u32 %v8506_v23, %v8503_v47  ;;  %v15968_v46 = vld [vmem:[%s12740_s30 + $0x230] sm:$0xff] }
 0x93f   : > { %v6573_v57 = vadd.f32 %v6393_v17, %v16548_v2 }
 0x940   : > { %v10465_v33 = vmax.f32 %v10329_v20, 0.0  ;;  %v9210_v1 = vadd.f32 %v9029_v36, %v7887_v0  ;;  %v5898_v31 = vsel %vm5769_vm4, %v5895_v58, %v5897_v52 }
 0x942   : > { %v10601_v63 = vpack.c.bf16 %v10465_v33, %v10465_v33  ;;  %v10050_v4 = vadd.f32 %v9869_v21, %v9210_v1  ;;  %v9871_v14 = vpop.f32.mrf.mxu0  ;;  %v9375_v33 = vrot.slane %v15916_v44, 3 }
 0x944   : > { %10738 = vst.msk [vmem:[%s14498_s21 + $0x1a4] sm:$0xf] %vm10632_vm7, %v10601_v63  ;;  %v10190_v16 = vmul.f32 %v15771_v25, %v10050_v4 }
 0x945   : > { %v7708_v40 = vpop.f32.mrf.mxu2  ;;  %v9031_v35 = vpop.f32.mrf.mxu3 }
 0x946   : > { %v10330_v32 = vadd.f32 %v15778_v12, %v10190_v16  ;;  %v7888_v54 = vadd.f32 %v7708_v40, %v6573_v57  ;;  %v6396_v39 = vpop.f32.mrf.mxu1  ;;  %v9376_v40 = vsel %vm9247_vm6, %v9373_v8, %v9375_v33 }
 0x947   : > { %v6574_v53 = vadd.f32 %v6396_v39, %v16549_v49  ;;  %v7214_v49 = vrot.slane %v15942_v50, 2 }
 0x948   : > { %v10466_v51 = vmax.f32 %v10330_v32, 0.0  ;;  %v9211_v34 = vadd.f32 %v9031_v35, %v7888_v54  ;;  %v8513_v54 = vshll.u32 %v15942_v50, 16 }
 0x949   : > { %11803 = vmatmul.msk.bf16.gmra.mxu1 %vm1239_vm1, %v5896_v28  ;;  %v7215_v23 = vsel %vm5769_vm4, %v7212_v18, %v7214_v49  ;;  %v16553_v18 = vld [vmem:[#allocation34_spill] sm:$0xff] }
 0x94a   : > { %v10602_v6 = vpack.c.bf16 %v10466_v51, %v10466_v51  ;;  %v10051_v11 = vadd.f32 %v9871_v14, %v9211_v34  ;;  %v9874_v48 = vpop.f32.mrf.mxu0  ;;  %12145 = vmatmul.msk.bf16.gmra.mxu2 %vm1239_vm1, %v7211_v15  ;;  %12219 = vmatmul.msk.bf16.gmra.mxu3 %vm1239_vm1, %v8499_v61  ;;  %v8508_v14 = vsel %vm7924_vm5, %v8498_v13, %v8507_v9  ;;  %v8510_v13 = vshrl.u32 %v15942_v50, 16 }
 0x94b   : > { %v8515_v44 = vrot.slane %v8513_v54, 3 }
 0x94c   : > { %10739 = vst.msk [vmem:[%s14498_s21 + $0x1a8] sm:$0xf] %vm10632_vm7, %v10602_v6  ;;  %v10191_v38 = vmul.f32 %v15771_v25, %v10051_v11  ;;  %v8512_v61 = vrot.slane %v8510_v13, 2  ;;  %v16554_v13 = vld [vmem:[#allocation37_spill] sm:$0xff] }
 0x94d   : > { %12293 = vmatmul.msk.bf16.gmra.mxu0 %vm1239_vm1, %v9374_v3  ;;  %v7711_v60 = vpop.f32.mrf.mxu2  ;;  %v9034_v7 = vpop.f32.mrf.mxu3  ;;  %v12673_v3 = vld [vmem:[%s12740_s30 + $0x218] sm:$0xff] }
 0x94e   : > { %v10331_v24 = vadd.f32 %v15778_v12, %v10191_v38  ;;  %v7889_v43 = vadd.f32 %v7711_v60, %v6574_v53  ;;  %v6398_v56 = vpop.f32.mrf.mxu1  ;;  %v5899_v38 = vrot.slane %v12673_v3, 2  ;;  %v8516_v60 = vor.u32 %v8515_v44, %v8512_v61  ;;  %v15994_v3 = vld [vmem:[%s12740_s30 + $0x238] sm:$0xff] }
 0x94f   : > { %v6575_v37 = vadd.f32 %v6398_v56, %v16550_v42 }
 0x950   : > { %v10467_v10 = vmax.f32 %v10331_v24, 0.0  ;;  %v9212_v62 = vadd.f32 %v9034_v7, %v7889_v43  ;;  %v5900_v47 = vsel %vm5769_vm4, %v5897_v52, %v5899_v38 }
 0x952   : > { %v10603_v19 = vpack.c.bf16 %v10467_v10, %v10467_v10  ;;  %v10052_v22 = vadd.f32 %v9874_v48, %v9212_v62  ;;  %v9876_v21 = vpop.f32.mrf.mxu0  ;;  %v9377_v10 = vrot.slane %v15942_v50, 3 }
 0x954   : > { %10740 = vst.msk [vmem:[%s14498_s21 + $0x1ac] sm:$0xf] %vm10632_vm7, %v10603_v19  ;;  %v10192_v27 = vmul.f32 %v15771_v25, %v10052_v22 }
 0x955   : > { %v7713_v20 = vpop.f32.mrf.mxu2  ;;  %v9036_v17 = vpop.f32.mrf.mxu3 }
 0x956   : > { %v10332_v0 = vadd.f32 %v15778_v12, %v10192_v27  ;;  %v7890_v36 = vadd.f32 %v7713_v20, %v6575_v37  ;;  %v6401_v1 = vpop.f32.mrf.mxu1  ;;  %v9378_v20 = vsel %vm9247_vm6, %v9375_v33, %v9377_v10 }
 0x957   : > { %v6576_v32 = vadd.f32 %v6401_v1, %v16551_v29  ;;  %v7216_v29 = vrot.slane %v15968_v46, 2 }
 0x958   : > { %v10468_v63 = vmax.f32 %v10332_v0, 0.0  ;;  %v9213_v4 = vadd.f32 %v9036_v17, %v7890_v36  ;;  %v8522_v36 = vshll.u32 %v15968_v46, 16 }
 0x959   : > { %11804 = vmatmul.msk.bf16.gmra.mxu1 %vm1239_vm1, %v5898_v31  ;;  %v7217_v44 = vsel %vm5769_vm4, %v7214_v49, %v7216_v29  ;;  %v16555_v49 = vld [vmem:[#allocation40_spill] sm:$0xff] }
 0x95a   : > { %v10604_v16 = vpack.c.bf16 %v10468_v63, %v10468_v63  ;;  %v10053_v2 = vadd.f32 %v9876_v21, %v9213_v4  ;;  %v9879_v57 = vpop.f32.mrf.mxu0  ;;  %12146 = vmatmul.msk.bf16.gmra.mxu2 %vm1239_vm1, %v7213_v45  ;;  %12220 = vmatmul.msk.bf16.gmra.mxu3 %vm1239_vm1, %v8508_v14  ;;  %v8517_v21 = vsel %vm7924_vm5, %v8507_v9, %v8516_v60  ;;  %v8519_v9 = vshrl.u32 %v15968_v46, 16 }
 0x95b   : > { %v8524_v50 = vrot.slane %v8522_v36, 3  ;;  %v16556_v36 = vld [vmem:[#allocation107_spill] sm:$0xff] }
 0x95c   : > { %10741 = vst.msk [vmem:[%s14498_s21 + $0x1b0] sm:$0xf] %vm10632_vm7, %v10604_v16  ;;  %v10193_v58 = vmul.f32 %v15771_v25, %v10053_v2  ;;  %v8521_v14 = vrot.slane %v8519_v9, 2 }
 0x95d   : > { %12294 = vmatmul.msk.bf16.gmra.mxu0 %vm1239_vm1, %v9376_v40  ;;  %v7716_v35 = vpop.f32.mrf.mxu2  ;;  %v9039_v28 = vpop.f32.mrf.mxu3  ;;  %v12674_v40 = vld [vmem:[%s12740_s30 + $0x220] sm:$0xff] }
 0x95e   : > { %v10333_v39 = vadd.f32 %v15778_v12, %v10193_v58  ;;  %v7891_v8 = vadd.f32 %v7716_v35, %v6576_v32  ;;  %v6403_v15 = vpop.f32.mrf.mxu1  ;;  %v5901_v58 = vrot.slane %v12674_v40, 2  ;;  %v8525_v35 = vor.u32 %v8524_v50, %v8521_v14 }
 0x95f   : > { %v6577_v26 = vadd.f32 %v6403_v15, %v16552_v30  ;;  %v9381_v14 = vrot.slane %v15994_v3, 3 }
 0x960   : > { %v10469_v51 = vmax.f32 %v10333_v39, 0.0  ;;  %v9214_v34 = vadd.f32 %v9039_v28, %v7891_v8  ;;  %v5902_v61 = vsel %vm5769_vm4, %v5899_v38, %v5901_v58 }
 0x962   : > { %v10605_v6 = vpack.c.bf16 %v10469_v51, %v10469_v51  ;;  %v10054_v11 = vadd.f32 %v9879_v57, %v9214_v34  ;;  %v9881_v48 = vpop.f32.mrf.mxu0  ;;  %v9379_v51 = vrot.slane %v15968_v46, 3 }
 0x964   : > { %10742 = vst.msk [vmem:[%s14498_s21 + $0x1b4] sm:$0xf] %vm10632_vm7, %v10605_v6  ;;  %v10194_v53 = vmul.f32 %v15771_v25, %v10054_v11 }
 0x965   : > { %v7718_v24 = vpop.f32.mrf.mxu2  ;;  %v9041_v56 = vpop.f32.mrf.mxu3 }
 0x966   : > { %v10334_v43 = vadd.f32 %v15778_v12, %v10194_v53  ;;  %v7892_v7 = vadd.f32 %v7718_v24, %v6577_v26  ;;  %v6406_v62 = vpop.f32.mrf.mxu1  ;;  %v9380_v24 = vsel %vm9247_vm6, %v9377_v10, %v9379_v51 }
 0x967   : > { %v6578_v0 = vadd.f32 %v6406_v62, %v16553_v18 }
 0x968   : > { %v10470_v19 = vmax.f32 %v10334_v43, 0.0  ;;  %v9215_v22 = vadd.f32 %v9041_v56, %v7892_v7  ;;  %v8528_v43 = vshrl.u32 %v15994_v3, 16  ;;  %v8531_v7 = vshll.u32 %v15994_v3, 16 }
 0x969   : > { %11805 = vmatmul.msk.bf16.gmra.mxu1 %vm1239_vm1, %v5900_v47 }
 0x96a   : > { %v10606_v27 = vpack.c.bf16 %v10470_v19, %v10470_v19  ;;  %v10055_v42 = vadd.f32 %v9881_v48, %v9215_v22  ;;  %v9884_v37 = vpop.f32.mrf.mxu0  ;;  %12147 = vmatmul.msk.bf16.gmra.mxu2 %vm1239_vm1, %v7215_v23  ;;  %12221 = vmatmul.msk.bf16.gmra.mxu3 %vm1239_vm1, %v8517_v21  ;;  %v8526_v48 = vsel %vm7924_vm5, %v8516_v60, %v8525_v35  ;;  %v8530_v21 = vrot.slane %v8528_v43, 2 }
 0x96b   : > { %v8533_v46 = vrot.slane %v8531_v7, 3  ;;  %v16558_v7 = vld [vmem:[#allocation43_spill] sm:$0xff] }
 0x96c   : > { %10743 = vst.msk [vmem:[%s14498_s21 + $0x1b8] sm:$0xf] %vm10632_vm7, %v10606_v27  ;;  %v10195_v52 = vmul.f32 %v15771_v25, %v10055_v42  ;;  %v7917_v27 = vld [vmem:[%s12740_s30 + $0x240] sm:$0x7] }
 0x96d   : > { %12295 = vmatmul.msk.bf16.gmra.mxu0 %vm1239_vm1, %v9378_v20  ;;  %v7721_v17 = vpop.f32.mrf.mxu2  ;;  %v9044_v31 = vpop.f32.mrf.mxu3 }
 0x96e   : > { %v10335_v1 = vadd.f32 %v15778_v12, %v10195_v52  ;;  %v7893_v33 = vadd.f32 %v7721_v17, %v6578_v0  ;;  %v6408_v45 = vpop.f32.mrf.mxu1  ;;  %v12675_v52 = vld [vmem:[%s12740_s30 + $0x228] sm:$0xff]  ;;  %v7218_v0 = vrot.slane %v15994_v3, 2 }
 0x96f   : > { %v6579_v54 = vadd.f32 %v6408_v45, %v16554_v13  ;;  %v5903_v18 = vrot.slane %v12675_v52, 2  ;;  %v6738_v13 = vld [vmem:[%s12740_s30 + $0x240] sm:$0x3] }
 0x970   : > { %v10471_v63 = vmax.f32 %v10335_v1, 0.0  ;;  %v9216_v4 = vadd.f32 %v9044_v31, %v7893_v33  ;;  %v8534_v1 = vor.u32 %v8533_v46, %v8530_v21  ;;  %v7922_v33 = vunpack.c.l.b16 %v7917_v27 }
 0x972   : > { %v10607_v16 = vpack.c.bf16 %v10471_v63, %v10471_v63  ;;  %v10056_v2 = vadd.f32 %v9884_v37, %v9216_v4  ;;  %v9886_v57 = vpop.f32.mrf.mxu0 }
 0x974   : > { %10744 = vst.msk [vmem:[%s14498_s21 + $0x1bc] sm:$0xf] %vm10632_vm7, %v10607_v16  ;;  %v10196_v32 = vmul.f32 %v15771_v25, %v10056_v2  ;;  %v5904_v16 = vsel %vm5769_vm4, %v5901_v58, %v5903_v18  ;;  %v7219_v2 = vsel %vm5769_vm4, %v7216_v29, %v7218_v0  ;;  %v7015_v58 = vunpack.c.l.b16 %v6738_v13 }
 0x975   : > { %v7723_v39 = vpop.f32.mrf.mxu2  ;;  %v9046_v15 = vpop.f32.mrf.mxu3 }
 0x976   : > { %v10336_v8 = vadd.f32 %v15778_v12, %v10196_v32  ;;  %v7894_v28 = vadd.f32 %v7723_v39, %v6579_v54  ;;  %v6411_v34 = vpop.f32.mrf.mxu1  ;;  %v8535_v32 = vsel %vm7924_vm5, %v8525_v35, %v8534_v1  ;;  %v7923_v54 = vpack.c.b16 %v7922_v33, %v7922_v33 }
 0x977   : > { %v6580_v60 = vadd.f32 %v6411_v34, %v16555_v49  ;;  %v16557_v34 = vld [vmem:[#allocation47_spill] sm:$0xff] }
 0x978   : > { %v10472_v6 = vmax.f32 %v10336_v8, 0.0  ;;  %v9217_v11 = vadd.f32 %v9046_v15, %v7894_v28  ;;  %v9382_v15 = vsel %vm9247_vm6, %v9379_v51, %v9381_v14 }
 0x979   : > { %11806 = vmatmul.msk.bf16.gmra.mxu1 %vm1239_vm1, %v5902_v61  ;;  %v8537_v61 = vshrl.u32 %v7923_v54, 16 }
 0x97a   : > { %v10608_v53 = vpack.c.bf16 %v10472_v6, %v10472_v6  ;;  %v10057_v30 = vadd.f32 %v9886_v57, %v9217_v11  ;;  %v9889_v26 = vpop.f32.mrf.mxu0  ;;  %12148 = vmatmul.msk.bf16.gmra.mxu2 %vm1239_vm1, %v7217_v44  ;;  %12222 = vmatmul.msk.bf16.gmra.mxu3 %vm1239_vm1, %v8526_v48  ;;  %v8540_v44 = vshll.u32 %v7923_v54, 16 }
 0x97c   : > { %10745 = vst.msk [vmem:[%s14498_s21 + $0x1c0] sm:$0xf] %vm10632_vm7, %v10608_v53  ;;  %v10197_v38 = vmul.f32 %v15771_v25, %v10057_v30  ;;  %v7084_v53 = vpack.c.b16 %v7015_v58, %v7015_v58 }
 0x97d   : > { %12296 = vmatmul.msk.bf16.gmra.mxu0 %vm1239_vm1, %v9380_v24  ;;  %v7726_v56 = vpop.f32.mrf.mxu2  ;;  %v9049_v47 = vpop.f32.mrf.mxu3  ;;  %v8539_v24 = vrot.slane %v8537_v61, 2 }
 0x97e   : > { %v10337_v10 = vadd.f32 %v15778_v12, %v10197_v38  ;;  %v7895_v62 = vadd.f32 %v7726_v56, %v6580_v60  ;;  %v6413_v23 = vpop.f32.mrf.mxu1  ;;  %v8542_v38 = vrot.slane %v8540_v44, 3  ;;  %v5905_v56 = vrot.slane %v16558_v7, 2 }
 0x97f   : > { %v6581_v17 = vadd.f32 %v6413_v23, %v16556_v36 }
 0x980   : > { %v10473_v19 = vmax.f32 %v10337_v10, 0.0  ;;  %v9218_v22 = vadd.f32 %v9049_v47, %v7895_v62  ;;  %v7220_v10 = vrot.slane %v7084_v53, 2  ;;  %v16559_v47 = vld [vmem:[#allocation45_spill] sm:$0xff] }
 0x982   : > { %v10609_v42 = vpack.c.bf16 %v10473_v19, %v10473_v19  ;;  %v10058_v37 = vadd.f32 %v9889_v26, %v9218_v22  ;;  %v9891_v20 = vpop.f32.mrf.mxu0  ;;  %v8543_v19 = vor.u32 %v8542_v38, %v8539_v24  ;;  %v7221_v52 = vsel %vm5769_vm4, %v7218_v0, %v7220_v10 }
 0x984   : > { %10746 = vst.msk [vmem:[%s14498_s21 + $0x1c4] sm:$0xf] %vm10632_vm7, %v10609_v42  ;;  %v10198_v9 = vmul.f32 %v15771_v25, %v10058_v37  ;;  %v9383_v42 = vrot.slane %v7923_v54, 3 }
 0x985   : > { %v7728_v31 = vpop.f32.mrf.mxu2  ;;  %v9051_v4 = vpop.f32.mrf.mxu3 }
 0x986   : > { %v10338_v45 = vadd.f32 %v15778_v12, %v10198_v9  ;;  %v7896_v63 = vadd.f32 %v7728_v31, %v6581_v17  ;;  %v6416_v50 = vpop.f32.mrf.mxu1  ;;  %v8544_v17 = vsel %vm7924_vm5, %v8534_v1, %v8543_v19 }
 0x987   : > { %v6582_v35 = vadd.f32 %v6416_v50, %v16557_v34 }
 0x988   : > { %v10474_v57 = vmax.f32 %v10338_v45, 0.0  ;;  %v9219_v40 = vadd.f32 %v9051_v4, %v7896_v63  ;;  %v9384_v63 = vsel %vm9247_vm6, %v9381_v14, %v9383_v42 }
 0x989   : > { %11807 = vmatmul.msk.bf16.gmra.mxu1 %vm1239_vm1, %v5904_v16 }
 0x98a   : > { %v10610_v39 = vpack.c.bf16 %v10474_v57, %v10474_v57  ;;  %v10059_v8 = vadd.f32 %v9891_v20, %v9219_v40  ;;  %v9894_v28 = vpop.f32.mrf.mxu0  ;;  %12149 = vmatmul.msk.bf16.gmra.mxu2 %vm1239_vm1, %v7219_v2  ;;  %12223 = vmatmul.msk.bf16.gmra.mxu3 %vm1239_vm1, %v8535_v32  ;;  %v5906_v20 = vsel %vm5769_vm4, %v5903_v18, %v5905_v56 }
 0x98c   : > { %10747 = vst.msk [vmem:[%s14498_s21 + $0x1c8] sm:$0xf] %vm10632_vm7, %v10610_v39  ;;  %v10199_v29 = vmul.f32 %v15771_v25, %v10059_v8 }
 0x98d   : > { %12297 = vmatmul.msk.bf16.gmra.mxu0 %vm1239_vm1, %v9382_v15  ;;  %v7731_v6 = vpop.f32.mrf.mxu2  ;;  %v9054_v3 = vpop.f32.mrf.mxu3 }
 0x98e   : > { %v10339_v11 = vadd.f32 %v15778_v12, %v10199_v29  ;;  %v7897_v48 = vadd.f32 %v7731_v6, %v6582_v35  ;;  %v6418_v51 = vpop.f32.mrf.mxu1 }
 0x98f   : > { %v6583_v23 = vadd.f32 %v6418_v51, %v16559_v47 }
 0x990   : > { %v10475_v30 = vmax.f32 %v10339_v11, 0.0  ;;  %v9220_v26 = vadd.f32 %v9054_v3, %v7897_v48 }
 0x992   : > { %v10611_v49 = vpack.c.bf16 %v10475_v30, %v10475_v30  ;;  %v10060_v60 = vadd.f32 %v9894_v28, %v9220_v26  ;;  %v9896_v43 = vpop.f32.mrf.mxu0 }
 0x994   : > { %10748 = vst.msk [vmem:[%s14498_s21 + $0x1cc] sm:$0xf] %vm10632_vm7, %v10611_v49  ;;  %v10200_v62 = vmul.f32 %v15771_v25, %v10060_v60 }
 0x995   : > { %v7733_v22 = vpop.f32.mrf.mxu2  ;;  %v9056_v27 = vpop.f32.mrf.mxu3 }
 0x996   : > { %v10340_v21 = vadd.f32 %v15778_v12, %v10200_v62  ;;  %v7898_v46 = vadd.f32 %v7733_v22, %v6583_v23  ;;  %v6421_v37 = vpop.f32.mrf.mxu1 }
 0x997   : > { %v6584_v0 = vadd.f32 %v6421_v37, %v14274_v59 }
 0x998   : > { %v10476_v9 = vmax.f32 %v10340_v21, 0.0  ;;  %v9221_v36 = vadd.f32 %v9056_v27, %v7898_v46  ;;  %v16560_v27 = vld [vmem:[#allocation51_spill] sm:$0xff] }
 0x999   : > { %11808 = vmatmul.msk.bf16.gmra.mxu1 %vm1239_vm1, %v5906_v20 }
 0x99a   : > { %v10612_v33 = vpack.c.bf16 %v10476_v9, %v10476_v9  ;;  %v10061_v31 = vadd.f32 %v9896_v43, %v9221_v36  ;;  %v9899_v45 = vpop.f32.mrf.mxu0  ;;  %12150 = vmatmul.msk.bf16.gmra.mxu2 %vm1239_vm1, %v7221_v52  ;;  %12224 = vmatmul.msk.bf16.gmra.mxu3 %vm1239_vm1, %v8544_v17 }
 0x99c   : > { %10749 = vst.msk [vmem:[%s14498_s21 + $0x1d0] sm:$0xf] %vm10632_vm7, %v10612_v33  ;;  %v10201_v18 = vmul.f32 %v15771_v25, %v10061_v31 }
 0x99d   : > { %12298 = vmatmul.msk.bf16.gmra.mxu0 %vm1239_vm1, %v9384_v63  ;;  %v7736_v1 = vpop.f32.mrf.mxu2  ;;  %v9059_v16 = vpop.f32.mrf.mxu3 }
 0x99e   : > { %v10341_v4 = vadd.f32 %v15778_v12, %v10201_v18  ;;  %v7899_v50 = vadd.f32 %v7736_v1, %v6584_v0  ;;  %v6423_v2 = vpop.f32.mrf.mxu1  ;;  %v16561_v18 = vld [vmem:[#allocation54_spill] sm:$0xff] }
 0x99f   : > { %v6585_v59 = vadd.f32 %v6423_v2, %v14289_v5  ;;  %v16082_v1 = vld [vmem:[%s16157_s3] ss:$0 sm:$0xff] }
 0x9a0   : > { %v10477_v57 = vmax.f32 %v10341_v4, 0.0  ;;  %v9222_v40 = vadd.f32 %v9059_v16, %v7899_v50 }
 0x9a2   : > { %v10613_v14 = vpack.c.bf16 %v10477_v57, %v10477_v57  ;;  %v10062_v32 = vadd.f32 %v9899_v45, %v9222_v40  ;;  %v9901_v13 = vpop.f32.mrf.mxu0 }
 0x9a4   : > { %10750 = vst.msk [vmem:[%s14498_s21 + $0x1d4] sm:$0xf] %vm10632_vm7, %v10613_v14  ;;  %v10202_v54 = vmul.f32 %v15771_v25, %v10062_v32 }
 0x9a5   : > { %v7738_v39 = vpop.f32.mrf.mxu2  ;;  %v9061_v15 = vpop.f32.mrf.mxu3 }
 0x9a6   : > { %v10342_v8 = vadd.f32 %v15778_v12, %v10202_v54  ;;  %v7900_v28 = vadd.f32 %v7738_v39, %v6585_v59  ;;  %v6426_v58 = vpop.f32.mrf.mxu1  ;;  %v16562_v59 = vld [vmem:[#allocation49_spill] sm:$0xff] }
 0x9a7   : > { %v6586_v11 = vadd.f32 %v6426_v58, %v14296_v55 }
 0x9a8   : > { %v10478_v29 = vmax.f32 %v10342_v8, 0.0  ;;  %v9223_v34 = vadd.f32 %v9061_v15, %v7900_v28 }
 0x9aa   : > { %v10614_v35 = vpack.c.bf16 %v10478_v29, %v10478_v29  ;;  %v10063_v61 = vadd.f32 %v9901_v13, %v9223_v34  ;;  %v9904_v44 = vpop.f32.mrf.mxu0 }
 0x9ac   : > { %10751 = vst.msk [vmem:[%s14498_s21 + $0x1d8] sm:$0xf] %vm10632_vm7, %v10614_v35  ;;  %v10203_v6 = vmul.f32 %v15771_v25, %v10063_v61 }
 0x9ad   : > { %v7741_v48 = vpop.f32.mrf.mxu2  ;;  %v9064_v51 = vpop.f32.mrf.mxu3 }
 0x9ae   : > { %v10343_v5 = vadd.f32 %v15778_v12, %v10203_v6  ;;  %v7901_v3 = vadd.f32 %v7741_v48, %v6586_v11  ;;  %v6428_v53 = vpop.f32.mrf.mxu1  ;;  %v16563_v48 = vld [vmem:[#allocation57_spill] sm:$0xff] }
 0x9af   : > { %v6587_v43 = vadd.f32 %v6428_v53, %v14311_v41 }
 0x9b0   : > { %v10479_v30 = vmax.f32 %v10343_v5, 0.0  ;;  %v9224_v26 = vadd.f32 %v9064_v51, %v7901_v3 }
 0x9b2   : > { %v10615_v24 = vpack.c.bf16 %v10479_v30, %v10479_v30  ;;  %v10064_v38 = vadd.f32 %v9904_v44, %v9224_v26  ;;  %v9906_v49 = vpop.f32.mrf.mxu0 }
 0x9b4   : > { %10752 = vst.msk [vmem:[%s14498_s21 + $0x1dc] sm:$0xf] %vm10632_vm7, %v10615_v24  ;;  %v10204_v60 = vmul.f32 %v15771_v25, %v10064_v38 }
 0x9b5   : > { %v7743_v7 = vpop.f32.mrf.mxu2  ;;  %v9066_v10 = vpop.f32.mrf.mxu3 }
 0x9b6   : > { %v10344_v55 = vadd.f32 %v15778_v12, %v10204_v60  ;;  %v7902_v56 = vadd.f32 %v7743_v7, %v6587_v43  ;;  %v6431_v62 = vpop.f32.mrf.mxu1 }
 0x9b7   : > { %v6588_v42 = vadd.f32 %v6431_v62, %v16560_v27 }
 0x9b8   : > { %v10480_v47 = vmax.f32 %v10344_v55, 0.0  ;;  %v9225_v23 = vadd.f32 %v9066_v10, %v7902_v56  ;;  %v16564_v55 = vld [vmem:[#allocation60_spill] sm:$0xff] }
 0x9ba   : > { %v10616_v19 = vpack.c.bf16 %v10480_v47, %v10480_v47  ;;  %v10065_v22 = vadd.f32 %v9906_v49, %v9225_v23  ;;  %v9909_v21 = vpop.f32.mrf.mxu0 }
 0x9bc   : > { %10753 = vst.msk [vmem:[%s14498_s21 + $0x1e0] sm:$0xf] %vm10632_vm7, %v10616_v19  ;;  %v10205_v46 = vmul.f32 %v15771_v25, %v10065_v22  ;;  %v16075_v25 = vld [vmem:[%s16156_s2] ss:$0 sm:$0xff] }
 0x9bd   : > { %v7746_v37 = vpop.f32.mrf.mxu2  ;;  %v9069_v52 = vpop.f32.mrf.mxu3 }
 0x9be   : > { %v10345_v41 = vadd.f32 %v15778_v12, %v10205_v46  ;;  %v7903_v20 = vadd.f32 %v7746_v37, %v6588_v42  ;;  %v6433_v9 = vpop.f32.mrf.mxu1 }
 0x9bf   : > { %v6589_v12 = vadd.f32 %v6433_v9, %v16561_v18 }
 0x9c0   : > { %v10481_v36 = vmax.f32 %v10345_v41, 0.0  ;;  %v9226_v17 = vadd.f32 %v9069_v52, %v7903_v20  ;;  %v16565_v41 = vld [vmem:[#allocation63_spill] sm:$0xff] }
 0x9c2   : > { %v10617_v33 = vpack.c.bf16 %v10481_v36, %v10481_v36  ;;  %v10066_v31 = vadd.f32 %v9909_v21, %v9226_v17  ;;  %v9911_v45 = vpop.f32.mrf.mxu0 }
 0x9c4   : > { %10754 = vst.msk [vmem:[%s14498_s21 + $0x1e4] sm:$0xf] %vm10632_vm7, %v10617_v33  ;;  %v10206_v63 = vmul.f32 %v16075_v25, %v10066_v31 }
 0x9c5   : > { %v7748_v0 = vpop.f32.mrf.mxu2  ;;  %v9071_v16 = vpop.f32.mrf.mxu3 }
 0x9c6   : > { %v10346_v4 = vadd.f32 %v16082_v1, %v10206_v63  ;;  %v7904_v50 = vadd.f32 %v7748_v0, %v6589_v12  ;;  %v6436_v2 = vpop.f32.mrf.mxu1 }
 0x9c7   : > { %v6590_v39 = vadd.f32 %v6436_v2, %v16562_v59 }
 0x9c8   : > { %v10482_v57 = vmax.f32 %v10346_v4, 0.0  ;;  %v9227_v40 = vadd.f32 %v9071_v16, %v7904_v50  ;;  %v16566_v4 = vld [vmem:[#allocation66_spill] sm:$0xff] }
 0x9ca   : > { %v10618_v14 = vpack.c.bf16 %v10482_v57, %v10482_v57  ;;  %v10067_v32 = vadd.f32 %v9911_v45, %v9227_v40  ;;  %v9914_v13 = vpop.f32.mrf.mxu0 }
 0x9cc   : > { %10755 = vst.msk [vmem:[%s14498_s21 + $0x1e8] sm:$0xf] %vm10632_vm7, %v10618_v14  ;;  %v10207_v54 = vmul.f32 %v16075_v25, %v10067_v32 }
 0x9cd   : > { %v7751_v8 = vpop.f32.mrf.mxu2  ;;  %v9074_v58 = vpop.f32.mrf.mxu3 }
 0x9ce   : > { %v10347_v28 = vadd.f32 %v16082_v1, %v10207_v54  ;;  %v7905_v15 = vadd.f32 %v7751_v8, %v6590_v39  ;;  %v6438_v29 = vpop.f32.mrf.mxu1 }
 0x9cf   : > { %v6591_v5 = vadd.f32 %v6438_v29, %v16563_v48 }
 0x9d0   : > { %v10483_v34 = vmax.f32 %v10347_v28, 0.0  ;;  %v9228_v35 = vadd.f32 %v9074_v58, %v7905_v15  ;;  %v16567_v28 = vld [vmem:[#allocation69_spill] sm:$0xff] }
 0x9d2   : > { %v10619_v61 = vpack.c.bf16 %v10483_v34, %v10483_v34  ;;  %v10068_v44 = vadd.f32 %v9914_v13, %v9228_v35  ;;  %v9916_v6 = vpop.f32.mrf.mxu0 }
 0x9d4   : > { %10756 = vst.msk [vmem:[%s14498_s21 + $0x1ec] sm:$0xf] %vm10632_vm7, %v10619_v61  ;;  %v10208_v11 = vmul.f32 %v16075_v25, %v10068_v44 }
 0x9d5   : > { %v7753_v3 = vpop.f32.mrf.mxu2  ;;  %v9076_v30 = vpop.f32.mrf.mxu3 }
 0x9d6   : > { %v10348_v51 = vadd.f32 %v16082_v1, %v10208_v11  ;;  %v7906_v53 = vadd.f32 %v7753_v3, %v6591_v5  ;;  %v6441_v26 = vpop.f32.mrf.mxu1 }
 0x9d7   : > { %v6592_v56 = vadd.f32 %v6441_v26, %v16564_v55 }
 0x9d8   : > { %v10484_v24 = vmax.f32 %v10348_v51, 0.0  ;;  %v9229_v38 = vadd.f32 %v9076_v30, %v7906_v53  ;;  %v16568_v51 = vld [vmem:[#allocation72_spill] sm:$0xff] }
 0x9da   : > { %v10620_v49 = vpack.c.bf16 %v10484_v24, %v10484_v24  ;;  %v10069_v60 = vadd.f32 %v9916_v6, %v9229_v38  ;;  %v9919_v43 = vpop.f32.mrf.mxu0 }
 0x9dc   : > { %10757 = vst.msk [vmem:[%s14498_s21 + $0x1f0] sm:$0xf] %vm10632_vm7, %v10620_v49  ;;  %v10209_v7 = vmul.f32 %v16075_v25, %v10069_v60 }
 0x9dd   : > { %v7756_v10 = vpop.f32.mrf.mxu2  ;;  %v9079_v23 = vpop.f32.mrf.mxu3 }
 0x9de   : > { %v10349_v62 = vadd.f32 %v16082_v1, %v10209_v7  ;;  %v7907_v47 = vadd.f32 %v7756_v10, %v6592_v56  ;;  %v6443_v19 = vpop.f32.mrf.mxu1 }
 0x9df   : > { %v6593_v20 = vadd.f32 %v6443_v19, %v16565_v41 }
 0x9e0   : > { %v10485_v22 = vmax.f32 %v10349_v62, 0.0  ;;  %v9230_v21 = vadd.f32 %v9079_v23, %v7907_v47  ;;  %v16569_v62 = vld [vmem:[#allocation75_spill] sm:$0xff] }
 0x9e2   : > { %v10621_v46 = vpack.c.bf16 %v10485_v22, %v10485_v22  ;;  %v10070_v27 = vadd.f32 %v9919_v43, %v9230_v21  ;;  %v9921_v42 = vpop.f32.mrf.mxu0 }
 0x9e4   : > { %10758 = vst.msk [vmem:[%s14498_s21 + $0x1f4] sm:$0xf] %vm10632_vm7, %v10621_v46  ;;  %v10210_v37 = vmul.f32 %v16075_v25, %v10070_v27 }
 0x9e5   : > { %v7758_v52 = vpop.f32.mrf.mxu2  ;;  %v9081_v17 = vpop.f32.mrf.mxu3 }
 0x9e6   : > { %v10350_v9 = vadd.f32 %v16082_v1, %v10210_v37  ;;  %v7908_v36 = vadd.f32 %v7758_v52, %v6593_v20  ;;  %v6446_v33 = vpop.f32.mrf.mxu1 }
 0x9e7   : > { %v6594_v50 = vadd.f32 %v6446_v33, %v16566_v4 }
 0x9e8   : > { %v10486_v31 = vmax.f32 %v10350_v9, 0.0  ;;  %v9231_v45 = vadd.f32 %v9081_v17, %v7908_v36  ;;  %v16570_v9 = vld [vmem:[#allocation78_spill] sm:$0xff] }
 0x9ea   : > { %v10622_v63 = vpack.c.bf16 %v10486_v31, %v10486_v31  ;;  %v10071_v18 = vadd.f32 %v9921_v42, %v9231_v45  ;;  %v9924_v12 = vpop.f32.mrf.mxu0 }
 0x9ec   : > { %10759 = vst.msk [vmem:[%s14498_s21 + $0x1f8] sm:$0xf] %vm10632_vm7, %v10622_v63  ;;  %v10211_v0 = vmul.f32 %v16075_v25, %v10071_v18 }
 0x9ed   : > { %v7761_v16 = vpop.f32.mrf.mxu2  ;;  %v9084_v40 = vpop.f32.mrf.mxu3 }
 0x9ee   : > { %v10351_v2 = vadd.f32 %v16082_v1, %v10211_v0  ;;  %v7909_v57 = vadd.f32 %v7761_v16, %v6594_v50  ;;  %v6448_v14 = vpop.f32.mrf.mxu1  ;;  %v16571_v16 = vld [vmem:[#allocation81_spill] sm:$0xff] }
 0x9ef   : > { %v6595_v15 = vadd.f32 %v6448_v14, %v16567_v28 }
 0x9f0   : > { %v10487_v32 = vmax.f32 %v10351_v2, 0.0  ;;  %v9232_v13 = vadd.f32 %v9084_v40, %v7909_v57 }
 0x9f2   : > { %v10623_v54 = vpack.c.bf16 %v10487_v32, %v10487_v32  ;;  %v10072_v59 = vadd.f32 %v9924_v12, %v9232_v13  ;;  %v9926_v39 = vpop.f32.mrf.mxu0 }
 0x9f4   : > { %10760 = vst.msk [vmem:[%s14498_s21 + $0x1fc] sm:$0xf] %vm10632_vm7, %v10623_v54  ;;  %v10212_v8 = vmul.f32 %v16075_v25, %v10072_v59 }
 0x9f5   : > { %v7763_v58 = vpop.f32.mrf.mxu2  ;;  %v9086_v35 = vpop.f32.mrf.mxu3 }
 0x9f6   : > { %v10352_v29 = vadd.f32 %v16082_v1, %v10212_v8  ;;  %v7910_v34 = vadd.f32 %v7763_v58, %v6595_v15  ;;  %v6451_v61 = vpop.f32.mrf.mxu1  ;;  %v16572_v58 = vld [vmem:[#allocation84_spill] sm:$0xff] }
 0x9f7   : > { %v6596_v53 = vadd.f32 %v6451_v61, %v16568_v51 }
 0x9f8   : > { %v10488_v44 = vmax.f32 %v10352_v29, 0.0  ;;  %v9233_v6 = vadd.f32 %v9086_v35, %v7910_v34 }
 0x9fa   : > { %v10624_v11 = vpack.c.bf16 %v10488_v44, %v10488_v44  ;;  %v10073_v48 = vadd.f32 %v9926_v39, %v9233_v6  ;;  %v9929_v5 = vpop.f32.mrf.mxu0 }
 0x9fc   : > { %10761 = vst.msk [vmem:[%s14498_s21 + $0x200] sm:$0xf] %vm10632_vm7, %v10624_v11  ;;  %v10213_v3 = vmul.f32 %v16075_v25, %v10073_v48 }
 0x9fd   : > { %v7766_v30 = vpop.f32.mrf.mxu2  ;;  %v9089_v38 = vpop.f32.mrf.mxu3 }
 0x9fe   : > { %v10353_v26 = vadd.f32 %v16082_v1, %v10213_v3  ;;  %v7911_v24 = vadd.f32 %v7766_v30, %v6596_v53  ;;  %v6453_v49 = vpop.f32.mrf.mxu1  ;;  %v16573_v30 = vld [vmem:[#allocation87_spill] sm:$0xff] }
 0x9ff   : > { %v6597_v47 = vadd.f32 %v6453_v49, %v16569_v62 }
 0xa00   : > { %v10489_v60 = vmax.f32 %v10353_v26, 0.0  ;;  %v9234_v43 = vadd.f32 %v9089_v38, %v7911_v24 }
 0xa02   : > { %v10625_v7 = vpack.c.bf16 %v10489_v60, %v10489_v60  ;;  %v10074_v55 = vadd.f32 %v9929_v5, %v9234_v43  ;;  %v9931_v56 = vpop.f32.mrf.mxu0 }
 0xa04   : > { %10762 = vst.msk [vmem:[%s14498_s21 + $0x204] sm:$0xf] %vm10632_vm7, %v10625_v7  ;;  %v10214_v10 = vmul.f32 %v16075_v25, %v10074_v55 }
 0xa05   : > { %v7768_v23 = vpop.f32.mrf.mxu2  ;;  %v9091_v21 = vpop.f32.mrf.mxu3 }
 0xa06   : > { %v10354_v19 = vadd.f32 %v16082_v1, %v10214_v10  ;;  %v7912_v22 = vadd.f32 %v7768_v23, %v6597_v47  ;;  %v6456_v46 = vpop.f32.mrf.mxu1 }
 0xa07   : > { %v6598_v36 = vadd.f32 %v6456_v46, %v16570_v9 }
 0xa08   : > { %v10490_v27 = vmax.f32 %v10354_v19, 0.0  ;;  %v9235_v42 = vadd.f32 %v9091_v21, %v7912_v22 }
 0xa0a   : > { %v10626_v37 = vpack.c.bf16 %v10490_v27, %v10490_v27  ;;  %v10075_v41 = vadd.f32 %v9931_v56, %v9235_v42  ;;  %v9934_v20 = vpop.f32.mrf.mxu0 }
 0xa0c   : > { %10763 = vst.msk [vmem:[%s14498_s21 + $0x208] sm:$0xf] %vm10632_vm7, %v10626_v37  ;;  %v10215_v52 = vmul.f32 %v16075_v25, %v10075_v41 }
 0xa0d   : > { %v7771_v17 = vpop.f32.mrf.mxu2  ;;  %v9094_v45 = vpop.f32.mrf.mxu3 }
 0xa0e   : > { %v10355_v33 = vadd.f32 %v16082_v1, %v10215_v52  ;;  %v7913_v31 = vadd.f32 %v7771_v17, %v6598_v36  ;;  %v6458_v63 = vpop.f32.mrf.mxu1 }
 0xa0f   : > { %v6599_v2 = vadd.f32 %v6458_v63, %v16571_v16 }
 0xa10   : > { %v10491_v18 = vmax.f32 %v10355_v33, 0.0  ;;  %v9236_v12 = vadd.f32 %v9094_v45, %v7913_v31 }
 0xa12   : > { %v10627_v0 = vpack.c.bf16 %v10491_v18, %v10491_v18  ;;  %v10076_v4 = vadd.f32 %v9934_v20, %v9236_v12  ;;  %v9936_v57 = vpop.f32.mrf.mxu0 }
 0xa14   : > { %10764 = vst.msk [vmem:[%s14498_s21 + $0x20c] sm:$0xf] %vm10632_vm7, %v10627_v0  ;;  %v10216_v50 = vmul.f32 %v16075_v25, %v10076_v4 }
 0xa15   : > { %v7773_v40 = vpop.f32.mrf.mxu2  ;;  %v9096_v13 = vpop.f32.mrf.mxu3 }
 0xa16   : > { %v10356_v14 = vadd.f32 %v16082_v1, %v10216_v50  ;;  %v7914_v32 = vadd.f32 %v7773_v40, %v6599_v2  ;;  %v6461_v54 = vpop.f32.mrf.mxu1 }
 0xa17   : > { %v6600_v29 = vadd.f32 %v6461_v54, %v16572_v58 }
 0xa18   : > { %v10492_v59 = vmax.f32 %v10356_v14, 0.0  ;;  %v9237_v39 = vadd.f32 %v9096_v13, %v7914_v32 }
 0xa1a   : > { %v10628_v8 = vpack.c.bf16 %v10492_v59, %v10492_v59  ;;  %v10077_v28 = vadd.f32 %v9936_v57, %v9237_v39  ;;  %v9939_v6 = vpop.f32.mrf.mxu0 }
 0xa1c   : > { %10765 = vst.msk [vmem:[%s14498_s21 + $0x210] sm:$0xf] %vm10632_vm7, %v10628_v8  ;;  %v10217_v15 = vmul.f32 %v16075_v25, %v10077_v28 }
 0xa1d   : > { %v7776_v34 = vpop.f32.mrf.mxu2  ;;  %v9099_v44 = vpop.f32.mrf.mxu3 }
 0xa1e   : > { %v10357_v35 = vadd.f32 %v16082_v1, %v10217_v15  ;;  %v7915_v61 = vadd.f32 %v7776_v34, %v6600_v29  ;;  %v6463_v5 = vpop.f32.mrf.mxu1 }
 0xa1f   : > { %v6601_v26 = vadd.f32 %v6463_v5, %v16573_v30 }
 0xa20   : > { %v10493_v11 = vmax.f32 %v10357_v35, 0.0  ;;  %v9238_v48 = vadd.f32 %v9099_v44, %v7915_v61 }
 0xa22   : > { %v10629_v3 = vpack.c.bf16 %v10493_v11, %v10493_v11  ;;  %v10078_v51 = vadd.f32 %v9939_v6, %v9238_v48  ;;  %v9941_v55 = vpop.f32.mrf.mxu0 }
 0xa24   : > { %10766 = vst.msk [vmem:[%s14498_s21 + $0x214] sm:$0xf] %vm10632_vm7, %v10629_v3  ;;  %v10218_v53 = vmul.f32 %v16075_v25, %v10078_v51 }
 0xa25   : > { %v7778_v24 = vpop.f32.mrf.mxu2  ;;  %v9101_v60 = vpop.f32.mrf.mxu3 }
 0xa26   : > { %v10358_v38 = vadd.f32 %v16082_v1, %v10218_v53  ;;  %v7916_v49 = vadd.f32 %v7778_v24, %v6601_v26 }
 0xa28   : > { %v10494_v43 = vmax.f32 %v10358_v38, 0.0  ;;  %v9239_v7 = vadd.f32 %v9101_v60, %v7916_v49 }
 0xa2a   : > { %v10630_v56 = vpack.c.bf16 %v10494_v43, %v10494_v43  ;;  %v10079_v10 = vadd.f32 %v9941_v55, %v9239_v7 }
 0xa2c   : > { %10767 = vst.msk [vmem:[%s14498_s21 + $0x218] sm:$0xf] %vm10632_vm7, %v10630_v56  ;;  %v10219_v62 = vmul.f32 %v16075_v25, %v10079_v10 }
 0xa2e   : > { %v10359_v47 = vadd.f32 %v16082_v1, %v10219_v62 }
 0xa30   : > { %v10495_v23 = vmax.f32 %v10359_v47, 0.0 }
 0xa32   : > { %v10631_v19 = vpack.c.bf16 %v10495_v23, %v10495_v23 }
 0xa34   : > { %10768 = vst.msk [vmem:[%s14498_s21 + $0x21c] sm:$0xf] %vm10632_vm7, %v10631_v19 }
 0xa35 PF: > { %s14_s15 = sadd.s32 1, %s12684_s15  }
 0xa36   : > { %p11_p4 = scmp.ge.s32.totalorder %s14_s15, 4  }
 0xa38   :  { %13 = sbr.rel (!%p11_p4) target bundleno = 1 (0x1), region = 74 }

</bundles_post_ra>
